<compile_context>
chip_gen: v6e
topology: v6e:2x2x1
jax: 0.10.0
libtpu: 0.0.40
codegen_flags: <defaults>
</compile_context>

<pallas_src>
import functools

import jax
import jax.numpy as jnp
from jax.experimental import pallas as pl
from jax.experimental.pallas import tpu as pltpu

H = 150          # hidden size, fixed by nn.Linear(150, 150) in the reference module
HP = 256         # hidden size zero-padded to a 128-aligned lane width


def seq2seq_kernel(src_ref, dec_ref,
                   e_wih, e_whh, e_bx, e_bhn,
                   fc_w, fc_b,
                   d_wih, d_whh, d_bx, d_bhn,
                   o_w, o_b,
                   out_ref, h_all_ref,
                   *, b, t_src, t_tgt, hp):
    dot = functools.partial(jnp.dot, preferred_element_type=jnp.float32)

    # ---- hoisted input-to-hidden projections: one MXU call per sequence,
    #      with b_ih (and b_hh for the r/z gates) pre-folded into the bias ----
    xp_enc = dot(src_ref[...], e_wih[...]) + e_bx[...]      # (T_src*B, 3*HP)
    xp_dec = dot(dec_ref[...], d_wih[...]) + d_bx[...]      # (T_tgt*B, 3*HP)

    # hoisted bias broadcasts (broadcast_in_dim is not CSE'd inside unrolled loops)
    e_bhn_b = jnp.broadcast_to(e_bhn[...], (b, hp))
    d_bhn_b = jnp.broadcast_to(d_bhn[...], (b, hp))

    def gru_step(xp_t, h, whh_ref, bhn_b):
        # single fused (B, HP) x (HP, 3*HP) matmul covers all three gates
        gh = dot(h, whh_ref[...])
        rz = jax.nn.sigmoid(xp_t[:, :2 * hp] + gh[:, :2 * hp])
        r = rz[:, :hp]
        z = rz[:, hp:]
        n = jnp.tanh(xp_t[:, 2 * hp:] + r * (gh[:, 2 * hp:] + bhn_b))
        return (1.0 - z) * n + z * h

    # ---- encoder: fully-unrolled recurrence, hidden state stays in vregs ----
    h = jnp.zeros((b, hp), jnp.float32)
    for t in range(t_src):
        h = gru_step(xp_enc[t * b:(t + 1) * b], h, e_whh, e_bhn_b)

    # ---- state = tanh(fc1(state)) ----
    h = jnp.tanh(dot(h, fc_w[...]) + fc_b[...])

    # ---- decoder: teacher-forced unroll; stash h_t, defer the output proj ----
    for t in range(t_tgt):
        h = gru_step(xp_dec[t * b:(t + 1) * b], h, d_whh, d_bhn_b)
        h_all_ref[pl.ds(t * b, b), :] = h

    # ---- deferred output projection: one bulk matmul + one lane-dense store ----
    out_ref[...] = dot(h_all_ref[...], o_w[...]) + o_b[...]


def _pad2(x, rows, cols):
    return jnp.pad(x, ((0, rows - x.shape[0]), (0, cols - x.shape[1])))


def pack_params(params, vp):
    """Fuse GRU gate weights along the output dim ([r|z|n]); zero-pad H->HP, V->vp."""
    emb = params['e_wih'].shape[1]

    def fuse_w(w3, rows):
        return jnp.concatenate([_pad2(w3[g], rows, HP) for g in range(3)], axis=1)

    def fuse_bx(bih, bhh):
        # r/z gates: b_ih + b_hh folded; n gate: only b_ih
        # (b_hn must stay inside the r * (W_hn h + b_hn) term)
        return jnp.concatenate([_pad2(bih[0] + bhh[0], 1, HP),
                                _pad2(bih[1] + bhh[1], 1, HP),
                                _pad2(bih[2], 1, HP)], axis=1)

    return dict(
        e_wih=fuse_w(params['e_wih'], emb),
        e_whh=fuse_w(params['e_whh'], HP),
        e_bx=fuse_bx(params['e_bih'], params['e_bhh']),
        e_bhn=_pad2(params['e_bhh'][2], 1, HP),
        fc_w=_pad2(params['fc_w'], HP, HP),
        fc_b=_pad2(params['fc_b'], 1, HP),
        d_wih=fuse_w(params['d_wih'], emb),
        d_whh=fuse_w(params['d_whh'], HP),
        d_bx=fuse_bx(params['d_bih'], params['d_bhh']),
        d_bhn=_pad2(params['d_bhh'][2], 1, HP),
        out_w=_pad2(params['out_w'], HP, vp),
        out_b=_pad2(params['out_b'], 1, vp),
    )


def seq2seq_forward(params, text, target):
    """Training-mode forward: returns logits of shape (B, T_tgt, output_dim)."""
    b, t_src = text.shape
    _, t_tgt = target.shape
    v_out = params['out_w'].shape[-1]
    vp = ((v_out + 127) // 128) * 128            # lane-dense output width

    pk = pack_params(params, vp)

    # glue: embedding lookups, time-major layout, flattened to (T*B, E)
    src = jnp.transpose(params['enc_emb'][text], (1, 0, 2)).reshape(t_src * b, -1)
    # decoder inputs: step 0 is the <start> token (id 1), then teacher forcing
    dec_tok = jnp.concatenate(
        [jnp.ones((b, 1), dtype=target.dtype), target[:, :-1]], axis=1)
    dec = jnp.transpose(params['dec_emb'][dec_tok], (1, 0, 2)).reshape(t_tgt * b, -1)

    args = (src, dec,
            pk['e_wih'], pk['e_whh'], pk['e_bx'], pk['e_bhn'],
            pk['fc_w'], pk['fc_b'],
            pk['d_wih'], pk['d_whh'], pk['d_bx'], pk['d_bhn'],
            pk['out_w'], pk['out_b'])

    kernel = functools.partial(seq2seq_kernel, b=b, t_src=t_src, t_tgt=t_tgt, hp=HP)
    vspec = pl.BlockSpec(memory_space=pltpu.MemorySpace.VMEM)
    out_flat = pl.pallas_call(
        kernel,
        out_shape=jax.ShapeDtypeStruct((t_tgt * b, vp), jnp.float32),
        in_specs=[vspec] * len(args),
        out_specs=vspec,
        scratch_shapes=[pltpu.VMEM((t_tgt * b, HP), jnp.float32)],
    )(*args)

    out = out_flat.reshape(t_tgt, b, vp)[:, :, :v_out]     # drop lane padding
    return jnp.transpose(out, (1, 0, 2))                   # (B, T_tgt, V)


def reference_forward(params, text, target):
    """Pure-JAX reference (same math, no Pallas / no padding) for correctness checks."""
    b, t_src = text.shape
    _, t_tgt = target.shape
    src = jnp.transpose(params['enc_emb'][text], (1, 0, 2))
    dec_tok = jnp.concatenate(
        [jnp.ones((b, 1), dtype=target.dtype), target[:, :-1]], axis=1)
    dec = jnp.transpose(params['dec_emb'][dec_tok], (1, 0, 2))

    def gru(x, h, wih, whh, bih, bhh):
        r = jax.nn.sigmoid(x @ wih[0] + bih[0] + h @ whh[0] + bhh[0])
        z = jax.nn.sigmoid(x @ wih[1] + bih[1] + h @ whh[1] + bhh[1])
        n = jnp.tanh(x @ wih[2] + bih[2] + r * (h @ whh[2] + bhh[2]))
        return (1.0 - z) * n + z * h

    h = jnp.zeros((b, H), jnp.float32)
    for t in range(t_src):
        h = gru(src[t], h, params['e_wih'], params['e_whh'],
                params['e_bih'], params['e_bhh'])
    h = jnp.tanh(h @ params['fc_w'] + params['fc_b'])
    outs = []
    for t in range(t_tgt):
        h = gru(dec[t], h, params['d_wih'], params['d_whh'],
                params['d_bih'], params['d_bhh'])
        outs.append(h @ params['out_w'] + params['out_b'])
    return jnp.transpose(jnp.stack(outs, 0), (1, 0, 2))


def init_params(key, vocab_enc, vocab_dec, emb_dim, v_out):
    ks = jax.random.split(key, 14)
    s = 1.0 / (H ** 0.5)

    def u(k, shape, scale):
        return jax.random.uniform(k, shape, jnp.float32, -scale, scale)

    return dict(
        enc_emb=u(ks[0], (vocab_enc, emb_dim), 0.1),
        dec_emb=u(ks[1], (vocab_dec, emb_dim), 0.1),
        e_wih=u(ks[2], (3, emb_dim, H), s),
        e_whh=u(ks[3], (3, H, H), s),
        e_bih=u(ks[4], (3, 1, H), s),
        e_bhh=u(ks[5], (3, 1, H), s),
        fc_w=u(ks[6], (H, H), s),
        fc_b=u(ks[7], (1, H), s),
        d_wih=u(ks[8], (3, emb_dim, H), s),
        d_whh=u(ks[9], (3, H, H), s),
        d_bih=u(ks[10], (3, 1, H), s),
        d_bhh=u(ks[11], (3, 1, H), s),
        out_w=u(ks[12], (H, v_out), s),
        out_b=u(ks[13], (1, v_out), s),
    )


if __name__ == "__main__":
    B, T_SRC, T_TGT = 2, 8, 6
    EMB = 32
    VOCAB_ENC, VOCAB_DEC = 100, 64   # decoder output_dim == decoder vocab == 64

    key = jax.random.PRNGKey(0)
    k_params, k_text, k_tgt = jax.random.split(key, 3)

    params = init_params(k_params, VOCAB_ENC, VOCAB_DEC, EMB, VOCAB_DEC)
    text = jax.random.randint(k_text, (B, T_SRC), 0, VOCAB_ENC, dtype=jnp.int32)
    target = jax.random.randint(k_tgt, (B, T_TGT), 0, VOCAB_DEC, dtype=jnp.int32)

    out = jax.block_until_ready(seq2seq_forward(params, text, target))
    ref = jax.block_until_ready(reference_forward(params, text, target))

    assert out.shape == (B, T_TGT, VOCAB_DEC), out.shape
    assert jnp.allclose(out, ref, rtol=2e-3, atol=2e-3), float(jnp.abs(out - ref).max())
    print("KERNEL_OK")
</pallas_src>

<mosaic_0001>
module attributes {stable_mosaic.version = 11 : i64} {
  func.func @seq2seq_kernel(%arg0: memref<16x32xf32, #tpu.memory_space<vmem>>, %arg1: memref<12x32xf32, #tpu.memory_space<vmem>>, %arg2: memref<32x768xf32, #tpu.memory_space<vmem>>, %arg3: memref<256x768xf32, #tpu.memory_space<vmem>>, %arg4: memref<1x768xf32, #tpu.memory_space<vmem>>, %arg5: memref<1x256xf32, #tpu.memory_space<vmem>>, %arg6: memref<256x256xf32, #tpu.memory_space<vmem>>, %arg7: memref<1x256xf32, #tpu.memory_space<vmem>>, %arg8: memref<32x768xf32, #tpu.memory_space<vmem>>, %arg9: memref<256x768xf32, #tpu.memory_space<vmem>>, %arg10: memref<1x768xf32, #tpu.memory_space<vmem>>, %arg11: memref<1x256xf32, #tpu.memory_space<vmem>>, %arg12: memref<256x128xf32, #tpu.memory_space<vmem>>, %arg13: memref<1x128xf32, #tpu.memory_space<vmem>>, %arg14: memref<12x128xf32, #tpu.memory_space<vmem>>, %arg15: memref<12x256xf32, #tpu.memory_space<vmem>>) attributes {dimension_semantics = [], scalar_prefetch = 0 : i64, scratch_operands = 1 : i64, tpu.core_type = #tpu.core_type<tc>} {
    %c0 = arith.constant 0 : index
    %c0_0 = arith.constant 0 : index
    %0 = vector.load %arg0[%c0, %c0_0] : memref<16x32xf32, #tpu.memory_space<vmem>>, vector<16x32xf32>
    %c0_1 = arith.constant 0 : index
    %c0_2 = arith.constant 0 : index
    %1 = vector.load %arg2[%c0_1, %c0_2] : memref<32x768xf32, #tpu.memory_space<vmem>>, vector<32x768xf32>
    %cst = arith.constant dense<0.000000e+00> : vector<16x768xf32>
    %2 = tpu.matmul %0, %1, %cst {dimension_numbers = #tpu.dot_dimension_numbers<[1], [0], [0], [1], [0, 0, 1, 1], [], []>} : vector<16x32xf32>, vector<32x768xf32>, vector<16x768xf32> -> vector<16x768xf32>
    %c0_3 = arith.constant 0 : index
    %c0_4 = arith.constant 0 : index
    %3 = vector.load %arg4[%c0_3, %c0_4] : memref<1x768xf32, #tpu.memory_space<vmem>>, vector<1x768xf32>
    %4 = vector.broadcast %3 : vector<1x768xf32> to vector<16x768xf32>
    %5 = arith.addf %2, %4 : vector<16x768xf32>
    %c0_5 = arith.constant 0 : index
    %c0_6 = arith.constant 0 : index
    %6 = vector.load %arg1[%c0_5, %c0_6] : memref<12x32xf32, #tpu.memory_space<vmem>>, vector<12x32xf32>
    %c0_7 = arith.constant 0 : index
    %c0_8 = arith.constant 0 : index
    %7 = vector.load %arg8[%c0_7, %c0_8] : memref<32x768xf32, #tpu.memory_space<vmem>>, vector<32x768xf32>
    %cst_9 = arith.constant dense<0.000000e+00> : vector<12x768xf32>
    %8 = tpu.matmul %6, %7, %cst_9 {dimension_numbers = #tpu.dot_dimension_numbers<[1], [0], [0], [1], [0, 0, 1, 1], [], []>} : vector<12x32xf32>, vector<32x768xf32>, vector<12x768xf32> -> vector<12x768xf32>
    %c0_10 = arith.constant 0 : index
    %c0_11 = arith.constant 0 : index
    %9 = vector.load %arg10[%c0_10, %c0_11] : memref<1x768xf32, #tpu.memory_space<vmem>>, vector<1x768xf32>
    %10 = vector.broadcast %9 : vector<1x768xf32> to vector<12x768xf32>
    %11 = arith.addf %8, %10 : vector<12x768xf32>
    %c0_12 = arith.constant 0 : index
    %c0_13 = arith.constant 0 : index
    %12 = vector.load %arg5[%c0_12, %c0_13] : memref<1x256xf32, #tpu.memory_space<vmem>>, vector<1x256xf32>
    %13 = vector.shape_cast %12 : vector<1x256xf32> to vector<1x256xf32>
    %14 = vector.broadcast %13 : vector<1x256xf32> to vector<2x256xf32>
    %c0_14 = arith.constant 0 : index
    %c0_15 = arith.constant 0 : index
    %15 = vector.load %arg11[%c0_14, %c0_15] : memref<1x256xf32, #tpu.memory_space<vmem>>, vector<1x256xf32>
    %16 = vector.shape_cast %15 : vector<1x256xf32> to vector<1x256xf32>
    %17 = vector.broadcast %16 : vector<1x256xf32> to vector<2x256xf32>
    %cst_16 = arith.constant 0.000000e+00 : f32
    %18 = vector.broadcast %cst_16 : f32 to vector<2x256xf32>
    %19 = vector.extract_strided_slice %5 {offsets = [0, 0], sizes = [2, 768], strides = [1, 1]} : vector<16x768xf32> to vector<2x768xf32>
    %c0_17 = arith.constant 0 : index
    %c0_18 = arith.constant 0 : index
    %20 = vector.load %arg3[%c0_17, %c0_18] : memref<256x768xf32, #tpu.memory_space<vmem>>, vector<256x768xf32>
    %cst_19 = arith.constant dense<0.000000e+00> : vector<2x768xf32>
    %21 = tpu.matmul %18, %20, %cst_19 {dimension_numbers = #tpu.dot_dimension_numbers<[1], [0], [0], [1], [0, 0, 1, 1], [], []>} : vector<2x256xf32>, vector<256x768xf32>, vector<2x768xf32> -> vector<2x768xf32>
    %22 = vector.extract_strided_slice %19 {offsets = [0, 0], sizes = [2, 512], strides = [1, 1]} : vector<2x768xf32> to vector<2x512xf32>
    %23 = vector.extract_strided_slice %21 {offsets = [0, 0], sizes = [2, 512], strides = [1, 1]} : vector<2x768xf32> to vector<2x512xf32>
    %24 = arith.addf %22, %23 : vector<2x512xf32>
    %25 = arith.negf %24 : vector<2x512xf32>
    %26 = math.exp %25 : vector<2x512xf32>
    %cst_20 = arith.constant 1.000000e+00 : f32
    %27 = vector.broadcast %cst_20 : f32 to vector<2x512xf32>
    %28 = arith.addf %27, %26 : vector<2x512xf32>
    %29 = arith.divf %27, %28 : vector<2x512xf32>
    %30 = vector.extract_strided_slice %29 {offsets = [0, 0], sizes = [2, 256], strides = [1, 1]} : vector<2x512xf32> to vector<2x256xf32>
    %31 = vector.extract_strided_slice %29 {offsets = [0, 256], sizes = [2, 256], strides = [1, 1]} : vector<2x512xf32> to vector<2x256xf32>
    %32 = vector.extract_strided_slice %19 {offsets = [0, 512], sizes = [2, 256], strides = [1, 1]} : vector<2x768xf32> to vector<2x256xf32>
    %33 = vector.extract_strided_slice %21 {offsets = [0, 512], sizes = [2, 256], strides = [1, 1]} : vector<2x768xf32> to vector<2x256xf32>
    %34 = arith.addf %33, %14 : vector<2x256xf32>
    %35 = arith.mulf %30, %34 : vector<2x256xf32>
    %36 = arith.addf %32, %35 : vector<2x256xf32>
    %37 = math.tanh %36 : vector<2x256xf32>
    %cst_21 = arith.constant 1.000000e+00 : f32
    %38 = vector.broadcast %cst_21 : f32 to vector<2x256xf32>
    %39 = arith.subf %38, %31 : vector<2x256xf32>
    %40 = arith.mulf %39, %37 : vector<2x256xf32>
    %41 = arith.mulf %31, %18 : vector<2x256xf32>
    %42 = arith.addf %40, %41 : vector<2x256xf32>
    %43 = vector.extract_strided_slice %5 {offsets = [2, 0], sizes = [2, 768], strides = [1, 1]} : vector<16x768xf32> to vector<2x768xf32>
    %c0_22 = arith.constant 0 : index
    %c0_23 = arith.constant 0 : index
    %44 = vector.load %arg3[%c0_22, %c0_23] : memref<256x768xf32, #tpu.memory_space<vmem>>, vector<256x768xf32>
    %cst_24 = arith.constant dense<0.000000e+00> : vector<2x768xf32>
    %45 = tpu.matmul %42, %44, %cst_24 {dimension_numbers = #tpu.dot_dimension_numbers<[1], [0], [0], [1], [0, 0, 1, 1], [], []>} : vector<2x256xf32>, vector<256x768xf32>, vector<2x768xf32> -> vector<2x768xf32>
    %46 = vector.extract_strided_slice %43 {offsets = [0, 0], sizes = [2, 512], strides = [1, 1]} : vector<2x768xf32> to vector<2x512xf32>
    %47 = vector.extract_strided_slice %45 {offsets = [0, 0], sizes = [2, 512], strides = [1, 1]} : vector<2x768xf32> to vector<2x512xf32>
    %48 = arith.addf %46, %47 : vector<2x512xf32>
    %49 = arith.negf %48 : vector<2x512xf32>
    %50 = math.exp %49 : vector<2x512xf32>
    %cst_25 = arith.constant 1.000000e+00 : f32
    %51 = vector.broadcast %cst_25 : f32 to vector<2x512xf32>
    %52 = arith.addf %51, %50 : vector<2x512xf32>
    %53 = arith.divf %51, %52 : vector<2x512xf32>
    %54 = vector.extract_strided_slice %53 {offsets = [0, 0], sizes = [2, 256], strides = [1, 1]} : vector<2x512xf32> to vector<2x256xf32>
    %55 = vector.extract_strided_slice %53 {offsets = [0, 256], sizes = [2, 256], strides = [1, 1]} : vector<2x512xf32> to vector<2x256xf32>
    %56 = vector.extract_strided_slice %43 {offsets = [0, 512], sizes = [2, 256], strides = [1, 1]} : vector<2x768xf32> to vector<2x256xf32>
    %57 = vector.extract_strided_slice %45 {offsets = [0, 512], sizes = [2, 256], strides = [1, 1]} : vector<2x768xf32> to vector<2x256xf32>
    %58 = arith.addf %57, %14 : vector<2x256xf32>
    %59 = arith.mulf %54, %58 : vector<2x256xf32>
    %60 = arith.addf %56, %59 : vector<2x256xf32>
    %61 = math.tanh %60 : vector<2x256xf32>
    %cst_26 = arith.constant 1.000000e+00 : f32
    %62 = vector.broadcast %cst_26 : f32 to vector<2x256xf32>
    %63 = arith.subf %62, %55 : vector<2x256xf32>
    %64 = arith.mulf %63, %61 : vector<2x256xf32>
    %65 = arith.mulf %55, %42 : vector<2x256xf32>
    %66 = arith.addf %64, %65 : vector<2x256xf32>
    %67 = vector.extract_strided_slice %5 {offsets = [4, 0], sizes = [2, 768], strides = [1, 1]} : vector<16x768xf32> to vector<2x768xf32>
    %c0_27 = arith.constant 0 : index
    %c0_28 = arith.constant 0 : index
    %68 = vector.load %arg3[%c0_27, %c0_28] : memref<256x768xf32, #tpu.memory_space<vmem>>, vector<256x768xf32>
    %cst_29 = arith.constant dense<0.000000e+00> : vector<2x768xf32>
    %69 = tpu.matmul %66, %68, %cst_29 {dimension_numbers = #tpu.dot_dimension_numbers<[1], [0], [0], [1], [0, 0, 1, 1], [], []>} : vector<2x256xf32>, vector<256x768xf32>, vector<2x768xf32> -> vector<2x768xf32>
    %70 = vector.extract_strided_slice %67 {offsets = [0, 0], sizes = [2, 512], strides = [1, 1]} : vector<2x768xf32> to vector<2x512xf32>
    %71 = vector.extract_strided_slice %69 {offsets = [0, 0], sizes = [2, 512], strides = [1, 1]} : vector<2x768xf32> to vector<2x512xf32>
    %72 = arith.addf %70, %71 : vector<2x512xf32>
    %73 = arith.negf %72 : vector<2x512xf32>
    %74 = math.exp %73 : vector<2x512xf32>
    %cst_30 = arith.constant 1.000000e+00 : f32
    %75 = vector.broadcast %cst_30 : f32 to vector<2x512xf32>
    %76 = arith.addf %75, %74 : vector<2x512xf32>
    %77 = arith.divf %75, %76 : vector<2x512xf32>
    %78 = vector.extract_strided_slice %77 {offsets = [0, 0], sizes = [2, 256], strides = [1, 1]} : vector<2x512xf32> to vector<2x256xf32>
    %79 = vector.extract_strided_slice %77 {offsets = [0, 256], sizes = [2, 256], strides = [1, 1]} : vector<2x512xf32> to vector<2x256xf32>
    %80 = vector.extract_strided_slice %67 {offsets = [0, 512], sizes = [2, 256], strides = [1, 1]} : vector<2x768xf32> to vector<2x256xf32>
    %81 = vector.extract_strided_slice %69 {offsets = [0, 512], sizes = [2, 256], strides = [1, 1]} : vector<2x768xf32> to vector<2x256xf32>
    %82 = arith.addf %81, %14 : vector<2x256xf32>
    %83 = arith.mulf %78, %82 : vector<2x256xf32>
    %84 = arith.addf %80, %83 : vector<2x256xf32>
    %85 = math.tanh %84 : vector<2x256xf32>
    %cst_31 = arith.constant 1.000000e+00 : f32
    %86 = vector.broadcast %cst_31 : f32 to vector<2x256xf32>
    %87 = arith.subf %86, %79 : vector<2x256xf32>
    %88 = arith.mulf %87, %85 : vector<2x256xf32>
    %89 = arith.mulf %79, %66 : vector<2x256xf32>
    %90 = arith.addf %88, %89 : vector<2x256xf32>
    %91 = vector.extract_strided_slice %5 {offsets = [6, 0], sizes = [2, 768], strides = [1, 1]} : vector<16x768xf32> to vector<2x768xf32>
    %c0_32 = arith.constant 0 : index
    %c0_33 = arith.constant 0 : index
    %92 = vector.load %arg3[%c0_32, %c0_33] : memref<256x768xf32, #tpu.memory_space<vmem>>, vector<256x768xf32>
    %cst_34 = arith.constant dense<0.000000e+00> : vector<2x768xf32>
    %93 = tpu.matmul %90, %92, %cst_34 {dimension_numbers = #tpu.dot_dimension_numbers<[1], [0], [0], [1], [0, 0, 1, 1], [], []>} : vector<2x256xf32>, vector<256x768xf32>, vector<2x768xf32> -> vector<2x768xf32>
    %94 = vector.extract_strided_slice %91 {offsets = [0, 0], sizes = [2, 512], strides = [1, 1]} : vector<2x768xf32> to vector<2x512xf32>
    %95 = vector.extract_strided_slice %93 {offsets = [0, 0], sizes = [2, 512], strides = [1, 1]} : vector<2x768xf32> to vector<2x512xf32>
    %96 = arith.addf %94, %95 : vector<2x512xf32>
    %97 = arith.negf %96 : vector<2x512xf32>
    %98 = math.exp %97 : vector<2x512xf32>
    %cst_35 = arith.constant 1.000000e+00 : f32
    %99 = vector.broadcast %cst_35 : f32 to vector<2x512xf32>
    %100 = arith.addf %99, %98 : vector<2x512xf32>
    %101 = arith.divf %99, %100 : vector<2x512xf32>
    %102 = vector.extract_strided_slice %101 {offsets = [0, 0], sizes = [2, 256], strides = [1, 1]} : vector<2x512xf32> to vector<2x256xf32>
    %103 = vector.extract_strided_slice %101 {offsets = [0, 256], sizes = [2, 256], strides = [1, 1]} : vector<2x512xf32> to vector<2x256xf32>
    %104 = vector.extract_strided_slice %91 {offsets = [0, 512], sizes = [2, 256], strides = [1, 1]} : vector<2x768xf32> to vector<2x256xf32>
    %105 = vector.extract_strided_slice %93 {offsets = [0, 512], sizes = [2, 256], strides = [1, 1]} : vector<2x768xf32> to vector<2x256xf32>
    %106 = arith.addf %105, %14 : vector<2x256xf32>
    %107 = arith.mulf %102, %106 : vector<2x256xf32>
    %108 = arith.addf %104, %107 : vector<2x256xf32>
    %109 = math.tanh %108 : vector<2x256xf32>
    %cst_36 = arith.constant 1.000000e+00 : f32
    %110 = vector.broadcast %cst_36 : f32 to vector<2x256xf32>
    %111 = arith.subf %110, %103 : vector<2x256xf32>
    %112 = arith.mulf %111, %109 : vector<2x256xf32>
    %113 = arith.mulf %103, %90 : vector<2x256xf32>
    %114 = arith.addf %112, %113 : vector<2x256xf32>
    %115 = vector.extract_strided_slice %5 {offsets = [8, 0], sizes = [2, 768], strides = [1, 1]} : vector<16x768xf32> to vector<2x768xf32>
    %c0_37 = arith.constant 0 : index
    %c0_38 = arith.constant 0 : index
    %116 = vector.load %arg3[%c0_37, %c0_38] : memref<256x768xf32, #tpu.memory_space<vmem>>, vector<256x768xf32>
    %cst_39 = arith.constant dense<0.000000e+00> : vector<2x768xf32>
    %117 = tpu.matmul %114, %116, %cst_39 {dimension_numbers = #tpu.dot_dimension_numbers<[1], [0], [0], [1], [0, 0, 1, 1], [], []>} : vector<2x256xf32>, vector<256x768xf32>, vector<2x768xf32> -> vector<2x768xf32>
    %118 = vector.extract_strided_slice %115 {offsets = [0, 0], sizes = [2, 512], strides = [1, 1]} : vector<2x768xf32> to vector<2x512xf32>
    %119 = vector.extract_strided_slice %117 {offsets = [0, 0], sizes = [2, 512], strides = [1, 1]} : vector<2x768xf32> to vector<2x512xf32>
    %120 = arith.addf %118, %119 : vector<2x512xf32>
    %121 = arith.negf %120 : vector<2x512xf32>
    %122 = math.exp %121 : vector<2x512xf32>
    %cst_40 = arith.constant 1.000000e+00 : f32
    %123 = vector.broadcast %cst_40 : f32 to vector<2x512xf32>
    %124 = arith.addf %123, %122 : vector<2x512xf32>
    %125 = arith.divf %123, %124 : vector<2x512xf32>
    %126 = vector.extract_strided_slice %125 {offsets = [0, 0], sizes = [2, 256], strides = [1, 1]} : vector<2x512xf32> to vector<2x256xf32>
    %127 = vector.extract_strided_slice %125 {offsets = [0, 256], sizes = [2, 256], strides = [1, 1]} : vector<2x512xf32> to vector<2x256xf32>
    %128 = vector.extract_strided_slice %115 {offsets = [0, 512], sizes = [2, 256], strides = [1, 1]} : vector<2x768xf32> to vector<2x256xf32>
    %129 = vector.extract_strided_slice %117 {offsets = [0, 512], sizes = [2, 256], strides = [1, 1]} : vector<2x768xf32> to vector<2x256xf32>
    %130 = arith.addf %129, %14 : vector<2x256xf32>
    %131 = arith.mulf %126, %130 : vector<2x256xf32>
    %132 = arith.addf %128, %131 : vector<2x256xf32>
    %133 = math.tanh %132 : vector<2x256xf32>
    %cst_41 = arith.constant 1.000000e+00 : f32
    %134 = vector.broadcast %cst_41 : f32 to vector<2x256xf32>
    %135 = arith.subf %134, %127 : vector<2x256xf32>
    %136 = arith.mulf %135, %133 : vector<2x256xf32>
    %137 = arith.mulf %127, %114 : vector<2x256xf32>
    %138 = arith.addf %136, %137 : vector<2x256xf32>
    %139 = vector.extract_strided_slice %5 {offsets = [10, 0], sizes = [2, 768], strides = [1, 1]} : vector<16x768xf32> to vector<2x768xf32>
    %c0_42 = arith.constant 0 : index
    %c0_43 = arith.constant 0 : index
    %140 = vector.load %arg3[%c0_42, %c0_43] : memref<256x768xf32, #tpu.memory_space<vmem>>, vector<256x768xf32>
    %cst_44 = arith.constant dense<0.000000e+00> : vector<2x768xf32>
    %141 = tpu.matmul %138, %140, %cst_44 {dimension_numbers = #tpu.dot_dimension_numbers<[1], [0], [0], [1], [0, 0, 1, 1], [], []>} : vector<2x256xf32>, vector<256x768xf32>, vector<2x768xf32> -> vector<2x768xf32>
    %142 = vector.extract_strided_slice %139 {offsets = [0, 0], sizes = [2, 512], strides = [1, 1]} : vector<2x768xf32> to vector<2x512xf32>
    %143 = vector.extract_strided_slice %141 {offsets = [0, 0], sizes = [2, 512], strides = [1, 1]} : vector<2x768xf32> to vector<2x512xf32>
    %144 = arith.addf %142, %143 : vector<2x512xf32>
    %145 = arith.negf %144 : vector<2x512xf32>
    %146 = math.exp %145 : vector<2x512xf32>
    %cst_45 = arith.constant 1.000000e+00 : f32
    %147 = vector.broadcast %cst_45 : f32 to vector<2x512xf32>
    %148 = arith.addf %147, %146 : vector<2x512xf32>
    %149 = arith.divf %147, %148 : vector<2x512xf32>
    %150 = vector.extract_strided_slice %149 {offsets = [0, 0], sizes = [2, 256], strides = [1, 1]} : vector<2x512xf32> to vector<2x256xf32>
    %151 = vector.extract_strided_slice %149 {offsets = [0, 256], sizes = [2, 256], strides = [1, 1]} : vector<2x512xf32> to vector<2x256xf32>
    %152 = vector.extract_strided_slice %139 {offsets = [0, 512], sizes = [2, 256], strides = [1, 1]} : vector<2x768xf32> to vector<2x256xf32>
    %153 = vector.extract_strided_slice %141 {offsets = [0, 512], sizes = [2, 256], strides = [1, 1]} : vector<2x768xf32> to vector<2x256xf32>
    %154 = arith.addf %153, %14 : vector<2x256xf32>
    %155 = arith.mulf %150, %154 : vector<2x256xf32>
    %156 = arith.addf %152, %155 : vector<2x256xf32>
    %157 = math.tanh %156 : vector<2x256xf32>
    %cst_46 = arith.constant 1.000000e+00 : f32
    %158 = vector.broadcast %cst_46 : f32 to vector<2x256xf32>
    %159 = arith.subf %158, %151 : vector<2x256xf32>
    %160 = arith.mulf %159, %157 : vector<2x256xf32>
    %161 = arith.mulf %151, %138 : vector<2x256xf32>
    %162 = arith.addf %160, %161 : vector<2x256xf32>
    %163 = vector.extract_strided_slice %5 {offsets = [12, 0], sizes = [2, 768], strides = [1, 1]} : vector<16x768xf32> to vector<2x768xf32>
    %c0_47 = arith.constant 0 : index
    %c0_48 = arith.constant 0 : index
    %164 = vector.load %arg3[%c0_47, %c0_48] : memref<256x768xf32, #tpu.memory_space<vmem>>, vector<256x768xf32>
    %cst_49 = arith.constant dense<0.000000e+00> : vector<2x768xf32>
    %165 = tpu.matmul %162, %164, %cst_49 {dimension_numbers = #tpu.dot_dimension_numbers<[1], [0], [0], [1], [0, 0, 1, 1], [], []>} : vector<2x256xf32>, vector<256x768xf32>, vector<2x768xf32> -> vector<2x768xf32>
    %166 = vector.extract_strided_slice %163 {offsets = [0, 0], sizes = [2, 512], strides = [1, 1]} : vector<2x768xf32> to vector<2x512xf32>
    %167 = vector.extract_strided_slice %165 {offsets = [0, 0], sizes = [2, 512], strides = [1, 1]} : vector<2x768xf32> to vector<2x512xf32>
    %168 = arith.addf %166, %167 : vector<2x512xf32>
    %169 = arith.negf %168 : vector<2x512xf32>
    %170 = math.exp %169 : vector<2x512xf32>
    %cst_50 = arith.constant 1.000000e+00 : f32
    %171 = vector.broadcast %cst_50 : f32 to vector<2x512xf32>
    %172 = arith.addf %171, %170 : vector<2x512xf32>
    %173 = arith.divf %171, %172 : vector<2x512xf32>
    %174 = vector.extract_strided_slice %173 {offsets = [0, 0], sizes = [2, 256], strides = [1, 1]} : vector<2x512xf32> to vector<2x256xf32>
    %175 = vector.extract_strided_slice %173 {offsets = [0, 256], sizes = [2, 256], strides = [1, 1]} : vector<2x512xf32> to vector<2x256xf32>
    %176 = vector.extract_strided_slice %163 {offsets = [0, 512], sizes = [2, 256], strides = [1, 1]} : vector<2x768xf32> to vector<2x256xf32>
    %177 = vector.extract_strided_slice %165 {offsets = [0, 512], sizes = [2, 256], strides = [1, 1]} : vector<2x768xf32> to vector<2x256xf32>
    %178 = arith.addf %177, %14 : vector<2x256xf32>
    %179 = arith.mulf %174, %178 : vector<2x256xf32>
    %180 = arith.addf %176, %179 : vector<2x256xf32>
    %181 = math.tanh %180 : vector<2x256xf32>
    %cst_51 = arith.constant 1.000000e+00 : f32
    %182 = vector.broadcast %cst_51 : f32 to vector<2x256xf32>
    %183 = arith.subf %182, %175 : vector<2x256xf32>
    %184 = arith.mulf %183, %181 : vector<2x256xf32>
    %185 = arith.mulf %175, %162 : vector<2x256xf32>
    %186 = arith.addf %184, %185 : vector<2x256xf32>
    %187 = vector.extract_strided_slice %5 {offsets = [14, 0], sizes = [2, 768], strides = [1, 1]} : vector<16x768xf32> to vector<2x768xf32>
    %c0_52 = arith.constant 0 : index
    %c0_53 = arith.constant 0 : index
    %188 = vector.load %arg3[%c0_52, %c0_53] : memref<256x768xf32, #tpu.memory_space<vmem>>, vector<256x768xf32>
    %cst_54 = arith.constant dense<0.000000e+00> : vector<2x768xf32>
    %189 = tpu.matmul %186, %188, %cst_54 {dimension_numbers = #tpu.dot_dimension_numbers<[1], [0], [0], [1], [0, 0, 1, 1], [], []>} : vector<2x256xf32>, vector<256x768xf32>, vector<2x768xf32> -> vector<2x768xf32>
    %190 = vector.extract_strided_slice %187 {offsets = [0, 0], sizes = [2, 512], strides = [1, 1]} : vector<2x768xf32> to vector<2x512xf32>
    %191 = vector.extract_strided_slice %189 {offsets = [0, 0], sizes = [2, 512], strides = [1, 1]} : vector<2x768xf32> to vector<2x512xf32>
    %192 = arith.addf %190, %191 : vector<2x512xf32>
    %193 = arith.negf %192 : vector<2x512xf32>
    %194 = math.exp %193 : vector<2x512xf32>
    %cst_55 = arith.constant 1.000000e+00 : f32
    %195 = vector.broadcast %cst_55 : f32 to vector<2x512xf32>
    %196 = arith.addf %195, %194 : vector<2x512xf32>
    %197 = arith.divf %195, %196 : vector<2x512xf32>
    %198 = vector.extract_strided_slice %197 {offsets = [0, 0], sizes = [2, 256], strides = [1, 1]} : vector<2x512xf32> to vector<2x256xf32>
    %199 = vector.extract_strided_slice %197 {offsets = [0, 256], sizes = [2, 256], strides = [1, 1]} : vector<2x512xf32> to vector<2x256xf32>
    %200 = vector.extract_strided_slice %187 {offsets = [0, 512], sizes = [2, 256], strides = [1, 1]} : vector<2x768xf32> to vector<2x256xf32>
    %201 = vector.extract_strided_slice %189 {offsets = [0, 512], sizes = [2, 256], strides = [1, 1]} : vector<2x768xf32> to vector<2x256xf32>
    %202 = arith.addf %201, %14 : vector<2x256xf32>
    %203 = arith.mulf %198, %202 : vector<2x256xf32>
    %204 = arith.addf %200, %203 : vector<2x256xf32>
    %205 = math.tanh %204 : vector<2x256xf32>
    %cst_56 = arith.constant 1.000000e+00 : f32
    %206 = vector.broadcast %cst_56 : f32 to vector<2x256xf32>
    %207 = arith.subf %206, %199 : vector<2x256xf32>
    %208 = arith.mulf %207, %205 : vector<2x256xf32>
    %209 = arith.mulf %199, %186 : vector<2x256xf32>
    %210 = arith.addf %208, %209 : vector<2x256xf32>
    %c0_57 = arith.constant 0 : index
    %c0_58 = arith.constant 0 : index
    %211 = vector.load %arg6[%c0_57, %c0_58] : memref<256x256xf32, #tpu.memory_space<vmem>>, vector<256x256xf32>
    %cst_59 = arith.constant dense<0.000000e+00> : vector<2x256xf32>
    %212 = tpu.matmul %210, %211, %cst_59 {dimension_numbers = #tpu.dot_dimension_numbers<[1], [0], [0], [1], [0, 0, 1, 1], [], []>} : vector<2x256xf32>, vector<256x256xf32>, vector<2x256xf32> -> vector<2x256xf32>
    %c0_60 = arith.constant 0 : index
    %c0_61 = arith.constant 0 : index
    %213 = vector.load %arg7[%c0_60, %c0_61] : memref<1x256xf32, #tpu.memory_space<vmem>>, vector<1x256xf32>
    %214 = vector.broadcast %213 : vector<1x256xf32> to vector<2x256xf32>
    %215 = arith.addf %212, %214 : vector<2x256xf32>
    %216 = math.tanh %215 : vector<2x256xf32>
    %217 = vector.extract_strided_slice %11 {offsets = [0, 0], sizes = [2, 768], strides = [1, 1]} : vector<12x768xf32> to vector<2x768xf32>
    %c0_62 = arith.constant 0 : index
    %c0_63 = arith.constant 0 : index
    %218 = vector.load %arg9[%c0_62, %c0_63] : memref<256x768xf32, #tpu.memory_space<vmem>>, vector<256x768xf32>
    %cst_64 = arith.constant dense<0.000000e+00> : vector<2x768xf32>
    %219 = tpu.matmul %216, %218, %cst_64 {dimension_numbers = #tpu.dot_dimension_numbers<[1], [0], [0], [1], [0, 0, 1, 1], [], []>} : vector<2x256xf32>, vector<256x768xf32>, vector<2x768xf32> -> vector<2x768xf32>
    %220 = vector.extract_strided_slice %217 {offsets = [0, 0], sizes = [2, 512], strides = [1, 1]} : vector<2x768xf32> to vector<2x512xf32>
    %221 = vector.extract_strided_slice %219 {offsets = [0, 0], sizes = [2, 512], strides = [1, 1]} : vector<2x768xf32> to vector<2x512xf32>
    %222 = arith.addf %220, %221 : vector<2x512xf32>
    %223 = arith.negf %222 : vector<2x512xf32>
    %224 = math.exp %223 : vector<2x512xf32>
    %cst_65 = arith.constant 1.000000e+00 : f32
    %225 = vector.broadcast %cst_65 : f32 to vector<2x512xf32>
    %226 = arith.addf %225, %224 : vector<2x512xf32>
    %227 = arith.divf %225, %226 : vector<2x512xf32>
    %228 = vector.extract_strided_slice %227 {offsets = [0, 0], sizes = [2, 256], strides = [1, 1]} : vector<2x512xf32> to vector<2x256xf32>
    %229 = vector.extract_strided_slice %227 {offsets = [0, 256], sizes = [2, 256], strides = [1, 1]} : vector<2x512xf32> to vector<2x256xf32>
    %230 = vector.extract_strided_slice %217 {offsets = [0, 512], sizes = [2, 256], strides = [1, 1]} : vector<2x768xf32> to vector<2x256xf32>
    %231 = vector.extract_strided_slice %219 {offsets = [0, 512], sizes = [2, 256], strides = [1, 1]} : vector<2x768xf32> to vector<2x256xf32>
    %232 = arith.addf %231, %17 : vector<2x256xf32>
    %233 = arith.mulf %228, %232 : vector<2x256xf32>
    %234 = arith.addf %230, %233 : vector<2x256xf32>
    %235 = math.tanh %234 : vector<2x256xf32>
    %cst_66 = arith.constant 1.000000e+00 : f32
    %236 = vector.broadcast %cst_66 : f32 to vector<2x256xf32>
    %237 = arith.subf %236, %229 : vector<2x256xf32>
    %238 = arith.mulf %237, %235 : vector<2x256xf32>
    %239 = arith.mulf %229, %216 : vector<2x256xf32>
    %240 = arith.addf %238, %239 : vector<2x256xf32>
    %c0_67 = arith.constant 0 : index
    %c0_68 = arith.constant 0 : index
    %241 = vector.load %arg15[%c0_67, %c0_68] : memref<12x256xf32, #tpu.memory_space<vmem>>, vector<2x256xf32>
    tpu.vector_store %arg15[%c0_67, %c0_68], %240 {strides = array<i32>} : memref<12x256xf32, #tpu.memory_space<vmem>>, vector<2x256xf32>,
    %242 = vector.extract_strided_slice %11 {offsets = [2, 0], sizes = [2, 768], strides = [1, 1]} : vector<12x768xf32> to vector<2x768xf32>
    %c0_69 = arith.constant 0 : index
    %c0_70 = arith.constant 0 : index
    %243 = vector.load %arg9[%c0_69, %c0_70] : memref<256x768xf32, #tpu.memory_space<vmem>>, vector<256x768xf32>
    %cst_71 = arith.constant dense<0.000000e+00> : vector<2x768xf32>
    %244 = tpu.matmul %240, %243, %cst_71 {dimension_numbers = #tpu.dot_dimension_numbers<[1], [0], [0], [1], [0, 0, 1, 1], [], []>} : vector<2x256xf32>, vector<256x768xf32>, vector<2x768xf32> -> vector<2x768xf32>
    %245 = vector.extract_strided_slice %242 {offsets = [0, 0], sizes = [2, 512], strides = [1, 1]} : vector<2x768xf32> to vector<2x512xf32>
    %246 = vector.extract_strided_slice %244 {offsets = [0, 0], sizes = [2, 512], strides = [1, 1]} : vector<2x768xf32> to vector<2x512xf32>
    %247 = arith.addf %245, %246 : vector<2x512xf32>
    %248 = arith.negf %247 : vector<2x512xf32>
    %249 = math.exp %248 : vector<2x512xf32>
    %cst_72 = arith.constant 1.000000e+00 : f32
    %250 = vector.broadcast %cst_72 : f32 to vector<2x512xf32>
    %251 = arith.addf %250, %249 : vector<2x512xf32>
    %252 = arith.divf %250, %251 : vector<2x512xf32>
    %253 = vector.extract_strided_slice %252 {offsets = [0, 0], sizes = [2, 256], strides = [1, 1]} : vector<2x512xf32> to vector<2x256xf32>
    %254 = vector.extract_strided_slice %252 {offsets = [0, 256], sizes = [2, 256], strides = [1, 1]} : vector<2x512xf32> to vector<2x256xf32>
    %255 = vector.extract_strided_slice %242 {offsets = [0, 512], sizes = [2, 256], strides = [1, 1]} : vector<2x768xf32> to vector<2x256xf32>
    %256 = vector.extract_strided_slice %244 {offsets = [0, 512], sizes = [2, 256], strides = [1, 1]} : vector<2x768xf32> to vector<2x256xf32>
    %257 = arith.addf %256, %17 : vector<2x256xf32>
    %258 = arith.mulf %253, %257 : vector<2x256xf32>
    %259 = arith.addf %255, %258 : vector<2x256xf32>
    %260 = math.tanh %259 : vector<2x256xf32>
    %cst_73 = arith.constant 1.000000e+00 : f32
    %261 = vector.broadcast %cst_73 : f32 to vector<2x256xf32>
    %262 = arith.subf %261, %254 : vector<2x256xf32>
    %263 = arith.mulf %262, %260 : vector<2x256xf32>
    %264 = arith.mulf %254, %240 : vector<2x256xf32>
    %265 = arith.addf %263, %264 : vector<2x256xf32>
    %c2 = arith.constant 2 : index
    %c0_74 = arith.constant 0 : index
    %266 = vector.load %arg15[%c2, %c0_74] : memref<12x256xf32, #tpu.memory_space<vmem>>, vector<2x256xf32>
    tpu.vector_store %arg15[%c2, %c0_74], %265 {strides = array<i32>} : memref<12x256xf32, #tpu.memory_space<vmem>>, vector<2x256xf32>,
    %267 = vector.extract_strided_slice %11 {offsets = [4, 0], sizes = [2, 768], strides = [1, 1]} : vector<12x768xf32> to vector<2x768xf32>
    %c0_75 = arith.constant 0 : index
    %c0_76 = arith.constant 0 : index
    %268 = vector.load %arg9[%c0_75, %c0_76] : memref<256x768xf32, #tpu.memory_space<vmem>>, vector<256x768xf32>
    %cst_77 = arith.constant dense<0.000000e+00> : vector<2x768xf32>
    %269 = tpu.matmul %265, %268, %cst_77 {dimension_numbers = #tpu.dot_dimension_numbers<[1], [0], [0], [1], [0, 0, 1, 1], [], []>} : vector<2x256xf32>, vector<256x768xf32>, vector<2x768xf32> -> vector<2x768xf32>
    %270 = vector.extract_strided_slice %267 {offsets = [0, 0], sizes = [2, 512], strides = [1, 1]} : vector<2x768xf32> to vector<2x512xf32>
    %271 = vector.extract_strided_slice %269 {offsets = [0, 0], sizes = [2, 512], strides = [1, 1]} : vector<2x768xf32> to vector<2x512xf32>
    %272 = arith.addf %270, %271 : vector<2x512xf32>
    %273 = arith.negf %272 : vector<2x512xf32>
    %274 = math.exp %273 : vector<2x512xf32>
    %cst_78 = arith.constant 1.000000e+00 : f32
    %275 = vector.broadcast %cst_78 : f32 to vector<2x512xf32>
    %276 = arith.addf %275, %274 : vector<2x512xf32>
    %277 = arith.divf %275, %276 : vector<2x512xf32>
    %278 = vector.extract_strided_slice %277 {offsets = [0, 0], sizes = [2, 256], strides = [1, 1]} : vector<2x512xf32> to vector<2x256xf32>
    %279 = vector.extract_strided_slice %277 {offsets = [0, 256], sizes = [2, 256], strides = [1, 1]} : vector<2x512xf32> to vector<2x256xf32>
    %280 = vector.extract_strided_slice %267 {offsets = [0, 512], sizes = [2, 256], strides = [1, 1]} : vector<2x768xf32> to vector<2x256xf32>
    %281 = vector.extract_strided_slice %269 {offsets = [0, 512], sizes = [2, 256], strides = [1, 1]} : vector<2x768xf32> to vector<2x256xf32>
    %282 = arith.addf %281, %17 : vector<2x256xf32>
    %283 = arith.mulf %278, %282 : vector<2x256xf32>
    %284 = arith.addf %280, %283 : vector<2x256xf32>
    %285 = math.tanh %284 : vector<2x256xf32>
    %cst_79 = arith.constant 1.000000e+00 : f32
    %286 = vector.broadcast %cst_79 : f32 to vector<2x256xf32>
    %287 = arith.subf %286, %279 : vector<2x256xf32>
    %288 = arith.mulf %287, %285 : vector<2x256xf32>
    %289 = arith.mulf %279, %265 : vector<2x256xf32>
    %290 = arith.addf %288, %289 : vector<2x256xf32>
    %c4 = arith.constant 4 : index
    %c0_80 = arith.constant 0 : index
    %291 = vector.load %arg15[%c4, %c0_80] : memref<12x256xf32, #tpu.memory_space<vmem>>, vector<2x256xf32>
    tpu.vector_store %arg15[%c4, %c0_80], %290 {strides = array<i32>} : memref<12x256xf32, #tpu.memory_space<vmem>>, vector<2x256xf32>,
    %292 = vector.extract_strided_slice %11 {offsets = [6, 0], sizes = [2, 768], strides = [1, 1]} : vector<12x768xf32> to vector<2x768xf32>
    %c0_81 = arith.constant 0 : index
    %c0_82 = arith.constant 0 : index
    %293 = vector.load %arg9[%c0_81, %c0_82] : memref<256x768xf32, #tpu.memory_space<vmem>>, vector<256x768xf32>
    %cst_83 = arith.constant dense<0.000000e+00> : vector<2x768xf32>
    %294 = tpu.matmul %290, %293, %cst_83 {dimension_numbers = #tpu.dot_dimension_numbers<[1], [0], [0], [1], [0, 0, 1, 1], [], []>} : vector<2x256xf32>, vector<256x768xf32>, vector<2x768xf32> -> vector<2x768xf32>
    %295 = vector.extract_strided_slice %292 {offsets = [0, 0], sizes = [2, 512], strides = [1, 1]} : vector<2x768xf32> to vector<2x512xf32>
    %296 = vector.extract_strided_slice %294 {offsets = [0, 0], sizes = [2, 512], strides = [1, 1]} : vector<2x768xf32> to vector<2x512xf32>
    %297 = arith.addf %295, %296 : vector<2x512xf32>
    %298 = arith.negf %297 : vector<2x512xf32>
    %299 = math.exp %298 : vector<2x512xf32>
    %cst_84 = arith.constant 1.000000e+00 : f32
    %300 = vector.broadcast %cst_84 : f32 to vector<2x512xf32>
    %301 = arith.addf %300, %299 : vector<2x512xf32>
    %302 = arith.divf %300, %301 : vector<2x512xf32>
    %303 = vector.extract_strided_slice %302 {offsets = [0, 0], sizes = [2, 256], strides = [1, 1]} : vector<2x512xf32> to vector<2x256xf32>
    %304 = vector.extract_strided_slice %302 {offsets = [0, 256], sizes = [2, 256], strides = [1, 1]} : vector<2x512xf32> to vector<2x256xf32>
    %305 = vector.extract_strided_slice %292 {offsets = [0, 512], sizes = [2, 256], strides = [1, 1]} : vector<2x768xf32> to vector<2x256xf32>
    %306 = vector.extract_strided_slice %294 {offsets = [0, 512], sizes = [2, 256], strides = [1, 1]} : vector<2x768xf32> to vector<2x256xf32>
    %307 = arith.addf %306, %17 : vector<2x256xf32>
    %308 = arith.mulf %303, %307 : vector<2x256xf32>
    %309 = arith.addf %305, %308 : vector<2x256xf32>
    %310 = math.tanh %309 : vector<2x256xf32>
    %cst_85 = arith.constant 1.000000e+00 : f32
    %311 = vector.broadcast %cst_85 : f32 to vector<2x256xf32>
    %312 = arith.subf %311, %304 : vector<2x256xf32>
    %313 = arith.mulf %312, %310 : vector<2x256xf32>
    %314 = arith.mulf %304, %290 : vector<2x256xf32>
    %315 = arith.addf %313, %314 : vector<2x256xf32>
    %c6 = arith.constant 6 : index
    %c0_86 = arith.constant 0 : index
    %316 = vector.load %arg15[%c6, %c0_86] : memref<12x256xf32, #tpu.memory_space<vmem>>, vector<2x256xf32>
    tpu.vector_store %arg15[%c6, %c0_86], %315 {strides = array<i32>} : memref<12x256xf32, #tpu.memory_space<vmem>>, vector<2x256xf32>,
    %317 = vector.extract_strided_slice %11 {offsets = [8, 0], sizes = [2, 768], strides = [1, 1]} : vector<12x768xf32> to vector<2x768xf32>
    %c0_87 = arith.constant 0 : index
    %c0_88 = arith.constant 0 : index
    %318 = vector.load %arg9[%c0_87, %c0_88] : memref<256x768xf32, #tpu.memory_space<vmem>>, vector<256x768xf32>
    %cst_89 = arith.constant dense<0.000000e+00> : vector<2x768xf32>
    %319 = tpu.matmul %315, %318, %cst_89 {dimension_numbers = #tpu.dot_dimension_numbers<[1], [0], [0], [1], [0, 0, 1, 1], [], []>} : vector<2x256xf32>, vector<256x768xf32>, vector<2x768xf32> -> vector<2x768xf32>
    %320 = vector.extract_strided_slice %317 {offsets = [0, 0], sizes = [2, 512], strides = [1, 1]} : vector<2x768xf32> to vector<2x512xf32>
    %321 = vector.extract_strided_slice %319 {offsets = [0, 0], sizes = [2, 512], strides = [1, 1]} : vector<2x768xf32> to vector<2x512xf32>
    %322 = arith.addf %320, %321 : vector<2x512xf32>
    %323 = arith.negf %322 : vector<2x512xf32>
    %324 = math.exp %323 : vector<2x512xf32>
    %cst_90 = arith.constant 1.000000e+00 : f32
    %325 = vector.broadcast %cst_90 : f32 to vector<2x512xf32>
    %326 = arith.addf %325, %324 : vector<2x512xf32>
    %327 = arith.divf %325, %326 : vector<2x512xf32>
    %328 = vector.extract_strided_slice %327 {offsets = [0, 0], sizes = [2, 256], strides = [1, 1]} : vector<2x512xf32> to vector<2x256xf32>
    %329 = vector.extract_strided_slice %327 {offsets = [0, 256], sizes = [2, 256], strides = [1, 1]} : vector<2x512xf32> to vector<2x256xf32>
    %330 = vector.extract_strided_slice %317 {offsets = [0, 512], sizes = [2, 256], strides = [1, 1]} : vector<2x768xf32> to vector<2x256xf32>
    %331 = vector.extract_strided_slice %319 {offsets = [0, 512], sizes = [2, 256], strides = [1, 1]} : vector<2x768xf32> to vector<2x256xf32>
    %332 = arith.addf %331, %17 : vector<2x256xf32>
    %333 = arith.mulf %328, %332 : vector<2x256xf32>
    %334 = arith.addf %330, %333 : vector<2x256xf32>
    %335 = math.tanh %334 : vector<2x256xf32>
    %cst_91 = arith.constant 1.000000e+00 : f32
    %336 = vector.broadcast %cst_91 : f32 to vector<2x256xf32>
    %337 = arith.subf %336, %329 : vector<2x256xf32>
    %338 = arith.mulf %337, %335 : vector<2x256xf32>
    %339 = arith.mulf %329, %315 : vector<2x256xf32>
    %340 = arith.addf %338, %339 : vector<2x256xf32>
    %c8 = arith.constant 8 : index
    %c0_92 = arith.constant 0 : index
    %341 = vector.load %arg15[%c8, %c0_92] : memref<12x256xf32, #tpu.memory_space<vmem>>, vector<2x256xf32>
    tpu.vector_store %arg15[%c8, %c0_92], %340 {strides = array<i32>} : memref<12x256xf32, #tpu.memory_space<vmem>>, vector<2x256xf32>,
    %342 = vector.extract_strided_slice %11 {offsets = [10, 0], sizes = [2, 768], strides = [1, 1]} : vector<12x768xf32> to vector<2x768xf32>
    %c0_93 = arith.constant 0 : index
    %c0_94 = arith.constant 0 : index
    %343 = vector.load %arg9[%c0_93, %c0_94] : memref<256x768xf32, #tpu.memory_space<vmem>>, vector<256x768xf32>
    %cst_95 = arith.constant dense<0.000000e+00> : vector<2x768xf32>
    %344 = tpu.matmul %340, %343, %cst_95 {dimension_numbers = #tpu.dot_dimension_numbers<[1], [0], [0], [1], [0, 0, 1, 1], [], []>} : vector<2x256xf32>, vector<256x768xf32>, vector<2x768xf32> -> vector<2x768xf32>
    %345 = vector.extract_strided_slice %342 {offsets = [0, 0], sizes = [2, 512], strides = [1, 1]} : vector<2x768xf32> to vector<2x512xf32>
    %346 = vector.extract_strided_slice %344 {offsets = [0, 0], sizes = [2, 512], strides = [1, 1]} : vector<2x768xf32> to vector<2x512xf32>
    %347 = arith.addf %345, %346 : vector<2x512xf32>
    %348 = arith.negf %347 : vector<2x512xf32>
    %349 = math.exp %348 : vector<2x512xf32>
    %cst_96 = arith.constant 1.000000e+00 : f32
    %350 = vector.broadcast %cst_96 : f32 to vector<2x512xf32>
    %351 = arith.addf %350, %349 : vector<2x512xf32>
    %352 = arith.divf %350, %351 : vector<2x512xf32>
    %353 = vector.extract_strided_slice %352 {offsets = [0, 0], sizes = [2, 256], strides = [1, 1]} : vector<2x512xf32> to vector<2x256xf32>
    %354 = vector.extract_strided_slice %352 {offsets = [0, 256], sizes = [2, 256], strides = [1, 1]} : vector<2x512xf32> to vector<2x256xf32>
    %355 = vector.extract_strided_slice %342 {offsets = [0, 512], sizes = [2, 256], strides = [1, 1]} : vector<2x768xf32> to vector<2x256xf32>
    %356 = vector.extract_strided_slice %344 {offsets = [0, 512], sizes = [2, 256], strides = [1, 1]} : vector<2x768xf32> to vector<2x256xf32>
    %357 = arith.addf %356, %17 : vector<2x256xf32>
    %358 = arith.mulf %353, %357 : vector<2x256xf32>
    %359 = arith.addf %355, %358 : vector<2x256xf32>
    %360 = math.tanh %359 : vector<2x256xf32>
    %cst_97 = arith.constant 1.000000e+00 : f32
    %361 = vector.broadcast %cst_97 : f32 to vector<2x256xf32>
    %362 = arith.subf %361, %354 : vector<2x256xf32>
    %363 = arith.mulf %362, %360 : vector<2x256xf32>
    %364 = arith.mulf %354, %340 : vector<2x256xf32>
    %365 = arith.addf %363, %364 : vector<2x256xf32>
    %c10 = arith.constant 10 : index
    %c0_98 = arith.constant 0 : index
    %366 = vector.load %arg15[%c10, %c0_98] : memref<12x256xf32, #tpu.memory_space<vmem>>, vector<2x256xf32>
    tpu.vector_store %arg15[%c10, %c0_98], %365 {strides = array<i32>} : memref<12x256xf32, #tpu.memory_space<vmem>>, vector<2x256xf32>,
    %c0_99 = arith.constant 0 : index
    %c0_100 = arith.constant 0 : index
    %367 = vector.load %arg15[%c0_99, %c0_100] : memref<12x256xf32, #tpu.memory_space<vmem>>, vector<12x256xf32>
    %c0_101 = arith.constant 0 : index
    %c0_102 = arith.constant 0 : index
    %368 = vector.load %arg12[%c0_101, %c0_102] : memref<256x128xf32, #tpu.memory_space<vmem>>, vector<256x128xf32>
    %cst_103 = arith.constant dense<0.000000e+00> : vector<12x128xf32>
    %369 = tpu.matmul %367, %368, %cst_103 {dimension_numbers = #tpu.dot_dimension_numbers<[1], [0], [0], [1], [0, 0, 1, 1], [], []>} : vector<12x256xf32>, vector<256x128xf32>, vector<12x128xf32> -> vector<12x128xf32>
    %c0_104 = arith.constant 0 : index
    %c0_105 = arith.constant 0 : index
    %370 = vector.load %arg13[%c0_104, %c0_105] : memref<1x128xf32, #tpu.memory_space<vmem>>, vector<1x128xf32>
    %371 = vector.broadcast %370 : vector<1x128xf32> to vector<12x128xf32>
    %372 = arith.addf %369, %371 : vector<12x128xf32>
    %c0_106 = arith.constant 0 : index
    %c0_107 = arith.constant 0 : index
    %373 = vector.load %arg14[%c0_106, %c0_107] : memref<12x128xf32, #tpu.memory_space<vmem>>, vector<12x128xf32>
    tpu.vector_store %arg14[%c0_106, %c0_107], %372 {strides = array<i32>} : memref<12x128xf32, #tpu.memory_space<vmem>>, vector<12x128xf32>,
    return
  }
}

</mosaic_0001>

<bundles_post_ra>
// kernel: tpu_custom_call.1
= control target key start
LH: loop header
LB: loop body
LE: loop exit
PB: predicated region body
PF: predicated region fallthrough
CT: control target
= control target key end

     0   :  { %19 = vsyncpa [#allocation4], 0  ;;  %s12968_s0 = inlined_call_operand.hbm [shape: f32[16,32], index: 0, kind: input, shape index: {}]   ;;  %s12969_s1 = inlined_call_operand.hbm [shape: f32[12,32], index: 1, kind: input, shape index: {}]   ;;  %s12970_s2 = inlined_call_operand.hbm [shape: f32[32,768], index: 2, kind: input, shape index: {}]   ;;  %s12971_s3 = inlined_call_operand.hbm [shape: f32[256,768], index: 3, kind: input, shape index: {}]   ;;  %s12972_s4 = inlined_call_operand.vmem [shape: f32[1,768], index: 4, kind: input, shape index: {}]   ;;  %s12973_s5 = inlined_call_operand.hbm [shape: f32[1,256], index: 5, kind: input, shape index: {}]   ;;  %s12974_s6 = inlined_call_operand.hbm [shape: f32[256,256], index: 6, kind: input, shape index: {}]   ;;  %s12975_s7 = inlined_call_operand.hbm [shape: f32[1,256], index: 7, kind: input, shape index: {}]   ;;  %s12976_s8 = inlined_call_operand.hbm [shape: f32[32,768], index: 8, kind: input, shape index: {}]   ;;  %s12977_s9 = inlined_call_operand.hbm [shape: f32[256,768], index: 9, kind: input, shape index: {}]   ;;  %s12978_s10 = inlined_call_operand.vmem [shape: f32[1,768], index: 10, kind: input, shape index: {}]   ;;  %s12979_s11 = inlined_call_operand.vmem [shape: f32[1,256], index: 11, kind: input, shape index: {}]   ;;  %s12980_s12 = inlined_call_operand.hbm [shape: f32[256,128], index: 12, kind: input, shape index: {}]   ;;  %s12981_s13 = inlined_call_operand.vmem [shape: f32[1,128], index: 13, kind: input, shape index: {}]   ;;  %s12982_s14 = inlined_call_operand.hbm [shape: f32[12,128], index: 14, kind: output, shape index: {}]  }
   0x1   :  { %20 = vsyncpa [#allocation7], 0 }
   0x2   :  { %21 = vsyncpa [#allocation10], 0 }
   0x3   :  { %22 = vsyncpa [#allocation13], 0 }
   0x4   :  { %23 = vsyncpa [#allocation16], 0 }
   0x5   :  { %24 = vsyncpa [#allocation19], 0 }
   0x6   :  { %25 = vsyncpa [#allocation5], 0  ;;  %s7547_s29 = smov [#allocation6]  }
   0x7   :  { %s43_s30 = sshll.u32 %s7547_s29, 4  ;;  %s44_s30 = int_to_ptr.vmem [resolvable:$true] %s43_s30 }
   0x8   :  { %s7321_s15 = scalar_lea.vmem %s44_s30, 256  ;;  %p7326_p1 = scmp.lt.s32.totalorder %s44_s30, %s44_s30 }
   0x9   :  { %p7322_p0 = scmp.ne.s32.totalorder %s44_s30, %s7321_s15  ;;  %p7327_p2 = scmp.lt.s32.totalorder %s7321_s15, %s7321_s15 }
   0xb   :  { %p7328_p3 = por %p7327_p2, %p7326_p1 }
   0xd   :  { %p7329_p4 = pnand %p7328_p3, %p7322_p0 }
   0xf   :  { %7332 = shalt.err (!%p7329_p4)
}
  0x10   :  { %s7548_s16 = smov 128   ;;  %s7549_s17 = smov 8  }
  0x11   :  { %49 = dma.hbm_to_vmem [thread:$0]  %s12969_s1, 256, %s44_s30, [#allocation7], %s7548_s16, %s7548_s16, %s7549_s17  }
  0x12   :  { %s7550_s20 = smov [#allocation9]   ;;  %s7551_s22 = smov [#allocation12]  }
  0x13   :  { %s67_s21 = sshll.u32 %s7550_s20, 4  ;;  %s91_s23 = sshll.u32 %s7551_s22, 4  ;;  %s68_s21 = int_to_ptr.vmem [resolvable:$true] %s67_s21  ;;  %s92_s23 = int_to_ptr.vmem [resolvable:$true] %s91_s23 }
  0x14   :  { %s7341_s24 = scalar_lea.vmem %s68_s21, 24576  ;;  %p7346_p6 = scmp.lt.s32.totalorder %s68_s21, %s68_s21 }
  0x15   :  { %p7342_p5 = scmp.ne.s32.totalorder %s68_s21, %s7341_s24  ;;  %p7347_p7 = scmp.lt.s32.totalorder %s7341_s24, %s7341_s24 }
  0x17   :  { %p7348_p8 = por %p7347_p7, %p7346_p6 }
  0x19   :  { %p7349_p9 = pnand %p7348_p8, %p7342_p5 }
  0x1b   :  { %7352 = shalt.err (!%p7349_p9)
}
  0x1c   :  { %s7552_s25 = smov 768   ;;  %s7553_s26 = smov 48  }
  0x1d   :  { %73 = dma.hbm_to_vmem [thread:$0]  %s12971_s3, 24576, %s68_s21, [#allocation10], %s7552_s25, %s7552_s25, %s7553_s26  }
  0x1e   :  { %s7361_s1 = scalar_lea.vmem %s92_s23, 8192  ;;  %p7366_p11 = scmp.lt.s32.totalorder %s92_s23, %s92_s23 }
  0x1f   :  { %p7362_p10 = scmp.ne.s32.totalorder %s92_s23, %s7361_s1  ;;  %p7367_p12 = scmp.lt.s32.totalorder %s7361_s1, %s7361_s1 }
  0x21   :  { %p7368_p13 = por %p7367_p12, %p7366_p11 }
  0x23   :  { %p7369_p0 = pnand %p7368_p13, %p7362_p10 }
  0x25   :  { %7372 = shalt.err (!%p7369_p0)
}
  0x26   :  { %s7554_s29 = smov 256   ;;  %s7555_s30 = smov 16  }
  0x27   :  { %97 = dma.hbm_to_vmem [thread:$0]  %s12974_s6, 8192, %s92_s23, [#allocation13], %s7554_s29, %s7554_s29, %s7555_s30  }
  0x28   :  { %s7556_s19 = smov [#allocation15]   ;;  %s7557_s22 = smov [#allocation3]  }
  0x29   :  { %s113_s20 = sshll.u32 %s7556_s19, 4  ;;  %s31_s24 = sshll.u32 %s7557_s22, 4  ;;  %s114_s20 = int_to_ptr.vmem [resolvable:$true] %s113_s20  ;;  %s32_s24 = int_to_ptr.vmem [resolvable:$true] %s31_s24 }
  0x2a   :  { %s7381_s3 = scalar_lea.vmem %s114_s20, 3072  ;;  %p7386_p2 = scmp.lt.s32.totalorder %s114_s20, %s114_s20 }
  0x2b   :  { %p7382_p1 = scmp.ne.s32.totalorder %s114_s20, %s7381_s3  ;;  %p7387_p3 = scmp.lt.s32.totalorder %s7381_s3, %s7381_s3 }
  0x2d   :  { %p7388_p4 = por %p7387_p3, %p7386_p2 }
  0x2f   :  { %p7389_p5 = pnand %p7388_p4, %p7382_p1 }
  0x31   :  { %7392 = shalt.err (!%p7389_p5)
}
  0x32   :  { %119 = dma.hbm_to_vmem [thread:$0]  %s12976_s8, 3072, %s114_s20, [#allocation16], %s7552_s25, %s7552_s25, %s7553_s26  }
  0x33   :  { %s7401_s6 = scalar_lea.vmem %s32_s24, 256  ;;  %p7406_p7 = scmp.lt.s32.totalorder %s32_s24, %s32_s24 }
  0x34   :  { %p7402_p6 = scmp.ne.s32.totalorder %s32_s24, %s7401_s6  ;;  %p7407_p8 = scmp.lt.s32.totalorder %s7401_s6, %s7401_s6 }
  0x36   :  { %p7408_p9 = por %p7407_p8, %p7406_p7 }
  0x38   :  { %p7409_p10 = pnand %p7408_p9, %p7402_p6 }
  0x3a   :  { %7412 = shalt.err (!%p7409_p10)
}
  0x3b   :  { %37 = dma.hbm_to_vmem [thread:$0]  %s12968_s0, 256, %s32_s24, [#allocation4], %s7548_s16, %s7548_s16, %s7549_s17  }
  0x3c   :  { %s7558_s1 = smov [#allocation8]   ;;  %s7559_s30 = smov [#allocation11]  }
  0x3d   :  { %s55_s29 = sshll.u32 %s7558_s1, 4  ;;  %s82_s8 = sshll.u32 %s7559_s30, 4  ;;  %s56_s29 = int_to_ptr.vmem [resolvable:$true] %s55_s29  ;;  %s83_s8 = int_to_ptr.vmem [resolvable:$true] %s82_s8 }
  0x3e   :  { %s7421_s15 = scalar_lea.vmem %s56_s29, 3072  ;;  %p7426_p12 = scmp.lt.s32.totalorder %s56_s29, %s56_s29 }
  0x3f   :  { %p7422_p11 = scmp.ne.s32.totalorder %s56_s29, %s7421_s15  ;;  %p7427_p13 = scmp.lt.s32.totalorder %s7421_s15, %s7421_s15 }
  0x41   :  { %p7428_p0 = por %p7427_p13, %p7426_p12 }
  0x43   :  { %p7429_p1 = pnand %p7428_p0, %p7422_p11 }
  0x45   :  { %7432 = shalt.err (!%p7429_p1)
}
  0x46   :  { %61 = dma.hbm_to_vmem [thread:$0]  %s12970_s2, 3072, %s56_s29, [#allocation7], %s7552_s25, %s7552_s25, %s7553_s26  }
  0x47   :  { %s7441_s0 = scalar_lea.vmem %s83_s8, 32  ;;  %p7446_p3 = scmp.lt.s32.totalorder %s83_s8, %s83_s8 }
  0x48   :  { %p7442_p2 = scmp.ne.s32.totalorder %s83_s8, %s7441_s0  ;;  %p7447_p4 = scmp.lt.s32.totalorder %s7441_s0, %s7441_s0 }
  0x4a   :  { %p7448_p5 = por %p7447_p4, %p7446_p3 }
  0x4c   :  { %p7449_p6 = pnand %p7448_p5, %p7442_p2 }
  0x4e   :  { %7452 = shalt.err (!%p7449_p6)
}
  0x4f   :  { %85 = dma.hbm_to_vmem [thread:$0]  %s12973_s5, 32, %s83_s8, [#allocation10]  }
  0x50   :  { %s7560_s24 = smov [#allocation14]   ;;  %s7561_s21 = smov [#allocation17]  }
  0x51   :  { %s104_s3 = sshll.u32 %s7560_s24, 4  ;;  %s125_s27 = sshll.u32 %s7561_s21, 4  ;;  %s105_s3 = int_to_ptr.vmem [resolvable:$true] %s104_s3  ;;  %s126_s27 = int_to_ptr.vmem [resolvable:$true] %s125_s27 }
  0x52   :  { %s7461_s6 = scalar_lea.vmem %s105_s3, 32  ;;  %p7466_p8 = scmp.lt.s32.totalorder %s105_s3, %s105_s3 }
  0x53   :  { %p7462_p7 = scmp.ne.s32.totalorder %s105_s3, %s7461_s6  ;;  %p7467_p9 = scmp.lt.s32.totalorder %s7461_s6, %s7461_s6 }
  0x55   :  { %p7468_p10 = por %p7467_p9, %p7466_p8 }
  0x57   :  { %p7469_p11 = pnand %p7468_p10, %p7462_p7 }
  0x59   :  { %7472 = shalt.err (!%p7469_p11)
}
  0x5a   :  { %107 = dma.hbm_to_vmem [thread:$0]  %s12975_s7, 32, %s105_s3, [#allocation13]  }
  0x5b   :  { %s7481_s28 = scalar_lea.vmem %s126_s27, 24576  ;;  %p7486_p13 = scmp.lt.s32.totalorder %s126_s27, %s126_s27 }
  0x5c   :  { %p7482_p12 = scmp.ne.s32.totalorder %s126_s27, %s7481_s28  ;;  %p7487_p0 = scmp.lt.s32.totalorder %s7481_s28, %s7481_s28 }
  0x5e   :  { %p7488_p1 = por %p7487_p0, %p7486_p13 }
  0x60   :  { %p7489_p2 = pnand %p7488_p1, %p7482_p12 }
  0x62   :  { %7492 = shalt.err (!%p7489_p2)
}
  0x63   :  { %131 = dma.hbm_to_vmem [thread:$0]  %s12977_s9, 24576, %s126_s27, [#allocation16], %s7552_s25, %s7552_s25, %s7553_s26  }
  0x64   :  { %s7562_s29 = smov [#allocation18]  }
  0x65   :  { %s141_s30 = sshll.u32 %s7562_s29, 4  ;;  %s142_s30 = int_to_ptr.vmem [resolvable:$true] %s141_s30 }
  0x66   :  { %s7501_s8 = scalar_lea.vmem %s142_s30, 4096  ;;  %p7506_p4 = scmp.lt.s32.totalorder %s142_s30, %s142_s30 }
  0x67   :  { %p7502_p3 = scmp.ne.s32.totalorder %s142_s30, %s7501_s8  ;;  %p7507_p5 = scmp.lt.s32.totalorder %s7501_s8, %s7501_s8 }
  0x69   :  { %p7508_p6 = por %p7507_p5, %p7506_p4 }
  0x6b   :  { %p7509_p7 = pnand %p7508_p6, %p7502_p3 }
  0x6d   :  { %7512 = shalt.err (!%p7509_p7)
}
  0x6e   :  { %147 = dma.hbm_to_vmem [thread:$0]  %s12980_s12, 4096, %s142_s30, [#allocation19], %s7548_s16, %s7548_s16, %s7549_s17  }
  0x6f   :  { %7533 = dma.done.wait [#allocation4], 256  }
  0x70   :  { %7534 = vsyncadd [#allocation4], 4294967040 }
  0x71   :  { %7535 = dma.done.wait [#allocation7], 3328  }
  0x72   :  { %7536 = vsyncadd [#allocation7], 4294963968 }
  0x73   :  { %7537 = dma.done.wait [#allocation10], 24608  }
  0x74   :  { %7538 = vsyncadd [#allocation10], 4294942688 }
  0x75   :  { %7539 = dma.done.wait [#allocation13], 8224  }
  0x76   :  { %7540 = vsyncadd [#allocation13], 4294959072 }
  0x77   :  { %7541 = dma.done.wait [#allocation16], 27648  }
  0x78   :  { %7542 = vsyncadd [#allocation16], 4294939648 }
  0x79   :  { %7543 = dma.done.wait [#allocation19], 4096  }
  0x7a   :  { %7544 = vsyncadd [#allocation19], 4294963200  ;;  %v12983_v0 = vmov 0.0   ;;  %v201_v1 = vld [vmem:[#allocation8 + $0x98] sm:$0xff]  ;;  %v499_v2 = vld [vmem:[#allocation15 + $0xa8] sm:$0xff]  ;;  %vm238_vm0 = vcmask 261120  }
  0x7b   :  { %681 = vmatprep.mubr.f32.mxu0 %v12983_v0  ;;  %309 = vmatprep.mubr.f32.mxu1 %v12983_v0  ;;  %v200_v3 = vld [vmem:[#allocation8 + $0x90] sm:$0xff]  ;;  %v498_v4 = vld [vmem:[#allocation15 + $0xa0] sm:$0xff]  ;;  %v493_v6 = vld [vmem:[#allocation15 + $0x78] sm:$0xff] }
  0x7c   :  { %269 = vmatprep.subr.mxu1 %v201_v1  ;;  %641 = vmatprep.subr.mxu0 %v499_v2  ;;  %v195_v5 = vld [vmem:[#allocation8 + $0x68] sm:$0xff]  ;;  %v194_v7 = vld [vmem:[#allocation8 + $0x60] sm:$0xff]  ;;  %v492_v8 = vld [vmem:[#allocation15 + $0x70] sm:$0xff] }
  0x7d   :  { %270 = vmatpush1.msra.mxu1 %v200_v3  ;;  %642 = vmatpush1.msra.mxu0 %v498_v4  ;;  %v189_v9 = vld [vmem:[#allocation8 + $0x38] sm:$0xff]  ;;  %v487_v10 = vld [vmem:[#allocation15 + $0x48] sm:$0xff]  ;;  %v486_v12 = vld [vmem:[#allocation15 + $0x40] sm:$0xff] }
  0x7e   :  { %271 = vmatprep.subr.mxu1 %v195_v5  ;;  %643 = vmatprep.subr.mxu0 %v493_v6  ;;  %v188_v11 = vld [vmem:[#allocation8 + $0x30] sm:$0xff]  ;;  %v183_v13 = vld [vmem:[#allocation8 + $0x8] sm:$0xff]  ;;  %v481_v14 = vld [vmem:[#allocation15 + $0x18] sm:$0xff] }
  0x7f   :  { %272 = vmatpush1.msra.mxu1 %v194_v7  ;;  %644 = vmatpush1.msra.mxu0 %v492_v8  ;;  %v182_v15 = vld [vmem:[#allocation8] sm:$0xff]  ;;  %v480_v16 = vld [vmem:[#allocation15 + $0x10] sm:$0xff]  ;;  %v203_v17 = vld [vmem:[#allocation8 + $0xa8] sm:$0xff] }
  0x80   :  { %273 = vmatprep.subr.mxu1 %v189_v9  ;;  %645 = vmatprep.subr.mxu0 %v487_v10  ;;  %v7693_v18 = vld [vmem:[#allocation6] sm:$0xff]  ;;  %v7695_v19 = vld [vmem:[#allocation9 + $0x2d8] sm:$0xff]  ;;  %v7697_v20 = vld [vmem:[#allocation3] sm:$0xff] }
  0x81   :  { %274 = vmatpush1.msra.mxu1 %v188_v11  ;;  %646 = vmatpush1.msra.mxu0 %v486_v12  ;;  %v202_v21 = vld [vmem:[#allocation8 + $0xa0] sm:$0xff]  ;;  %v7699_v22 = vld [vmem:[#allocation9 + $0x2d0] sm:$0xff]  ;;  %v197_v23 = vld [vmem:[#allocation8 + $0x78] sm:$0xff] }
  0x82   :  { %275 = vmatprep.subr.mxu1 %v183_v13  ;;  %647 = vmatprep.subr.mxu0 %v481_v14  ;;  %v7703_v24 = vld [vmem:[#allocation9 + $0x2a8] sm:$0xff]  ;;  %v196_v25 = vld [vmem:[#allocation8 + $0x70] sm:$0xff]  ;;  %v7708_v26 = vld [vmem:[#allocation9 + $0x2a0] sm:$0xff] }
  0x83   :  { %276 = vmatpush1.msra.mxu1 %v182_v15  ;;  %648 = vmatpush1.msra.mxu0 %v480_v16  ;;  %v191_v27 = vld [vmem:[#allocation8 + $0x48] sm:$0xff]  ;;  %v7712_v28 = vld [vmem:[#allocation9 + $0x278] sm:$0xff]  ;;  %v190_v30 = vld [vmem:[#allocation8 + $0x40] sm:$0xff] }
  0x84   :  { %346 = vmatprep.subr.mxu1 %v203_v17  ;;  %6330 = vmatmul.mubr.msk.f32.vlgmr.msra.gmra.mxu0 %vm238_vm0, %v7693_v18  ;;  %v7714_v29 = vld [vmem:[#allocation3 + $0x8] sm:$0xff]  ;;  %v7717_v31 = vld [vmem:[#allocation9 + $0x270] sm:$0xff]  ;;  %v185_v32 = vld [vmem:[#allocation8 + $0x18] sm:$0xff] }
  0x85   :  { %987 = vmatprep.subr.mxu0 %v7695_v19  ;;  %6322 = vmatmul.mubr.msk.f32.vlgmr.msra.gmra.mxu1 %vm238_vm0, %v7697_v20  ;;  %v7720_v33 = vld [vmem:[#allocation9 + $0x248] sm:$0xff]  ;;  %v184_v34 = vld [vmem:[#allocation8 + $0x10] sm:$0xff]  ;;  %v7725_v35 = vld [vmem:[#allocation9 + $0x240] sm:$0xff] }
  0x86   :  { %347 = vmatpush1.msra.mxu1 %v202_v21  ;;  %988 = vmatpush1.msra.mxu0 %v7699_v22  ;;  %v205_v36 = vld [vmem:[#allocation8 + $0xb8] sm:$0xff]  ;;  %v204_v38 = vld [vmem:[#allocation8 + $0xb0] sm:$0xff]  ;;  %v199_v40 = vld [vmem:[#allocation8 + $0x88] sm:$0xff] }
  0x87   :  { %348 = vmatprep.subr.mxu1 %v197_v23  ;;  %989 = vmatprep.subr.mxu0 %v7703_v24  ;;  %v7729_v37 = vld [vmem:[#allocation9 + $0x218] sm:$0xff]  ;;  %v7732_v39 = vld [vmem:[#allocation9 + $0x210] sm:$0xff]  ;;  %v7735_v41 = vld [vmem:[#allocation9 + $0x1e8] sm:$0xff] }
  0x88   :  { %349 = vmatpush1.msra.mxu1 %v196_v25  ;;  %990 = vmatpush1.msra.mxu0 %v7708_v26  ;;  %v198_v42 = vld [vmem:[#allocation8 + $0x80] sm:$0xff]  ;;  %v193_v44 = vld [vmem:[#allocation8 + $0x58] sm:$0xff]  ;;  %v192_v46 = vld [vmem:[#allocation8 + $0x50] sm:$0xff] }
  0x89   :  { %315 = vmatprep.mubr.f32.mxu1 %v12983_v0  ;;  %350 = vmatprep.subr.mxu1 %v191_v27  ;;  %v7740_v43 = vld [vmem:[#allocation9 + $0x1e0] sm:$0xff]  ;;  %v7744_v45 = vld [vmem:[#allocation9 + $0x1b8] sm:$0xff]  ;;  %v7747_v47 = vld [vmem:[#allocation9 + $0x1b0] sm:$0xff] }
  0x8a   :  { %991 = vmatprep.subr.mxu0 %v7712_v28  ;;  %6323 = vmatmul.mubr.msk.f32.gmra.mxu1 %vm238_vm0, %v7714_v29  ;;  %v187_v48 = vld [vmem:[#allocation8 + $0x28] sm:$0xff]  ;;  %v186_v50 = vld [vmem:[#allocation8 + $0x20] sm:$0xff]  ;;  %v7759_v53 = vld [vmem:[#allocation9 + $0x158] sm:$0xff] }
  0x8b   :  { %351 = vmatpush1.msra.mxu1 %v190_v30  ;;  %992 = vmatpush1.msra.mxu0 %v7717_v31  ;;  %v7750_v49 = vld [vmem:[#allocation9 + $0x188] sm:$0xff]  ;;  %v7755_v51 = vld [vmem:[#allocation9 + $0x180] sm:$0xff]  ;;  %v496_v54 = vld [vmem:[#allocation15 + $0x90] sm:$0xff] }
  0x8c   :  { %352 = vmatprep.subr.mxu1 %v185_v32  ;;  %993 = vmatprep.subr.mxu0 %v7720_v33  ;;  %v497_v52 = vld [vmem:[#allocation15 + $0x98] sm:$0xff]  ;;  %v7762_v55 = vld [vmem:[#allocation9 + $0x150] sm:$0xff]  ;;  %v7765_v57 = vld [vmem:[#allocation9 + $0x128] sm:$0xff] }
  0x8d   :  { %353 = vmatpush1.msra.mxu1 %v184_v34  ;;  %994 = vmatpush1.msra.mxu0 %v7725_v35  ;;  %v491_v56 = vld [vmem:[#allocation15 + $0x68] sm:$0xff]  ;;  %v490_v58 = vld [vmem:[#allocation15 + $0x60] sm:$0xff]  ;;  %v485_v60 = vld [vmem:[#allocation15 + $0x38] sm:$0xff] }
  0x8e   :  { %386 = vmatprep.mubr.f32.mxu1 %v12983_v0  ;;  %423 = vmatprep.subr.mxu1 %v205_v36  ;;  %v7770_v59 = vld [vmem:[#allocation9 + $0x120] sm:$0xff]  ;;  %v7774_v61 = vld [vmem:[#allocation9 + $0xf8] sm:$0xff]  ;;  %v7777_v63 = vld [vmem:[#allocation9 + $0xf0] sm:$0xff] }
  0x8f   :  { %995 = vmatprep.subr.mxu0 %v7729_v37  ;;  %6324 = vmatmul.mubr.msk.f32.vlgmr.msra.gmra.mxu1 %vm238_vm0, %v7697_v20  ;;  %v484_v62 = vld [vmem:[#allocation15 + $0x30] sm:$0xff]  ;;  %v479_v1 = vld [vmem:[#allocation15 + $0x8] sm:$0xff]  ;;  %v478_v3 = vld [vmem:[#allocation15] sm:$0xff] }
  0x90   :  { %424 = vmatpush1.msra.mxu1 %v204_v38  ;;  %996 = vmatpush1.msra.mxu0 %v7732_v39  ;;  %v7780_v2 = vld [vmem:[#allocation9 + $0xc8] sm:$0xff]  ;;  %v7785_v4 = vld [vmem:[#allocation9 + $0xc0] sm:$0xff]  ;;  %v7789_v6 = vld [vmem:[#allocation9 + $0x98] sm:$0xff] }
  0x91   :  { %425 = vmatprep.subr.mxu1 %v199_v40  ;;  %997 = vmatprep.subr.mxu0 %v7735_v41  ;;  %v501_v5 = vld [vmem:[#allocation15 + $0xb8] sm:$0xff]  ;;  %v500_v7 = vld [vmem:[#allocation15 + $0xb0] sm:$0xff]  ;;  %v495_v9 = vld [vmem:[#allocation15 + $0x88] sm:$0xff] }
  0x92   :  { %426 = vmatpush1.msra.mxu1 %v198_v42  ;;  %998 = vmatpush1.msra.mxu0 %v7740_v43  ;;  %v7792_v8 = vld [vmem:[#allocation9 + $0x90] sm:$0xff]  ;;  %v7795_v10 = vld [vmem:[#allocation9 + $0x68] sm:$0xff]  ;;  %v7800_v12 = vld [vmem:[#allocation9 + $0x60] sm:$0xff] }
  0x93   :  { %392 = vmatprep.mubr.f32.mxu1 %v12983_v0  ;;  %427 = vmatprep.subr.mxu1 %v193_v44  ;;  %v494_v11 = vld [vmem:[#allocation15 + $0x80] sm:$0xff]  ;;  %v489_v13 = vld [vmem:[#allocation15 + $0x58] sm:$0xff]  ;;  %v7806_v15 = vld [vmem:[#allocation6 + $0x8] sm:$0xf] }
  0x94   :  { %999 = vmatprep.subr.mxu0 %v7744_v45  ;;  %6325 = vmatmul.mubr.msk.f32.gmra.mxu1 %vm238_vm0, %v7714_v29  ;;  %v7804_v14 = vld [vmem:[#allocation9 + $0x38] sm:$0xff]  ;;  %v7809_v17 = vld [vmem:[#allocation9 + $0x30] sm:$0xff]  ;;  %v7812_v21 = vld [vmem:[#allocation9 + $0x8] sm:$0xff] }
  0x95   :  { %428 = vmatpush1.msra.mxu1 %v192_v46  ;;  %1000 = vmatpush1.msra.mxu0 %v7747_v47  ;;  %v488_v16 = vld [vmem:[#allocation15 + $0x50] sm:$0xff]  ;;  %v482_v23 = vld [vmem:[#allocation15 + $0x20] sm:$0xff] }
  0x96   :  { %429 = vmatprep.subr.mxu1 %v187_v48  ;;  %1001 = vmatprep.subr.mxu0 %v7750_v49  ;;  %v7817_v25 = vld [vmem:[#allocation9] sm:$0xff]  ;;  %v7820_v27 = vld [vmem:[#allocation9 + $0x5d8] sm:$0xff]  ;;  %v7826_v30 = vld [vmem:[#allocation9 + $0x5d0] sm:$0xff] }
  0x97   :  { %430 = vmatpush1.msra.mxu1 %v186_v50  ;;  %1002 = vmatpush1.msra.mxu0 %v7755_v51  ;;  %v7828_v32 = vld [vmem:[#allocation9 + $0x2e0] sm:$0xff]  ;;  %v7832_v34 = vld [vmem:[#allocation9 + $0x5a8] sm:$0xff]  ;;  %v7834_v36 = vld [vmem:[#allocation9 + $0x2b8] sm:$0xff] }
  0x98   :  { %463 = vmatprep.mubr.f32.mxu1 %v12983_v0  ;;  %564 = vmatprep.subr.mxu1 %v497_v52  ;;  %v7839_v38 = vld [vmem:[#allocation9 + $0x5a0] sm:$0xff]  ;;  %v7841_v40 = vld [vmem:[#allocation9 + $0x2b0] sm:$0xff]  ;;  %v7845_v42 = vld [vmem:[#allocation9 + $0x578] sm:$0xff] }
  0x99   :  { %1003 = vmatprep.subr.mxu0 %v7759_v53  ;;  %6326 = vmatmul.mubr.msk.f32.vlgmr.msra.gmra.mxu1 %vm238_vm0, %v7697_v20  ;;  %v483_v20 = vld [vmem:[#allocation15 + $0x28] sm:$0xff]  ;;  %v7853_v48 = vld [vmem:[#allocation9 + $0x280] sm:$0xff]  ;;  %v7859_v50 = vld [vmem:[#allocation9 + $0x258] sm:$0xff] }
  0x9a   :  { %565 = vmatpush1.msra.mxu1 %v496_v54  ;;  %1004 = vmatpush1.msra.mxu0 %v7762_v55  ;;  %v7847_v44 = vld [vmem:[#allocation9 + $0x288] sm:$0xff]  ;;  %v7851_v46 = vld [vmem:[#allocation9 + $0x570] sm:$0xff]  ;;  %v7863_v52 = vld [vmem:[#allocation9 + $0x540] sm:$0xff] }
  0x9b   :  { %566 = vmatprep.subr.mxu1 %v491_v56  ;;  %1005 = vmatprep.subr.mxu0 %v7765_v57  ;;  %v7865_v54 = vld [vmem:[#allocation9 + $0x250] sm:$0xff]  ;;  %v7869_v56 = vld [vmem:[#allocation9 + $0x518] sm:$0xff] }
  0x9c   :  { %567 = vmatpush1.msra.mxu1 %v490_v58  ;;  %1006 = vmatpush1.msra.mxu0 %v7770_v59  ;;  %13855 = vst [vmem:[#allocation28_spill] sm:$0xff] %v7869_v56  ;;  %v7871_v58 = vld [vmem:[#allocation9 + $0x228] sm:$0xff] }
  0x9d   :  { %469 = vmatprep.mubr.f32.mxu1 %v12983_v0  ;;  %568 = vmatprep.subr.mxu1 %v485_v60  ;;  %v7875_v60 = vld [vmem:[#allocation9 + $0x510] sm:$0xff] }
  0x9e   :  { %1007 = vmatprep.subr.mxu0 %v7774_v61  ;;  %6327 = vmatmul.mubr.msk.f32.gmra.mxu1 %vm238_vm0, %v7714_v29  ;;  %v7823_v29 = vld [vmem:[#allocation9 + $0x2e8] sm:$0xff]  ;;  %13856 = vst [vmem:[#allocation29_spill] sm:$0xff] %v7875_v60 }
  0x9f   :  { %569 = vmatpush1.msra.mxu1 %v484_v62  ;;  %1008 = vmatpush1.msra.mxu0 %v7777_v63  ;;  %v7877_v62 = vld [vmem:[#allocation9 + $0x220] sm:$0xff] }
  0xa0   :  { %570 = vmatprep.subr.mxu1 %v479_v1  ;;  %1009 = vmatprep.subr.mxu0 %v7780_v2  ;;  %v7881_v1 = vld [vmem:[#allocation9 + $0x4e8] sm:$0xff] }
  0xa1   :  { %571 = vmatpush1.msra.mxu1 %v478_v3  ;;  %1010 = vmatpush1.msra.mxu0 %v7785_v4  ;;  %13857 = vst [vmem:[#allocation30_spill] sm:$0xff] %v7881_v1  ;;  %v7883_v3 = vld [vmem:[#allocation9 + $0x1f8] sm:$0xff] }
  0xa2   :  { %604 = vmatprep.mubr.f32.mxu1 %v12983_v0  ;;  %718 = vmatprep.subr.mxu1 %v501_v5  ;;  %v7887_v5 = vld [vmem:[#allocation9 + $0x4e0] sm:$0xff] }
  0xa3   :  { %1011 = vmatprep.subr.mxu0 %v7789_v6  ;;  %6328 = vmatmul.mubr.msk.f32.vlgmr.msra.gmra.mxu1 %vm238_vm0, %v7693_v18  ;;  %13858 = vst [vmem:[#allocation31_spill] sm:$0xff] %v7887_v5 }
  0xa4   :  { %719 = vmatpush1.msra.mxu1 %v500_v7  ;;  %1012 = vmatpush1.msra.mxu0 %v7792_v8  ;;  %v7889_v7 = vld [vmem:[#allocation9 + $0x1f0] sm:$0xff] }
  0xa5   :  { %720 = vmatprep.subr.mxu1 %v495_v9  ;;  %1013 = vmatprep.subr.mxu0 %v7795_v10  ;;  %13859 = vst [vmem:[#allocation32_spill] sm:$0xff] %v7889_v7  ;;  %v7893_v9 = vld [vmem:[#allocation9 + $0x4b8] sm:$0xff] }
  0xa6   :  { %721 = vmatpush1.msra.mxu1 %v494_v11  ;;  %1014 = vmatpush1.msra.mxu0 %v7800_v12  ;;  %13860 = vst [vmem:[#allocation33_spill] sm:$0xff] %v7893_v9  ;;  %v7895_v11 = vld [vmem:[#allocation9 + $0x1c8] sm:$0xff] }
  0xa7   :  { %610 = vmatprep.mubr.f32.mxu1 %v12983_v0  ;;  %722 = vmatprep.subr.mxu1 %v489_v13  ;;  %13861 = vst [vmem:[#allocation34_spill] sm:$0xff] %v7895_v11  ;;  %v7899_v13 = vld [vmem:[#allocation9 + $0x4b0] sm:$0xff] }
  0xa8   :  { %1015 = vmatprep.subr.mxu0 %v7804_v14  ;;  %6329 = vmatmul.mubr.msk.f32.gmra.mxu1 %vm238_vm0, %v7806_v15  ;;  %13862 = vst [vmem:[#allocation35_spill] sm:$0xff] %v7899_v13 }
  0xa9   :  { %723 = vmatpush1.msra.mxu1 %v488_v16  ;;  %1016 = vmatpush1.msra.mxu0 %v7809_v17  ;;  %v7901_v16 = vld [vmem:[#allocation9 + $0x1c0] sm:$0xff] }
  0xaa   :  { %724 = vmatprep.subr.mxu1 %v483_v20  ;;  %1017 = vmatprep.subr.mxu0 %v7812_v21  ;;  %13863 = vst [vmem:[#allocation36_spill] sm:$0xff] %v7901_v16  ;;  %v7905_v20 = vld [vmem:[#allocation9 + $0x488] sm:$0xff] }
  0xab   :  { %725 = vmatpush1.msra.mxu1 %v482_v23  ;;  %1018 = vmatpush1.msra.mxu0 %v7817_v25  ;;  %13864 = vst [vmem:[#allocation37_spill] sm:$0xff] %v7905_v20  ;;  %v7907_v23 = vld [vmem:[#allocation9 + $0x198] sm:$0xff] }
  0xac   :  { %758 = vmatprep.mubr.f32.mxu1 %v12983_v0  ;;  %1019 = vmatprep.subr.mxu0 %v7820_v27  ;;  %13865 = vst [vmem:[#allocation38_spill] sm:$0xff] %v7907_v23  ;;  %v7911_v0 = vld [vmem:[#allocation9 + $0x480] sm:$0xff] }
  0xad   :  { %1058 = vmatprep.subr.mxu1 %v7823_v29  ;;  %6332 = vmatmul.mubr.msk.f32.vlgmr.msra.gmra.mxu1 %vm238_vm0, %v7693_v18  ;;  %v7857_v18 = vld [vmem:[#allocation9 + $0x548] sm:$0xff]  ;;  %13866 = vst [vmem:[#allocation39_spill] sm:$0xff] %v7911_v0 }
  0xae   :  { %1020 = vmatpush2.msra.mxu0 %v7826_v30  ;;  %1059 = vmatpush1.msra.mxu1 %v7828_v32 }
  0xaf   :  { %1021 = vmatprep.subr.mxu0 %v7832_v34  ;;  %1060 = vmatprep.subr.mxu1 %v7834_v36 }
  0xb0   :  { %1022 = vmatpush2.msra.mxu0 %v7839_v38  ;;  %1061 = vmatpush1.msra.mxu1 %v7841_v40 }
  0xb1   :  { %1023 = vmatprep.subr.mxu0 %v7845_v42  ;;  %1062 = vmatprep.subr.mxu1 %v7847_v44 }
  0xb2   :  { %1024 = vmatpush2.msra.mxu0 %v7851_v46  ;;  %1063 = vmatpush1.msra.mxu1 %v7853_v48 }
  0xb3   :  { %1025 = vmatprep.subr.mxu0 %v7857_v18  ;;  %1064 = vmatprep.subr.mxu1 %v7859_v50 }
  0xb4   :  { %1026 = vmatpush2.msra.mxu0 %v7863_v52  ;;  %1065 = vmatpush1.msra.mxu1 %v7865_v54 }
  0xb5   :  { %1027 = vmatprep.subr.mxu0 %v7869_v56  ;;  %1066 = vmatprep.subr.mxu1 %v7871_v58  ;;  %v8048_v56 = vld [vmem:[#allocation9 + $0x580] sm:$0xff] }
  0xb6   :  { %1028 = vmatpush2.msra.mxu0 %v7875_v60  ;;  %1067 = vmatpush1.msra.mxu1 %v7877_v62  ;;  %v7917_v60 = vld [vmem:[#allocation9 + $0x458] sm:$0xff]  ;;  %13911 = vst [vmem:[#allocation83_spill] sm:$0xff] %v8048_v56 }
  0xb7   :  { %1029 = vmatprep.subr.mxu0 %v7881_v1  ;;  %1068 = vmatprep.subr.mxu1 %v7883_v3  ;;  %v7913_v1 = vld [vmem:[#allocation9 + $0x190] sm:$0xff]  ;;  %13868 = vst [vmem:[#allocation41_spill] sm:$0xff] %v7917_v60 }
  0xb8   :  { %1030 = vmatpush2.msra.mxu0 %v7887_v5  ;;  %1069 = vmatpush1.msra.mxu1 %v7889_v7  ;;  %13867 = vst [vmem:[#allocation40_spill] sm:$0xff] %v7913_v1  ;;  %v7919_v5 = vld [vmem:[#allocation9 + $0x168] sm:$0xff]  ;;  %v7923_v7 = vld [vmem:[#allocation9 + $0x450] sm:$0xff] }
  0xb9   :  { %1031 = vmatprep.subr.mxu0 %v7893_v9  ;;  %1070 = vmatprep.subr.mxu1 %v7895_v11  ;;  %13869 = vst [vmem:[#allocation42_spill] sm:$0xff] %v7919_v5  ;;  %13870 = vst [vmem:[#allocation43_spill] sm:$0xff] %v7923_v7  ;;  %v7925_v9 = vld [vmem:[#allocation9 + $0x160] sm:$0xff]  ;;  %v7929_v11 = vld [vmem:[#allocation9 + $0x428] sm:$0xff] }
  0xba   :  { %1032 = vmatpush2.msra.mxu0 %v7899_v13  ;;  %1071 = vmatpush1.msra.mxu1 %v7901_v16  ;;  %13871 = vst [vmem:[#allocation44_spill] sm:$0xff] %v7925_v9  ;;  %13872 = vst [vmem:[#allocation45_spill] sm:$0xff] %v7929_v11  ;;  %v7931_v13 = vld [vmem:[#allocation9 + $0x138] sm:$0xff]  ;;  %v7935_v16 = vld [vmem:[#allocation9 + $0x420] sm:$0xff] }
  0xbb   :  { %1033 = vmatprep.subr.mxu0 %v7905_v20  ;;  %1072 = vmatprep.subr.mxu1 %v7907_v23  ;;  %13873 = vst [vmem:[#allocation46_spill] sm:$0xff] %v7931_v13  ;;  %13874 = vst [vmem:[#allocation47_spill] sm:$0xff] %v7935_v16  ;;  %v7937_v20 = vld [vmem:[#allocation9 + $0x130] sm:$0xff]  ;;  %v7941_v23 = vld [vmem:[#allocation9 + $0x3f8] sm:$0xff] }
  0xbc   :  { %1034 = vmatpush2.msra.mxu0 %v7911_v0  ;;  %1073 = vmatpush1.msra.mxu1 %v7913_v1  ;;  %13875 = vst [vmem:[#allocation48_spill] sm:$0xff] %v7937_v20  ;;  %13876 = vst [vmem:[#allocation49_spill] sm:$0xff] %v7941_v23  ;;  %v7943_v0 = vld [vmem:[#allocation9 + $0x108] sm:$0xff]  ;;  %v7947_v1 = vld [vmem:[#allocation9 + $0x3f0] sm:$0xff] }
  0xbd   :  { %1035 = vmatprep.subr.mxu0 %v7917_v60  ;;  %1074 = vmatprep.subr.mxu1 %v7919_v5  ;;  %13877 = vst [vmem:[#allocation50_spill] sm:$0xff] %v7943_v0  ;;  %13878 = vst [vmem:[#allocation51_spill] sm:$0xff] %v7947_v1  ;;  %v7949_v60 = vld [vmem:[#allocation9 + $0x100] sm:$0xff]  ;;  %v7953_v5 = vld [vmem:[#allocation9 + $0x3c8] sm:$0xff] }
  0xbe   :  { %1036 = vmatpush2.msra.mxu0 %v7923_v7  ;;  %1075 = vmatpush1.msra.mxu1 %v7925_v9  ;;  %13879 = vst [vmem:[#allocation52_spill] sm:$0xff] %v7949_v60  ;;  %13880 = vst [vmem:[#allocation53_spill] sm:$0xff] %v7953_v5  ;;  %v7955_v7 = vld [vmem:[#allocation9 + $0xd8] sm:$0xff]  ;;  %v7959_v9 = vld [vmem:[#allocation9 + $0x3c0] sm:$0xff] }
  0xbf   :  { %1037 = vmatprep.subr.mxu0 %v7929_v11  ;;  %1076 = vmatprep.subr.mxu1 %v7931_v13  ;;  %13881 = vst [vmem:[#allocation54_spill] sm:$0xff] %v7955_v7  ;;  %13882 = vst [vmem:[#allocation55_spill] sm:$0xff] %v7959_v9  ;;  %v7961_v11 = vld [vmem:[#allocation9 + $0xd0] sm:$0xff]  ;;  %v7965_v13 = vld [vmem:[#allocation9 + $0x398] sm:$0xff] }
  0xc0   :  { %1038 = vmatpush2.msra.mxu0 %v7935_v16  ;;  %1077 = vmatpush1.msra.mxu1 %v7937_v20  ;;  %13883 = vst [vmem:[#allocation56_spill] sm:$0xff] %v7961_v11  ;;  %13884 = vst [vmem:[#allocation57_spill] sm:$0xff] %v7965_v13  ;;  %v7967_v16 = vld [vmem:[#allocation9 + $0xa8] sm:$0xff]  ;;  %v7971_v20 = vld [vmem:[#allocation9 + $0x390] sm:$0xff] }
  0xc1   :  { %1039 = vmatprep.subr.mxu0 %v7941_v23  ;;  %1078 = vmatprep.subr.mxu1 %v7943_v0  ;;  %13885 = vst [vmem:[#allocation58_spill] sm:$0xff] %v7967_v16  ;;  %13886 = vst [vmem:[#allocation59_spill] sm:$0xff] %v7971_v20  ;;  %v7973_v23 = vld [vmem:[#allocation9 + $0xa0] sm:$0xff]  ;;  %v7977_v0 = vld [vmem:[#allocation9 + $0x368] sm:$0xff] }
  0xc2   :  { %1040 = vmatpush2.msra.mxu0 %v7947_v1  ;;  %1079 = vmatpush1.msra.mxu1 %v7949_v60  ;;  %13887 = vst [vmem:[#allocation60_spill] sm:$0xff] %v7973_v23  ;;  %13888 = vst [vmem:[#allocation61_spill] sm:$0xff] %v7977_v0  ;;  %v7981_v1 = vld [vmem:[#allocation9 + $0x78] sm:$0xff]  ;;  %v13892_v60 = vmov 0.0  }
  0xc3   :  { %1041 = vmatprep.subr.mxu0 %v7953_v5  ;;  %1080 = vmatprep.subr.mxu1 %v7955_v7  ;;  %13889 = vst [vmem:[#allocation62_spill] sm:$0xff] %v7981_v1  ;;  %v7985_v5 = vld [vmem:[#allocation9 + $0x360] sm:$0xff]  ;;  %v7987_v7 = vld [vmem:[#allocation9 + $0x70] sm:$0xff] }
  0xc4   :  { %1042 = vmatpush2.msra.mxu0 %v7959_v9  ;;  %1081 = vmatpush1.msra.mxu1 %v7961_v11  ;;  %13890 = vst [vmem:[#allocation63_spill] sm:$0xff] %v7985_v5  ;;  %13891 = vst [vmem:[#allocation64_spill] sm:$0xff] %v7987_v7  ;;  %v7991_v9 = vld [vmem:[#allocation9 + $0x338] sm:$0xff]  ;;  %v7993_v11 = vld [vmem:[#allocation9 + $0x48] sm:$0xff] }
  0xc5   :  { %1043 = vmatprep.subr.mxu0 %v7965_v13  ;;  %1082 = vmatprep.subr.mxu1 %v7967_v16  ;;  %13893 = vst [vmem:[#allocation65_spill] sm:$0xff] %v7991_v9  ;;  %13894 = vst [vmem:[#allocation66_spill] sm:$0xff] %v7993_v11  ;;  %v8000_v13 = vld [vmem:[#allocation9 + $0x40] sm:$0xff]  ;;  %v8014_v16 = vld [vmem:[#allocation9 + $0x10] sm:$0xff] }
  0xc6   :  { %1044 = vmatpush2.msra.mxu0 %v7971_v20  ;;  %1083 = vmatpush1.msra.mxu1 %v7973_v23  ;;  %v7998_v20 = vld [vmem:[#allocation9 + $0x330] sm:$0xff]  ;;  %13896 = vst [vmem:[#allocation68_spill] sm:$0xff] %v8000_v13  ;;  %v8004_v23 = vld [vmem:[#allocation9 + $0x308] sm:$0xff]  ;;  %13900 = vst [vmem:[#allocation72_spill] sm:$0xff] %v8014_v16 }
  0xc7   :  { %687 = vmatprep.mubr.f32.mxu0 %v13892_v60  ;;  %1045 = vmatprep.subr.mxu0 %v7977_v0  ;;  %13895 = vst [vmem:[#allocation67_spill] sm:$0xff] %v7998_v20  ;;  %13897 = vst [vmem:[#allocation69_spill] sm:$0xff] %v8004_v23  ;;  %v8006_v0 = vld [vmem:[#allocation9 + $0x18] sm:$0xff] }
  0xc8   :  { %1084 = vmatprep.subr.mxu1 %v7981_v1  ;;  %6331 = vmatmul.mubr.msk.f32.gmra.mxu0 %vm238_vm0, %v7806_v15  ;;  %13898 = vst [vmem:[#allocation70_spill] sm:$0xff] %v8006_v0  ;;  %v8010_v1 = vld [vmem:[#allocation9 + $0x300] sm:$0xff] }
  0xc9   :  { %1046 = vmatpush2.msra.mxu0 %v7985_v5  ;;  %1085 = vmatpush1.msra.mxu1 %v7987_v7  ;;  %13899 = vst [vmem:[#allocation71_spill] sm:$0xff] %v8010_v1  ;;  %v8018_v5 = vld [vmem:[#allocation9 + $0x5e8] sm:$0xff]  ;;  %v8020_v7 = vld [vmem:[#allocation9 + $0x2f8] sm:$0xff] }
  0xca   :  { %1047 = vmatprep.subr.mxu0 %v7991_v9  ;;  %1086 = vmatprep.subr.mxu1 %v7993_v11  ;;  %13901 = vst [vmem:[#allocation73_spill] sm:$0xff] %v8018_v5  ;;  %13902 = vst [vmem:[#allocation74_spill] sm:$0xff] %v8020_v7  ;;  %v8024_v9 = vld [vmem:[#allocation9 + $0x5e0] sm:$0xff]  ;;  %v8026_v11 = vld [vmem:[#allocation9 + $0x2f0] sm:$0xff] }
  0xcb   :  { %1048 = vmatpush2.msra.mxu0 %v7998_v20  ;;  %1087 = vmatpush1.msra.mxu1 %v8000_v13  ;;  %13903 = vst [vmem:[#allocation75_spill] sm:$0xff] %v8024_v9  ;;  %13904 = vst [vmem:[#allocation76_spill] sm:$0xff] %v8026_v11  ;;  %v8030_v20 = vld [vmem:[#allocation9 + $0x5b8] sm:$0xff]  ;;  %v8042_v13 = vld [vmem:[#allocation9 + $0x588] sm:$0xff] }
  0xcc   :  { %1049 = vmatprep.subr.mxu0 %v8004_v23  ;;  %1088 = vmatprep.subr.mxu1 %v8006_v0  ;;  %13905 = vst [vmem:[#allocation77_spill] sm:$0xff] %v8030_v20  ;;  %v8032_v23 = vld [vmem:[#allocation9 + $0x2c8] sm:$0xff]  ;;  %v8036_v0 = vld [vmem:[#allocation9 + $0x5b0] sm:$0xff]  ;;  %13909 = vst [vmem:[#allocation81_spill] sm:$0xff] %v8042_v13 }
  0xcd   :  { %1050 = vmatpush2.msra.mxu0 %v8010_v1  ;;  %1051 = vmatprep.mubr.f32.mxu0 %v13892_v60  ;;  %13906 = vst [vmem:[#allocation78_spill] sm:$0xff] %v8032_v23  ;;  %13907 = vst [vmem:[#allocation79_spill] sm:$0xff] %v8036_v0  ;;  %v8038_v1 = vld [vmem:[#allocation9 + $0x2c0] sm:$0xff] }
  0xce   :  { %1089 = vmatpush1.msra.mxu1 %v8014_v16  ;;  %1052 = vmatmul.mubr.f32.vlgmr.msra.gmra.mxu0 %v13892_v60  ;;  %13908 = vst [vmem:[#allocation80_spill] sm:$0xff] %v8038_v1  ;;  %v8044_v16 = vld [vmem:[#allocation9 + $0x298] sm:$0xff] }
  0xcf   :  { %1090 = vmatprep.subr.mxu1 %v8018_v5  ;;  %1129 = vmatprep.subr.mxu0 %v8020_v7  ;;  %13910 = vst [vmem:[#allocation82_spill] sm:$0xff] %v8044_v16  ;;  %v8050_v5 = vld [vmem:[#allocation9 + $0x290] sm:$0xff]  ;;  %v8054_v7 = vld [vmem:[#allocation9 + $0x558] sm:$0xff] }
  0xd0   :  { %1091 = vmatpush2.msra.mxu1 %v8024_v9  ;;  %1130 = vmatpush1.msra.mxu0 %v8026_v11  ;;  %13912 = vst [vmem:[#allocation84_spill] sm:$0xff] %v8050_v5  ;;  %13913 = vst [vmem:[#allocation85_spill] sm:$0xff] %v8054_v7  ;;  %v8056_v9 = vld [vmem:[#allocation9 + $0x268] sm:$0xff]  ;;  %v8060_v11 = vld [vmem:[#allocation9 + $0x550] sm:$0xff] }
  0xd1   :  { %1092 = vmatprep.subr.mxu1 %v8030_v20  ;;  %1131 = vmatprep.subr.mxu0 %v8032_v23  ;;  %13914 = vst [vmem:[#allocation86_spill] sm:$0xff] %v8056_v9  ;;  %13915 = vst [vmem:[#allocation87_spill] sm:$0xff] %v8060_v11  ;;  %v8062_v20 = vld [vmem:[#allocation9 + $0x260] sm:$0xff]  ;;  %v8066_v23 = vld [vmem:[#allocation9 + $0x528] sm:$0xff] }
  0xd2   :  { %1093 = vmatpush2.msra.mxu1 %v8036_v0  ;;  %1132 = vmatpush1.msra.mxu0 %v8038_v1  ;;  %13916 = vst [vmem:[#allocation88_spill] sm:$0xff] %v8062_v20  ;;  %13917 = vst [vmem:[#allocation89_spill] sm:$0xff] %v8066_v23  ;;  %v8068_v0 = vld [vmem:[#allocation9 + $0x238] sm:$0xff]  ;;  %v8072_v1 = vld [vmem:[#allocation9 + $0x520] sm:$0xff] }
  0xd3   :  { %1094 = vmatprep.subr.mxu1 %v8042_v13  ;;  %1133 = vmatprep.subr.mxu0 %v8044_v16  ;;  %13918 = vst [vmem:[#allocation90_spill] sm:$0xff] %v8068_v0  ;;  %13919 = vst [vmem:[#allocation91_spill] sm:$0xff] %v8072_v1  ;;  %v8074_v13 = vld [vmem:[#allocation9 + $0x230] sm:$0xff]  ;;  %v8078_v16 = vld [vmem:[#allocation9 + $0x4f8] sm:$0xff] }
  0xd4   :  { %1095 = vmatpush2.msra.mxu1 %v8048_v56  ;;  %1134 = vmatpush1.msra.mxu0 %v8050_v5  ;;  %13920 = vst [vmem:[#allocation92_spill] sm:$0xff] %v8074_v13  ;;  %13921 = vst [vmem:[#allocation93_spill] sm:$0xff] %v8078_v16  ;;  %v8080_v56 = vld [vmem:[#allocation9 + $0x208] sm:$0xff]  ;;  %v8084_v5 = vld [vmem:[#allocation9 + $0x4f0] sm:$0xff] }
  0xd5   :  { %1096 = vmatprep.subr.mxu1 %v8054_v7  ;;  %1135 = vmatprep.subr.mxu0 %v8056_v9  ;;  %13922 = vst [vmem:[#allocation94_spill] sm:$0xff] %v8080_v56  ;;  %13923 = vst [vmem:[#allocation95_spill] sm:$0xff] %v8084_v5  ;;  %v8086_v7 = vld [vmem:[#allocation9 + $0x200] sm:$0xff]  ;;  %v8090_v9 = vld [vmem:[#allocation9 + $0x4c8] sm:$0xff] }
  0xd6   :  { %1097 = vmatpush2.msra.mxu1 %v8060_v11  ;;  %1136 = vmatpush1.msra.mxu0 %v8062_v20  ;;  %13924 = vst [vmem:[#allocation96_spill] sm:$0xff] %v8086_v7  ;;  %13925 = vst [vmem:[#allocation97_spill] sm:$0xff] %v8090_v9  ;;  %v8092_v11 = vld [vmem:[#allocation9 + $0x1d8] sm:$0xff]  ;;  %v8096_v20 = vld [vmem:[#allocation9 + $0x4c0] sm:$0xff] }
  0xd7   :  { %1098 = vmatprep.subr.mxu1 %v8066_v23  ;;  %1137 = vmatprep.subr.mxu0 %v8068_v0  ;;  %13926 = vst [vmem:[#allocation98_spill] sm:$0xff] %v8092_v11  ;;  %13927 = vst [vmem:[#allocation99_spill] sm:$0xff] %v8096_v20  ;;  %v8098_v23 = vld [vmem:[#allocation9 + $0x1d0] sm:$0xff]  ;;  %v8102_v0 = vld [vmem:[#allocation9 + $0x498] sm:$0xff] }
  0xd8   :  { %1099 = vmatpush2.msra.mxu1 %v8072_v1  ;;  %1138 = vmatpush1.msra.mxu0 %v8074_v13  ;;  %13928 = vst [vmem:[#allocation100_spill] sm:$0xff] %v8098_v23  ;;  %13929 = vst [vmem:[#allocation101_spill] sm:$0xff] %v8102_v0  ;;  %v8104_v1 = vld [vmem:[#allocation9 + $0x1a8] sm:$0xff]  ;;  %v8108_v13 = vld [vmem:[#allocation9 + $0x490] sm:$0xff] }
  0xd9   :  { %1100 = vmatprep.subr.mxu1 %v8078_v16  ;;  %1139 = vmatprep.subr.mxu0 %v8080_v56  ;;  %13930 = vst [vmem:[#allocation102_spill] sm:$0xff] %v8104_v1  ;;  %13931 = vst [vmem:[#allocation103_spill] sm:$0xff] %v8108_v13  ;;  %v8110_v16 = vld [vmem:[#allocation9 + $0x1a0] sm:$0xff]  ;;  %v8114_v56 = vld [vmem:[#allocation9 + $0x468] sm:$0xff] }
  0xda   :  { %1101 = vmatpush2.msra.mxu1 %v8084_v5  ;;  %1140 = vmatpush1.msra.mxu0 %v8086_v7  ;;  %13932 = vst [vmem:[#allocation104_spill] sm:$0xff] %v8110_v16  ;;  %13933 = vst [vmem:[#allocation105_spill] sm:$0xff] %v8114_v56  ;;  %v8116_v5 = vld [vmem:[#allocation9 + $0x178] sm:$0xff]  ;;  %v8120_v7 = vld [vmem:[#allocation9 + $0x460] sm:$0xff] }
  0xdb   :  { %1102 = vmatprep.subr.mxu1 %v8090_v9  ;;  %1141 = vmatprep.subr.mxu0 %v8092_v11  ;;  %13934 = vst [vmem:[#allocation106_spill] sm:$0xff] %v8116_v5  ;;  %13935 = vst [vmem:[#allocation107_spill] sm:$0xff] %v8120_v7  ;;  %v8122_v9 = vld [vmem:[#allocation9 + $0x170] sm:$0xff]  ;;  %v8126_v11 = vld [vmem:[#allocation9 + $0x438] sm:$0xff] }
  0xdc   :  { %1103 = vmatpush2.msra.mxu1 %v8096_v20  ;;  %1142 = vmatpush1.msra.mxu0 %v8098_v23  ;;  %13936 = vst [vmem:[#allocation108_spill] sm:$0xff] %v8122_v9  ;;  %13937 = vst [vmem:[#allocation109_spill] sm:$0xff] %v8126_v11  ;;  %v8128_v20 = vld [vmem:[#allocation9 + $0x148] sm:$0xff]  ;;  %v8132_v23 = vld [vmem:[#allocation9 + $0x430] sm:$0xff] }
  0xdd   :  { %1104 = vmatprep.subr.mxu1 %v8102_v0  ;;  %1143 = vmatprep.subr.mxu0 %v8104_v1  ;;  %13938 = vst [vmem:[#allocation110_spill] sm:$0xff] %v8128_v20  ;;  %13939 = vst [vmem:[#allocation111_spill] sm:$0xff] %v8132_v23  ;;  %v8134_v0 = vld [vmem:[#allocation9 + $0x140] sm:$0xff]  ;;  %v8138_v1 = vld [vmem:[#allocation9 + $0x408] sm:$0xff] }
  0xde   :  { %1105 = vmatpush2.msra.mxu1 %v8108_v13  ;;  %1144 = vmatpush1.msra.mxu0 %v8110_v16  ;;  %13940 = vst [vmem:[#allocation112_spill] sm:$0xff] %v8134_v0  ;;  %13941 = vst [vmem:[#allocation113_spill] sm:$0xff] %v8138_v1  ;;  %v8140_v13 = vld [vmem:[#allocation9 + $0x118] sm:$0xff]  ;;  %v8144_v16 = vld [vmem:[#allocation9 + $0x400] sm:$0xff] }
  0xdf   :  { %1106 = vmatprep.subr.mxu1 %v8114_v56  ;;  %1145 = vmatprep.subr.mxu0 %v8116_v5  ;;  %13942 = vst [vmem:[#allocation114_spill] sm:$0xff] %v8140_v13  ;;  %13943 = vst [vmem:[#allocation115_spill] sm:$0xff] %v8144_v16  ;;  %v8146_v56 = vld [vmem:[#allocation9 + $0x110] sm:$0xff]  ;;  %v8150_v5 = vld [vmem:[#allocation9 + $0x3d8] sm:$0xff] }
  0xe0   :  { %1107 = vmatpush2.msra.mxu1 %v8120_v7  ;;  %1146 = vmatpush1.msra.mxu0 %v8122_v9  ;;  %13944 = vst [vmem:[#allocation116_spill] sm:$0xff] %v8146_v56  ;;  %v8152_v7 = vld [vmem:[#allocation9 + $0xe8] sm:$0xff]  ;;  %v8156_v9 = vld [vmem:[#allocation9 + $0x3d0] sm:$0xff] }
  0xe1   :  { %1108 = vmatprep.subr.mxu1 %v8126_v11  ;;  %1147 = vmatprep.subr.mxu0 %v8128_v20  ;;  %13945 = vst [vmem:[#allocation117_spill] sm:$0xff] %v8152_v7  ;;  %13946 = vst [vmem:[#allocation118_spill] sm:$0xff] %v8156_v9  ;;  %v8158_v11 = vld [vmem:[#allocation9 + $0xe0] sm:$0xff]  ;;  %v8162_v20 = vld [vmem:[#allocation9 + $0x3a8] sm:$0xff] }
  0xe2   :  { %1109 = vmatpush2.msra.mxu1 %v8132_v23  ;;  %1148 = vmatpush1.msra.mxu0 %v8134_v0  ;;  %13947 = vst [vmem:[#allocation119_spill] sm:$0xff] %v8158_v11  ;;  %13948 = vst [vmem:[#allocation120_spill] sm:$0xff] %v8162_v20  ;;  %v8164_v23 = vld [vmem:[#allocation9 + $0xb8] sm:$0xff]  ;;  %v8168_v0 = vld [vmem:[#allocation9 + $0x3a0] sm:$0xff] }
  0xe3   :  { %1110 = vmatprep.subr.mxu1 %v8138_v1  ;;  %1149 = vmatprep.subr.mxu0 %v8140_v13  ;;  %13949 = vst [vmem:[#allocation121_spill] sm:$0xff] %v8164_v23  ;;  %v8170_v1 = vld [vmem:[#allocation9 + $0xb0] sm:$0xff]  ;;  %v8174_v13 = vld [vmem:[#allocation9 + $0x378] sm:$0xff] }
  0xe4   :  { %1111 = vmatpush2.msra.mxu1 %v8144_v16  ;;  %1150 = vmatpush1.msra.mxu0 %v8146_v56  ;;  %13950 = vst [vmem:[#allocation122_spill] sm:$0xff] %v8170_v1  ;;  %13951 = vst [vmem:[#allocation123_spill] sm:$0xff] %v8174_v13  ;;  %v8176_v16 = vld [vmem:[#allocation9 + $0x88] sm:$0xff]  ;;  %v8180_v56 = vld [vmem:[#allocation9 + $0x370] sm:$0xff] }
  0xe5   :  { %1112 = vmatprep.subr.mxu1 %v8150_v5  ;;  %1151 = vmatprep.subr.mxu0 %v8152_v7  ;;  %13952 = vst [vmem:[#allocation124_spill] sm:$0xff] %v8176_v16  ;;  %13953 = vst [vmem:[#allocation125_spill] sm:$0xff] %v8180_v56  ;;  %v8184_v7 = vld [vmem:[#allocation9 + $0x80] sm:$0xff] }
  0xe6   :  { %1113 = vmatpush2.msra.mxu1 %v8156_v9  ;;  %1152 = vmatpush1.msra.mxu0 %v8158_v11  ;;  %13954 = vst [vmem:[#allocation126_spill] sm:$0xff] %v8184_v7  ;;  %v8188_v11 = vld [vmem:[#allocation9 + $0x348] sm:$0xff]  ;;  %v8190_v9 = vld [vmem:[#allocation9 + $0x58] sm:$0xff] }
  0xe7   :  { %1114 = vmatprep.subr.mxu1 %v8162_v20  ;;  %1153 = vmatprep.subr.mxu0 %v8164_v23  ;;  %13955 = vst [vmem:[#allocation127_spill] sm:$0xff] %v8190_v9  ;;  %v8194_v23 = vld [vmem:[#allocation9 + $0x340] sm:$0xff]  ;;  %v8196_v20 = vld [vmem:[#allocation9 + $0x50] sm:$0xff] }
  0xe8   :  { %1115 = vmatpush2.msra.mxu1 %v8168_v0  ;;  %1154 = vmatpush1.msra.mxu0 %v8170_v1  ;;  %13956 = vst [vmem:[#allocation128_spill] sm:$0xff] %v8196_v20  ;;  %v8201_v1 = vld [vmem:[#allocation9 + $0x318] sm:$0xff] }
  0xe9   :  { %1116 = vmatprep.subr.mxu1 %v8174_v13  ;;  %1155 = vmatprep.subr.mxu0 %v8176_v16  ;;  %v8203_v16 = vld [vmem:[#allocation9 + $0x28] sm:$0xff]  ;;  %v8207_v13 = vld [vmem:[#allocation9 + $0x310] sm:$0xff] }
  0xea   :  { %764 = vmatprep.mubr.f32.mxu1 %v13892_v60  ;;  %1117 = vmatpush2.msra.mxu1 %v8180_v56  ;;  %13957 = vst [vmem:[#allocation129_spill] sm:$0xff] %v8203_v16  ;;  %13958 = vst [vmem:[#allocation130_spill] sm:$0xff] %v8207_v13  ;;  %v8211_v56 = vld [vmem:[#allocation9 + $0x20] sm:$0xff] }
  0xeb   :  { %1156 = vmatpush1.msra.mxu0 %v8184_v7  ;;  %6333 = vmatmul.mubr.msk.f32.gmra.mxu1 %vm238_vm0, %v7806_v15  ;;  %13959 = vst [vmem:[#allocation131_spill] sm:$0xff] %v8211_v56  ;;  %v8215_v15 = vld [vmem:[#allocation9 + $0x5f8] sm:$0xff]  ;;  %v8219_v7 = vld [vmem:[#allocation9 + $0x5f0] sm:$0xff] }
  0xec   :  { %1118 = vmatprep.subr.mxu1 %v8188_v11  ;;  %1157 = vmatprep.subr.mxu0 %v8190_v9  ;;  %13960 = vst [vmem:[#allocation132_spill] sm:$0xff] %v8215_v15  ;;  %v8223_v9 = vld [vmem:[#allocation9 + $0x5c8] sm:$0xff] }
  0xed   :  { %1119 = vmatpush2.msra.mxu1 %v8194_v23  ;;  %1158 = vmatpush1.msra.mxu0 %v8196_v20  ;;  %v8226_v20 = vld [vmem:[#allocation9 + $0x5c0] sm:$0xff] }
  0xee   :  { %1120 = vmatprep.subr.mxu1 %v8201_v1  ;;  %1159 = vmatprep.subr.mxu0 %v8203_v16  ;;  %v8230_v16 = vld [vmem:[#allocation9 + $0x598] sm:$0xff] }
  0xef   :  { %1121 = vmatpush2.msra.mxu1 %v8207_v13  ;;  %1122 = vmatprep.mubr.f32.mxu1 %v13892_v60  ;;  %v8234_v13 = vld [vmem:[#allocation9 + $0x590] sm:$0xff] }
  0xf0   :  { %1160 = vmatpush1.msra.mxu0 %v8211_v56  ;;  %1123 = vmatmul.mubr.f32.vlgmr.msra.gmra.mxu1 %v13892_v60  ;;  %v8238_v56 = vld [vmem:[#allocation9 + $0x568] sm:$0xff] }
  0xf1   :  { %1161 = vmatprep.subr.mxu0 %v8215_v15  ;;  %1193 = vmatprep.mubr.f32.mxu0 %v13892_v60  ;;  %v8242_v15 = vld [vmem:[#allocation9 + $0x560] sm:$0xff] }
  0xf2   :  { %1162 = vmatpush2.msra.mxu0 %v8219_v7  ;;  %1244 = vmatprep.subr.mxu1 %v7695_v19  ;;  %v8246_v19 = vld [vmem:[#allocation9 + $0x538] sm:$0xff] }
  0xf3   :  { %1163 = vmatprep.subr.mxu0 %v8223_v9  ;;  %1245 = vmatpush1.msra.mxu1 %v7699_v22  ;;  %v8250_v22 = vld [vmem:[#allocation9 + $0x530] sm:$0xff] }
  0xf4   :  { %1164 = vmatpush2.msra.mxu0 %v8226_v20  ;;  %1246 = vmatprep.subr.mxu1 %v7703_v24  ;;  %v8254_v24 = vld [vmem:[#allocation9 + $0x508] sm:$0xff] }
  0xf5   :  { %1165 = vmatprep.subr.mxu0 %v8230_v16  ;;  %1247 = vmatpush1.msra.mxu1 %v7708_v26  ;;  %v8258_v26 = vld [vmem:[#allocation9 + $0x500] sm:$0xff] }
  0xf6   :  { %1166 = vmatpush2.msra.mxu0 %v8234_v13  ;;  %1248 = vmatprep.subr.mxu1 %v7712_v28  ;;  %v8262_v28 = vld [vmem:[#allocation9 + $0x4d8] sm:$0xff] }
  0xf7   :  { %1167 = vmatprep.subr.mxu0 %v8238_v56  ;;  %1249 = vmatpush1.msra.mxu1 %v7717_v31  ;;  %v8266_v31 = vld [vmem:[#allocation9 + $0x4d0] sm:$0xff] }
  0xf8   :  { %1168 = vmatpush2.msra.mxu0 %v8242_v15  ;;  %1250 = vmatprep.subr.mxu1 %v7720_v33  ;;  %v8270_v33 = vld [vmem:[#allocation9 + $0x4a8] sm:$0xff] }
  0xf9   :  { %1169 = vmatprep.subr.mxu0 %v8246_v19  ;;  %1251 = vmatpush1.msra.mxu1 %v7725_v35  ;;  %v8274_v35 = vld [vmem:[#allocation9 + $0x4a0] sm:$0xff] }
  0xfa   :  { %1170 = vmatpush2.msra.mxu0 %v8250_v22  ;;  %1252 = vmatprep.subr.mxu1 %v7729_v37  ;;  %v8278_v37 = vld [vmem:[#allocation9 + $0x478] sm:$0xff] }
  0xfb   :  { %1171 = vmatprep.subr.mxu0 %v8254_v24  ;;  %1253 = vmatpush1.msra.mxu1 %v7732_v39  ;;  %v8282_v39 = vld [vmem:[#allocation9 + $0x470] sm:$0xff] }
  0xfc   :  { %1172 = vmatpush2.msra.mxu0 %v8258_v26  ;;  %1254 = vmatprep.subr.mxu1 %v7735_v41  ;;  %v8286_v41 = vld [vmem:[#allocation9 + $0x448] sm:$0xff] }
  0xfd   :  { %1173 = vmatprep.subr.mxu0 %v8262_v28  ;;  %1255 = vmatpush1.msra.mxu1 %v7740_v43  ;;  %v8290_v43 = vld [vmem:[#allocation9 + $0x440] sm:$0xff] }
  0xfe   :  { %1174 = vmatpush2.msra.mxu0 %v8266_v31  ;;  %1256 = vmatprep.subr.mxu1 %v7744_v45  ;;  %v8294_v45 = vld [vmem:[#allocation9 + $0x418] sm:$0xff] }
  0xff   :  { %1175 = vmatprep.subr.mxu0 %v8270_v33  ;;  %1257 = vmatpush1.msra.mxu1 %v7747_v47  ;;  %v8298_v47 = vld [vmem:[#allocation9 + $0x410] sm:$0xff] }
 0x100   :  { %1176 = vmatpush2.msra.mxu0 %v8274_v35  ;;  %1258 = vmatprep.subr.mxu1 %v7750_v49  ;;  %v8302_v49 = vld [vmem:[#allocation9 + $0x3e8] sm:$0xff] }
 0x101   :  { %1177 = vmatprep.subr.mxu0 %v8278_v37  ;;  %1259 = vmatpush1.msra.mxu1 %v7755_v51  ;;  %v8306_v51 = vld [vmem:[#allocation9 + $0x3e0] sm:$0xff] }
 0x102   :  { %1178 = vmatpush2.msra.mxu0 %v8282_v39  ;;  %1260 = vmatprep.subr.mxu1 %v7759_v53  ;;  %v8310_v53 = vld [vmem:[#allocation9 + $0x3b8] sm:$0xff] }
 0x103   :  { %1179 = vmatprep.subr.mxu0 %v8286_v41  ;;  %1261 = vmatpush1.msra.mxu1 %v7762_v55  ;;  %v8314_v55 = vld [vmem:[#allocation9 + $0x3b0] sm:$0xff] }
 0x104   :  { %1180 = vmatpush2.msra.mxu0 %v8290_v43  ;;  %1262 = vmatprep.subr.mxu1 %v7765_v57  ;;  %v8318_v57 = vld [vmem:[#allocation9 + $0x388] sm:$0xff] }
 0x105   :  { %1181 = vmatprep.subr.mxu0 %v8294_v45  ;;  %1263 = vmatpush1.msra.mxu1 %v7770_v59  ;;  %v8322_v59 = vld [vmem:[#allocation9 + $0x380] sm:$0xff] }
 0x106   :  { %1182 = vmatpush2.msra.mxu0 %v8298_v47  ;;  %1264 = vmatprep.subr.mxu1 %v7774_v61  ;;  %v8326_v61 = vld [vmem:[#allocation9 + $0x358] sm:$0xff] }
 0x107   :  { %1183 = vmatprep.subr.mxu0 %v8302_v49  ;;  %1265 = vmatpush1.msra.mxu1 %v7777_v63  ;;  %v8330_v63 = vld [vmem:[#allocation9 + $0x350] sm:$0xff] }
 0x108   :  { %1184 = vmatpush2.msra.mxu0 %v8306_v51  ;;  %1266 = vmatprep.subr.mxu1 %v7780_v2  ;;  %v8334_v2 = vld [vmem:[#allocation9 + $0x328] sm:$0xff] }
 0x109   :  { %1185 = vmatprep.subr.mxu0 %v8310_v53  ;;  %1267 = vmatpush1.msra.mxu1 %v7785_v4  ;;  %v8338_v4 = vld [vmem:[#allocation9 + $0x320] sm:$0xff] }
 0x10a   :  { %1186 = vmatpush2.msra.mxu0 %v8314_v55  ;;  %1268 = vmatprep.subr.mxu1 %v7789_v6  ;;  %v13961_v6 = vld [vmem:[#allocation28_spill] sm:$0xff] }
 0x10b   :  { %1187 = vmatprep.subr.mxu0 %v8318_v57  ;;  %1269 = vmatpush1.msra.mxu1 %v7792_v8  ;;  %v13962_v8 = vld [vmem:[#allocation32_spill] sm:$0xff] }
 0x10c   :  { %1188 = vmatpush2.msra.mxu0 %v8322_v59  ;;  %1270 = vmatprep.subr.mxu1 %v7795_v10  ;;  %v13963_v10 = vld [vmem:[#allocation29_spill] sm:$0xff] }
 0x10d   :  { %1189 = vmatprep.subr.mxu0 %v8326_v61  ;;  %1271 = vmatpush1.msra.mxu1 %v7800_v12  ;;  %v13964_v12 = vld [vmem:[#allocation34_spill] sm:$0xff] }
 0x10e   :  { %1190 = vmatpush2.msra.mxu0 %v8330_v63  ;;  %1272 = vmatprep.subr.mxu1 %v7804_v14  ;;  %v13965_v14 = vld [vmem:[#allocation30_spill] sm:$0xff] }
 0x10f   :  { %1191 = vmatprep.subr.mxu0 %v8334_v2  ;;  %1273 = vmatpush1.msra.mxu1 %v7809_v17  ;;  %v13966_v17 = vld [vmem:[#allocation36_spill] sm:$0xff] }
 0x110   :  { %1192 = vmatpush2.msra.mxu0 %v8338_v4  ;;  %1274 = vmatprep.subr.mxu1 %v7812_v21  ;;  %v13967_v21 = vld [vmem:[#allocation31_spill] sm:$0xff] }
 0x111   :  { %1194 = vmatmul.mubr.f32.vlgmr.msra.gmra.mxu0 %v13892_v60  ;;  %1315 = vmatprep.subr.mxu0 %v7823_v29  ;;  %v13970_v29 = vld [vmem:[#allocation40_spill] sm:$0xff] }
 0x112   :  { %1316 = vmatpush1.msra.mxu0 %v7828_v32  ;;  %1275 = vmatpush1.msra.mxu1 %v7817_v25  ;;  %v13968_v25 = vld [vmem:[#allocation38_spill] sm:$0xff]  ;;  %v13986_v60 = vld [vmem:[#allocation56_spill] sm:$0xff] }
 0x113   :  { %1317 = vmatprep.subr.mxu0 %v7834_v36  ;;  %1276 = vmatprep.subr.mxu1 %v7820_v27  ;;  %v13969_v27 = vld [vmem:[#allocation33_spill] sm:$0xff]  ;;  %v13972_v32 = vld [vmem:[#allocation42_spill] sm:$0xff]  ;;  %v13974_v36 = vld [vmem:[#allocation44_spill] sm:$0xff] }
 0x114   :  { %1318 = vmatpush1.msra.mxu0 %v7841_v40  ;;  %1277 = vmatpush2.msra.mxu1 %v7826_v30  ;;  %v13971_v30 = vld [vmem:[#allocation35_spill] sm:$0xff]  ;;  %v13976_v40 = vld [vmem:[#allocation46_spill] sm:$0xff] }
 0x115   :  { %1319 = vmatprep.subr.mxu0 %v7847_v44  ;;  %1278 = vmatprep.subr.mxu1 %v7832_v34  ;;  %v13973_v34 = vld [vmem:[#allocation37_spill] sm:$0xff]  ;;  %v13978_v44 = vld [vmem:[#allocation48_spill] sm:$0xff] }
 0x116   :  { %1320 = vmatpush1.msra.mxu0 %v7853_v48  ;;  %1279 = vmatpush2.msra.mxu1 %v7839_v38  ;;  %v13975_v38 = vld [vmem:[#allocation39_spill] sm:$0xff]  ;;  %v13980_v48 = vld [vmem:[#allocation50_spill] sm:$0xff] }
 0x117   :  { %1321 = vmatprep.subr.mxu0 %v7859_v50  ;;  %1280 = vmatprep.subr.mxu1 %v7845_v42  ;;  %v13977_v42 = vld [vmem:[#allocation41_spill] sm:$0xff]  ;;  %v13982_v50 = vld [vmem:[#allocation52_spill] sm:$0xff] }
 0x118   :  { %1322 = vmatpush1.msra.mxu0 %v7865_v54  ;;  %1281 = vmatpush2.msra.mxu1 %v7851_v46  ;;  %v13979_v46 = vld [vmem:[#allocation43_spill] sm:$0xff]  ;;  %v13984_v54 = vld [vmem:[#allocation54_spill] sm:$0xff] }
 0x119   :  { %1323 = vmatprep.subr.mxu0 %v7871_v58  ;;  %1282 = vmatprep.subr.mxu1 %v7857_v18  ;;  %v13981_v18 = vld [vmem:[#allocation45_spill] sm:$0xff] }
 0x11a   :  { %1324 = vmatpush1.msra.mxu0 %v7877_v62  ;;  %1283 = vmatpush2.msra.mxu1 %v7863_v52  ;;  %v13983_v52 = vld [vmem:[#allocation47_spill] sm:$0xff]  ;;  %v13985_v58 = vld [vmem:[#allocation49_spill] sm:$0xff] }
 0x11b   :  { %1325 = vmatprep.subr.mxu0 %v7883_v3  ;;  %1284 = vmatprep.subr.mxu1 %v13961_v6  ;;  %v13987_v62 = vld [vmem:[#allocation51_spill] sm:$0xff]  ;;  %v13988_v3 = vld [vmem:[#allocation58_spill] sm:$0xff]  ;;  %v13989_v6 = vld [vmem:[#allocation53_spill] sm:$0xff] }
 0x11c   :  { %1326 = vmatpush1.msra.mxu0 %v13962_v8  ;;  %1285 = vmatpush2.msra.mxu1 %v13963_v10  ;;  %v13990_v8 = vld [vmem:[#allocation60_spill] sm:$0xff]  ;;  %v13991_v10 = vld [vmem:[#allocation55_spill] sm:$0xff] }
 0x11d   :  { %1327 = vmatprep.subr.mxu0 %v13964_v12  ;;  %1286 = vmatprep.subr.mxu1 %v13965_v14  ;;  %v13992_v12 = vld [vmem:[#allocation62_spill] sm:$0xff]  ;;  %v13993_v14 = vld [vmem:[#allocation57_spill] sm:$0xff] }
 0x11e   :  { %1328 = vmatpush1.msra.mxu0 %v13966_v17  ;;  %1287 = vmatpush2.msra.mxu1 %v13967_v21  ;;  %v13994_v17 = vld [vmem:[#allocation64_spill] sm:$0xff]  ;;  %v13995_v21 = vld [vmem:[#allocation59_spill] sm:$0xff] }
 0x11f   :  { %1329 = vmatprep.subr.mxu0 %v13968_v25  ;;  %1288 = vmatprep.subr.mxu1 %v13969_v27  ;;  %v13996_v25 = vld [vmem:[#allocation66_spill] sm:$0xff]  ;;  %v13997_v27 = vld [vmem:[#allocation61_spill] sm:$0xff] }
 0x120   :  { %1330 = vmatpush1.msra.mxu0 %v13970_v29  ;;  %1289 = vmatpush2.msra.mxu1 %v13971_v30  ;;  %v13998_v29 = vld [vmem:[#allocation68_spill] sm:$0xff]  ;;  %v13999_v30 = vld [vmem:[#allocation63_spill] sm:$0xff] }
 0x121   :  { %1331 = vmatprep.subr.mxu0 %v13972_v32  ;;  %1290 = vmatprep.subr.mxu1 %v13973_v34  ;;  %v14000_v32 = vld [vmem:[#allocation70_spill] sm:$0xff]  ;;  %v14001_v34 = vld [vmem:[#allocation65_spill] sm:$0xff] }
 0x122   :  { %1332 = vmatpush1.msra.mxu0 %v13974_v36  ;;  %1291 = vmatpush2.msra.mxu1 %v13975_v38  ;;  %v14002_v36 = vld [vmem:[#allocation72_spill] sm:$0xff]  ;;  %v14003_v38 = vld [vmem:[#allocation67_spill] sm:$0xff] }
 0x123   :  { %1333 = vmatprep.subr.mxu0 %v13976_v40  ;;  %1292 = vmatprep.subr.mxu1 %v13977_v42  ;;  %v14004_v40 = vld [vmem:[#allocation73_spill] sm:$0xff] }
 0x124   :  { %1334 = vmatpush1.msra.mxu0 %v13978_v44  ;;  %1293 = vmatpush2.msra.mxu1 %v13979_v46  ;;  %v14005_v42 = vld [vmem:[#allocation69_spill] sm:$0xff]  ;;  %v14006_v44 = vld [vmem:[#allocation75_spill] sm:$0xff] }
 0x125   :  { %1335 = vmatprep.subr.mxu0 %v13980_v48  ;;  %1294 = vmatprep.subr.mxu1 %v13981_v18  ;;  %v14007_v46 = vld [vmem:[#allocation71_spill] sm:$0xff]  ;;  %v14008_v48 = vld [vmem:[#allocation77_spill] sm:$0xff]  ;;  %v14009_v18 = vld [vmem:[#allocation74_spill] sm:$0xff] }
 0x126   :  { %1336 = vmatpush1.msra.mxu0 %v13982_v50  ;;  %1295 = vmatpush2.msra.mxu1 %v13983_v52  ;;  %v14010_v50 = vld [vmem:[#allocation79_spill] sm:$0xff]  ;;  %v14011_v52 = vld [vmem:[#allocation81_spill] sm:$0xff] }
 0x127   :  { %1337 = vmatprep.subr.mxu0 %v13984_v54  ;;  %1296 = vmatprep.subr.mxu1 %v13985_v58  ;;  %v14012_v54 = vld [vmem:[#allocation83_spill] sm:$0xff]  ;;  %v14013_v58 = vld [vmem:[#allocation85_spill] sm:$0xff] }
 0x128   :  { %1338 = vmatpush1.msra.mxu0 %v13986_v60  ;;  %1297 = vmatpush2.msra.mxu1 %v13987_v62  ;;  %v14014_v60 = vld [vmem:[#allocation87_spill] sm:$0xff]  ;;  %v14015_v62 = vld [vmem:[#allocation89_spill] sm:$0xff] }
 0x129   :  { %1339 = vmatprep.subr.mxu0 %v13988_v3  ;;  %1298 = vmatprep.subr.mxu1 %v13989_v6  ;;  %v14016_v3 = vld [vmem:[#allocation91_spill] sm:$0xff]  ;;  %v14017_v6 = vld [vmem:[#allocation93_spill] sm:$0xff] }
 0x12a   :  { %1340 = vmatpush1.msra.mxu0 %v13990_v8  ;;  %1299 = vmatpush2.msra.mxu1 %v13991_v10  ;;  %v14018_v8 = vld [vmem:[#allocation95_spill] sm:$0xff]  ;;  %v14019_v10 = vld [vmem:[#allocation97_spill] sm:$0xff] }
 0x12b   :  { %1341 = vmatprep.subr.mxu0 %v13992_v12  ;;  %1300 = vmatprep.subr.mxu1 %v13993_v14  ;;  %v14020_v12 = vld [vmem:[#allocation99_spill] sm:$0xff]  ;;  %v208_v14 = vlaneseq }
 0x12c   :  { %1342 = vmatpush1.msra.mxu0 %v13994_v17  ;;  %1301 = vmatpush2.msra.mxu1 %v13995_v21  ;;  %v14021_v17 = vld [vmem:[#allocation101_spill] sm:$0xff]  ;;  %v14022_v21 = vld [vmem:[#allocation103_spill] sm:$0xff] }
 0x12d   :  { %1343 = vmatprep.subr.mxu0 %v13996_v25  ;;  %1302 = vmatprep.subr.mxu1 %v13997_v27  ;;  %v14023_v25 = vld [vmem:[#allocation105_spill] sm:$0xff]  ;;  %v14024_v27 = vld [vmem:[#allocation107_spill] sm:$0xff] }
 0x12e   :  { %1344 = vmatpush1.msra.mxu0 %v13998_v29  ;;  %1303 = vmatpush2.msra.mxu1 %v13999_v30  ;;  %v8432_v29 = vshrl.u32 %v208_v14, 7  ;;  %v14026_v30 = vld [vmem:[#allocation109_spill] sm:$0xff] }
 0x12f   :  { %1345 = vmatprep.subr.mxu0 %v14000_v32  ;;  %1304 = vmatprep.subr.mxu1 %v14001_v34  ;;  %v14027_v32 = vld [vmem:[#allocation111_spill] sm:$0xff] }
 0x130   :  { %1346 = vmatpush1.msra.mxu0 %v14002_v36  ;;  %1305 = vmatpush2.msra.mxu1 %v14003_v38  ;;  %14025 = vst [vmem:[#allocation28_spill] sm:$0xff] %v8432_v29  ;;  %v8437_v34 = vsub.s32 0, %v8432_v29  ;;  %v14029_v38 = vld [vmem:[#allocation113_spill] sm:$0xff]  ;;  %v13090_v14 = vsub.s32 3, %v8432_v29 }
 0x131   :  { %1347 = vmatprep.subr.mxu0 %v14004_v40  ;;  %1306 = vmatprep.subr.mxu1 %v14005_v42  ;;  %v206_v40 = vld [vmem:[%s12972_s4] sm:$0x3f]  ;;  %v14030_v42 = vld [vmem:[#allocation115_spill] sm:$0xff] }
 0x132   :  { %1348 = vmatpush2.msra.mxu0 %v14006_v44  ;;  %1307 = vmatpush2.msra.mxu1 %v14007_v46  ;;  %14028 = vst [vmem:[#allocation32_spill] sm:$0xff] %v8437_v34  ;;  %v8447_v44 = vsub.s32 1, %v8432_v29 }
 0x133   :  { %1349 = vmatprep.subr.mxu0 %v14008_v48  ;;  %1386 = vmatprep.subr.mxu1 %v14009_v18  ;;  %v14032_v48 = vld [vmem:[#allocation118_spill] sm:$0xff]  ;;  %v211_v18 = vrot.slane %v206_v40, %v8437_v34 }
 0x134   :  { %1350 = vmatpush2.msra.mxu0 %v14010_v50  ;;  %14031 = vst [vmem:[#allocation29_spill] sm:$0xff] %v8447_v44  ;;  %v14033_v50 = vld [vmem:[#allocation120_spill] sm:$0xff] }
 0x135   :  { %1351 = vmatprep.subr.mxu0 %v14011_v52 }
 0x136   :  { %1352 = vmatpush2.msra.mxu0 %v14012_v54  ;;  %v215_v54 = vrot.slane %v206_v40, %v8447_v44 }
 0x137   :  { %1353 = vmatprep.subr.mxu0 %v14013_v58 }
 0x138   :  { %1354 = vmatpush2.msra.mxu0 %v14014_v60  ;;  %v14035_v60 = vld [vmem:[#allocation123_spill] sm:$0xff] }
 0x139   :  { %1355 = vmatprep.subr.mxu0 %v14015_v62 }
 0x13a   :  { %1356 = vmatpush2.msra.mxu0 %v14016_v3  ;;  %v14036_v3 = vld [vmem:[#allocation125_spill] sm:$0xff] }
 0x13b   :  { %1357 = vmatprep.subr.mxu0 %v14017_v6 }
 0x13c   :  { %1358 = vmatpush2.msra.mxu0 %v14018_v8  ;;  %v14038_v8 = vld [vmem:[#allocation130_spill] sm:$0xff] }
 0x13d   :  { %1359 = vmatprep.subr.mxu0 %v14019_v10 }
 0x13e   :  { %1360 = vmatpush2.msra.mxu0 %v14020_v12  ;;  %v8466_v12 = vld [vmem:[#allocation9 + $0x2d8] sm:$0xff] }
 0x13f   :  { %1361 = vmatprep.subr.mxu0 %v14021_v17 }
 0x140   :  { %1362 = vmatpush2.msra.mxu0 %v14022_v21 }
 0x141   :  { %1363 = vmatprep.subr.mxu0 %v14023_v25 }
 0x142   :  { %1364 = vmatpush2.msra.mxu0 %v14024_v27  ;;  %v226_v27 = vsub.s32 4, %v8432_v29 }
 0x143   :  { %1365 = vmatprep.subr.mxu0 %v14026_v30 }
 0x144   :  { %1366 = vmatpush2.msra.mxu0 %v14027_v32  ;;  %v230_v32 = vsub.s32 5, %v8432_v29 }
 0x145   :  { %v8439_v36 = vpop.f32.mrf.mxu1  ;;  %1367 = vmatprep.subr.mxu0 %v14029_v38 }
 0x146   :  { %1368 = vmatpush2.msra.mxu0 %v14030_v42  ;;  %v8484_v42 = vrot.slane %v206_v40, %v226_v27 }
 0x147   :  { %v313_v46 = vpop.f32.mrf.mxu1  ;;  %1369 = vmatprep.subr.mxu0 %v8150_v5 }
 0x148   :  { %1370 = vmatpush2.msra.mxu0 %v14032_v48 }
 0x149   :  { %1371 = vmatprep.subr.mxu0 %v14033_v50  ;;  %v8486_v50 = vrot.slane %v206_v40, %v230_v32 }
 0x14a   :  { %v317_v52 = vpop.f32.mrf.mxu1  ;;  %1372 = vmatpush2.msra.mxu0 %v8168_v0  ;;  %v13091_v0 = vsub.s32 2, %v8432_v29 }
 0x14b   :  { %v8455_v58 = vadd.f32 %v317_v52, %v211_v18  ;;  %1373 = vmatprep.subr.mxu0 %v14035_v60 }
 0x14c   :  { %v319_v62 = vpop.f32.mrf.mxu1  ;;  %1374 = vmatpush2.msra.mxu0 %v14036_v3  ;;  %v219_v17 = vrot.slane %v206_v40, %v13091_v0 }
 0x14d   :  { %14034 = vst [vmem:[#allocation34_spill] sm:$0xff] %v8455_v58  ;;  %v8459_v6 = vadd.f32 %v319_v62, %v215_v54  ;;  %1375 = vmatprep.subr.mxu0 %v8188_v11 }
 0x14e   :  { %1376 = vmatpush2.msra.mxu0 %v8194_v23  ;;  %v223_v23 = vrot.slane %v206_v40, %v13090_v14 }
 0x14f   :  { %14037 = vst [vmem:[#allocation30_spill] sm:$0xff] %v8459_v6  ;;  %v388_v5 = vpop.f32.mrf.mxu1  ;;  %1377 = vmatprep.subr.mxu0 %v8201_v1 }
 0x150   :  { %1378 = vmatpush2.msra.mxu0 %v14038_v8 }
 0x151   :  { %v390_v10 = vpop.f32.mrf.mxu1  ;;  %1531 = vmatprep.subr.mxu0 %v8466_v12 }
 0x154   :  { %v394_v11 = vpop.f32.mrf.mxu1 }
 0x155   :  { %v8474_v21 = vadd.f32 %v394_v11, %v219_v17  ;;  %v502_v11 = vld [vmem:[%s12978_s10] sm:$0x3f] }
 0x156   :  { %v396_v1 = vpop.f32.mrf.mxu1  ;;  %v8505_v14 = vrot.slane %v502_v11, %v8447_v44  ;;  %v523_v0 = vrot.slane %v502_v11, %v226_v27  ;;  %v8526_v27 = vadd.f32 %v8439_v36, %v211_v18  ;;  %v8536_v36 = vadd.f32 %v388_v5, %v219_v17 }
 0x157   :  { %14039 = vst [vmem:[#allocation36_spill] sm:$0xff] %v8474_v21  ;;  %v8476_v25 = vadd.f32 %v396_v1, %v223_v23  ;;  %v8502_v1 = vrot.slane %v502_v11, %v8437_v34  ;;  %v8517_v21 = vpop.f32.mrf.mxu0 }
 0x158   :  { %14046 = vst [vmem:[#allocation37_spill] sm:$0xff] %v8505_v14  ;;  %14051 = vst [vmem:[#allocation48_spill] sm:$0xff] %v8517_v21  ;;  %v8623_v21 = vld [vmem:[#allocation9 + $0x188] sm:$0xff] }
 0x159   :  { %14040 = vst [vmem:[#allocation31_spill] sm:$0xff] %v8476_v25  ;;  %v8479_v30 = vpop.f32.mrf.mxu1  ;;  %14045 = vst [vmem:[#allocation42_spill] sm:$0xff] %v8502_v1  ;;  %v8519_v6 = vpop.f32.mrf.mxu0 }
 0x15a   :  { %14052 = vst [vmem:[#allocation43_spill] sm:$0xff] %v8519_v6  ;;  %14057 = vst [vmem:[#allocation54_spill] sm:$0xff] %v8536_v36 }
 0x15b   :  { %v8482_v38 = vpop.f32.mrf.mxu1 }
 0x15e   :  { %v471_v48 = vpop.f32.mrf.mxu1 }
 0x15f   :  { %v8489_v52 = vadd.f32 %v471_v48, %v8484_v42 }
 0x160   :  { %v473_v60 = vpop.f32.mrf.mxu1 }
 0x161   :  { %14041 = vst [vmem:[#allocation38_spill] sm:$0xff] %v8489_v52  ;;  %v8492_v62 = vadd.f32 %v473_v60, %v8486_v50 }
 0x163   :  { %14042 = vst [vmem:[#allocation33_spill] sm:$0xff] %v8492_v62  ;;  %v8494_v3 = vpop.f32.mrf.mxu1 }
 0x164   :  { %14043 = vst [vmem:[#allocation40_spill] sm:$0xff] %v8494_v3 }
 0x165   :  { %v8496_v8 = vpop.f32.mrf.mxu1 }
 0x166   :  { %14044 = vst [vmem:[#allocation35_spill] sm:$0xff] %v8496_v8  ;;  %v527_v8 = vrot.slane %v502_v11, %v230_v32  ;;  %v8528_v32 = vadd.f32 %v313_v46, %v215_v54  ;;  %v8538_v46 = vadd.f32 %v390_v10, %v223_v23 }
 0x168   :  { %v612_v40 = vpop.f32.mrf.mxu1  ;;  %14058 = vst [vmem:[#allocation49_spill] sm:$0xff] %v8538_v46 }
 0x169   :  { %v8508_v48 = vadd.f32 %v612_v40, %v8502_v1  ;;  %v8631_v1 = vld [vmem:[#allocation9 + $0x158] sm:$0xff] }
 0x16a   :  { %v614_v60 = vpop.f32.mrf.mxu1  ;;  %14079 = vst [vmem:[#allocation53_spill] sm:$0xff] %v8631_v1 }
 0x16b   :  { %14047 = vst [vmem:[#allocation44_spill] sm:$0xff] %v8508_v48  ;;  %v8511_v29 = vadd.f32 %v614_v60, %v8505_v14  ;;  %v8627_v14 = vld [vmem:[#allocation9 + $0x180] sm:$0xff] }
 0x16c   :  { %14077 = vst [vmem:[#allocation58_spill] sm:$0xff] %v8627_v14 }
 0x16d   :  { %14048 = vst [vmem:[#allocation39_spill] sm:$0xff] %v8511_v29  ;;  %v760_v3 = vpop.f32.mrf.mxu1 }
 0x16e   :  { %v8513_v62 = vadd.f32 %v760_v3, %v523_v0 }
 0x16f   :  { %v762_v52 = vpop.f32.mrf.mxu1 }
 0x170   :  { %14049 = vst [vmem:[#allocation46_spill] sm:$0xff] %v8513_v62  ;;  %v8515_v25 = vadd.f32 %v762_v52, %v527_v8 }
 0x172   :  { %14050 = vst [vmem:[#allocation41_spill] sm:$0xff] %v8515_v25 }
 0x188   :  { %v8521_v58 = vpop.f32.mrf.mxu0 }
 0x189   :  { %14053 = vst [vmem:[#allocation50_spill] sm:$0xff] %v8521_v58 }
 0x18a   :  { %v8523_v40 = vpop.f32.mrf.mxu0 }
 0x18b   :  { %14054 = vst [vmem:[#allocation45_spill] sm:$0xff] %v8523_v40 }
 0x18e   :  { %v1053_v48 = vpop.f32.mrf.mxu0 }
 0x18f   :  { %v1200_v3 = vadd.f32 %v1053_v48, %v8526_v27 }
 0x190   :  { %v1055_v60 = vpop.f32.mrf.mxu0 }
 0x191   :  { %v1201_v52 = vadd.f32 %v1055_v60, %v8528_v32  ;;  %v6334_v62 = vmul.f32 -1.442695, %v1200_v3 }
 0x193   :  { %v6335_v58 = vmul.f32 -1.442695, %v1201_v52  ;;  %6447 = vpow2.f32 %v6334_v62 }
 0x195   :  { %6449 = vpow2.f32 %v6335_v58  ;;  %v771_v58 = vld [vmem:[#allocation11] sm:$0x3] }
 0x196   :  { %v8543_v17 = vrot.slane %v771_v58, %v8437_v34  ;;  %v8546_v23 = vrot.slane %v771_v58, %v8447_v44  ;;  %v8635_v44 = vld [vmem:[#allocation9 + $0x150] sm:$0xff]  ;;  %v8639_v34 = vld [vmem:[#allocation9 + $0x128] sm:$0xff] }
 0x197   :  { %14081 = vst [vmem:[#allocation60_spill] sm:$0xff] %v8635_v44  ;;  %14083 = vst [vmem:[#allocation55_spill] sm:$0xff] %v8639_v34 }
 0x198   :  { %14059 = vst [vmem:[#allocation56_spill] sm:$0xff] %v8543_v17  ;;  %14060 = vst [vmem:[#allocation51_spill] sm:$0xff] %v8546_v23 }
 0x1ab   :  { %v766_v11 = vpop.f32.mrf.mxu1 }
 0x1ac   :  { %v8532_v29 = vadd.f32 %v766_v11, %v523_v0  ;;  %v6448_v11 = vpop.eup %6447 }
 0x1ad   :  { %v768_v25 = vpop.f32.mrf.mxu1 }
 0x1ae   :  { %14055 = vst [vmem:[#allocation52_spill] sm:$0xff] %v8532_v29  ;;  %v8534_v6 = vadd.f32 %v768_v25, %v527_v8  ;;  %v6450_v29 = vpop.eup %6449  ;;  %v1216_v25 = vadd.f32 1.0, %v6448_v11  ;;  %v8556_v11 = vadd.f32 %v8482_v38, %v8486_v50 }
 0x1af   :  { %v1217_v8 = vadd.f32 1.0, %v6450_v29  ;;  %v8551_v29 = vadd.f32 %v8479_v30, %v8484_v42 }
 0x1b0   :  { %14056 = vst [vmem:[#allocation47_spill] sm:$0xff] %v8534_v6  ;;  %v1124_v40 = vpop.f32.mrf.mxu1 }
 0x1b1   :  { %v1202_v54 = vadd.f32 %v1124_v40, %v8536_v36 }
 0x1b2   :  { %v1126_v18 = vpop.f32.mrf.mxu1 }
 0x1b3   :  { %v1203_v48 = vadd.f32 %v1126_v18, %v8538_v46  ;;  %v6336_v60 = vmul.f32 -1.442695, %v1202_v54 }
 0x1b5   :  { %v6337_v0 = vmul.f32 -1.442695, %v1203_v48  ;;  %6451 = vpow2.f32 %v6336_v60 }
 0x1b7   :  { %6453 = vpow2.f32 %v6337_v0 }
 0x1b8   :  { %6455 = vrcp.f32 %v1216_v25 }
 0x1b9   :  { %6457 = vrcp.f32 %v1217_v8 }
 0x1c2   :  { %v6452_v5 = vpop.eup %6451 }
 0x1c3   :  { %v1218_v62 = vadd.f32 1.0, %v6452_v5 }
 0x1c4   :  { %v6454_v10 = vpop.eup %6453 }
 0x1c5   :  { %v1219_v3 = vadd.f32 1.0, %v6454_v10  ;;  %v6456_v18 = vpop.eup %6455  ;;  %6459 = vrcp.f32 %v1218_v62 }
 0x1c6   :  { %v6458_v0 = vpop.eup %6457 }
 0x1c7   :  { %6461 = vrcp.f32 %v1219_v3  ;;  %v14061_v3 = vld [vmem:[#allocation76_spill] sm:$0xff] }
 0x1d1   :  { %v1195_v40 = vpop.f32.mrf.mxu0 }
 0x1d2   :  { %v1228_v52 = vadd.f32 %v1195_v40, %v8543_v17  ;;  %v6460_v5 = vpop.eup %6459 }
 0x1d3   :  { %v1197_v54 = vpop.f32.mrf.mxu0  ;;  %v1236_v10 = vsub.f32 1.0, %v6460_v5  ;;  %v1240_v6 = vmul.f32 0.0, %v6460_v5  ;;  %v8583_v5 = vld [vmem:[#allocation9 + $0x278] sm:$0xff] }
 0x1d4   :  { %v1230_v48 = vmul.f32 %v6456_v18, %v1228_v52  ;;  %v1229_v60 = vadd.f32 %v1197_v54, %v8546_v23  ;;  %v6462_v30 = vpop.eup %6461 }
 0x1d5   :  { %v1237_v40 = vsub.f32 1.0, %v6462_v30  ;;  %v1241_v54 = vmul.f32 0.0, %v6462_v30  ;;  %v14066_v30 = vld [vmem:[#allocation86_spill] sm:$0xff] }
 0x1d6   :  { %v1232_v25 = vadd.f32 %v1230_v48, %v8551_v29  ;;  %v1231_v8 = vmul.f32 %v6458_v0, %v1229_v60  ;;  %v14062_v48 = vld [vmem:[#allocation78_spill] sm:$0xff]  ;;  %v8571_v60 = vld [vmem:[#allocation9 + $0x2d0] sm:$0xff] }
 0x1d7   :  { %v8575_v0 = vld [vmem:[#allocation9 + $0x2a8] sm:$0xff] }
 0x1d8   :  { %6463 = vtanh.f32 %v1232_v25  ;;  %v1233_v58 = vadd.f32 %v1231_v8, %v8556_v11  ;;  %v14064_v25 = vld [vmem:[#allocation82_spill] sm:$0xff] }
 0x1d9   :  { %v8579_v8 = vld [vmem:[#allocation9 + $0x2a0] sm:$0xff] }
 0x1da   :  { %6465 = vtanh.f32 %v1233_v58  ;;  %v14065_v58 = vld [vmem:[#allocation84_spill] sm:$0xff] }
 0x1e5   :  { %v6464_v42 = vpop.eup %6463 }
 0x1e6   :  { %v1238_v18 = vmul.f32 %v6464_v42, %v1236_v10  ;;  %v8587_v42 = vld [vmem:[#allocation9 + $0x270] sm:$0xff] }
 0x1e7   :  { %v6466_v52 = vpop.eup %6465  ;;  %v14067_v10 = vld [vmem:[#allocation88_spill] sm:$0xff] }
 0x1e8   :  { %v1239_v62 = vmul.f32 %v6466_v52, %v1237_v40  ;;  %v8562_v50 = vadd.f32 %v1240_v6, %v1238_v18  ;;  %v14063_v6 = vld [vmem:[#allocation80_spill] sm:$0xff]  ;;  %v8591_v40 = vld [vmem:[#allocation9 + $0x248] sm:$0xff]  ;;  %v8595_v18 = vld [vmem:[#allocation9 + $0x240] sm:$0xff] }
 0x1e9   :  { %v14068_v52 = vld [vmem:[#allocation90_spill] sm:$0xff] }
 0x1ea   :  { %v8560_v38 = vadd.f32 %v1241_v54, %v1239_v62  ;;  %v14069_v62 = vld [vmem:[#allocation92_spill] sm:$0xff] }
 0x1eb   :  { %v8599_v54 = vld [vmem:[#allocation9 + $0x218] sm:$0xff] }
 0x1ec   :  { %1308 = vmatprep.mubr.f32.mxu1 %v8560_v38  ;;  %1379 = vmatprep.mubr.f32.mxu0 %v8560_v38 }
 0x1ed   :  { %1309 = vmatmul.mubr.f32.vlgmr.msra.gmra.mxu1 %v8562_v50  ;;  %1380 = vmatmul.mubr.f32.vlgmr.msra.gmra.mxu0 %v8562_v50 }
 0x1ee   :  { %1387 = vmatpush1.msra.mxu1 %v14061_v3  ;;  %1450 = vmatprep.mubr.f32.mxu1 %v8560_v38  ;;  %v14070_v3 = vld [vmem:[#allocation94_spill] sm:$0xff] }
 0x1ef   :  { %1388 = vmatprep.subr.mxu1 %v14062_v48  ;;  %1532 = vmatpush1.msra.mxu0 %v8571_v60  ;;  %v8603_v48 = vld [vmem:[#allocation9 + $0x210] sm:$0xff] }
 0x1f0   :  { %1389 = vmatpush1.msra.mxu1 %v14063_v6  ;;  %1533 = vmatprep.subr.mxu0 %v8575_v0  ;;  %v14071_v6 = vld [vmem:[#allocation96_spill] sm:$0xff] }
 0x1f1   :  { %1390 = vmatprep.subr.mxu1 %v14064_v25  ;;  %1534 = vmatpush1.msra.mxu0 %v8579_v8  ;;  %v8607_v25 = vld [vmem:[#allocation9 + $0x1e8] sm:$0xff] }
 0x1f2   :  { %1391 = vmatpush1.msra.mxu1 %v14065_v58  ;;  %1535 = vmatprep.subr.mxu0 %v8583_v5  ;;  %v14072_v58 = vld [vmem:[#allocation98_spill] sm:$0xff] }
 0x1f3   :  { %1392 = vmatprep.subr.mxu1 %v14066_v30  ;;  %1536 = vmatpush1.msra.mxu0 %v8587_v42  ;;  %v8611_v30 = vld [vmem:[#allocation9 + $0x1e0] sm:$0xff] }
 0x1f4   :  { %1393 = vmatpush1.msra.mxu1 %v14067_v10  ;;  %1537 = vmatprep.subr.mxu0 %v8591_v40  ;;  %v14073_v10 = vld [vmem:[#allocation100_spill] sm:$0xff] }
 0x1f5   :  { %1394 = vmatprep.subr.mxu1 %v14068_v52  ;;  %1538 = vmatpush1.msra.mxu0 %v8595_v18  ;;  %v8615_v52 = vld [vmem:[#allocation9 + $0x1b8] sm:$0xff] }
 0x1f6   :  { %1395 = vmatpush1.msra.mxu1 %v14069_v62  ;;  %1539 = vmatprep.subr.mxu0 %v8599_v54  ;;  %v14074_v62 = vld [vmem:[#allocation102_spill] sm:$0xff] }
 0x1f7   :  { %1396 = vmatprep.subr.mxu1 %v14070_v3  ;;  %1540 = vmatpush1.msra.mxu0 %v8603_v48  ;;  %v8619_v3 = vld [vmem:[#allocation9 + $0x1b0] sm:$0xff] }
 0x1f8   :  { %1397 = vmatpush1.msra.mxu1 %v14071_v6  ;;  %1541 = vmatprep.subr.mxu0 %v8607_v25  ;;  %v14075_v6 = vld [vmem:[#allocation104_spill] sm:$0xff] }
 0x1f9   :  { %1398 = vmatprep.subr.mxu1 %v14072_v58  ;;  %1542 = vmatpush1.msra.mxu0 %v8611_v30  ;;  %v14076_v58 = vld [vmem:[#allocation106_spill] sm:$0xff] }
 0x1fa   :  { %1399 = vmatpush1.msra.mxu1 %v14073_v10  ;;  %1543 = vmatprep.subr.mxu0 %v8615_v52  ;;  %v14078_v10 = vld [vmem:[#allocation108_spill] sm:$0xff] }
 0x1fb   :  { %1400 = vmatprep.subr.mxu1 %v14074_v62  ;;  %1544 = vmatpush1.msra.mxu0 %v8619_v3  ;;  %v14080_v62 = vld [vmem:[#allocation110_spill] sm:$0xff] }
 0x1fc   :  { %1401 = vmatpush1.msra.mxu1 %v14075_v6  ;;  %1545 = vmatprep.subr.mxu0 %v8623_v21  ;;  %v14082_v6 = vld [vmem:[#allocation112_spill] sm:$0xff] }
 0x1fd   :  { %1402 = vmatprep.subr.mxu1 %v14076_v58  ;;  %1546 = vmatpush1.msra.mxu0 %v8627_v14  ;;  %v14084_v58 = vld [vmem:[#allocation114_spill] sm:$0xff] }
 0x1fe   :  { %1403 = vmatpush1.msra.mxu1 %v14078_v10  ;;  %1547 = vmatprep.subr.mxu0 %v8631_v1  ;;  %v8643_v14 = vld [vmem:[#allocation9 + $0x120] sm:$0xff]  ;;  %v14086_v10 = vld [vmem:[#allocation116_spill] sm:$0xff] }
 0x1ff   :  { %1404 = vmatprep.subr.mxu1 %v14080_v62  ;;  %1548 = vmatpush1.msra.mxu0 %v8635_v44  ;;  %14085 = vst [vmem:[#allocation62_spill] sm:$0xff] %v8643_v14  ;;  %v8647_v1 = vld [vmem:[#allocation9 + $0xf8] sm:$0xff]  ;;  %v8651_v44 = vld [vmem:[#allocation9 + $0xf0] sm:$0xff] }
 0x200   :  { %1405 = vmatpush1.msra.mxu1 %v14082_v6  ;;  %1549 = vmatprep.subr.mxu0 %v8639_v34  ;;  %14087 = vst [vmem:[#allocation57_spill] sm:$0xff] %v8647_v1  ;;  %v14088_v62 = vld [vmem:[#allocation117_spill] sm:$0xff]  ;;  %14089 = vst [vmem:[#allocation64_spill] sm:$0xff] %v8651_v44  ;;  %v14090_v6 = vld [vmem:[#allocation119_spill] sm:$0xff] }
 0x201   :  { %1406 = vmatprep.subr.mxu1 %v14084_v58  ;;  %1550 = vmatpush1.msra.mxu0 %v8643_v14  ;;  %v8655_v34 = vld [vmem:[#allocation9 + $0xc8] sm:$0xff]  ;;  %v14092_v58 = vld [vmem:[#allocation121_spill] sm:$0xff] }
 0x202   :  { %1407 = vmatpush1.msra.mxu1 %v14086_v10  ;;  %1551 = vmatprep.subr.mxu0 %v8647_v1  ;;  %14091 = vst [vmem:[#allocation59_spill] sm:$0xff] %v8655_v34  ;;  %v8659_v14 = vld [vmem:[#allocation9 + $0xc0] sm:$0xff]  ;;  %v8663_v1 = vld [vmem:[#allocation9 + $0x98] sm:$0xff] }
 0x203   :  { %1408 = vmatprep.subr.mxu1 %v14088_v62  ;;  %1552 = vmatpush1.msra.mxu0 %v8651_v44  ;;  %14093 = vst [vmem:[#allocation66_spill] sm:$0xff] %v8659_v14  ;;  %v14094_v10 = vld [vmem:[#allocation122_spill] sm:$0xff]  ;;  %14095 = vst [vmem:[#allocation61_spill] sm:$0xff] %v8663_v1  ;;  %v14096_v62 = vld [vmem:[#allocation124_spill] sm:$0xff] }
 0x204   :  { %1409 = vmatpush1.msra.mxu1 %v14090_v6  ;;  %1553 = vmatprep.subr.mxu0 %v8655_v34  ;;  %v8667_v44 = vld [vmem:[#allocation9 + $0x90] sm:$0xff]  ;;  %v14098_v6 = vld [vmem:[#allocation126_spill] sm:$0xff] }
 0x205   :  { %1410 = vmatprep.subr.mxu1 %v14092_v58  ;;  %1554 = vmatpush1.msra.mxu0 %v8659_v14  ;;  %14097 = vst [vmem:[#allocation68_spill] sm:$0xff] %v8667_v44  ;;  %v8671_v34 = vld [vmem:[#allocation9 + $0x68] sm:$0xff]  ;;  %v8675_v14 = vld [vmem:[#allocation9 + $0x60] sm:$0xff] }
 0x206   :  { %1411 = vmatpush1.msra.mxu1 %v14094_v10  ;;  %1555 = vmatprep.subr.mxu0 %v8663_v1  ;;  %14099 = vst [vmem:[#allocation63_spill] sm:$0xff] %v8671_v34  ;;  %v14100_v58 = vld [vmem:[#allocation127_spill] sm:$0xff]  ;;  %14101 = vst [vmem:[#allocation70_spill] sm:$0xff] %v8675_v14  ;;  %v14102_v10 = vld [vmem:[#allocation128_spill] sm:$0xff] }
 0x207   :  { %1412 = vmatprep.subr.mxu1 %v14096_v62  ;;  %1556 = vmatpush1.msra.mxu0 %v8667_v44  ;;  %v8679_v1 = vld [vmem:[#allocation9 + $0x38] sm:$0xff]  ;;  %v8683_v44 = vld [vmem:[#allocation9 + $0x30] sm:$0xff] }
 0x208   :  { %1413 = vmatpush1.msra.mxu1 %v14098_v6  ;;  %1557 = vmatprep.subr.mxu0 %v8671_v34  ;;  %v14103_v62 = vld [vmem:[#allocation129_spill] sm:$0xff]  ;;  %v14104_v6 = vld [vmem:[#allocation131_spill] sm:$0xff] }
 0x209   :  { %1414 = vmatprep.subr.mxu1 %v14100_v58  ;;  %1558 = vmatpush1.msra.mxu0 %v8675_v14  ;;  %v8687_v34 = vld [vmem:[#allocation9 + $0x8] sm:$0xff]  ;;  %v14105_v58 = vld [vmem:[#allocation132_spill] sm:$0xff]  ;;  %v8691_v14 = vld [vmem:[#allocation9] sm:$0xff] }
 0x20a   :  { %1415 = vmatpush1.msra.mxu1 %v14102_v10  ;;  %1559 = vmatprep.subr.mxu0 %v8679_v1  ;;  %v8695_v10 = vld [vmem:[#allocation9 + $0x5d8] sm:$0xff] }
 0x20b   :  { %1416 = vmatprep.subr.mxu1 %v14103_v62  ;;  %1560 = vmatpush1.msra.mxu0 %v8683_v44  ;;  %v8699_v62 = vld [vmem:[#allocation9 + $0x5d0] sm:$0xff] }
 0x20c   :  { %1417 = vmatpush1.msra.mxu1 %v14104_v6  ;;  %1561 = vmatprep.subr.mxu0 %v8687_v34  ;;  %v8703_v6 = vld [vmem:[#allocation9 + $0x5a8] sm:$0xff] }
 0x20d   :  { %1418 = vmatprep.subr.mxu1 %v14105_v58  ;;  %1562 = vmatpush1.msra.mxu0 %v8691_v14  ;;  %v8707_v58 = vld [vmem:[#allocation9 + $0x5a0] sm:$0xff] }
 0x20e   :  { %1419 = vmatpush2.msra.mxu1 %v8219_v7  ;;  %1563 = vmatprep.subr.mxu0 %v8695_v10  ;;  %v8711_v7 = vld [vmem:[#allocation9 + $0x578] sm:$0xff] }
 0x20f   :  { %1420 = vmatprep.subr.mxu1 %v8223_v9  ;;  %1564 = vmatpush2.msra.mxu0 %v8699_v62  ;;  %v8715_v9 = vld [vmem:[#allocation9 + $0x570] sm:$0xff] }
 0x210   :  { %1421 = vmatpush2.msra.mxu1 %v8226_v20  ;;  %1565 = vmatprep.subr.mxu0 %v8703_v6  ;;  %v8719_v20 = vld [vmem:[#allocation9 + $0x548] sm:$0xff] }
 0x211   :  { %1422 = vmatprep.subr.mxu1 %v8230_v16  ;;  %1566 = vmatpush2.msra.mxu0 %v8707_v58  ;;  %v8723_v16 = vld [vmem:[#allocation9 + $0x540] sm:$0xff] }
 0x212   :  { %1423 = vmatpush2.msra.mxu1 %v8234_v13  ;;  %1567 = vmatprep.subr.mxu0 %v8711_v7  ;;  %v8727_v13 = vld [vmem:[#allocation9 + $0x518] sm:$0xff] }
 0x213   :  { %1424 = vmatprep.subr.mxu1 %v8238_v56  ;;  %1568 = vmatpush2.msra.mxu0 %v8715_v9  ;;  %v8731_v56 = vld [vmem:[#allocation9 + $0x510] sm:$0xff] }
 0x214   :  { %1425 = vmatpush2.msra.mxu1 %v8242_v15  ;;  %1569 = vmatprep.subr.mxu0 %v8719_v20  ;;  %v8735_v15 = vld [vmem:[#allocation9 + $0x4e8] sm:$0xff] }
 0x215   :  { %1426 = vmatprep.subr.mxu1 %v8246_v19  ;;  %1570 = vmatpush2.msra.mxu0 %v8723_v16  ;;  %v8739_v19 = vld [vmem:[#allocation9 + $0x4e0] sm:$0xff] }
 0x216   :  { %1427 = vmatpush2.msra.mxu1 %v8250_v22  ;;  %1571 = vmatprep.subr.mxu0 %v8727_v13  ;;  %v8743_v22 = vld [vmem:[#allocation9 + $0x4b8] sm:$0xff] }
 0x217   :  { %1428 = vmatprep.subr.mxu1 %v8254_v24  ;;  %1572 = vmatpush2.msra.mxu0 %v8731_v56  ;;  %v8747_v24 = vld [vmem:[#allocation9 + $0x4b0] sm:$0xff] }
 0x218   :  { %1429 = vmatpush2.msra.mxu1 %v8258_v26  ;;  %1573 = vmatprep.subr.mxu0 %v8735_v15  ;;  %v8751_v26 = vld [vmem:[#allocation9 + $0x488] sm:$0xff] }
 0x219   :  { %1430 = vmatprep.subr.mxu1 %v8262_v28  ;;  %1574 = vmatpush2.msra.mxu0 %v8739_v19  ;;  %v8755_v28 = vld [vmem:[#allocation9 + $0x480] sm:$0xff] }
 0x21a   :  { %1431 = vmatpush2.msra.mxu1 %v8266_v31  ;;  %1575 = vmatprep.subr.mxu0 %v8743_v22  ;;  %v8759_v31 = vld [vmem:[#allocation9 + $0x458] sm:$0xff] }
 0x21b   :  { %1432 = vmatprep.subr.mxu1 %v8270_v33  ;;  %1576 = vmatpush2.msra.mxu0 %v8747_v24  ;;  %v8763_v33 = vld [vmem:[#allocation9 + $0x450] sm:$0xff] }
 0x21c   :  { %1433 = vmatpush2.msra.mxu1 %v8274_v35  ;;  %1577 = vmatprep.subr.mxu0 %v8751_v26  ;;  %v8767_v35 = vld [vmem:[#allocation9 + $0x428] sm:$0xff] }
 0x21d   :  { %1434 = vmatprep.subr.mxu1 %v8278_v37  ;;  %1578 = vmatpush2.msra.mxu0 %v8755_v28  ;;  %v8771_v37 = vld [vmem:[#allocation9 + $0x420] sm:$0xff] }
 0x21e   :  { %1435 = vmatpush2.msra.mxu1 %v8282_v39  ;;  %1579 = vmatprep.subr.mxu0 %v8759_v31  ;;  %v8775_v39 = vld [vmem:[#allocation9 + $0x3f8] sm:$0xff] }
 0x21f   :  { %1436 = vmatprep.subr.mxu1 %v8286_v41  ;;  %1580 = vmatpush2.msra.mxu0 %v8763_v33  ;;  %14106 = vst [vmem:[#allocation65_spill] sm:$0xff] %v8775_v39  ;;  %v8779_v41 = vld [vmem:[#allocation9 + $0x3f0] sm:$0xff] }
 0x220   :  { %1437 = vmatpush2.msra.mxu1 %v8290_v43  ;;  %1581 = vmatprep.subr.mxu0 %v8767_v35  ;;  %14107 = vst [vmem:[#allocation72_spill] sm:$0xff] %v8779_v41  ;;  %v8783_v43 = vld [vmem:[#allocation9 + $0x3c8] sm:$0xff] }
 0x221   :  { %1438 = vmatprep.subr.mxu1 %v8294_v45  ;;  %1582 = vmatpush2.msra.mxu0 %v8771_v37  ;;  %14108 = vst [vmem:[#allocation67_spill] sm:$0xff] %v8783_v43  ;;  %v8787_v45 = vld [vmem:[#allocation9 + $0x3c0] sm:$0xff] }
 0x222   :  { %1439 = vmatpush2.msra.mxu1 %v8298_v47  ;;  %1583 = vmatprep.subr.mxu0 %v8775_v39  ;;  %14109 = vst [vmem:[#allocation73_spill] sm:$0xff] %v8787_v45  ;;  %v8791_v47 = vld [vmem:[#allocation9 + $0x398] sm:$0xff] }
 0x223   :  { %1440 = vmatprep.subr.mxu1 %v8302_v49  ;;  %1584 = vmatpush2.msra.mxu0 %v8779_v41  ;;  %14110 = vst [vmem:[#allocation69_spill] sm:$0xff] %v8791_v47  ;;  %v8795_v49 = vld [vmem:[#allocation9 + $0x390] sm:$0xff] }
 0x224   :  { %1441 = vmatpush2.msra.mxu1 %v8306_v51  ;;  %1585 = vmatprep.subr.mxu0 %v8783_v43  ;;  %14111 = vst [vmem:[#allocation75_spill] sm:$0xff] %v8795_v49  ;;  %v8799_v51 = vld [vmem:[#allocation9 + $0x368] sm:$0xff] }
 0x225   :  { %1442 = vmatprep.subr.mxu1 %v8310_v53  ;;  %1586 = vmatpush2.msra.mxu0 %v8787_v45  ;;  %14112 = vst [vmem:[#allocation71_spill] sm:$0xff] %v8799_v51  ;;  %v8803_v53 = vld [vmem:[#allocation9 + $0x360] sm:$0xff] }
 0x226   :  { %1443 = vmatpush2.msra.mxu1 %v8314_v55  ;;  %1587 = vmatprep.subr.mxu0 %v8791_v47  ;;  %14113 = vst [vmem:[#allocation77_spill] sm:$0xff] %v8803_v53  ;;  %v8807_v55 = vld [vmem:[#allocation9 + $0x338] sm:$0xff] }
 0x227   :  { %1444 = vmatprep.subr.mxu1 %v8318_v57  ;;  %1588 = vmatpush2.msra.mxu0 %v8795_v49  ;;  %14114 = vst [vmem:[#allocation74_spill] sm:$0xff] %v8807_v55  ;;  %v8811_v57 = vld [vmem:[#allocation9 + $0x330] sm:$0xff] }
 0x228   :  { %1445 = vmatpush2.msra.mxu1 %v8322_v59  ;;  %1589 = vmatprep.subr.mxu0 %v8799_v51  ;;  %14115 = vst [vmem:[#allocation79_spill] sm:$0xff] %v8811_v57  ;;  %v8815_v59 = vld [vmem:[#allocation9 + $0x308] sm:$0xff] }
 0x229   :  { %1446 = vmatprep.subr.mxu1 %v8326_v61  ;;  %1590 = vmatpush2.msra.mxu0 %v8803_v53  ;;  %14116 = vst [vmem:[#allocation81_spill] sm:$0xff] %v8815_v59  ;;  %v8819_v61 = vld [vmem:[#allocation9 + $0x2e8] sm:$0xff] }
 0x22a   :  { %1447 = vmatpush2.msra.mxu1 %v8330_v63  ;;  %1591 = vmatprep.subr.mxu0 %v8807_v55  ;;  %14117 = vst [vmem:[#allocation83_spill] sm:$0xff] %v8819_v61  ;;  %v8822_v63 = vld [vmem:[#allocation9 + $0x2e0] sm:$0xff] }
 0x22b   :  { %1448 = vmatprep.subr.mxu1 %v8334_v2  ;;  %1592 = vmatpush2.msra.mxu0 %v8811_v57  ;;  %14118 = vst [vmem:[#allocation85_spill] sm:$0xff] %v8822_v63  ;;  %v8825_v2 = vld [vmem:[#allocation9 + $0x300] sm:$0xff]  ;;  %v8828_v57 = vld [vmem:[#allocation9 + $0x2b8] sm:$0xff] }
 0x22c   :  { %1449 = vmatpush2.msra.mxu1 %v8338_v4  ;;  %1593 = vmatprep.subr.mxu0 %v8815_v59  ;;  %14119 = vst [vmem:[#allocation87_spill] sm:$0xff] %v8825_v2  ;;  %14120 = vst [vmem:[#allocation89_spill] sm:$0xff] %v8828_v57  ;;  %v8831_v4 = vld [vmem:[#allocation9 + $0x2f8] sm:$0xff]  ;;  %v8834_v59 = vld [vmem:[#allocation9 + $0x2b0] sm:$0xff] }
 0x22d   :  { %1451 = vmatmul.mubr.f32.vlgmr.msra.gmra.mxu1 %v8562_v50  ;;  %1602 = vmatprep.subr.mxu1 %v8819_v61  ;;  %14121 = vst [vmem:[#allocation91_spill] sm:$0xff] %v8831_v4  ;;  %14122 = vst [vmem:[#allocation93_spill] sm:$0xff] %v8834_v59  ;;  %v8837_v61 = vld [vmem:[#allocation9 + $0x288] sm:$0xff] }
 0x22e   :  { %1603 = vmatpush1.msra.mxu1 %v8822_v63  ;;  %1594 = vmatpush2.msra.mxu0 %v8825_v2  ;;  %14123 = vst [vmem:[#allocation95_spill] sm:$0xff] %v8837_v61  ;;  %v8840_v63 = vld [vmem:[#allocation9 + $0x280] sm:$0xff]  ;;  %v8843_v2 = vld [vmem:[#allocation9 + $0x258] sm:$0xff] }
 0x22f   :  { %1604 = vmatprep.subr.mxu1 %v8828_v57  ;;  %1673 = vmatprep.subr.mxu0 %v8831_v4  ;;  %14124 = vst [vmem:[#allocation97_spill] sm:$0xff] %v8840_v63  ;;  %14125 = vst [vmem:[#allocation99_spill] sm:$0xff] %v8843_v2  ;;  %v8846_v57 = vld [vmem:[#allocation9 + $0x250] sm:$0xff]  ;;  %v8849_v4 = vld [vmem:[#allocation9 + $0x228] sm:$0xff] }
 0x230   :  { %1605 = vmatpush1.msra.mxu1 %v8834_v59  ;;  %14126 = vst [vmem:[#allocation101_spill] sm:$0xff] %v8846_v57  ;;  %14127 = vst [vmem:[#allocation103_spill] sm:$0xff] %v8849_v4  ;;  %v8852_v59 = vld [vmem:[#allocation9 + $0x220] sm:$0xff] }
 0x231   :  { %1606 = vmatprep.subr.mxu1 %v8837_v61  ;;  %14128 = vst [vmem:[#allocation105_spill] sm:$0xff] %v8852_v59  ;;  %v8855_v61 = vld [vmem:[#allocation9 + $0x1f8] sm:$0xff] }
 0x232   :  { %1607 = vmatpush1.msra.mxu1 %v8840_v63  ;;  %14129 = vst [vmem:[#allocation107_spill] sm:$0xff] %v8855_v61  ;;  %v8858_v63 = vld [vmem:[#allocation9 + $0x1f0] sm:$0xff] }
 0x233   :  { %1608 = vmatprep.subr.mxu1 %v8843_v2  ;;  %14130 = vst [vmem:[#allocation109_spill] sm:$0xff] %v8858_v63  ;;  %v8861_v2 = vld [vmem:[#allocation9 + $0x1c8] sm:$0xff] }
 0x234   :  { %1609 = vmatpush1.msra.mxu1 %v8846_v57  ;;  %14131 = vst [vmem:[#allocation111_spill] sm:$0xff] %v8861_v2  ;;  %v8864_v57 = vld [vmem:[#allocation9 + $0x1c0] sm:$0xff] }
 0x235   :  { %1610 = vmatprep.subr.mxu1 %v8849_v4  ;;  %14132 = vst [vmem:[#allocation113_spill] sm:$0xff] %v8864_v57  ;;  %v8867_v4 = vld [vmem:[#allocation9 + $0x198] sm:$0xff] }
 0x236   :  { %1611 = vmatpush1.msra.mxu1 %v8852_v59  ;;  %14133 = vst [vmem:[#allocation115_spill] sm:$0xff] %v8867_v4  ;;  %v8870_v59 = vld [vmem:[#allocation9 + $0x190] sm:$0xff] }
 0x237   :  { %1612 = vmatprep.subr.mxu1 %v8855_v61  ;;  %14134 = vst [vmem:[#allocation118_spill] sm:$0xff] %v8870_v59  ;;  %v8873_v61 = vld [vmem:[#allocation9 + $0x168] sm:$0xff] }
 0x238   :  { %1613 = vmatpush1.msra.mxu1 %v8858_v63  ;;  %14135 = vst [vmem:[#allocation120_spill] sm:$0xff] %v8873_v61  ;;  %v8876_v63 = vld [vmem:[#allocation9 + $0x160] sm:$0xff] }
 0x239   :  { %1614 = vmatprep.subr.mxu1 %v8861_v2  ;;  %14136 = vst [vmem:[#allocation123_spill] sm:$0xff] %v8876_v63  ;;  %v8879_v2 = vld [vmem:[#allocation9 + $0x138] sm:$0xff] }
 0x23a   :  { %1615 = vmatpush1.msra.mxu1 %v8864_v57  ;;  %14137 = vst [vmem:[#allocation125_spill] sm:$0xff] %v8879_v2  ;;  %v8882_v57 = vld [vmem:[#allocation9 + $0x130] sm:$0xff] }
 0x23b   :  { %1616 = vmatprep.subr.mxu1 %v8867_v4  ;;  %14138 = vst [vmem:[#allocation130_spill] sm:$0xff] %v8882_v57  ;;  %v8885_v4 = vld [vmem:[#allocation9 + $0x108] sm:$0xff] }
 0x23c   :  { %1617 = vmatpush1.msra.mxu1 %v8870_v59  ;;  %14139 = vst [vmem:[#allocation76_spill] sm:$0xff] %v8885_v4  ;;  %v8888_v59 = vld [vmem:[#allocation9 + $0x100] sm:$0xff] }
 0x23d   :  { %1618 = vmatprep.subr.mxu1 %v8873_v61  ;;  %14140 = vst [vmem:[#allocation78_spill] sm:$0xff] %v8888_v59  ;;  %v8891_v61 = vld [vmem:[#allocation9 + $0xd8] sm:$0xff] }
 0x23e   :  { %1619 = vmatpush1.msra.mxu1 %v8876_v63  ;;  %14141 = vst [vmem:[#allocation80_spill] sm:$0xff] %v8891_v61  ;;  %v8894_v63 = vld [vmem:[#allocation9 + $0xd0] sm:$0xff] }
 0x23f   :  { %1620 = vmatprep.subr.mxu1 %v8879_v2  ;;  %14142 = vst [vmem:[#allocation82_spill] sm:$0xff] %v8894_v63  ;;  %v8897_v2 = vld [vmem:[#allocation9 + $0xa8] sm:$0xff] }
 0x240   :  { %1621 = vmatpush1.msra.mxu1 %v8882_v57  ;;  %14143 = vst [vmem:[#allocation84_spill] sm:$0xff] %v8897_v2  ;;  %v8900_v57 = vld [vmem:[#allocation9 + $0xa0] sm:$0xff] }
 0x241   :  { %1622 = vmatprep.subr.mxu1 %v8885_v4  ;;  %14144 = vst [vmem:[#allocation86_spill] sm:$0xff] %v8900_v57  ;;  %v8903_v4 = vld [vmem:[#allocation9 + $0x78] sm:$0xff] }
 0x242   :  { %1623 = vmatpush1.msra.mxu1 %v8888_v59  ;;  %14145 = vst [vmem:[#allocation88_spill] sm:$0xff] %v8903_v4  ;;  %v8906_v59 = vld [vmem:[#allocation9 + $0x70] sm:$0xff] }
 0x243   :  { %1624 = vmatprep.subr.mxu1 %v8891_v61  ;;  %14146 = vst [vmem:[#allocation90_spill] sm:$0xff] %v8906_v59  ;;  %v8909_v61 = vld [vmem:[#allocation9 + $0x48] sm:$0xff] }
 0x244   :  { %1625 = vmatpush1.msra.mxu1 %v8894_v63  ;;  %14147 = vst [vmem:[#allocation92_spill] sm:$0xff] %v8909_v61  ;;  %v8912_v63 = vld [vmem:[#allocation9 + $0x40] sm:$0xff] }
 0x245   :  { %1626 = vmatprep.subr.mxu1 %v8897_v2  ;;  %14148 = vst [vmem:[#allocation94_spill] sm:$0xff] %v8912_v63  ;;  %v8915_v2 = vld [vmem:[#allocation9 + $0x18] sm:$0xff] }
 0x246   :  { %1627 = vmatpush1.msra.mxu1 %v8900_v57  ;;  %14149 = vst [vmem:[#allocation96_spill] sm:$0xff] %v8915_v2  ;;  %v8918_v57 = vld [vmem:[#allocation9 + $0x10] sm:$0xff] }
 0x247   :  { %1628 = vmatprep.subr.mxu1 %v8903_v4  ;;  %14150 = vst [vmem:[#allocation98_spill] sm:$0xff] %v8918_v57  ;;  %v8921_v4 = vld [vmem:[#allocation9 + $0x5e8] sm:$0xff] }
 0x248   :  { %1629 = vmatpush1.msra.mxu1 %v8906_v59  ;;  %14151 = vst [vmem:[#allocation100_spill] sm:$0xff] %v8921_v4  ;;  %v8924_v59 = vld [vmem:[#allocation9 + $0x5e0] sm:$0xff] }
 0x249   :  { %1630 = vmatprep.subr.mxu1 %v8909_v61  ;;  %14152 = vst [vmem:[#allocation102_spill] sm:$0xff] %v8924_v59  ;;  %v8927_v61 = vld [vmem:[#allocation9 + $0x5b8] sm:$0xff] }
 0x24a   :  { %1631 = vmatpush1.msra.mxu1 %v8912_v63  ;;  %14153 = vst [vmem:[#allocation104_spill] sm:$0xff] %v8927_v61  ;;  %v8930_v63 = vld [vmem:[#allocation9 + $0x5b0] sm:$0xff] }
 0x24b   :  { %1632 = vmatprep.subr.mxu1 %v8915_v2  ;;  %14154 = vst [vmem:[#allocation106_spill] sm:$0xff] %v8930_v63  ;;  %v8933_v2 = vld [vmem:[#allocation9 + $0x588] sm:$0xff] }
 0x24c   :  { %1633 = vmatpush1.msra.mxu1 %v8918_v57  ;;  %14155 = vst [vmem:[#allocation108_spill] sm:$0xff] %v8933_v2  ;;  %v8936_v57 = vld [vmem:[#allocation9 + $0x580] sm:$0xff] }
 0x24d   :  { %1634 = vmatprep.subr.mxu1 %v8921_v4  ;;  %14156 = vst [vmem:[#allocation110_spill] sm:$0xff] %v8936_v57  ;;  %v8939_v4 = vld [vmem:[#allocation9 + $0x558] sm:$0xff] }
 0x24e   :  { %1635 = vmatpush2.msra.mxu1 %v8924_v59  ;;  %14157 = vst [vmem:[#allocation112_spill] sm:$0xff] %v8939_v4  ;;  %v8942_v59 = vld [vmem:[#allocation9 + $0x550] sm:$0xff] }
 0x24f   :  { %1636 = vmatprep.subr.mxu1 %v8927_v61  ;;  %14158 = vst [vmem:[#allocation114_spill] sm:$0xff] %v8942_v59  ;;  %v8945_v61 = vld [vmem:[#allocation9 + $0x528] sm:$0xff] }
 0x250   :  { %1637 = vmatpush2.msra.mxu1 %v8930_v63  ;;  %14159 = vst [vmem:[#allocation116_spill] sm:$0xff] %v8945_v61  ;;  %v8948_v63 = vld [vmem:[#allocation9 + $0x520] sm:$0xff] }
 0x251   :  { %1638 = vmatprep.subr.mxu1 %v8933_v2  ;;  %14160 = vst [vmem:[#allocation117_spill] sm:$0xff] %v8948_v63  ;;  %v8951_v2 = vld [vmem:[#allocation9 + $0x4f8] sm:$0xff] }
 0x252   :  { %1639 = vmatpush2.msra.mxu1 %v8936_v57  ;;  %14161 = vst [vmem:[#allocation119_spill] sm:$0xff] %v8951_v2  ;;  %v8954_v57 = vld [vmem:[#allocation9 + $0x4f0] sm:$0xff] }
 0x253   :  { %1640 = vmatprep.subr.mxu1 %v8939_v4  ;;  %14162 = vst [vmem:[#allocation121_spill] sm:$0xff] %v8954_v57  ;;  %v8957_v4 = vld [vmem:[#allocation9 + $0x4c8] sm:$0xff] }
 0x254   :  { %1641 = vmatpush2.msra.mxu1 %v8942_v59  ;;  %14163 = vst [vmem:[#allocation122_spill] sm:$0xff] %v8957_v4  ;;  %v8960_v59 = vld [vmem:[#allocation9 + $0x4c0] sm:$0xff] }
 0x255   :  { %1642 = vmatprep.subr.mxu1 %v8945_v61  ;;  %14164 = vst [vmem:[#allocation124_spill] sm:$0xff] %v8960_v59  ;;  %v8963_v61 = vld [vmem:[#allocation9 + $0x498] sm:$0xff] }
 0x256   :  { %1643 = vmatpush2.msra.mxu1 %v8948_v63  ;;  %14165 = vst [vmem:[#allocation126_spill] sm:$0xff] %v8963_v61  ;;  %v8966_v63 = vld [vmem:[#allocation9 + $0x490] sm:$0xff] }
 0x257   :  { %1644 = vmatprep.subr.mxu1 %v8951_v2  ;;  %14166 = vst [vmem:[#allocation127_spill] sm:$0xff] %v8966_v63  ;;  %v8969_v2 = vld [vmem:[#allocation9 + $0x468] sm:$0xff] }
 0x258   :  { %1645 = vmatpush2.msra.mxu1 %v8954_v57  ;;  %14167 = vst [vmem:[#allocation128_spill] sm:$0xff] %v8969_v2  ;;  %v8972_v57 = vld [vmem:[#allocation9 + $0x460] sm:$0xff] }
 0x259   :  { %1646 = vmatprep.subr.mxu1 %v8957_v4  ;;  %14168 = vst [vmem:[#allocation129_spill] sm:$0xff] %v8972_v57  ;;  %v8975_v4 = vld [vmem:[#allocation9 + $0x438] sm:$0xff] }
 0x25a   :  { %1647 = vmatpush2.msra.mxu1 %v8960_v59  ;;  %14169 = vst [vmem:[#allocation131_spill] sm:$0xff] %v8975_v4  ;;  %v8978_v59 = vld [vmem:[#allocation9 + $0x430] sm:$0xff] }
 0x25b   :  { %1648 = vmatprep.subr.mxu1 %v8963_v61  ;;  %14170 = vst [vmem:[#allocation132_spill] sm:$0xff] %v8978_v59  ;;  %v8981_v61 = vld [vmem:[#allocation9 + $0x408] sm:$0xff] }
 0x25c   :  { %1649 = vmatpush2.msra.mxu1 %v8966_v63  ;;  %14171 = vst [vmem:[#allocation133_spill] sm:$0xff] %v8981_v61  ;;  %v8984_v63 = vld [vmem:[#allocation9 + $0x400] sm:$0xff] }
 0x25d   :  { %1650 = vmatprep.subr.mxu1 %v8969_v2  ;;  %14172 = vst [vmem:[#allocation134_spill] sm:$0xff] %v8984_v63  ;;  %v8987_v2 = vld [vmem:[#allocation9 + $0x3d8] sm:$0xff] }
 0x25e   :  { %1651 = vmatpush2.msra.mxu1 %v8972_v57  ;;  %14173 = vst [vmem:[#allocation135_spill] sm:$0xff] %v8987_v2  ;;  %v8990_v57 = vld [vmem:[#allocation9 + $0x3d0] sm:$0xff] }
 0x25f   :  { %1652 = vmatprep.subr.mxu1 %v8975_v4  ;;  %14174 = vst [vmem:[#allocation136_spill] sm:$0xff] %v8990_v57  ;;  %v8993_v4 = vld [vmem:[#allocation9 + $0x3a8] sm:$0xff] }
 0x260   :  { %1653 = vmatpush2.msra.mxu1 %v8978_v59  ;;  %14175 = vst [vmem:[#allocation137_spill] sm:$0xff] %v8993_v4  ;;  %v8996_v59 = vld [vmem:[#allocation9 + $0x3a0] sm:$0xff] }
 0x261   :  { %1654 = vmatprep.subr.mxu1 %v8981_v61  ;;  %14176 = vst [vmem:[#allocation138_spill] sm:$0xff] %v8996_v59  ;;  %v8999_v61 = vld [vmem:[#allocation9 + $0x378] sm:$0xff] }
 0x262   :  { %1655 = vmatpush2.msra.mxu1 %v8984_v63  ;;  %14177 = vst [vmem:[#allocation139_spill] sm:$0xff] %v8999_v61  ;;  %v9002_v63 = vld [vmem:[#allocation9 + $0x370] sm:$0xff] }
 0x263   :  { %1656 = vmatprep.subr.mxu1 %v8987_v2  ;;  %14178 = vst [vmem:[#allocation140_spill] sm:$0xff] %v9002_v63  ;;  %v9005_v2 = vld [vmem:[#allocation9 + $0x348] sm:$0xff] }
 0x264   :  { %1657 = vmatpush2.msra.mxu1 %v8990_v57  ;;  %14179 = vst [vmem:[#allocation141_spill] sm:$0xff] %v9005_v2  ;;  %v9008_v57 = vld [vmem:[#allocation9 + $0x340] sm:$0xff] }
 0x265   :  { %1658 = vmatprep.subr.mxu1 %v8993_v4  ;;  %14180 = vst [vmem:[#allocation142_spill] sm:$0xff] %v9008_v57  ;;  %v9011_v4 = vld [vmem:[#allocation9 + $0x318] sm:$0xff] }
 0x266   :  { %1659 = vmatpush2.msra.mxu1 %v8996_v59  ;;  %14181 = vst [vmem:[#allocation143_spill] sm:$0xff] %v9011_v4  ;;  %v9014_v59 = vld [vmem:[#allocation9 + $0x310] sm:$0xff] }
 0x267   :  { %1660 = vmatprep.subr.mxu1 %v8999_v61  ;;  %14182 = vst [vmem:[#allocation144_spill] sm:$0xff] %v9014_v59 }
 0x268   :  { %1661 = vmatpush2.msra.mxu1 %v9002_v63 }
 0x269   :  { %1662 = vmatprep.subr.mxu1 %v9005_v2 }
 0x26a   :  { %1663 = vmatpush2.msra.mxu1 %v9008_v57 }
 0x26b   :  { %1664 = vmatprep.subr.mxu1 %v9011_v4 }
 0x26c   :  { %1665 = vmatpush2.msra.mxu1 %v9014_v59 }
 0x26d   :  { %1816 = vmatprep.subr.mxu1 %v8466_v12 }
 0x2ad   :  { %v1310_v61 = vpop.f32.mrf.mxu1  ;;  %v1381_v57 = vpop.f32.mrf.mxu0 }
 0x2ae   :  { %v1461_v55 = vrot.slane %v1310_v61, 6  ;;  %v1463_v4 = vrot.slane %v1381_v57, 6 }
 0x2af   :  { %v1312_v63 = vpop.f32.mrf.mxu1  ;;  %v1383_v45 = vpop.f32.mrf.mxu0 }
 0x2b0   :  { %v1462_v53 = vrot.slane %v1312_v63, 6  ;;  %v1469_v2 = vadd.f32 %v1461_v55, %v8526_v27  ;;  %v1464_v43 = vrot.slane %v1383_v45, 6  ;;  %v1471_v59 = vadd.f32 %v1463_v4, %v8536_v36 }
 0x2b2   :  { %v1470_v51 = vadd.f32 %v1462_v53, %v8528_v32  ;;  %v6338_v49 = vmul.f32 -1.442695, %v1469_v2  ;;  %v1472_v12 = vadd.f32 %v1464_v43, %v8538_v46  ;;  %v6340_v41 = vmul.f32 -1.442695, %v1471_v59 }
 0x2b4   :  { %v6339_v47 = vmul.f32 -1.442695, %v1470_v51  ;;  %6467 = vpow2.f32 %v6338_v49  ;;  %v6341_v39 = vmul.f32 -1.442695, %v1472_v12 }
 0x2b6   :  { %6469 = vpow2.f32 %v6339_v47 }
 0x2b7   :  { %6471 = vpow2.f32 %v6340_v41 }
 0x2b8   :  { %6473 = vpow2.f32 %v6341_v39 }
 0x2c1   :  { %v6468_v61 = vpop.eup %6467 }
 0x2c2   :  { %v1485_v55 = vadd.f32 1.0, %v6468_v61 }
 0x2c3   :  { %v6470_v63 = vpop.eup %6469 }
 0x2c4   :  { %v1486_v53 = vadd.f32 1.0, %v6470_v63  ;;  %6475 = vrcp.f32 %v1485_v55  ;;  %v6472_v51 = vpop.eup %6471 }
 0x2c5   :  { %v6474_v49 = vpop.eup %6473  ;;  %v1487_v57 = vadd.f32 1.0, %v6472_v51 }
 0x2c6   :  { %6477 = vrcp.f32 %v1486_v53  ;;  %v1488_v4 = vadd.f32 1.0, %v6474_v49 }
 0x2c7   :  { %6479 = vrcp.f32 %v1487_v57  ;;  %v1518_v57 = vrot.slane %v8560_v38, 6  ;;  %v9038_v38 = vld [vmem:[#allocation9 + $0x2f0] sm:$0xff] }
 0x2c8   :  { %6481 = vrcp.f32 %v1488_v4 }
 0x2d1   :  { %v6476_v59 = vpop.eup %6475 }
 0x2d3   :  { %v6478_v61 = vpop.eup %6477 }
 0x2d4   :  { %v6480_v53 = vpop.eup %6479 }
 0x2d5   :  { %v6482_v51 = vpop.eup %6481 }
 0x2ed   :  { %v1452_v2 = vpop.f32.mrf.mxu1 }
 0x2ee   :  { %v1497_v45 = vadd.f32 %v1452_v2, %v8543_v17  ;;  %v1511_v2 = vsub.f32 1.0, %v6480_v53 }
 0x2ef   :  { %v1454_v47 = vpop.f32.mrf.mxu1 }
 0x2f0   :  { %v1501_v36 = vrot.slane %v1497_v45, 6  ;;  %v1498_v43 = vadd.f32 %v1454_v47, %v8546_v23  ;;  %v1517_v45 = vrot.slane %v8562_v50, 6  ;;  %v1512_v47 = vsub.f32 1.0, %v6482_v51  ;;  %v9041_v50 = vld [vmem:[#allocation9 + $0x2c8] sm:$0xff] }
 0x2f1   :  { %v1522_v23 = vmul.f32 %v6482_v51, %v1518_v57  ;;  %v9101_v51 = vld [vmem:[#allocation9 + $0x170] sm:$0xff] }
 0x2f2   :  { %v1505_v41 = vmul.f32 %v6476_v59, %v1501_v36  ;;  %v1502_v12 = vrot.slane %v1498_v43, 6  ;;  %v1521_v59 = vmul.f32 %v6480_v53, %v1517_v45  ;;  %v9057_v53 = vld [vmem:[#allocation9 + $0x268] sm:$0xff]  ;;  %v9113_v45 = vld [vmem:[#allocation9 + $0x118] sm:$0xff]  ;;  %v9117_v57 = vld [vmem:[#allocation9 + $0x110] sm:$0xff] }
 0x2f4   :  { %v1507_v39 = vadd.f32 %v1505_v41, %v8551_v29  ;;  %v1506_v63 = vmul.f32 %v6478_v61, %v1502_v12 }
 0x2f6   :  { %6483 = vtanh.f32 %v1507_v39  ;;  %v1508_v55 = vadd.f32 %v1506_v63, %v8556_v11  ;;  %v9049_v63 = vld [vmem:[#allocation9 + $0x298] sm:$0xff] }
 0x2f8   :  { %6485 = vtanh.f32 %v1508_v55  ;;  %v9053_v55 = vld [vmem:[#allocation9 + $0x290] sm:$0xff] }
 0x303   :  { %v6484_v49 = vpop.eup %6483 }
 0x304   :  { %v1513_v36 = vmul.f32 %v6484_v49, %v1511_v2  ;;  %v9105_v2 = vld [vmem:[#allocation9 + $0x148] sm:$0xff]  ;;  %v9109_v49 = vld [vmem:[#allocation9 + $0x140] sm:$0xff] }
 0x305   :  { %v6486_v43 = vpop.eup %6485 }
 0x306   :  { %v1514_v4 = vmul.f32 %v6486_v43, %v1512_v47  ;;  %v9028_v41 = vadd.f32 %v1521_v59, %v1513_v36  ;;  %v14187_v47 = vld [vmem:[#allocation62_spill] sm:$0xff]  ;;  %v14188_v36 = vld [vmem:[#allocation57_spill] sm:$0xff]  ;;  %v14189_v59 = vld [vmem:[#allocation64_spill] sm:$0xff] }
 0x307   :  { %v9121_v43 = vld [vmem:[#allocation9 + $0xe8] sm:$0xff] }
 0x308   :  { %v9030_v12 = vadd.f32 %v1522_v23, %v1514_v4  ;;  %v9034_v39 = vrot.slane %v9028_v41, 2  ;;  %v9045_v23 = vld [vmem:[#allocation9 + $0x2c0] sm:$0xff] }
 0x309   :  { %v9125_v4 = vld [vmem:[#allocation9 + $0xe0] sm:$0xff] }
 0x30a   :  { %v1528_v61 = vrot.slane %v9030_v12, 2 }
 0x30c   :  { %1595 = vmatprep.mubr.f32.mxu0 %v1528_v61  ;;  %1666 = vmatprep.mubr.f32.mxu1 %v1528_v61 }
 0x30d   :  { %1596 = vmatmul.mubr.f32.vlgmr.msra.gmra.mxu0 %v9034_v39  ;;  %1667 = vmatmul.mubr.f32.vlgmr.msra.gmra.mxu1 %v9034_v39 }
 0x30e   :  { %1674 = vmatpush1.msra.mxu0 %v9038_v38  ;;  %1737 = vmatprep.mubr.f32.mxu0 %v1528_v61  ;;  %v14190_v61 = vld [vmem:[#allocation59_spill] sm:$0xff] }
 0x30f   :  { %1675 = vmatprep.subr.mxu0 %v9041_v50  ;;  %1817 = vmatpush1.msra.mxu1 %v8571_v60  ;;  %v9061_v60 = vld [vmem:[#allocation9 + $0x260] sm:$0xff] }
 0x310   :  { %1676 = vmatpush1.msra.mxu0 %v9045_v23  ;;  %1818 = vmatprep.subr.mxu1 %v8575_v0  ;;  %v9065_v0 = vld [vmem:[#allocation9 + $0x238] sm:$0xff] }
 0x311   :  { %1677 = vmatprep.subr.mxu0 %v9049_v63  ;;  %1819 = vmatpush1.msra.mxu1 %v8579_v8  ;;  %v9069_v8 = vld [vmem:[#allocation9 + $0x230] sm:$0xff] }
 0x312   :  { %1678 = vmatpush1.msra.mxu0 %v9053_v55  ;;  %1820 = vmatprep.subr.mxu1 %v8583_v5  ;;  %v9073_v5 = vld [vmem:[#allocation9 + $0x208] sm:$0xff] }
 0x313   :  { %1679 = vmatprep.subr.mxu0 %v9057_v53  ;;  %1821 = vmatpush1.msra.mxu1 %v8587_v42  ;;  %v9077_v42 = vld [vmem:[#allocation9 + $0x200] sm:$0xff] }
 0x314   :  { %1680 = vmatpush1.msra.mxu0 %v9061_v60  ;;  %1822 = vmatprep.subr.mxu1 %v8591_v40  ;;  %v9081_v40 = vld [vmem:[#allocation9 + $0x1d8] sm:$0xff] }
 0x315   :  { %1681 = vmatprep.subr.mxu0 %v9065_v0  ;;  %1823 = vmatpush1.msra.mxu1 %v8595_v18  ;;  %v9085_v18 = vld [vmem:[#allocation9 + $0x1d0] sm:$0xff] }
 0x316   :  { %1682 = vmatpush1.msra.mxu0 %v9069_v8  ;;  %1824 = vmatprep.subr.mxu1 %v8599_v54  ;;  %v9089_v54 = vld [vmem:[#allocation9 + $0x1a8] sm:$0xff] }
 0x317   :  { %1683 = vmatprep.subr.mxu0 %v9073_v5  ;;  %1825 = vmatpush1.msra.mxu1 %v8603_v48  ;;  %v9093_v48 = vld [vmem:[#allocation9 + $0x1a0] sm:$0xff] }
 0x318   :  { %1684 = vmatpush1.msra.mxu0 %v9077_v42  ;;  %1826 = vmatprep.subr.mxu1 %v8607_v25  ;;  %v9097_v25 = vld [vmem:[#allocation9 + $0x178] sm:$0xff] }
 0x319   :  { %1685 = vmatprep.subr.mxu0 %v9081_v40  ;;  %1827 = vmatpush1.msra.mxu1 %v8611_v30  ;;  %v14183_v30 = vld [vmem:[#allocation58_spill] sm:$0xff] }
 0x31a   :  { %1686 = vmatpush1.msra.mxu0 %v9085_v18  ;;  %1828 = vmatprep.subr.mxu1 %v8615_v52  ;;  %v14184_v52 = vld [vmem:[#allocation53_spill] sm:$0xff] }
 0x31b   :  { %1687 = vmatprep.subr.mxu0 %v9089_v54  ;;  %1829 = vmatpush1.msra.mxu1 %v8619_v3  ;;  %v14185_v3 = vld [vmem:[#allocation60_spill] sm:$0xff] }
 0x31c   :  { %1688 = vmatpush1.msra.mxu0 %v9093_v48  ;;  %1830 = vmatprep.subr.mxu1 %v8623_v21  ;;  %v14186_v21 = vld [vmem:[#allocation55_spill] sm:$0xff] }
 0x31d   :  { %1689 = vmatprep.subr.mxu0 %v9097_v25  ;;  %1831 = vmatpush1.msra.mxu1 %v14183_v30  ;;  %v9129_v30 = vld [vmem:[#allocation9 + $0xb8] sm:$0xff] }
 0x31e   :  { %1690 = vmatpush1.msra.mxu0 %v9101_v51  ;;  %1832 = vmatprep.subr.mxu1 %v14184_v52  ;;  %14191 = vst [vmem:[#allocation58_spill] sm:$0xff] %v9129_v30  ;;  %v14192_v52 = vld [vmem:[#allocation66_spill] sm:$0xff] }
 0x31f   :  { %1691 = vmatprep.subr.mxu0 %v9105_v2  ;;  %1833 = vmatpush1.msra.mxu1 %v14185_v3  ;;  %v9133_v3 = vld [vmem:[#allocation9 + $0xb0] sm:$0xff] }
 0x320   :  { %1692 = vmatpush1.msra.mxu0 %v9109_v49  ;;  %1834 = vmatprep.subr.mxu1 %v14186_v21  ;;  %14193 = vst [vmem:[#allocation53_spill] sm:$0xff] %v9133_v3  ;;  %v14194_v21 = vld [vmem:[#allocation61_spill] sm:$0xff] }
 0x321   :  { %1693 = vmatprep.subr.mxu0 %v9113_v45  ;;  %1835 = vmatpush1.msra.mxu1 %v14187_v47  ;;  %v9137_v47 = vld [vmem:[#allocation9 + $0x88] sm:$0xff] }
 0x322   :  { %1694 = vmatpush1.msra.mxu0 %v9117_v57  ;;  %1836 = vmatprep.subr.mxu1 %v14188_v36  ;;  %v14195_v36 = vld [vmem:[#allocation68_spill] sm:$0xff] }
 0x323   :  { %1695 = vmatprep.subr.mxu0 %v9121_v43  ;;  %1837 = vmatpush1.msra.mxu1 %v14189_v59  ;;  %v9141_v59 = vld [vmem:[#allocation9 + $0x80] sm:$0xff] }
 0x324   :  { %1696 = vmatpush1.msra.mxu0 %v9125_v4  ;;  %1838 = vmatprep.subr.mxu1 %v14190_v61  ;;  %v14196_v61 = vld [vmem:[#allocation63_spill] sm:$0xff] }
 0x325   :  { %1697 = vmatprep.subr.mxu0 %v9129_v30  ;;  %1839 = vmatpush1.msra.mxu1 %v14192_v52  ;;  %v9145_v30 = vld [vmem:[#allocation9 + $0x58] sm:$0xff]  ;;  %v14197_v52 = vld [vmem:[#allocation70_spill] sm:$0xff] }
 0x326   :  { %1698 = vmatpush1.msra.mxu0 %v9133_v3  ;;  %1840 = vmatprep.subr.mxu1 %v14194_v21  ;;  %v9149_v3 = vld [vmem:[#allocation9 + $0x50] sm:$0xff]  ;;  %v9153_v21 = vld [vmem:[#allocation9 + $0x28] sm:$0xff] }
 0x327   :  { %1699 = vmatprep.subr.mxu0 %v9137_v47  ;;  %1841 = vmatpush1.msra.mxu1 %v14195_v36  ;;  %v9157_v36 = vld [vmem:[#allocation9 + $0x20] sm:$0xff] }
 0x328   :  { %1700 = vmatpush1.msra.mxu0 %v9141_v59  ;;  %1842 = vmatprep.subr.mxu1 %v14196_v61  ;;  %v9161_v61 = vld [vmem:[#allocation9 + $0x5f8] sm:$0xff] }
 0x329   :  { %1701 = vmatprep.subr.mxu0 %v9145_v30  ;;  %1843 = vmatpush1.msra.mxu1 %v14197_v52  ;;  %v9165_v52 = vld [vmem:[#allocation9 + $0x5f0] sm:$0xff] }
 0x32a   :  { %1702 = vmatpush1.msra.mxu0 %v9149_v3  ;;  %1844 = vmatprep.subr.mxu1 %v8679_v1  ;;  %v9169_v1 = vld [vmem:[#allocation9 + $0x5c8] sm:$0xff] }
 0x32b   :  { %1703 = vmatprep.subr.mxu0 %v9153_v21  ;;  %1845 = vmatpush1.msra.mxu1 %v8683_v44  ;;  %v9173_v44 = vld [vmem:[#allocation9 + $0x5c0] sm:$0xff] }
 0x32c   :  { %1704 = vmatpush1.msra.mxu0 %v9157_v36  ;;  %1846 = vmatprep.subr.mxu1 %v8687_v34  ;;  %v9177_v34 = vld [vmem:[#allocation9 + $0x598] sm:$0xff] }
 0x32d   :  { %1705 = vmatprep.subr.mxu0 %v9161_v61  ;;  %1847 = vmatpush1.msra.mxu1 %v8691_v14  ;;  %v9181_v14 = vld [vmem:[#allocation9 + $0x590] sm:$0xff] }
 0x32e   :  { %1706 = vmatpush2.msra.mxu0 %v9165_v52  ;;  %1848 = vmatprep.subr.mxu1 %v8695_v10  ;;  %v9185_v10 = vld [vmem:[#allocation9 + $0x568] sm:$0xff] }
 0x32f   :  { %1707 = vmatprep.subr.mxu0 %v9169_v1  ;;  %1849 = vmatpush2.msra.mxu1 %v8699_v62  ;;  %v9189_v62 = vld [vmem:[#allocation9 + $0x560] sm:$0xff] }
 0x330   :  { %1708 = vmatpush2.msra.mxu0 %v9173_v44  ;;  %1850 = vmatprep.subr.mxu1 %v8703_v6  ;;  %v9193_v6 = vld [vmem:[#allocation9 + $0x538] sm:$0xff] }
 0x331   :  { %1709 = vmatprep.subr.mxu0 %v9177_v34  ;;  %1851 = vmatpush2.msra.mxu1 %v8707_v58  ;;  %v9197_v58 = vld [vmem:[#allocation9 + $0x530] sm:$0xff] }
 0x332   :  { %1710 = vmatpush2.msra.mxu0 %v9181_v14  ;;  %1852 = vmatprep.subr.mxu1 %v8711_v7  ;;  %v9201_v7 = vld [vmem:[#allocation9 + $0x508] sm:$0xff] }
 0x333   :  { %1711 = vmatprep.subr.mxu0 %v9185_v10  ;;  %1853 = vmatpush2.msra.mxu1 %v8715_v9  ;;  %14198 = vst [vmem:[#allocation60_spill] sm:$0xff] %v9201_v7  ;;  %v9205_v9 = vld [vmem:[#allocation9 + $0x500] sm:$0xff] }
 0x334   :  { %1712 = vmatpush2.msra.mxu0 %v9189_v62  ;;  %1854 = vmatprep.subr.mxu1 %v8719_v20  ;;  %14199 = vst [vmem:[#allocation55_spill] sm:$0xff] %v9205_v9  ;;  %v9209_v20 = vld [vmem:[#allocation9 + $0x4d8] sm:$0xff] }
 0x335   :  { %1713 = vmatprep.subr.mxu0 %v9193_v6  ;;  %1855 = vmatpush2.msra.mxu1 %v8723_v16  ;;  %14200 = vst [vmem:[#allocation62_spill] sm:$0xff] %v9209_v20  ;;  %v9213_v16 = vld [vmem:[#allocation9 + $0x4d0] sm:$0xff] }
 0x336   :  { %1714 = vmatpush2.msra.mxu0 %v9197_v58  ;;  %1856 = vmatprep.subr.mxu1 %v8727_v13  ;;  %14201 = vst [vmem:[#allocation57_spill] sm:$0xff] %v9213_v16  ;;  %v9217_v13 = vld [vmem:[#allocation9 + $0x4a8] sm:$0xff] }
 0x337   :  { %1715 = vmatprep.subr.mxu0 %v9201_v7  ;;  %1857 = vmatpush2.msra.mxu1 %v8731_v56  ;;  %14202 = vst [vmem:[#allocation64_spill] sm:$0xff] %v9217_v13  ;;  %v9221_v56 = vld [vmem:[#allocation9 + $0x4a0] sm:$0xff] }
 0x338   :  { %1716 = vmatpush2.msra.mxu0 %v9205_v9  ;;  %1858 = vmatprep.subr.mxu1 %v8735_v15  ;;  %14203 = vst [vmem:[#allocation59_spill] sm:$0xff] %v9221_v56  ;;  %v9225_v15 = vld [vmem:[#allocation9 + $0x478] sm:$0xff] }
 0x339   :  { %1717 = vmatprep.subr.mxu0 %v9209_v20  ;;  %1859 = vmatpush2.msra.mxu1 %v8739_v19  ;;  %14204 = vst [vmem:[#allocation66_spill] sm:$0xff] %v9225_v15  ;;  %v9229_v19 = vld [vmem:[#allocation9 + $0x470] sm:$0xff] }
 0x33a   :  { %1718 = vmatpush2.msra.mxu0 %v9213_v16  ;;  %1860 = vmatprep.subr.mxu1 %v8743_v22  ;;  %14205 = vst [vmem:[#allocation61_spill] sm:$0xff] %v9229_v19  ;;  %v9233_v22 = vld [vmem:[#allocation9 + $0x448] sm:$0xff] }
 0x33b   :  { %1719 = vmatprep.subr.mxu0 %v9217_v13  ;;  %1861 = vmatpush2.msra.mxu1 %v8747_v24  ;;  %14206 = vst [vmem:[#allocation68_spill] sm:$0xff] %v9233_v22  ;;  %v9237_v24 = vld [vmem:[#allocation9 + $0x440] sm:$0xff] }
 0x33c   :  { %1720 = vmatpush2.msra.mxu0 %v9221_v56  ;;  %1862 = vmatprep.subr.mxu1 %v8751_v26  ;;  %14207 = vst [vmem:[#allocation63_spill] sm:$0xff] %v9237_v24  ;;  %v9241_v26 = vld [vmem:[#allocation9 + $0x418] sm:$0xff]  ;;  %v14298_v16 = vld [vmem:[#allocation54_spill] sm:$0xff] }
 0x33d   :  { %1721 = vmatprep.subr.mxu0 %v9225_v15  ;;  %1863 = vmatpush2.msra.mxu1 %v8755_v28  ;;  %14208 = vst [vmem:[#allocation70_spill] sm:$0xff] %v9241_v26  ;;  %v9245_v28 = vld [vmem:[#allocation9 + $0x410] sm:$0xff]  ;;  %v14238_v15 = vld [vmem:[#allocation97_spill] sm:$0xff] }
 0x33e   :  { %1722 = vmatpush2.msra.mxu0 %v9229_v19  ;;  %1864 = vmatprep.subr.mxu1 %v8759_v31  ;;  %14209 = vst [vmem:[#allocation145_spill] sm:$0xff] %v9245_v28  ;;  %v14210_v31 = vld [vmem:[#allocation65_spill] sm:$0xff]  ;;  %v14235_v19 = vld [vmem:[#allocation91_spill] sm:$0xff] }
 0x33f   :  { %1723 = vmatprep.subr.mxu0 %v9233_v22  ;;  %1865 = vmatpush2.msra.mxu1 %v8763_v33  ;;  %v9249_v22 = vld [vmem:[#allocation9 + $0x3e8] sm:$0xff]  ;;  %v14212_v33 = vld [vmem:[#allocation72_spill] sm:$0xff] }
 0x340   :  { %1724 = vmatpush2.msra.mxu0 %v9237_v24  ;;  %1866 = vmatprep.subr.mxu1 %v8767_v35  ;;  %14211 = vst [vmem:[#allocation65_spill] sm:$0xff] %v9249_v22  ;;  %v9253_v24 = vld [vmem:[#allocation9 + $0x3e0] sm:$0xff]  ;;  %v14214_v35 = vld [vmem:[#allocation67_spill] sm:$0xff] }
 0x341   :  { %1725 = vmatprep.subr.mxu0 %v9241_v26  ;;  %1867 = vmatpush2.msra.mxu1 %v8771_v37  ;;  %14213 = vst [vmem:[#allocation72_spill] sm:$0xff] %v9253_v24  ;;  %v9257_v26 = vld [vmem:[#allocation9 + $0x3b8] sm:$0xff] }
 0x342   :  { %1726 = vmatpush2.msra.mxu0 %v9245_v28  ;;  %1868 = vmatprep.subr.mxu1 %v14210_v31  ;;  %14215 = vst [vmem:[#allocation67_spill] sm:$0xff] %v9257_v26  ;;  %v14216_v37 = vld [vmem:[#allocation73_spill] sm:$0xff]  ;;  %v9261_v28 = vld [vmem:[#allocation9 + $0x3b0] sm:$0xff] }
 0x343   :  { %1727 = vmatprep.subr.mxu0 %v9249_v22  ;;  %1869 = vmatpush2.msra.mxu1 %v14212_v33  ;;  %14217 = vst [vmem:[#allocation73_spill] sm:$0xff] %v9261_v28  ;;  %v14218_v31 = vld [vmem:[#allocation69_spill] sm:$0xff]  ;;  %v9265_v22 = vld [vmem:[#allocation9 + $0x388] sm:$0xff] }
 0x344   :  { %1728 = vmatpush2.msra.mxu0 %v9253_v24  ;;  %1870 = vmatprep.subr.mxu1 %v14214_v35  ;;  %14219 = vst [vmem:[#allocation69_spill] sm:$0xff] %v9265_v22  ;;  %v14220_v33 = vld [vmem:[#allocation75_spill] sm:$0xff]  ;;  %v9269_v24 = vld [vmem:[#allocation9 + $0x380] sm:$0xff] }
 0x345   :  { %1729 = vmatprep.subr.mxu0 %v9257_v26  ;;  %1871 = vmatpush2.msra.mxu1 %v14216_v37  ;;  %14221 = vst [vmem:[#allocation75_spill] sm:$0xff] %v9269_v24  ;;  %v14222_v35 = vld [vmem:[#allocation71_spill] sm:$0xff]  ;;  %v9273_v26 = vld [vmem:[#allocation9 + $0x358] sm:$0xff] }
 0x346   :  { %1730 = vmatpush2.msra.mxu0 %v9261_v28  ;;  %1872 = vmatprep.subr.mxu1 %v14218_v31  ;;  %14223 = vst [vmem:[#allocation71_spill] sm:$0xff] %v9273_v26  ;;  %v14224_v37 = vld [vmem:[#allocation77_spill] sm:$0xff]  ;;  %v9277_v28 = vld [vmem:[#allocation9 + $0x350] sm:$0xff]  ;;  %v14226_v31 = vld [vmem:[#allocation74_spill] sm:$0xff] }
 0x347   :  { %1731 = vmatprep.subr.mxu0 %v9265_v22  ;;  %1873 = vmatpush2.msra.mxu1 %v14220_v33  ;;  %14225 = vst [vmem:[#allocation77_spill] sm:$0xff] %v9277_v28  ;;  %v9281_v22 = vld [vmem:[#allocation9 + $0x328] sm:$0xff] }
 0x348   :  { %1732 = vmatpush2.msra.mxu0 %v9269_v24  ;;  %1874 = vmatprep.subr.mxu1 %v14222_v35  ;;  %14227 = vst [vmem:[#allocation74_spill] sm:$0xff] %v9281_v22  ;;  %v14228_v33 = vld [vmem:[#allocation79_spill] sm:$0xff]  ;;  %v9285_v24 = vld [vmem:[#allocation9 + $0x320] sm:$0xff] }
 0x349   :  { %1733 = vmatprep.subr.mxu0 %v9273_v26  ;;  %1875 = vmatpush2.msra.mxu1 %v14224_v37  ;;  %14229 = vst [vmem:[#allocation79_spill] sm:$0xff] %v9285_v24  ;;  %v14230_v35 = vld [vmem:[#allocation81_spill] sm:$0xff]  ;;  %v14231_v37 = vld [vmem:[#allocation83_spill] sm:$0xff] }
 0x34a   :  { %1734 = vmatpush2.msra.mxu0 %v9277_v28  ;;  %1876 = vmatprep.subr.mxu1 %v14226_v31  ;;  %v14232_v26 = vld [vmem:[#allocation85_spill] sm:$0xff]  ;;  %v14233_v28 = vld [vmem:[#allocation87_spill] sm:$0xff] }
 0x34b   :  { %1735 = vmatprep.subr.mxu0 %v9281_v22  ;;  %1877 = vmatpush2.msra.mxu1 %v14228_v33  ;;  %v14234_v31 = vld [vmem:[#allocation89_spill] sm:$0xff]  ;;  %v14237_v33 = vld [vmem:[#allocation95_spill] sm:$0xff] }
 0x34c   :  { %1736 = vmatpush2.msra.mxu0 %v9285_v24  ;;  %1878 = vmatprep.subr.mxu1 %v14230_v35  ;;  %v14236_v22 = vld [vmem:[#allocation93_spill] sm:$0xff]  ;;  %v14239_v24 = vld [vmem:[#allocation99_spill] sm:$0xff] }
 0x34d   :  { %1738 = vmatmul.mubr.f32.vlgmr.msra.gmra.mxu0 %v9034_v39  ;;  %1887 = vmatprep.subr.mxu0 %v14231_v37  ;;  %v14240_v35 = vld [vmem:[#allocation101_spill] sm:$0xff]  ;;  %v14241_v39 = vld [vmem:[#allocation103_spill] sm:$0xff] }
 0x34e   :  { %1888 = vmatpush1.msra.mxu0 %v14232_v26  ;;  %1879 = vmatpush2.msra.mxu1 %v14233_v28  ;;  %v14242_v37 = vld [vmem:[#allocation105_spill] sm:$0xff]  ;;  %v14243_v26 = vld [vmem:[#allocation107_spill] sm:$0xff] }
 0x34f   :  { %1889 = vmatprep.subr.mxu0 %v14234_v31  ;;  %1958 = vmatprep.subr.mxu1 %v14235_v19  ;;  %v14244_v28 = vld [vmem:[#allocation109_spill] sm:$0xff]  ;;  %v14245_v31 = vld [vmem:[#allocation111_spill] sm:$0xff] }
 0x350   :  { %1890 = vmatpush1.msra.mxu0 %v14236_v22  ;;  %v14246_v19 = vld [vmem:[#allocation113_spill] sm:$0xff]  ;;  %v14247_v22 = vld [vmem:[#allocation115_spill] sm:$0xff] }
 0x351   :  { %1891 = vmatprep.subr.mxu0 %v14237_v33  ;;  %v14248_v33 = vld [vmem:[#allocation118_spill] sm:$0xff] }
 0x352   :  { %1892 = vmatpush1.msra.mxu0 %v14238_v15  ;;  %v14249_v15 = vld [vmem:[#allocation120_spill] sm:$0xff] }
 0x353   :  { %1893 = vmatprep.subr.mxu0 %v14239_v24  ;;  %v14250_v24 = vld [vmem:[#allocation123_spill] sm:$0xff] }
 0x354   :  { %1894 = vmatpush1.msra.mxu0 %v14240_v35  ;;  %v14251_v35 = vld [vmem:[#allocation125_spill] sm:$0xff] }
 0x355   :  { %1895 = vmatprep.subr.mxu0 %v14241_v39  ;;  %v14252_v39 = vld [vmem:[#allocation130_spill] sm:$0xff] }
 0x356   :  { %1896 = vmatpush1.msra.mxu0 %v14242_v37  ;;  %v14253_v37 = vld [vmem:[#allocation76_spill] sm:$0xff] }
 0x357   :  { %1897 = vmatprep.subr.mxu0 %v14243_v26  ;;  %v14254_v26 = vld [vmem:[#allocation78_spill] sm:$0xff] }
 0x358   :  { %1898 = vmatpush1.msra.mxu0 %v14244_v28  ;;  %v14255_v28 = vld [vmem:[#allocation80_spill] sm:$0xff] }
 0x359   :  { %1899 = vmatprep.subr.mxu0 %v14245_v31  ;;  %v14256_v31 = vld [vmem:[#allocation82_spill] sm:$0xff] }
 0x35a   :  { %1900 = vmatpush1.msra.mxu0 %v14246_v19  ;;  %v14257_v19 = vld [vmem:[#allocation84_spill] sm:$0xff] }
 0x35b   :  { %1901 = vmatprep.subr.mxu0 %v14247_v22  ;;  %v14258_v22 = vld [vmem:[#allocation86_spill] sm:$0xff] }
 0x35c   :  { %1902 = vmatpush1.msra.mxu0 %v14248_v33  ;;  %v14259_v33 = vld [vmem:[#allocation88_spill] sm:$0xff] }
 0x35d   :  { %1903 = vmatprep.subr.mxu0 %v14249_v15  ;;  %v14260_v15 = vld [vmem:[#allocation90_spill] sm:$0xff] }
 0x35e   :  { %1904 = vmatpush1.msra.mxu0 %v14250_v24  ;;  %v14261_v24 = vld [vmem:[#allocation92_spill] sm:$0xff] }
 0x35f   :  { %1905 = vmatprep.subr.mxu0 %v14251_v35  ;;  %v14262_v35 = vld [vmem:[#allocation94_spill] sm:$0xff] }
 0x360   :  { %1906 = vmatpush1.msra.mxu0 %v14252_v39  ;;  %v14263_v39 = vld [vmem:[#allocation96_spill] sm:$0xff] }
 0x361   :  { %1907 = vmatprep.subr.mxu0 %v14253_v37  ;;  %v14264_v37 = vld [vmem:[#allocation98_spill] sm:$0xff] }
 0x362   :  { %1908 = vmatpush1.msra.mxu0 %v14254_v26  ;;  %v14265_v26 = vld [vmem:[#allocation100_spill] sm:$0xff] }
 0x363   :  { %1909 = vmatprep.subr.mxu0 %v14255_v28  ;;  %v14266_v28 = vld [vmem:[#allocation102_spill] sm:$0xff] }
 0x364   :  { %1910 = vmatpush1.msra.mxu0 %v14256_v31  ;;  %v14267_v31 = vld [vmem:[#allocation104_spill] sm:$0xff] }
 0x365   :  { %1911 = vmatprep.subr.mxu0 %v14257_v19  ;;  %v14268_v19 = vld [vmem:[#allocation106_spill] sm:$0xff] }
 0x366   :  { %1912 = vmatpush1.msra.mxu0 %v14258_v22  ;;  %v14269_v22 = vld [vmem:[#allocation108_spill] sm:$0xff] }
 0x367   :  { %1913 = vmatprep.subr.mxu0 %v14259_v33  ;;  %v14270_v33 = vld [vmem:[#allocation110_spill] sm:$0xff] }
 0x368   :  { %1914 = vmatpush1.msra.mxu0 %v14260_v15  ;;  %v14271_v15 = vld [vmem:[#allocation112_spill] sm:$0xff] }
 0x369   :  { %1915 = vmatprep.subr.mxu0 %v14261_v24  ;;  %v14272_v24 = vld [vmem:[#allocation114_spill] sm:$0xff] }
 0x36a   :  { %1916 = vmatpush1.msra.mxu0 %v14262_v35  ;;  %v14273_v35 = vld [vmem:[#allocation116_spill] sm:$0xff] }
 0x36b   :  { %1917 = vmatprep.subr.mxu0 %v14263_v39  ;;  %v14274_v39 = vld [vmem:[#allocation117_spill] sm:$0xff] }
 0x36c   :  { %1918 = vmatpush1.msra.mxu0 %v14264_v37  ;;  %v14275_v37 = vld [vmem:[#allocation119_spill] sm:$0xff] }
 0x36d   :  { %1919 = vmatprep.subr.mxu0 %v14265_v26  ;;  %v14276_v26 = vld [vmem:[#allocation121_spill] sm:$0xff] }
 0x36e   :  { %1920 = vmatpush2.msra.mxu0 %v14266_v28  ;;  %v14277_v28 = vld [vmem:[#allocation122_spill] sm:$0xff] }
 0x36f   :  { %1921 = vmatprep.subr.mxu0 %v14267_v31  ;;  %v14278_v31 = vld [vmem:[#allocation124_spill] sm:$0xff] }
 0x370   :  { %1922 = vmatpush2.msra.mxu0 %v14268_v19  ;;  %v14279_v19 = vld [vmem:[#allocation126_spill] sm:$0xff] }
 0x371   :  { %1923 = vmatprep.subr.mxu0 %v14269_v22  ;;  %v14280_v22 = vld [vmem:[#allocation127_spill] sm:$0xff] }
 0x372   :  { %1924 = vmatpush2.msra.mxu0 %v14270_v33  ;;  %v14281_v33 = vld [vmem:[#allocation128_spill] sm:$0xff] }
 0x373   :  { %1925 = vmatprep.subr.mxu0 %v14271_v15  ;;  %v14282_v15 = vld [vmem:[#allocation129_spill] sm:$0xff] }
 0x374   :  { %1926 = vmatpush2.msra.mxu0 %v14272_v24  ;;  %v14283_v24 = vld [vmem:[#allocation131_spill] sm:$0xff] }
 0x375   :  { %1927 = vmatprep.subr.mxu0 %v14273_v35  ;;  %v14284_v35 = vld [vmem:[#allocation132_spill] sm:$0xff] }
 0x376   :  { %1928 = vmatpush2.msra.mxu0 %v14274_v39  ;;  %v14285_v39 = vld [vmem:[#allocation133_spill] sm:$0xff] }
 0x377   :  { %1929 = vmatprep.subr.mxu0 %v14275_v37  ;;  %v14286_v37 = vld [vmem:[#allocation134_spill] sm:$0xff] }
 0x378   :  { %1930 = vmatpush2.msra.mxu0 %v14276_v26  ;;  %v14287_v26 = vld [vmem:[#allocation135_spill] sm:$0xff] }
 0x379   :  { %1931 = vmatprep.subr.mxu0 %v14277_v28  ;;  %v14288_v28 = vld [vmem:[#allocation136_spill] sm:$0xff] }
 0x37a   :  { %1932 = vmatpush2.msra.mxu0 %v14278_v31  ;;  %v14289_v31 = vld [vmem:[#allocation137_spill] sm:$0xff] }
 0x37b   :  { %1933 = vmatprep.subr.mxu0 %v14279_v19  ;;  %v14290_v19 = vld [vmem:[#allocation138_spill] sm:$0xff] }
 0x37c   :  { %1934 = vmatpush2.msra.mxu0 %v14280_v22  ;;  %v14291_v22 = vld [vmem:[#allocation139_spill] sm:$0xff] }
 0x37d   :  { %1935 = vmatprep.subr.mxu0 %v14281_v33  ;;  %v14292_v33 = vld [vmem:[#allocation140_spill] sm:$0xff] }
 0x37e   :  { %1936 = vmatpush2.msra.mxu0 %v14282_v15  ;;  %v14293_v15 = vld [vmem:[#allocation141_spill] sm:$0xff] }
 0x37f   :  { %1937 = vmatprep.subr.mxu0 %v14283_v24  ;;  %v14294_v24 = vld [vmem:[#allocation142_spill] sm:$0xff] }
 0x380   :  { %1938 = vmatpush2.msra.mxu0 %v14284_v35  ;;  %v14295_v35 = vld [vmem:[#allocation143_spill] sm:$0xff] }
 0x381   :  { %1939 = vmatprep.subr.mxu0 %v14285_v39  ;;  %v14296_v39 = vld [vmem:[#allocation144_spill] sm:$0xff] }
 0x382   :  { %1940 = vmatpush2.msra.mxu0 %v14286_v37  ;;  %v9356_v37 = vld [vmem:[#allocation9 + $0x2d8] sm:$0xff] }
 0x383   :  { %1941 = vmatprep.subr.mxu0 %v14287_v26  ;;  %14297 = vst [vmem:[#allocation81_spill] sm:$0xff] %v9356_v37 }
 0x384   :  { %1942 = vmatpush2.msra.mxu0 %v14288_v28 }
 0x385   :  { %1943 = vmatprep.subr.mxu0 %v14289_v31 }
 0x386   :  { %1944 = vmatpush2.msra.mxu0 %v14290_v19 }
 0x387   :  { %1945 = vmatprep.subr.mxu0 %v14291_v22 }
 0x388   :  { %1946 = vmatpush2.msra.mxu0 %v14292_v33 }
 0x389   :  { %1947 = vmatprep.subr.mxu0 %v14293_v15 }
 0x38a   :  { %1948 = vmatpush2.msra.mxu0 %v14294_v24 }
 0x38b   :  { %1949 = vmatprep.subr.mxu0 %v14295_v35 }
 0x38c   :  { %1950 = vmatpush2.msra.mxu0 %v14296_v39 }
 0x38d   :  { %2101 = vmatprep.subr.mxu0 %v9356_v37 }
 0x3cd   :  { %v1597_v26 = vpop.f32.mrf.mxu0  ;;  %v1668_v15 = vpop.f32.mrf.mxu1 }
 0x3ce   :  { %v1748_v31 = vrot.slane %v1597_v26, 4  ;;  %v1750_v35 = vrot.slane %v1668_v15, 4 }
 0x3cf   :  { %v1599_v28 = vpop.f32.mrf.mxu0  ;;  %v1670_v24 = vpop.f32.mrf.mxu1 }
 0x3d0   :  { %v1749_v19 = vrot.slane %v1599_v28, 4  ;;  %v1756_v22 = vadd.f32 %v1748_v31, %v8526_v27  ;;  %v1751_v39 = vrot.slane %v1670_v24, 4  ;;  %v1758_v20 = vadd.f32 %v1750_v35, %v14298_v16 }
 0x3d2   :  { %v1757_v33 = vadd.f32 %v1749_v19, %v8528_v32  ;;  %v6342_v56 = vmul.f32 -1.442695, %v1756_v22  ;;  %v1759_v37 = vadd.f32 %v1751_v39, %v8538_v46  ;;  %v6344_v9 = vmul.f32 -1.442695, %v1758_v20  ;;  %v14299_v39 = vld [vmem:[#allocation51_spill] sm:$0xff] }
 0x3d4   :  { %v6343_v13 = vmul.f32 -1.442695, %v1757_v33  ;;  %6487 = vpow2.f32 %v6342_v56  ;;  %v6345_v7 = vmul.f32 -1.442695, %v1759_v37 }
 0x3d6   :  { %6489 = vpow2.f32 %v6343_v13 }
 0x3d7   :  { %6491 = vpow2.f32 %v6344_v9 }
 0x3d8   :  { %6493 = vpow2.f32 %v6345_v7 }
 0x3e1   :  { %v6488_v26 = vpop.eup %6487 }
 0x3e2   :  { %v1772_v31 = vadd.f32 1.0, %v6488_v26 }
 0x3e3   :  { %v6490_v28 = vpop.eup %6489 }
 0x3e4   :  { %v1773_v19 = vadd.f32 1.0, %v6490_v28  ;;  %6495 = vrcp.f32 %v1772_v31  ;;  %v6492_v22 = vpop.eup %6491 }
 0x3e5   :  { %v6494_v56 = vpop.eup %6493  ;;  %v1774_v15 = vadd.f32 1.0, %v6492_v22 }
 0x3e6   :  { %6497 = vrcp.f32 %v1773_v19  ;;  %v1775_v35 = vadd.f32 1.0, %v6494_v56 }
 0x3e7   :  { %6499 = vrcp.f32 %v1774_v15 }
 0x3e8   :  { %6501 = vrcp.f32 %v1775_v35 }
 0x3f1   :  { %v6496_v37 = vpop.eup %6495 }
 0x3f3   :  { %v6498_v26 = vpop.eup %6497 }
 0x3f4   :  { %v6500_v19 = vpop.eup %6499 }
 0x3f5   :  { %v6502_v22 = vpop.eup %6501 }
 0x3f6   :  { %v1799_v15 = vsub.f32 1.0, %v6502_v22 }
 0x40d   :  { %v1739_v33 = vpop.f32.mrf.mxu0 }
 0x40e   :  { %v1784_v13 = vadd.f32 %v1739_v33, %v8543_v17  ;;  %v1798_v33 = vsub.f32 1.0, %v6500_v19 }
 0x40f   :  { %v1741_v24 = vpop.f32.mrf.mxu0 }
 0x410   :  { %v1788_v16 = vrot.slane %v1784_v13, 4  ;;  %v1785_v20 = vadd.f32 %v1741_v24, %v14299_v39  ;;  %v1802_v13 = vrot.slane %v9028_v41, 6  ;;  %v1803_v24 = vrot.slane %v9030_v12, 6  ;;  %v9381_v41 = vld [vmem:[#allocation9 + $0x2d0] sm:$0xff]  ;;  %v9385_v12 = vld [vmem:[#allocation9 + $0x2a8] sm:$0xff] }
 0x412   :  { %v1792_v9 = vmul.f32 %v6496_v37, %v1788_v16  ;;  %v1789_v46 = vrot.slane %v1785_v20, 4  ;;  %v1806_v37 = vmul.f32 %v6500_v19, %v1802_v13  ;;  %v1807_v39 = vmul.f32 %v6502_v22, %v1803_v24  ;;  %v9485_v19 = vld [vmem:[#allocation9 + $0x60] sm:$0xff]  ;;  %v9489_v22 = vld [vmem:[#allocation9 + $0x38] sm:$0xff] }
 0x413   :  { %14304 = vst [vmem:[#allocation87_spill] sm:$0xff] %v9485_v19  ;;  %14305 = vst [vmem:[#allocation89_spill] sm:$0xff] %v9489_v22  ;;  %v9549_v13 = vld [vmem:[#allocation9 + $0x4e0] sm:$0xff]  ;;  %v9553_v24 = vld [vmem:[#allocation9 + $0x4b8] sm:$0xff] }
 0x414   :  { %v1794_v7 = vadd.f32 %v1792_v9, %v8551_v29  ;;  %v1793_v28 = vmul.f32 %v6498_v26, %v1789_v46  ;;  %14323 = vst [vmem:[#allocation120_spill] sm:$0xff] %v9549_v13  ;;  %14325 = vst [vmem:[#allocation123_spill] sm:$0xff] %v9553_v24 }
 0x416   :  { %6503 = vtanh.f32 %v1794_v7  ;;  %v1795_v31 = vadd.f32 %v1793_v28, %v8556_v11  ;;  %v9469_v28 = vld [vmem:[#allocation9 + $0xc0] sm:$0xff] }
 0x418   :  { %6505 = vtanh.f32 %v1795_v31  ;;  %v9473_v31 = vld [vmem:[#allocation9 + $0x98] sm:$0xff] }
 0x423   :  { %v6504_v56 = vpop.eup %6503 }
 0x424   :  { %v1800_v16 = vmul.f32 %v6504_v56, %v1798_v33  ;;  %v9541_v33 = vld [vmem:[#allocation9 + $0x510] sm:$0xff]  ;;  %v9545_v56 = vld [vmem:[#allocation9 + $0x4e8] sm:$0xff] }
 0x425   :  { %v6506_v20 = vpop.eup %6505  ;;  %14319 = vst [vmem:[#allocation115_spill] sm:$0xff] %v9541_v33  ;;  %14321 = vst [vmem:[#allocation118_spill] sm:$0xff] %v9545_v56 }
 0x426   :  { %v1801_v35 = vmul.f32 %v6506_v20, %v1799_v15  ;;  %v9369_v9 = vadd.f32 %v1806_v37, %v1800_v16  ;;  %v14326_v15 = vld [vmem:[#allocation64_spill] sm:$0xff]  ;;  %v14328_v20 = vld [vmem:[#allocation59_spill] sm:$0xff] }
 0x427   :  { %v9557_v16 = vld [vmem:[#allocation9 + $0x4b0] sm:$0xff]  ;;  %v9561_v37 = vld [vmem:[#allocation9 + $0x488] sm:$0xff] }
 0x428   :  { %v9371_v46 = vadd.f32 %v1807_v39, %v1801_v35  ;;  %v9375_v7 = vrot.slane %v9369_v9, 4  ;;  %v9389_v39 = vld [vmem:[#allocation9 + $0x2a0] sm:$0xff]  ;;  %14327 = vst [vmem:[#allocation125_spill] sm:$0xff] %v9557_v16  ;;  %14329 = vst [vmem:[#allocation130_spill] sm:$0xff] %v9561_v37 }
 0x429   :  { %v14330_v35 = vld [vmem:[#allocation66_spill] sm:$0xff] }
 0x42a   :  { %v1813_v26 = vrot.slane %v9371_v46, 4 }
 0x42c   :  { %1880 = vmatprep.mubr.f32.mxu1 %v1813_v26  ;;  %1951 = vmatprep.mubr.f32.mxu0 %v1813_v26 }
 0x42d   :  { %1881 = vmatmul.mubr.f32.vlgmr.msra.gmra.mxu1 %v9375_v7  ;;  %1952 = vmatmul.mubr.f32.vlgmr.msra.gmra.mxu0 %v9375_v7 }
 0x42e   :  { %1959 = vmatpush1.msra.mxu1 %v9038_v38  ;;  %2022 = vmatprep.mubr.f32.mxu1 %v1813_v26  ;;  %v9393_v38 = vld [vmem:[#allocation9 + $0x278] sm:$0xff]  ;;  %v9565_v26 = vld [vmem:[#allocation9 + $0x480] sm:$0xff] }
 0x42f   :  { %1960 = vmatprep.subr.mxu1 %v9041_v50  ;;  %2102 = vmatpush1.msra.mxu0 %v9381_v41  ;;  %v9397_v50 = vld [vmem:[#allocation9 + $0x270] sm:$0xff]  ;;  %14331 = vst [vmem:[#allocation76_spill] sm:$0xff] %v9565_v26 }
 0x430   :  { %1961 = vmatpush1.msra.mxu1 %v9045_v23  ;;  %2103 = vmatprep.subr.mxu0 %v9385_v12  ;;  %v9401_v23 = vld [vmem:[#allocation9 + $0x248] sm:$0xff] }
 0x431   :  { %1962 = vmatprep.subr.mxu1 %v9049_v63  ;;  %2104 = vmatpush1.msra.mxu0 %v9389_v39  ;;  %v9405_v63 = vld [vmem:[#allocation9 + $0x240] sm:$0xff] }
 0x432   :  { %1963 = vmatpush1.msra.mxu1 %v9053_v55  ;;  %2105 = vmatprep.subr.mxu0 %v9393_v38  ;;  %v9409_v55 = vld [vmem:[#allocation9 + $0x218] sm:$0xff] }
 0x433   :  { %1964 = vmatprep.subr.mxu1 %v9057_v53  ;;  %2106 = vmatpush1.msra.mxu0 %v9397_v50  ;;  %v9413_v53 = vld [vmem:[#allocation9 + $0x210] sm:$0xff] }
 0x434   :  { %1965 = vmatpush1.msra.mxu1 %v9061_v60  ;;  %2107 = vmatprep.subr.mxu0 %v9401_v23  ;;  %v9417_v60 = vld [vmem:[#allocation9 + $0x1e8] sm:$0xff] }
 0x435   :  { %1966 = vmatprep.subr.mxu1 %v9065_v0  ;;  %2108 = vmatpush1.msra.mxu0 %v9405_v63  ;;  %v9421_v0 = vld [vmem:[#allocation9 + $0x1e0] sm:$0xff] }
 0x436   :  { %1967 = vmatpush1.msra.mxu1 %v9069_v8  ;;  %2109 = vmatprep.subr.mxu0 %v9409_v55  ;;  %v9425_v8 = vld [vmem:[#allocation9 + $0x1b8] sm:$0xff] }
 0x437   :  { %1968 = vmatprep.subr.mxu1 %v9073_v5  ;;  %2110 = vmatpush1.msra.mxu0 %v9413_v53  ;;  %v9429_v5 = vld [vmem:[#allocation9 + $0x1b0] sm:$0xff] }
 0x438   :  { %1969 = vmatpush1.msra.mxu1 %v9077_v42  ;;  %2111 = vmatprep.subr.mxu0 %v9417_v60  ;;  %v9433_v42 = vld [vmem:[#allocation9 + $0x188] sm:$0xff] }
 0x439   :  { %1970 = vmatprep.subr.mxu1 %v9081_v40  ;;  %2112 = vmatpush1.msra.mxu0 %v9421_v0  ;;  %v9437_v40 = vld [vmem:[#allocation9 + $0x180] sm:$0xff] }
 0x43a   :  { %1971 = vmatpush1.msra.mxu1 %v9085_v18  ;;  %2113 = vmatprep.subr.mxu0 %v9425_v8  ;;  %v9441_v18 = vld [vmem:[#allocation9 + $0x158] sm:$0xff] }
 0x43b   :  { %1972 = vmatprep.subr.mxu1 %v9089_v54  ;;  %2114 = vmatpush1.msra.mxu0 %v9429_v5  ;;  %v9445_v54 = vld [vmem:[#allocation9 + $0x150] sm:$0xff] }
 0x43c   :  { %1973 = vmatpush1.msra.mxu1 %v9093_v48  ;;  %2115 = vmatprep.subr.mxu0 %v9433_v42  ;;  %v9449_v48 = vld [vmem:[#allocation9 + $0x128] sm:$0xff] }
 0x43d   :  { %1974 = vmatprep.subr.mxu1 %v9097_v25  ;;  %2116 = vmatpush1.msra.mxu0 %v9437_v40  ;;  %v9453_v25 = vld [vmem:[#allocation9 + $0x120] sm:$0xff] }
 0x43e   :  { %1975 = vmatpush1.msra.mxu1 %v9101_v51  ;;  %2117 = vmatprep.subr.mxu0 %v9441_v18  ;;  %v9457_v51 = vld [vmem:[#allocation9 + $0xf8] sm:$0xff] }
 0x43f   :  { %1976 = vmatprep.subr.mxu1 %v9105_v2  ;;  %2118 = vmatpush1.msra.mxu0 %v9445_v54  ;;  %v9461_v2 = vld [vmem:[#allocation9 + $0xf0] sm:$0xff] }
 0x440   :  { %1977 = vmatpush1.msra.mxu1 %v9109_v49  ;;  %2119 = vmatprep.subr.mxu0 %v9449_v48  ;;  %v9465_v49 = vld [vmem:[#allocation9 + $0xc8] sm:$0xff] }
 0x441   :  { %1978 = vmatprep.subr.mxu1 %v9113_v45  ;;  %2120 = vmatpush1.msra.mxu0 %v9453_v25  ;;  %v14300_v45 = vld [vmem:[#allocation58_spill] sm:$0xff] }
 0x442   :  { %1979 = vmatpush1.msra.mxu1 %v9117_v57  ;;  %2121 = vmatprep.subr.mxu0 %v9457_v51  ;;  %v14301_v57 = vld [vmem:[#allocation53_spill] sm:$0xff] }
 0x443   :  { %1980 = vmatprep.subr.mxu1 %v9121_v43  ;;  %2122 = vmatpush1.msra.mxu0 %v9461_v2  ;;  %v9477_v43 = vld [vmem:[#allocation9 + $0x90] sm:$0xff] }
 0x444   :  { %1981 = vmatpush1.msra.mxu1 %v9125_v4  ;;  %2123 = vmatprep.subr.mxu0 %v9465_v49  ;;  %14302 = vst [vmem:[#allocation83_spill] sm:$0xff] %v9477_v43  ;;  %v9481_v4 = vld [vmem:[#allocation9 + $0x68] sm:$0xff] }
 0x445   :  { %1982 = vmatprep.subr.mxu1 %v14300_v45  ;;  %2124 = vmatpush1.msra.mxu0 %v9469_v28  ;;  %14303 = vst [vmem:[#allocation85_spill] sm:$0xff] %v9481_v4  ;;  %v14332_v45 = vld [vmem:[#allocation61_spill] sm:$0xff] }
 0x446   :  { %1983 = vmatpush1.msra.mxu1 %v14301_v57  ;;  %2125 = vmatprep.subr.mxu0 %v9473_v31  ;;  %v9569_v57 = vld [vmem:[#allocation9 + $0x458] sm:$0xff] }
 0x447   :  { %1984 = vmatprep.subr.mxu1 %v9137_v47  ;;  %2126 = vmatpush1.msra.mxu0 %v9477_v43  ;;  %v9493_v47 = vld [vmem:[#allocation9 + $0x30] sm:$0xff]  ;;  %14333 = vst [vmem:[#allocation78_spill] sm:$0xff] %v9569_v57 }
 0x448   :  { %1985 = vmatpush1.msra.mxu1 %v9141_v59  ;;  %2127 = vmatprep.subr.mxu0 %v9481_v4  ;;  %14306 = vst [vmem:[#allocation91_spill] sm:$0xff] %v9493_v47  ;;  %v9497_v59 = vld [vmem:[#allocation9 + $0x8] sm:$0xff] }
 0x449   :  { %1986 = vmatprep.subr.mxu1 %v9145_v30  ;;  %2128 = vmatpush1.msra.mxu0 %v9485_v19  ;;  %14307 = vst [vmem:[#allocation93_spill] sm:$0xff] %v9497_v59  ;;  %v9501_v30 = vld [vmem:[#allocation9] sm:$0xff] }
 0x44a   :  { %1987 = vmatpush1.msra.mxu1 %v9149_v3  ;;  %2129 = vmatprep.subr.mxu0 %v9489_v22  ;;  %14308 = vst [vmem:[#allocation95_spill] sm:$0xff] %v9501_v30  ;;  %v9505_v3 = vld [vmem:[#allocation9 + $0x5d8] sm:$0xff] }
 0x44b   :  { %1988 = vmatprep.subr.mxu1 %v9153_v21  ;;  %2130 = vmatpush1.msra.mxu0 %v9493_v47  ;;  %14309 = vst [vmem:[#allocation97_spill] sm:$0xff] %v9505_v3  ;;  %v9509_v21 = vld [vmem:[#allocation9 + $0x5d0] sm:$0xff] }
 0x44c   :  { %1989 = vmatpush1.msra.mxu1 %v9157_v36  ;;  %2131 = vmatprep.subr.mxu0 %v9497_v59  ;;  %14310 = vst [vmem:[#allocation99_spill] sm:$0xff] %v9509_v21  ;;  %v9513_v36 = vld [vmem:[#allocation9 + $0x5a8] sm:$0xff] }
 0x44d   :  { %1990 = vmatprep.subr.mxu1 %v9161_v61  ;;  %2132 = vmatpush1.msra.mxu0 %v9501_v30  ;;  %14311 = vst [vmem:[#allocation101_spill] sm:$0xff] %v9513_v36  ;;  %v9517_v61 = vld [vmem:[#allocation9 + $0x5a0] sm:$0xff] }
 0x44e   :  { %1991 = vmatpush2.msra.mxu1 %v9165_v52  ;;  %2133 = vmatprep.subr.mxu0 %v9505_v3  ;;  %14312 = vst [vmem:[#allocation103_spill] sm:$0xff] %v9517_v61  ;;  %v9521_v52 = vld [vmem:[#allocation9 + $0x578] sm:$0xff] }
 0x44f   :  { %1992 = vmatprep.subr.mxu1 %v9169_v1  ;;  %2134 = vmatpush2.msra.mxu0 %v9509_v21  ;;  %14313 = vst [vmem:[#allocation105_spill] sm:$0xff] %v9521_v52  ;;  %v9525_v1 = vld [vmem:[#allocation9 + $0x570] sm:$0xff] }
 0x450   :  { %1993 = vmatpush2.msra.mxu1 %v9173_v44  ;;  %2135 = vmatprep.subr.mxu0 %v9513_v36  ;;  %14314 = vst [vmem:[#allocation107_spill] sm:$0xff] %v9525_v1  ;;  %v9529_v44 = vld [vmem:[#allocation9 + $0x548] sm:$0xff] }
 0x451   :  { %1994 = vmatprep.subr.mxu1 %v9177_v34  ;;  %2136 = vmatpush2.msra.mxu0 %v9517_v61  ;;  %14315 = vst [vmem:[#allocation109_spill] sm:$0xff] %v9529_v44  ;;  %v9533_v34 = vld [vmem:[#allocation9 + $0x540] sm:$0xff] }
 0x452   :  { %1995 = vmatpush2.msra.mxu1 %v9181_v14  ;;  %2137 = vmatprep.subr.mxu0 %v9521_v52  ;;  %14316 = vst [vmem:[#allocation111_spill] sm:$0xff] %v9533_v34  ;;  %v9537_v14 = vld [vmem:[#allocation9 + $0x518] sm:$0xff] }
 0x453   :  { %1996 = vmatprep.subr.mxu1 %v9185_v10  ;;  %2138 = vmatpush2.msra.mxu0 %v9525_v1  ;;  %14317 = vst [vmem:[#allocation113_spill] sm:$0xff] %v9537_v14  ;;  %v14318_v10 = vld [vmem:[#allocation60_spill] sm:$0xff] }
 0x454   :  { %1997 = vmatpush2.msra.mxu1 %v9189_v62  ;;  %2139 = vmatprep.subr.mxu0 %v9529_v44  ;;  %v14320_v62 = vld [vmem:[#allocation55_spill] sm:$0xff] }
 0x455   :  { %1998 = vmatprep.subr.mxu1 %v9193_v6  ;;  %2140 = vmatpush2.msra.mxu0 %v9533_v34  ;;  %v14322_v6 = vld [vmem:[#allocation62_spill] sm:$0xff] }
 0x456   :  { %1999 = vmatpush2.msra.mxu1 %v9197_v58  ;;  %2141 = vmatprep.subr.mxu0 %v9537_v14  ;;  %v14324_v58 = vld [vmem:[#allocation57_spill] sm:$0xff] }
 0x457   :  { %2000 = vmatprep.subr.mxu1 %v14318_v10  ;;  %2142 = vmatpush2.msra.mxu0 %v9541_v33  ;;  %v14334_v10 = vld [vmem:[#allocation68_spill] sm:$0xff] }
 0x458   :  { %2001 = vmatpush2.msra.mxu1 %v14320_v62  ;;  %2143 = vmatprep.subr.mxu0 %v9545_v56  ;;  %v9573_v62 = vld [vmem:[#allocation9 + $0x450] sm:$0xff]  ;;  %v14430_v56 = vld [vmem:[#allocation49_spill] sm:$0xff] }
 0x459   :  { %2002 = vmatprep.subr.mxu1 %v14322_v6  ;;  %2144 = vmatpush2.msra.mxu0 %v9549_v13  ;;  %14335 = vst [vmem:[#allocation80_spill] sm:$0xff] %v9573_v62  ;;  %v14336_v6 = vld [vmem:[#allocation63_spill] sm:$0xff]  ;;  %v14429_v13 = vld [vmem:[#allocation54_spill] sm:$0xff] }
 0x45a   :  { %2003 = vmatpush2.msra.mxu1 %v14324_v58  ;;  %2145 = vmatprep.subr.mxu0 %v9553_v24  ;;  %v9577_v58 = vld [vmem:[#allocation9 + $0x428] sm:$0xff] }
 0x45b   :  { %2004 = vmatprep.subr.mxu1 %v14326_v15  ;;  %2146 = vmatpush2.msra.mxu0 %v9557_v16  ;;  %14337 = vst [vmem:[#allocation82_spill] sm:$0xff] %v9577_v58  ;;  %v14338_v15 = vld [vmem:[#allocation70_spill] sm:$0xff] }
 0x45c   :  { %2005 = vmatpush2.msra.mxu1 %v14328_v20  ;;  %2147 = vmatprep.subr.mxu0 %v9561_v37  ;;  %v9581_v20 = vld [vmem:[#allocation9 + $0x420] sm:$0xff] }
 0x45d   :  { %2006 = vmatprep.subr.mxu1 %v14330_v35  ;;  %2148 = vmatpush2.msra.mxu0 %v9565_v26  ;;  %14339 = vst [vmem:[#allocation84_spill] sm:$0xff] %v9581_v20  ;;  %v14340_v35 = vld [vmem:[#allocation145_spill] sm:$0xff] }
 0x45e   :  { %2007 = vmatpush2.msra.mxu1 %v14332_v45  ;;  %2149 = vmatprep.subr.mxu0 %v9569_v57  ;;  %v9585_v45 = vld [vmem:[#allocation9 + $0x3f8] sm:$0xff] }
 0x45f   :  { %2008 = vmatprep.subr.mxu1 %v14334_v10  ;;  %2150 = vmatpush2.msra.mxu0 %v9573_v62  ;;  %14341 = vst [vmem:[#allocation86_spill] sm:$0xff] %v9585_v45  ;;  %v14342_v10 = vld [vmem:[#allocation65_spill] sm:$0xff]  ;;  %v9589_v62 = vld [vmem:[#allocation9 + $0x3f0] sm:$0xff] }
 0x460   :  { %2009 = vmatpush2.msra.mxu1 %v14336_v6  ;;  %2151 = vmatprep.subr.mxu0 %v9577_v58  ;;  %14343 = vst [vmem:[#allocation88_spill] sm:$0xff] %v9589_v62  ;;  %v14344_v6 = vld [vmem:[#allocation72_spill] sm:$0xff]  ;;  %v9593_v58 = vld [vmem:[#allocation9 + $0x3c8] sm:$0xff] }
 0x461   :  { %2010 = vmatprep.subr.mxu1 %v14338_v15  ;;  %2152 = vmatpush2.msra.mxu0 %v9581_v20  ;;  %14345 = vst [vmem:[#allocation90_spill] sm:$0xff] %v9593_v58  ;;  %v14346_v15 = vld [vmem:[#allocation67_spill] sm:$0xff]  ;;  %v9597_v20 = vld [vmem:[#allocation9 + $0x3c0] sm:$0xff] }
 0x462   :  { %2011 = vmatpush2.msra.mxu1 %v14340_v35  ;;  %2153 = vmatprep.subr.mxu0 %v9585_v45  ;;  %14347 = vst [vmem:[#allocation92_spill] sm:$0xff] %v9597_v20  ;;  %v14348_v35 = vld [vmem:[#allocation73_spill] sm:$0xff] }
 0x463   :  { %2012 = vmatprep.subr.mxu1 %v14342_v10  ;;  %2154 = vmatpush2.msra.mxu0 %v9589_v62  ;;  %v9601_v45 = vld [vmem:[#allocation9 + $0x398] sm:$0xff]  ;;  %v9605_v62 = vld [vmem:[#allocation9 + $0x390] sm:$0xff] }
 0x464   :  { %2013 = vmatpush2.msra.mxu1 %v14344_v6  ;;  %2155 = vmatprep.subr.mxu0 %v9593_v58  ;;  %14349 = vst [vmem:[#allocation94_spill] sm:$0xff] %v9601_v45  ;;  %v14350_v10 = vld [vmem:[#allocation69_spill] sm:$0xff]  ;;  %14351 = vst [vmem:[#allocation96_spill] sm:$0xff] %v9605_v62  ;;  %v14352_v6 = vld [vmem:[#allocation75_spill] sm:$0xff] }
 0x465   :  { %2014 = vmatprep.subr.mxu1 %v14346_v15  ;;  %2156 = vmatpush2.msra.mxu0 %v9597_v20  ;;  %v9609_v58 = vld [vmem:[#allocation9 + $0x368] sm:$0xff]  ;;  %v9613_v20 = vld [vmem:[#allocation9 + $0x360] sm:$0xff] }
 0x466   :  { %2015 = vmatpush2.msra.mxu1 %v14348_v35  ;;  %2157 = vmatprep.subr.mxu0 %v9601_v45  ;;  %14353 = vst [vmem:[#allocation98_spill] sm:$0xff] %v9609_v58  ;;  %v14354_v15 = vld [vmem:[#allocation71_spill] sm:$0xff]  ;;  %14355 = vst [vmem:[#allocation100_spill] sm:$0xff] %v9613_v20  ;;  %v14356_v35 = vld [vmem:[#allocation77_spill] sm:$0xff] }
 0x467   :  { %2016 = vmatprep.subr.mxu1 %v14350_v10  ;;  %2158 = vmatpush2.msra.mxu0 %v9605_v62  ;;  %v9617_v45 = vld [vmem:[#allocation9 + $0x338] sm:$0xff]  ;;  %v14358_v10 = vld [vmem:[#allocation74_spill] sm:$0xff]  ;;  %v9621_v62 = vld [vmem:[#allocation9 + $0x330] sm:$0xff] }
 0x468   :  { %2017 = vmatpush2.msra.mxu1 %v14352_v6  ;;  %2159 = vmatprep.subr.mxu0 %v9609_v58  ;;  %14357 = vst [vmem:[#allocation102_spill] sm:$0xff] %v9617_v45  ;;  %14359 = vst [vmem:[#allocation104_spill] sm:$0xff] %v9621_v62  ;;  %v14360_v6 = vld [vmem:[#allocation79_spill] sm:$0xff] }
 0x469   :  { %2018 = vmatprep.subr.mxu1 %v14354_v15  ;;  %2160 = vmatpush2.msra.mxu0 %v9613_v20  ;;  %v9625_v58 = vld [vmem:[#allocation9 + $0x308] sm:$0xff] }
 0x46a   :  { %2019 = vmatpush2.msra.mxu1 %v14356_v35  ;;  %2161 = vmatprep.subr.mxu0 %v9617_v45  ;;  %14361 = vst [vmem:[#allocation106_spill] sm:$0xff] %v9625_v58  ;;  %v9629_v15 = vld [vmem:[#allocation9 + $0x2e8] sm:$0xff]  ;;  %v9632_v35 = vld [vmem:[#allocation9 + $0x2e0] sm:$0xff] }
 0x46b   :  { %2020 = vmatprep.subr.mxu1 %v14358_v10  ;;  %2162 = vmatpush2.msra.mxu0 %v9621_v62  ;;  %14362 = vst [vmem:[#allocation108_spill] sm:$0xff] %v9629_v15  ;;  %14363 = vst [vmem:[#allocation110_spill] sm:$0xff] %v9632_v35  ;;  %v9635_v10 = vld [vmem:[#allocation9 + $0x300] sm:$0xff]  ;;  %v9638_v62 = vld [vmem:[#allocation9 + $0x2b8] sm:$0xff] }
 0x46c   :  { %2021 = vmatpush2.msra.mxu1 %v14360_v6  ;;  %2163 = vmatprep.subr.mxu0 %v9625_v58  ;;  %14364 = vst [vmem:[#allocation112_spill] sm:$0xff] %v9635_v10  ;;  %14365 = vst [vmem:[#allocation114_spill] sm:$0xff] %v9638_v62  ;;  %v9641_v6 = vld [vmem:[#allocation9 + $0x2f8] sm:$0xff] }
 0x46d   :  { %2023 = vmatmul.mubr.f32.vlgmr.msra.gmra.mxu1 %v9375_v7  ;;  %2172 = vmatprep.subr.mxu1 %v9629_v15  ;;  %14366 = vst [vmem:[#allocation116_spill] sm:$0xff] %v9641_v6  ;;  %v9644_v7 = vld [vmem:[#allocation9 + $0x2b0] sm:$0xff]  ;;  %v9647_v15 = vld [vmem:[#allocation9 + $0x288] sm:$0xff] }
 0x46e   :  { %2173 = vmatpush1.msra.mxu1 %v9632_v35  ;;  %2164 = vmatpush2.msra.mxu0 %v9635_v10  ;;  %14367 = vst [vmem:[#allocation117_spill] sm:$0xff] %v9644_v7  ;;  %14368 = vst [vmem:[#allocation119_spill] sm:$0xff] %v9647_v15  ;;  %v9650_v35 = vld [vmem:[#allocation9 + $0x280] sm:$0xff]  ;;  %v9653_v10 = vld [vmem:[#allocation9 + $0x258] sm:$0xff] }
 0x46f   :  { %2174 = vmatprep.subr.mxu1 %v9638_v62  ;;  %2243 = vmatprep.subr.mxu0 %v9641_v6  ;;  %14369 = vst [vmem:[#allocation121_spill] sm:$0xff] %v9650_v35  ;;  %14370 = vst [vmem:[#allocation122_spill] sm:$0xff] %v9653_v10  ;;  %v9656_v62 = vld [vmem:[#allocation9 + $0x250] sm:$0xff]  ;;  %v9659_v6 = vld [vmem:[#allocation9 + $0x228] sm:$0xff] }
 0x470   :  { %2175 = vmatpush1.msra.mxu1 %v9644_v7  ;;  %14371 = vst [vmem:[#allocation124_spill] sm:$0xff] %v9656_v62  ;;  %14372 = vst [vmem:[#allocation126_spill] sm:$0xff] %v9659_v6  ;;  %v9662_v7 = vld [vmem:[#allocation9 + $0x220] sm:$0xff] }
 0x471   :  { %2176 = vmatprep.subr.mxu1 %v9647_v15  ;;  %14373 = vst [vmem:[#allocation127_spill] sm:$0xff] %v9662_v7  ;;  %v9665_v15 = vld [vmem:[#allocation9 + $0x1f8] sm:$0xff] }
 0x472   :  { %2177 = vmatpush1.msra.mxu1 %v9650_v35  ;;  %14374 = vst [vmem:[#allocation128_spill] sm:$0xff] %v9665_v15  ;;  %v9668_v35 = vld [vmem:[#allocation9 + $0x1f0] sm:$0xff] }
 0x473   :  { %2178 = vmatprep.subr.mxu1 %v9653_v10  ;;  %14375 = vst [vmem:[#allocation129_spill] sm:$0xff] %v9668_v35  ;;  %v9671_v10 = vld [vmem:[#allocation9 + $0x1c8] sm:$0xff] }
 0x474   :  { %2179 = vmatpush1.msra.mxu1 %v9656_v62  ;;  %14376 = vst [vmem:[#allocation131_spill] sm:$0xff] %v9671_v10  ;;  %v9674_v62 = vld [vmem:[#allocation9 + $0x1c0] sm:$0xff] }
 0x475   :  { %2180 = vmatprep.subr.mxu1 %v9659_v6  ;;  %14377 = vst [vmem:[#allocation132_spill] sm:$0xff] %v9674_v62  ;;  %v9677_v6 = vld [vmem:[#allocation9 + $0x198] sm:$0xff] }
 0x476   :  { %2181 = vmatpush1.msra.mxu1 %v9662_v7  ;;  %14378 = vst [vmem:[#allocation133_spill] sm:$0xff] %v9677_v6  ;;  %v9680_v7 = vld [vmem:[#allocation9 + $0x190] sm:$0xff] }
 0x477   :  { %2182 = vmatprep.subr.mxu1 %v9665_v15  ;;  %14379 = vst [vmem:[#allocation134_spill] sm:$0xff] %v9680_v7  ;;  %v9683_v15 = vld [vmem:[#allocation9 + $0x168] sm:$0xff] }
 0x478   :  { %2183 = vmatpush1.msra.mxu1 %v9668_v35  ;;  %14380 = vst [vmem:[#allocation135_spill] sm:$0xff] %v9683_v15  ;;  %v9686_v35 = vld [vmem:[#allocation9 + $0x160] sm:$0xff] }
 0x479   :  { %2184 = vmatprep.subr.mxu1 %v9671_v10  ;;  %14381 = vst [vmem:[#allocation136_spill] sm:$0xff] %v9686_v35  ;;  %v9689_v10 = vld [vmem:[#allocation9 + $0x138] sm:$0xff] }
 0x47a   :  { %2185 = vmatpush1.msra.mxu1 %v9674_v62  ;;  %14382 = vst [vmem:[#allocation137_spill] sm:$0xff] %v9689_v10  ;;  %v9692_v62 = vld [vmem:[#allocation9 + $0x130] sm:$0xff] }
 0x47b   :  { %2186 = vmatprep.subr.mxu1 %v9677_v6  ;;  %14383 = vst [vmem:[#allocation138_spill] sm:$0xff] %v9692_v62  ;;  %v9695_v6 = vld [vmem:[#allocation9 + $0x108] sm:$0xff] }
 0x47c   :  { %2187 = vmatpush1.msra.mxu1 %v9680_v7  ;;  %14384 = vst [vmem:[#allocation139_spill] sm:$0xff] %v9695_v6  ;;  %v9698_v7 = vld [vmem:[#allocation9 + $0x100] sm:$0xff] }
 0x47d   :  { %2188 = vmatprep.subr.mxu1 %v9683_v15  ;;  %14385 = vst [vmem:[#allocation140_spill] sm:$0xff] %v9698_v7  ;;  %v9701_v15 = vld [vmem:[#allocation9 + $0xd8] sm:$0xff] }
 0x47e   :  { %2189 = vmatpush1.msra.mxu1 %v9686_v35  ;;  %14386 = vst [vmem:[#allocation141_spill] sm:$0xff] %v9701_v15  ;;  %v9704_v35 = vld [vmem:[#allocation9 + $0xd0] sm:$0xff] }
 0x47f   :  { %2190 = vmatprep.subr.mxu1 %v9689_v10  ;;  %14387 = vst [vmem:[#allocation142_spill] sm:$0xff] %v9704_v35  ;;  %v9707_v10 = vld [vmem:[#allocation9 + $0xa8] sm:$0xff] }
 0x480   :  { %2191 = vmatpush1.msra.mxu1 %v9692_v62  ;;  %14388 = vst [vmem:[#allocation143_spill] sm:$0xff] %v9707_v10  ;;  %v9710_v62 = vld [vmem:[#allocation9 + $0xa0] sm:$0xff] }
 0x481   :  { %2192 = vmatprep.subr.mxu1 %v9695_v6  ;;  %14389 = vst [vmem:[#allocation144_spill] sm:$0xff] %v9710_v62  ;;  %v9713_v6 = vld [vmem:[#allocation9 + $0x78] sm:$0xff] }
 0x482   :  { %2193 = vmatpush1.msra.mxu1 %v9698_v7  ;;  %14390 = vst [vmem:[#allocation58_spill] sm:$0xff] %v9713_v6  ;;  %v9716_v7 = vld [vmem:[#allocation9 + $0x70] sm:$0xff] }
 0x483   :  { %2194 = vmatprep.subr.mxu1 %v9701_v15  ;;  %14391 = vst [vmem:[#allocation53_spill] sm:$0xff] %v9716_v7  ;;  %v9719_v15 = vld [vmem:[#allocation9 + $0x48] sm:$0xff] }
 0x484   :  { %2195 = vmatpush1.msra.mxu1 %v9704_v35  ;;  %14392 = vst [vmem:[#allocation60_spill] sm:$0xff] %v9719_v15  ;;  %v9722_v35 = vld [vmem:[#allocation9 + $0x40] sm:$0xff] }
 0x485   :  { %2196 = vmatprep.subr.mxu1 %v9707_v10  ;;  %14393 = vst [vmem:[#allocation55_spill] sm:$0xff] %v9722_v35  ;;  %v9725_v10 = vld [vmem:[#allocation9 + $0x18] sm:$0xff] }
 0x486   :  { %2197 = vmatpush1.msra.mxu1 %v9710_v62  ;;  %14394 = vst [vmem:[#allocation62_spill] sm:$0xff] %v9725_v10  ;;  %v9728_v62 = vld [vmem:[#allocation9 + $0x10] sm:$0xff] }
 0x487   :  { %2198 = vmatprep.subr.mxu1 %v9713_v6  ;;  %14395 = vst [vmem:[#allocation57_spill] sm:$0xff] %v9728_v62  ;;  %v9731_v6 = vld [vmem:[#allocation9 + $0x5e8] sm:$0xff] }
 0x488   :  { %2199 = vmatpush1.msra.mxu1 %v9716_v7  ;;  %14396 = vst [vmem:[#allocation64_spill] sm:$0xff] %v9731_v6  ;;  %v9734_v7 = vld [vmem:[#allocation9 + $0x5e0] sm:$0xff] }
 0x489   :  { %2200 = vmatprep.subr.mxu1 %v9719_v15  ;;  %14397 = vst [vmem:[#allocation59_spill] sm:$0xff] %v9734_v7  ;;  %v9737_v15 = vld [vmem:[#allocation9 + $0x5b8] sm:$0xff] }
 0x48a   :  { %2201 = vmatpush1.msra.mxu1 %v9722_v35  ;;  %14398 = vst [vmem:[#allocation66_spill] sm:$0xff] %v9737_v15  ;;  %v9740_v35 = vld [vmem:[#allocation9 + $0x5b0] sm:$0xff] }
 0x48b   :  { %2202 = vmatprep.subr.mxu1 %v9725_v10  ;;  %14399 = vst [vmem:[#allocation61_spill] sm:$0xff] %v9740_v35  ;;  %v9743_v10 = vld [vmem:[#allocation9 + $0x588] sm:$0xff] }
 0x48c   :  { %2203 = vmatpush1.msra.mxu1 %v9728_v62  ;;  %14400 = vst [vmem:[#allocation68_spill] sm:$0xff] %v9743_v10  ;;  %v9746_v62 = vld [vmem:[#allocation9 + $0x580] sm:$0xff] }
 0x48d   :  { %2204 = vmatprep.subr.mxu1 %v9731_v6  ;;  %14401 = vst [vmem:[#allocation63_spill] sm:$0xff] %v9746_v62  ;;  %v9749_v6 = vld [vmem:[#allocation9 + $0x558] sm:$0xff] }
 0x48e   :  { %2205 = vmatpush2.msra.mxu1 %v9734_v7  ;;  %14402 = vst [vmem:[#allocation70_spill] sm:$0xff] %v9749_v6  ;;  %v9752_v7 = vld [vmem:[#allocation9 + $0x550] sm:$0xff] }
 0x48f   :  { %2206 = vmatprep.subr.mxu1 %v9737_v15  ;;  %14403 = vst [vmem:[#allocation145_spill] sm:$0xff] %v9752_v7  ;;  %v9755_v15 = vld [vmem:[#allocation9 + $0x528] sm:$0xff] }
 0x490   :  { %2207 = vmatpush2.msra.mxu1 %v9740_v35  ;;  %14404 = vst [vmem:[#allocation65_spill] sm:$0xff] %v9755_v15  ;;  %v9758_v35 = vld [vmem:[#allocation9 + $0x520] sm:$0xff] }
 0x491   :  { %2208 = vmatprep.subr.mxu1 %v9743_v10  ;;  %14405 = vst [vmem:[#allocation72_spill] sm:$0xff] %v9758_v35  ;;  %v9761_v10 = vld [vmem:[#allocation9 + $0x4f8] sm:$0xff] }
 0x492   :  { %2209 = vmatpush2.msra.mxu1 %v9746_v62  ;;  %14406 = vst [vmem:[#allocation67_spill] sm:$0xff] %v9761_v10  ;;  %v9764_v62 = vld [vmem:[#allocation9 + $0x4f0] sm:$0xff] }
 0x493   :  { %2210 = vmatprep.subr.mxu1 %v9749_v6  ;;  %14407 = vst [vmem:[#allocation73_spill] sm:$0xff] %v9764_v62  ;;  %v9767_v6 = vld [vmem:[#allocation9 + $0x4c8] sm:$0xff] }
 0x494   :  { %2211 = vmatpush2.msra.mxu1 %v9752_v7  ;;  %14408 = vst [vmem:[#allocation69_spill] sm:$0xff] %v9767_v6  ;;  %v9770_v7 = vld [vmem:[#allocation9 + $0x4c0] sm:$0xff] }
 0x495   :  { %2212 = vmatprep.subr.mxu1 %v9755_v15  ;;  %14409 = vst [vmem:[#allocation75_spill] sm:$0xff] %v9770_v7  ;;  %v9773_v15 = vld [vmem:[#allocation9 + $0x498] sm:$0xff] }
 0x496   :  { %2213 = vmatpush2.msra.mxu1 %v9758_v35  ;;  %14410 = vst [vmem:[#allocation71_spill] sm:$0xff] %v9773_v15  ;;  %v9776_v35 = vld [vmem:[#allocation9 + $0x490] sm:$0xff] }
 0x497   :  { %2214 = vmatprep.subr.mxu1 %v9761_v10  ;;  %14411 = vst [vmem:[#allocation77_spill] sm:$0xff] %v9776_v35  ;;  %v9779_v10 = vld [vmem:[#allocation9 + $0x468] sm:$0xff] }
 0x498   :  { %2215 = vmatpush2.msra.mxu1 %v9764_v62  ;;  %14412 = vst [vmem:[#allocation74_spill] sm:$0xff] %v9779_v10  ;;  %v9782_v62 = vld [vmem:[#allocation9 + $0x460] sm:$0xff] }
 0x499   :  { %2216 = vmatprep.subr.mxu1 %v9767_v6  ;;  %14413 = vst [vmem:[#allocation79_spill] sm:$0xff] %v9782_v62  ;;  %v9785_v6 = vld [vmem:[#allocation9 + $0x438] sm:$0xff] }
 0x49a   :  { %2217 = vmatpush2.msra.mxu1 %v9770_v7  ;;  %14414 = vst [vmem:[#allocation146_spill] sm:$0xff] %v9785_v6  ;;  %v9788_v7 = vld [vmem:[#allocation9 + $0x430] sm:$0xff] }
 0x49b   :  { %2218 = vmatprep.subr.mxu1 %v9773_v15  ;;  %14415 = vst [vmem:[#allocation147_spill] sm:$0xff] %v9788_v7  ;;  %v9791_v15 = vld [vmem:[#allocation9 + $0x408] sm:$0xff] }
 0x49c   :  { %2219 = vmatpush2.msra.mxu1 %v9776_v35  ;;  %14416 = vst [vmem:[#allocation148_spill] sm:$0xff] %v9791_v15  ;;  %v9794_v35 = vld [vmem:[#allocation9 + $0x400] sm:$0xff] }
 0x49d   :  { %2220 = vmatprep.subr.mxu1 %v9779_v10  ;;  %14417 = vst [vmem:[#allocation149_spill] sm:$0xff] %v9794_v35  ;;  %v9797_v10 = vld [vmem:[#allocation9 + $0x3d8] sm:$0xff] }
 0x49e   :  { %2221 = vmatpush2.msra.mxu1 %v9782_v62  ;;  %14418 = vst [vmem:[#allocation150_spill] sm:$0xff] %v9797_v10  ;;  %v9800_v62 = vld [vmem:[#allocation9 + $0x3d0] sm:$0xff] }
 0x49f   :  { %2222 = vmatprep.subr.mxu1 %v9785_v6  ;;  %14419 = vst [vmem:[#allocation151_spill] sm:$0xff] %v9800_v62  ;;  %v9803_v6 = vld [vmem:[#allocation9 + $0x3a8] sm:$0xff] }
 0x4a0   :  { %2223 = vmatpush2.msra.mxu1 %v9788_v7  ;;  %14420 = vst [vmem:[#allocation152_spill] sm:$0xff] %v9803_v6  ;;  %v9806_v7 = vld [vmem:[#allocation9 + $0x3a0] sm:$0xff] }
 0x4a1   :  { %2224 = vmatprep.subr.mxu1 %v9791_v15  ;;  %14421 = vst [vmem:[#allocation153_spill] sm:$0xff] %v9806_v7  ;;  %v9809_v15 = vld [vmem:[#allocation9 + $0x378] sm:$0xff] }
 0x4a2   :  { %2225 = vmatpush2.msra.mxu1 %v9794_v35  ;;  %14422 = vst [vmem:[#allocation154_spill] sm:$0xff] %v9809_v15  ;;  %v9812_v35 = vld [vmem:[#allocation9 + $0x370] sm:$0xff] }
 0x4a3   :  { %2226 = vmatprep.subr.mxu1 %v9797_v10  ;;  %14423 = vst [vmem:[#allocation155_spill] sm:$0xff] %v9812_v35  ;;  %v9815_v10 = vld [vmem:[#allocation9 + $0x348] sm:$0xff] }
 0x4a4   :  { %2227 = vmatpush2.msra.mxu1 %v9800_v62  ;;  %14424 = vst [vmem:[#allocation156_spill] sm:$0xff] %v9815_v10  ;;  %v9818_v62 = vld [vmem:[#allocation9 + $0x340] sm:$0xff] }
 0x4a5   :  { %2228 = vmatprep.subr.mxu1 %v9803_v6  ;;  %14425 = vst [vmem:[#allocation157_spill] sm:$0xff] %v9818_v62  ;;  %v9821_v6 = vld [vmem:[#allocation9 + $0x318] sm:$0xff] }
 0x4a6   :  { %2229 = vmatpush2.msra.mxu1 %v9806_v7  ;;  %14426 = vst [vmem:[#allocation158_spill] sm:$0xff] %v9821_v6  ;;  %v9824_v7 = vld [vmem:[#allocation9 + $0x310] sm:$0xff] }
 0x4a7   :  { %2230 = vmatprep.subr.mxu1 %v9809_v15  ;;  %14427 = vst [vmem:[#allocation159_spill] sm:$0xff] %v9824_v7  ;;  %v14428_v15 = vld [vmem:[#allocation81_spill] sm:$0xff] }
 0x4a8   :  { %2231 = vmatpush2.msra.mxu1 %v9812_v35 }
 0x4a9   :  { %2232 = vmatprep.subr.mxu1 %v9815_v10 }
 0x4aa   :  { %2233 = vmatpush2.msra.mxu1 %v9818_v62 }
 0x4ab   :  { %2234 = vmatprep.subr.mxu1 %v9821_v6 }
 0x4ac   :  { %2235 = vmatpush2.msra.mxu1 %v9824_v7 }
 0x4ad   :  { %2358 = vmatprep.subr.mxu1 %v14428_v15 }
 0x4ed   :  { %v1882_v58 = vpop.f32.mrf.mxu1  ;;  %v1953_v62 = vpop.f32.mrf.mxu0 }
 0x4ee   :  { %v2033_v45 = vrot.slane %v1882_v58, 2  ;;  %v2035_v6 = vrot.slane %v1953_v62, 2 }
 0x4ef   :  { %v1884_v35 = vpop.f32.mrf.mxu1  ;;  %v1955_v16 = vpop.f32.mrf.mxu0 }
 0x4f0   :  { %v2034_v20 = vrot.slane %v1884_v35, 2  ;;  %v2041_v10 = vadd.f32 %v2033_v45, %v8526_v27  ;;  %v2036_v24 = vrot.slane %v1955_v16, 2  ;;  %v2043_v7 = vadd.f32 %v2035_v6, %v14429_v13 }
 0x4f2   :  { %v2042_v57 = vadd.f32 %v2034_v20, %v8528_v32  ;;  %v6346_v26 = vmul.f32 -1.442695, %v2041_v10  ;;  %v2044_v15 = vadd.f32 %v2036_v24, %v14430_v56  ;;  %v6348_v33 = vmul.f32 -1.442695, %v2043_v7  ;;  %v14431_v56 = vld [vmem:[#allocation51_spill] sm:$0xff] }
 0x4f4   :  { %v6347_v37 = vmul.f32 -1.442695, %v2042_v57  ;;  %6507 = vpow2.f32 %v6346_v26  ;;  %v6349_v14 = vmul.f32 -1.442695, %v2044_v15 }
 0x4f6   :  { %6509 = vpow2.f32 %v6347_v37 }
 0x4f7   :  { %6511 = vpow2.f32 %v6348_v33 }
 0x4f8   :  { %6513 = vpow2.f32 %v6349_v14 }
 0x501   :  { %v6508_v58 = vpop.eup %6507 }
 0x502   :  { %v2057_v27 = vadd.f32 1.0, %v6508_v58 }
 0x503   :  { %v6510_v35 = vpop.eup %6509 }
 0x504   :  { %v2058_v32 = vadd.f32 1.0, %v6510_v35  ;;  %6515 = vrcp.f32 %v2057_v27  ;;  %v6512_v57 = vpop.eup %6511 }
 0x505   :  { %v6514_v26 = vpop.eup %6513  ;;  %v2059_v62 = vadd.f32 1.0, %v6512_v57 }
 0x506   :  { %6517 = vrcp.f32 %v2058_v32  ;;  %v2060_v13 = vadd.f32 1.0, %v6514_v26  ;;  %v2087_v26 = vrot.slane %v9369_v9, 6  ;;  %v9846_v9 = vld [vmem:[#allocation9 + $0x2f0] sm:$0xff] }
 0x507   :  { %6519 = vrcp.f32 %v2059_v62 }
 0x508   :  { %6521 = vrcp.f32 %v2060_v13 }
 0x511   :  { %v6516_v10 = vpop.eup %6515 }
 0x513   :  { %v6518_v7 = vpop.eup %6517 }
 0x514   :  { %v6520_v35 = vpop.eup %6519 }
 0x515   :  { %v6522_v27 = vpop.eup %6521  ;;  %v2083_v32 = vsub.f32 1.0, %v6520_v35 }
 0x516   :  { %v2084_v62 = vsub.f32 1.0, %v6522_v27 }
 0x52d   :  { %v2024_v20 = vpop.f32.mrf.mxu1 }
 0x52e   :  { %v2069_v16 = vadd.f32 %v2024_v20, %v8543_v17  ;;  %v2088_v20 = vrot.slane %v9371_v46, 6  ;;  %v9850_v46 = vld [vmem:[#allocation9 + $0x2c8] sm:$0xff] }
 0x52f   :  { %v2026_v37 = vpop.f32.mrf.mxu1 }
 0x530   :  { %v2073_v45 = vrot.slane %v2069_v16, 2  ;;  %v2070_v24 = vadd.f32 %v2026_v37, %v14431_v56 }
 0x532   :  { %v2077_v33 = vmul.f32 %v6516_v10, %v2073_v45  ;;  %v2074_v6 = vrot.slane %v2070_v24, 2  ;;  %v2091_v45 = vmul.f32 %v6520_v35, %v2087_v26  ;;  %v2092_v24 = vmul.f32 %v6522_v27, %v2088_v20  ;;  %v9874_v35 = vld [vmem:[#allocation9 + $0x238] sm:$0xff]  ;;  %v9878_v27 = vld [vmem:[#allocation9 + $0x230] sm:$0xff] }
 0x533   :  { %v9890_v26 = vld [vmem:[#allocation9 + $0x1d8] sm:$0xff]  ;;  %v9894_v20 = vld [vmem:[#allocation9 + $0x1d0] sm:$0xff] }
 0x534   :  { %v2079_v14 = vadd.f32 %v2077_v33, %v8551_v29  ;;  %v2078_v15 = vmul.f32 %v6518_v7, %v2074_v6  ;;  %v9854_v6 = vld [vmem:[#allocation9 + $0x2c0] sm:$0xff]  ;;  %v9858_v7 = vld [vmem:[#allocation9 + $0x298] sm:$0xff] }
 0x536   :  { %6523 = vtanh.f32 %v2079_v14  ;;  %v2080_v58 = vadd.f32 %v2078_v15, %v8556_v11  ;;  %v9862_v14 = vld [vmem:[#allocation9 + $0x290] sm:$0xff]  ;;  %v9866_v15 = vld [vmem:[#allocation9 + $0x268] sm:$0xff] }
 0x538   :  { %6525 = vtanh.f32 %v2080_v58  ;;  %v9870_v58 = vld [vmem:[#allocation9 + $0x260] sm:$0xff] }
 0x543   :  { %v6524_v57 = vpop.eup %6523 }
 0x544   :  { %v2085_v16 = vmul.f32 %v6524_v57, %v2083_v32  ;;  %v9882_v32 = vld [vmem:[#allocation9 + $0x208] sm:$0xff]  ;;  %v9886_v57 = vld [vmem:[#allocation9 + $0x200] sm:$0xff] }
 0x545   :  { %v6526_v37 = vpop.eup %6525 }
 0x546   :  { %v2086_v13 = vmul.f32 %v6526_v37, %v2084_v62  ;;  %v2093_v29 = vadd.f32 %v2091_v45, %v2085_v16  ;;  %v9898_v62 = vld [vmem:[#allocation9 + $0x1a8] sm:$0xff]  ;;  %v9902_v16 = vld [vmem:[#allocation9 + $0x1a0] sm:$0xff]  ;;  %v9906_v37 = vld [vmem:[#allocation9 + $0x178] sm:$0xff] }
 0x547   :  { %v9910_v45 = vld [vmem:[#allocation9 + $0x170] sm:$0xff] }
 0x548   :  { %v2094_v10 = vadd.f32 %v2092_v24, %v2086_v13  ;;  %v9840_v11 = vrot.slane %v2093_v29, 6  ;;  %v9914_v13 = vld [vmem:[#allocation9 + $0x148] sm:$0xff]  ;;  %v9918_v24 = vld [vmem:[#allocation9 + $0x140] sm:$0xff]  ;;  %v9922_v29 = vld [vmem:[#allocation9 + $0x118] sm:$0xff] }
 0x549   :  { %14432 = vst [vmem:[#allocation81_spill] sm:$0xff] %v9914_v13  ;;  %14433 = vst [vmem:[#allocation54_spill] sm:$0xff] %v9918_v24 }
 0x54a   :  { %v9838_v33 = vrot.slane %v2094_v10, 6  ;;  %14434 = vst [vmem:[#allocation49_spill] sm:$0xff] %v9922_v29  ;;  %v9926_v10 = vld [vmem:[#allocation9 + $0x110] sm:$0xff] }
 0x54b   :  { %14435 = vst [vmem:[#allocation160_spill] sm:$0xff] %v9926_v10 }
 0x54c   :  { %2165 = vmatprep.mubr.f32.mxu0 %v9838_v33  ;;  %2236 = vmatprep.mubr.f32.mxu1 %v9838_v33 }
 0x54d   :  { %2166 = vmatmul.mubr.f32.vlgmr.msra.gmra.mxu0 %v9840_v11  ;;  %2237 = vmatmul.mubr.f32.vlgmr.msra.gmra.mxu1 %v9840_v11 }
 0x54e   :  { %2244 = vmatpush1.msra.mxu0 %v9846_v9  ;;  %2307 = vmatprep.mubr.f32.mxu0 %v9838_v33 }
 0x54f   :  { %2245 = vmatprep.subr.mxu0 %v9850_v46  ;;  %2359 = vmatpush1.msra.mxu1 %v9381_v41 }
 0x550   :  { %2246 = vmatpush1.msra.mxu0 %v9854_v6  ;;  %2360 = vmatprep.subr.mxu1 %v9385_v12 }
 0x551   :  { %2247 = vmatprep.subr.mxu0 %v9858_v7  ;;  %2361 = vmatpush1.msra.mxu1 %v9389_v39 }
 0x552   :  { %2248 = vmatpush1.msra.mxu0 %v9862_v14  ;;  %2362 = vmatprep.subr.mxu1 %v9393_v38 }
 0x553   :  { %2249 = vmatprep.subr.mxu0 %v9866_v15  ;;  %2363 = vmatpush1.msra.mxu1 %v9397_v50 }
 0x554   :  { %2250 = vmatpush1.msra.mxu0 %v9870_v58  ;;  %2364 = vmatprep.subr.mxu1 %v9401_v23 }
 0x555   :  { %2251 = vmatprep.subr.mxu0 %v9874_v35  ;;  %2365 = vmatpush1.msra.mxu1 %v9405_v63 }
 0x556   :  { %2252 = vmatpush1.msra.mxu0 %v9878_v27  ;;  %2366 = vmatprep.subr.mxu1 %v9409_v55 }
 0x557   :  { %2253 = vmatprep.subr.mxu0 %v9882_v32  ;;  %2367 = vmatpush1.msra.mxu1 %v9413_v53 }
 0x558   :  { %2254 = vmatpush1.msra.mxu0 %v9886_v57  ;;  %2368 = vmatprep.subr.mxu1 %v9417_v60 }
 0x559   :  { %2255 = vmatprep.subr.mxu0 %v9890_v26  ;;  %2369 = vmatpush1.msra.mxu1 %v9421_v0 }
 0x55a   :  { %2256 = vmatpush1.msra.mxu0 %v9894_v20  ;;  %2370 = vmatprep.subr.mxu1 %v9425_v8 }
 0x55b   :  { %2257 = vmatprep.subr.mxu0 %v9898_v62  ;;  %2371 = vmatpush1.msra.mxu1 %v9429_v5 }
 0x55c   :  { %2258 = vmatpush1.msra.mxu0 %v9902_v16  ;;  %2372 = vmatprep.subr.mxu1 %v9433_v42 }
 0x55d   :  { %2259 = vmatprep.subr.mxu0 %v9906_v37  ;;  %2373 = vmatpush1.msra.mxu1 %v9437_v40 }
 0x55e   :  { %2260 = vmatpush1.msra.mxu0 %v9910_v45  ;;  %2374 = vmatprep.subr.mxu1 %v9441_v18 }
 0x55f   :  { %2261 = vmatprep.subr.mxu0 %v9914_v13  ;;  %2375 = vmatpush1.msra.mxu1 %v9445_v54  ;;  %v9930_v13 = vld [vmem:[#allocation9 + $0xe8] sm:$0xff] }
 0x560   :  { %2262 = vmatpush1.msra.mxu0 %v9918_v24  ;;  %2376 = vmatprep.subr.mxu1 %v9449_v48  ;;  %14436 = vst [vmem:[#allocation161_spill] sm:$0xff] %v9930_v13  ;;  %v9934_v24 = vld [vmem:[#allocation9 + $0xe0] sm:$0xff] }
 0x561   :  { %2263 = vmatprep.subr.mxu0 %v9922_v29  ;;  %2377 = vmatpush1.msra.mxu1 %v9453_v25  ;;  %14437 = vst [vmem:[#allocation162_spill] sm:$0xff] %v9934_v24  ;;  %v9938_v29 = vld [vmem:[#allocation9 + $0xb8] sm:$0xff] }
 0x562   :  { %2264 = vmatpush1.msra.mxu0 %v9926_v10  ;;  %2378 = vmatprep.subr.mxu1 %v9457_v51  ;;  %14438 = vst [vmem:[#allocation163_spill] sm:$0xff] %v9938_v29  ;;  %v9942_v10 = vld [vmem:[#allocation9 + $0xb0] sm:$0xff] }
 0x563   :  { %2265 = vmatprep.subr.mxu0 %v9930_v13  ;;  %2379 = vmatpush1.msra.mxu1 %v9461_v2  ;;  %14439 = vst [vmem:[#allocation164_spill] sm:$0xff] %v9942_v10  ;;  %v9946_v13 = vld [vmem:[#allocation9 + $0x88] sm:$0xff] }
 0x564   :  { %2266 = vmatpush1.msra.mxu0 %v9934_v24  ;;  %2380 = vmatprep.subr.mxu1 %v9465_v49  ;;  %14440 = vst [vmem:[#allocation165_spill] sm:$0xff] %v9946_v13  ;;  %v9950_v24 = vld [vmem:[#allocation9 + $0x80] sm:$0xff] }
 0x565   :  { %2267 = vmatprep.subr.mxu0 %v9938_v29  ;;  %2381 = vmatpush1.msra.mxu1 %v9469_v28  ;;  %14441 = vst [vmem:[#allocation166_spill] sm:$0xff] %v9950_v24  ;;  %v9954_v29 = vld [vmem:[#allocation9 + $0x58] sm:$0xff] }
 0x566   :  { %2268 = vmatpush1.msra.mxu0 %v9942_v10  ;;  %2382 = vmatprep.subr.mxu1 %v9473_v31  ;;  %14442 = vst [vmem:[#allocation167_spill] sm:$0xff] %v9954_v29  ;;  %v9958_v10 = vld [vmem:[#allocation9 + $0x50] sm:$0xff] }
 0x567   :  { %2269 = vmatprep.subr.mxu0 %v9946_v13  ;;  %2383 = vmatpush1.msra.mxu1 %v9477_v43  ;;  %14443 = vst [vmem:[#allocation168_spill] sm:$0xff] %v9958_v10  ;;  %v9962_v13 = vld [vmem:[#allocation9 + $0x28] sm:$0xff] }
 0x568   :  { %2270 = vmatpush1.msra.mxu0 %v9950_v24  ;;  %2384 = vmatprep.subr.mxu1 %v9481_v4  ;;  %14444 = vst [vmem:[#allocation169_spill] sm:$0xff] %v9962_v13  ;;  %v9966_v24 = vld [vmem:[#allocation9 + $0x20] sm:$0xff] }
 0x569   :  { %2271 = vmatprep.subr.mxu0 %v9954_v29  ;;  %2385 = vmatpush1.msra.mxu1 %v9485_v19  ;;  %14445 = vst [vmem:[#allocation170_spill] sm:$0xff] %v9966_v24  ;;  %v9970_v29 = vld [vmem:[#allocation9 + $0x5f8] sm:$0xff] }
 0x56a   :  { %2272 = vmatpush1.msra.mxu0 %v9958_v10  ;;  %2386 = vmatprep.subr.mxu1 %v9489_v22  ;;  %14446 = vst [vmem:[#allocation171_spill] sm:$0xff] %v9970_v29  ;;  %v9974_v10 = vld [vmem:[#allocation9 + $0x5f0] sm:$0xff] }
 0x56b   :  { %2273 = vmatprep.subr.mxu0 %v9962_v13  ;;  %2387 = vmatpush1.msra.mxu1 %v9493_v47  ;;  %14447 = vst [vmem:[#allocation172_spill] sm:$0xff] %v9974_v10  ;;  %v9978_v13 = vld [vmem:[#allocation9 + $0x5c8] sm:$0xff] }
 0x56c   :  { %2274 = vmatpush1.msra.mxu0 %v9966_v24  ;;  %2388 = vmatprep.subr.mxu1 %v9497_v59  ;;  %14448 = vst [vmem:[#allocation173_spill] sm:$0xff] %v9978_v13  ;;  %v9982_v24 = vld [vmem:[#allocation9 + $0x5c0] sm:$0xff]  ;;  %v14570_v59 = vld [vmem:[#allocation36_spill] sm:$0xff]  ;;  %v14571_v47 = vld [vmem:[#allocation31_spill] sm:$0xff] }
 0x56d   :  { %2275 = vmatprep.subr.mxu0 %v9970_v29  ;;  %2389 = vmatpush1.msra.mxu1 %v9501_v30  ;;  %14449 = vst [vmem:[#allocation174_spill] sm:$0xff] %v9982_v24  ;;  %v9986_v29 = vld [vmem:[#allocation9 + $0x598] sm:$0xff] }
 0x56e   :  { %2276 = vmatpush2.msra.mxu0 %v9974_v10  ;;  %2390 = vmatprep.subr.mxu1 %v9505_v3  ;;  %14450 = vst [vmem:[#allocation175_spill] sm:$0xff] %v9986_v29  ;;  %v9990_v10 = vld [vmem:[#allocation9 + $0x590] sm:$0xff]  ;;  %v14569_v3 = vld [vmem:[#allocation30_spill] sm:$0xff] }
 0x56f   :  { %2277 = vmatprep.subr.mxu0 %v9978_v13  ;;  %2391 = vmatpush2.msra.mxu1 %v9509_v21  ;;  %14451 = vst [vmem:[#allocation176_spill] sm:$0xff] %v9990_v10  ;;  %v9994_v13 = vld [vmem:[#allocation9 + $0x568] sm:$0xff] }
 0x570   :  { %2278 = vmatpush2.msra.mxu0 %v9982_v24  ;;  %2392 = vmatprep.subr.mxu1 %v9513_v36  ;;  %14452 = vst [vmem:[#allocation177_spill] sm:$0xff] %v9994_v13  ;;  %v9998_v24 = vld [vmem:[#allocation9 + $0x560] sm:$0xff] }
 0x571   :  { %2279 = vmatprep.subr.mxu0 %v9986_v29  ;;  %2393 = vmatpush2.msra.mxu1 %v9517_v61  ;;  %14453 = vst [vmem:[#allocation178_spill] sm:$0xff] %v9998_v24  ;;  %v10002_v29 = vld [vmem:[#allocation9 + $0x538] sm:$0xff]  ;;  %v14511_v21 = vld [vmem:[#allocation126_spill] sm:$0xff] }
 0x572   :  { %2280 = vmatpush2.msra.mxu0 %v9990_v10  ;;  %2394 = vmatprep.subr.mxu1 %v9521_v52  ;;  %14454 = vst [vmem:[#allocation179_spill] sm:$0xff] %v10002_v29  ;;  %v10006_v10 = vld [vmem:[#allocation9 + $0x530] sm:$0xff]  ;;  %v14456_v52 = vld [vmem:[#allocation113_spill] sm:$0xff] }
 0x573   :  { %2281 = vmatprep.subr.mxu0 %v9994_v13  ;;  %2395 = vmatpush2.msra.mxu1 %v9525_v1  ;;  %14455 = vst [vmem:[#allocation180_spill] sm:$0xff] %v10006_v10  ;;  %v10010_v13 = vld [vmem:[#allocation9 + $0x508] sm:$0xff]  ;;  %v14505_v61 = vld [vmem:[#allocation116_spill] sm:$0xff]  ;;  %v14508_v36 = vld [vmem:[#allocation121_spill] sm:$0xff] }
 0x574   :  { %2282 = vmatpush2.msra.mxu0 %v9998_v24  ;;  %2396 = vmatprep.subr.mxu1 %v9529_v44  ;;  %14457 = vst [vmem:[#allocation181_spill] sm:$0xff] %v10010_v13  ;;  %v14458_v1 = vld [vmem:[#allocation115_spill] sm:$0xff]  ;;  %v10014_v24 = vld [vmem:[#allocation9 + $0x500] sm:$0xff] }
 0x575   :  { %2283 = vmatprep.subr.mxu0 %v10002_v29  ;;  %2397 = vmatpush2.msra.mxu1 %v9533_v34  ;;  %14459 = vst [vmem:[#allocation182_spill] sm:$0xff] %v10014_v24  ;;  %v14460_v44 = vld [vmem:[#allocation118_spill] sm:$0xff]  ;;  %v10018_v29 = vld [vmem:[#allocation9 + $0x4d8] sm:$0xff] }
 0x576   :  { %2284 = vmatpush2.msra.mxu0 %v10006_v10  ;;  %2398 = vmatprep.subr.mxu1 %v14456_v52  ;;  %14461 = vst [vmem:[#allocation183_spill] sm:$0xff] %v10018_v29  ;;  %v14462_v34 = vld [vmem:[#allocation120_spill] sm:$0xff]  ;;  %v14464_v52 = vld [vmem:[#allocation123_spill] sm:$0xff] }
 0x577   :  { %2285 = vmatprep.subr.mxu0 %v10010_v13  ;;  %2399 = vmatpush2.msra.mxu1 %v14458_v1  ;;  %v10022_v10 = vld [vmem:[#allocation9 + $0x4d0] sm:$0xff]  ;;  %v10026_v13 = vld [vmem:[#allocation9 + $0x4a8] sm:$0xff]  ;;  %v14466_v1 = vld [vmem:[#allocation125_spill] sm:$0xff] }
 0x578   :  { %2286 = vmatpush2.msra.mxu0 %v10014_v24  ;;  %2400 = vmatprep.subr.mxu1 %v14460_v44  ;;  %14463 = vst [vmem:[#allocation184_spill] sm:$0xff] %v10022_v10  ;;  %14465 = vst [vmem:[#allocation185_spill] sm:$0xff] %v10026_v13  ;;  %v10030_v24 = vld [vmem:[#allocation9 + $0x4a0] sm:$0xff] }
 0x579   :  { %2287 = vmatprep.subr.mxu0 %v10018_v29  ;;  %2401 = vmatpush2.msra.mxu1 %v14462_v34  ;;  %14467 = vst [vmem:[#allocation186_spill] sm:$0xff] %v10030_v24  ;;  %v14468_v44 = vld [vmem:[#allocation130_spill] sm:$0xff]  ;;  %v10034_v29 = vld [vmem:[#allocation9 + $0x478] sm:$0xff] }
 0x57a   :  { %2288 = vmatpush2.msra.mxu0 %v10022_v10  ;;  %2402 = vmatprep.subr.mxu1 %v14464_v52  ;;  %14469 = vst [vmem:[#allocation187_spill] sm:$0xff] %v10034_v29  ;;  %v14470_v34 = vld [vmem:[#allocation76_spill] sm:$0xff]  ;;  %v14472_v52 = vld [vmem:[#allocation78_spill] sm:$0xff] }
 0x57b   :  { %2289 = vmatprep.subr.mxu0 %v10026_v13  ;;  %2403 = vmatpush2.msra.mxu1 %v14466_v1  ;;  %v10038_v10 = vld [vmem:[#allocation9 + $0x470] sm:$0xff]  ;;  %v10042_v13 = vld [vmem:[#allocation9 + $0x448] sm:$0xff] }
 0x57c   :  { %2290 = vmatpush2.msra.mxu0 %v10030_v24  ;;  %2404 = vmatprep.subr.mxu1 %v14468_v44  ;;  %14471 = vst [vmem:[#allocation188_spill] sm:$0xff] %v10038_v10  ;;  %14473 = vst [vmem:[#allocation189_spill] sm:$0xff] %v10042_v13  ;;  %v14474_v1 = vld [vmem:[#allocation80_spill] sm:$0xff]  ;;  %v10046_v24 = vld [vmem:[#allocation9 + $0x440] sm:$0xff] }
 0x57d   :  { %2291 = vmatprep.subr.mxu0 %v10034_v29  ;;  %2405 = vmatpush2.msra.mxu1 %v14470_v34  ;;  %14475 = vst [vmem:[#allocation190_spill] sm:$0xff] %v10046_v24  ;;  %v14476_v44 = vld [vmem:[#allocation82_spill] sm:$0xff]  ;;  %v10050_v29 = vld [vmem:[#allocation9 + $0x418] sm:$0xff] }
 0x57e   :  { %2292 = vmatpush2.msra.mxu0 %v10038_v10  ;;  %2406 = vmatprep.subr.mxu1 %v14472_v52  ;;  %14477 = vst [vmem:[#allocation191_spill] sm:$0xff] %v10050_v29  ;;  %v14478_v34 = vld [vmem:[#allocation84_spill] sm:$0xff]  ;;  %v14480_v52 = vld [vmem:[#allocation86_spill] sm:$0xff] }
 0x57f   :  { %2293 = vmatprep.subr.mxu0 %v10042_v13  ;;  %2407 = vmatpush2.msra.mxu1 %v14474_v1  ;;  %v10054_v10 = vld [vmem:[#allocation9 + $0x410] sm:$0xff]  ;;  %v10058_v13 = vld [vmem:[#allocation9 + $0x3e8] sm:$0xff] }
 0x580   :  { %2294 = vmatpush2.msra.mxu0 %v10046_v24  ;;  %2408 = vmatprep.subr.mxu1 %v14476_v44  ;;  %14479 = vst [vmem:[#allocation192_spill] sm:$0xff] %v10054_v10  ;;  %14481 = vst [vmem:[#allocation193_spill] sm:$0xff] %v10058_v13  ;;  %v14482_v1 = vld [vmem:[#allocation88_spill] sm:$0xff]  ;;  %v10062_v24 = vld [vmem:[#allocation9 + $0x3e0] sm:$0xff] }
 0x581   :  { %2295 = vmatprep.subr.mxu0 %v10050_v29  ;;  %2409 = vmatpush2.msra.mxu1 %v14478_v34  ;;  %14483 = vst [vmem:[#allocation194_spill] sm:$0xff] %v10062_v24  ;;  %v14484_v44 = vld [vmem:[#allocation90_spill] sm:$0xff]  ;;  %v10066_v29 = vld [vmem:[#allocation9 + $0x3b8] sm:$0xff] }
 0x582   :  { %2296 = vmatpush2.msra.mxu0 %v10054_v10  ;;  %2410 = vmatprep.subr.mxu1 %v14480_v52  ;;  %14485 = vst [vmem:[#allocation195_spill] sm:$0xff] %v10066_v29  ;;  %v14486_v34 = vld [vmem:[#allocation92_spill] sm:$0xff]  ;;  %v14488_v52 = vld [vmem:[#allocation94_spill] sm:$0xff] }
 0x583   :  { %2297 = vmatprep.subr.mxu0 %v10058_v13  ;;  %2411 = vmatpush2.msra.mxu1 %v14482_v1  ;;  %v10070_v10 = vld [vmem:[#allocation9 + $0x3b0] sm:$0xff]  ;;  %v10074_v13 = vld [vmem:[#allocation9 + $0x388] sm:$0xff] }
 0x584   :  { %2298 = vmatpush2.msra.mxu0 %v10062_v24  ;;  %2412 = vmatprep.subr.mxu1 %v14484_v44  ;;  %14487 = vst [vmem:[#allocation196_spill] sm:$0xff] %v10070_v10  ;;  %14489 = vst [vmem:[#allocation197_spill] sm:$0xff] %v10074_v13  ;;  %v14490_v1 = vld [vmem:[#allocation96_spill] sm:$0xff]  ;;  %v10078_v24 = vld [vmem:[#allocation9 + $0x380] sm:$0xff] }
 0x585   :  { %2299 = vmatprep.subr.mxu0 %v10066_v29  ;;  %2413 = vmatpush2.msra.mxu1 %v14486_v34  ;;  %14491 = vst [vmem:[#allocation198_spill] sm:$0xff] %v10078_v24  ;;  %v14492_v44 = vld [vmem:[#allocation98_spill] sm:$0xff]  ;;  %v10082_v29 = vld [vmem:[#allocation9 + $0x358] sm:$0xff] }
 0x586   :  { %2300 = vmatpush2.msra.mxu0 %v10070_v10  ;;  %2414 = vmatprep.subr.mxu1 %v14488_v52  ;;  %14493 = vst [vmem:[#allocation199_spill] sm:$0xff] %v10082_v29  ;;  %v14494_v34 = vld [vmem:[#allocation100_spill] sm:$0xff]  ;;  %v14496_v52 = vld [vmem:[#allocation102_spill] sm:$0xff] }
 0x587   :  { %2301 = vmatprep.subr.mxu0 %v10074_v13  ;;  %2415 = vmatpush2.msra.mxu1 %v14490_v1  ;;  %v10086_v10 = vld [vmem:[#allocation9 + $0x350] sm:$0xff]  ;;  %v10090_v13 = vld [vmem:[#allocation9 + $0x328] sm:$0xff] }
 0x588   :  { %2302 = vmatpush2.msra.mxu0 %v10078_v24  ;;  %2416 = vmatprep.subr.mxu1 %v14492_v44  ;;  %14495 = vst [vmem:[#allocation200_spill] sm:$0xff] %v10086_v10  ;;  %14497 = vst [vmem:[#allocation201_spill] sm:$0xff] %v10090_v13  ;;  %v14498_v1 = vld [vmem:[#allocation104_spill] sm:$0xff]  ;;  %v10094_v24 = vld [vmem:[#allocation9 + $0x320] sm:$0xff] }
 0x589   :  { %2303 = vmatprep.subr.mxu0 %v10082_v29  ;;  %2417 = vmatpush2.msra.mxu1 %v14494_v34  ;;  %14499 = vst [vmem:[#allocation202_spill] sm:$0xff] %v10094_v24  ;;  %v14500_v44 = vld [vmem:[#allocation106_spill] sm:$0xff]  ;;  %v14501_v34 = vld [vmem:[#allocation108_spill] sm:$0xff] }
 0x58a   :  { %2304 = vmatpush2.msra.mxu0 %v10086_v10  ;;  %2418 = vmatprep.subr.mxu1 %v14496_v52  ;;  %v14502_v29 = vld [vmem:[#allocation110_spill] sm:$0xff]  ;;  %v14503_v10 = vld [vmem:[#allocation112_spill] sm:$0xff] }
 0x58b   :  { %2305 = vmatprep.subr.mxu0 %v10090_v13  ;;  %2419 = vmatpush2.msra.mxu1 %v14498_v1  ;;  %v14504_v52 = vld [vmem:[#allocation114_spill] sm:$0xff]  ;;  %v14506_v13 = vld [vmem:[#allocation117_spill] sm:$0xff]  ;;  %v14507_v1 = vld [vmem:[#allocation119_spill] sm:$0xff] }
 0x58c   :  { %2306 = vmatpush2.msra.mxu0 %v10094_v24  ;;  %2420 = vmatprep.subr.mxu1 %v14500_v44  ;;  %v14509_v24 = vld [vmem:[#allocation122_spill] sm:$0xff]  ;;  %v14510_v44 = vld [vmem:[#allocation124_spill] sm:$0xff] }
 0x58d   :  { %2308 = vmatmul.mubr.f32.vlgmr.msra.gmra.mxu0 %v9840_v11  ;;  %2429 = vmatprep.subr.mxu0 %v14501_v34  ;;  %v14512_v34 = vld [vmem:[#allocation127_spill] sm:$0xff] }
 0x58e   :  { %2430 = vmatpush1.msra.mxu0 %v14502_v29  ;;  %2421 = vmatpush2.msra.mxu1 %v14503_v10  ;;  %v14513_v29 = vld [vmem:[#allocation128_spill] sm:$0xff]  ;;  %v14514_v10 = vld [vmem:[#allocation129_spill] sm:$0xff] }
 0x58f   :  { %2431 = vmatprep.subr.mxu0 %v14504_v52  ;;  %2500 = vmatprep.subr.mxu1 %v14505_v61  ;;  %v14515_v52 = vld [vmem:[#allocation131_spill] sm:$0xff]  ;;  %v14516_v61 = vld [vmem:[#allocation132_spill] sm:$0xff] }
 0x590   :  { %2432 = vmatpush1.msra.mxu0 %v14506_v13  ;;  %v14517_v13 = vld [vmem:[#allocation133_spill] sm:$0xff] }
 0x591   :  { %2433 = vmatprep.subr.mxu0 %v14507_v1  ;;  %v14518_v1 = vld [vmem:[#allocation134_spill] sm:$0xff] }
 0x592   :  { %2434 = vmatpush1.msra.mxu0 %v14508_v36  ;;  %v14519_v36 = vld [vmem:[#allocation135_spill] sm:$0xff] }
 0x593   :  { %2435 = vmatprep.subr.mxu0 %v14509_v24  ;;  %v14520_v24 = vld [vmem:[#allocation136_spill] sm:$0xff] }
 0x594   :  { %2436 = vmatpush1.msra.mxu0 %v14510_v44  ;;  %v14521_v44 = vld [vmem:[#allocation137_spill] sm:$0xff] }
 0x595   :  { %2437 = vmatprep.subr.mxu0 %v14511_v21  ;;  %v14522_v21 = vld [vmem:[#allocation138_spill] sm:$0xff] }
 0x596   :  { %2438 = vmatpush1.msra.mxu0 %v14512_v34  ;;  %v14523_v34 = vld [vmem:[#allocation139_spill] sm:$0xff] }
 0x597   :  { %2439 = vmatprep.subr.mxu0 %v14513_v29  ;;  %v14524_v29 = vld [vmem:[#allocation140_spill] sm:$0xff] }
 0x598   :  { %2440 = vmatpush1.msra.mxu0 %v14514_v10  ;;  %v14525_v10 = vld [vmem:[#allocation141_spill] sm:$0xff] }
 0x599   :  { %2441 = vmatprep.subr.mxu0 %v14515_v52  ;;  %v14526_v52 = vld [vmem:[#allocation142_spill] sm:$0xff] }
 0x59a   :  { %2442 = vmatpush1.msra.mxu0 %v14516_v61  ;;  %v14527_v61 = vld [vmem:[#allocation143_spill] sm:$0xff] }
 0x59b   :  { %2443 = vmatprep.subr.mxu0 %v14517_v13  ;;  %v14528_v13 = vld [vmem:[#allocation144_spill] sm:$0xff] }
 0x59c   :  { %2444 = vmatpush1.msra.mxu0 %v14518_v1  ;;  %v14529_v1 = vld [vmem:[#allocation58_spill] sm:$0xff] }
 0x59d   :  { %2445 = vmatprep.subr.mxu0 %v14519_v36  ;;  %v14530_v36 = vld [vmem:[#allocation53_spill] sm:$0xff] }
 0x59e   :  { %2446 = vmatpush1.msra.mxu0 %v14520_v24  ;;  %v14531_v24 = vld [vmem:[#allocation60_spill] sm:$0xff] }
 0x59f   :  { %2447 = vmatprep.subr.mxu0 %v14521_v44  ;;  %v14532_v44 = vld [vmem:[#allocation55_spill] sm:$0xff] }
 0x5a0   :  { %2448 = vmatpush1.msra.mxu0 %v14522_v21  ;;  %v14533_v21 = vld [vmem:[#allocation62_spill] sm:$0xff] }
 0x5a1   :  { %2449 = vmatprep.subr.mxu0 %v14523_v34  ;;  %v14534_v34 = vld [vmem:[#allocation57_spill] sm:$0xff] }
 0x5a2   :  { %2450 = vmatpush1.msra.mxu0 %v14524_v29  ;;  %v14535_v29 = vld [vmem:[#allocation64_spill] sm:$0xff] }
 0x5a3   :  { %2451 = vmatprep.subr.mxu0 %v14525_v10  ;;  %v14536_v10 = vld [vmem:[#allocation59_spill] sm:$0xff] }
 0x5a4   :  { %2452 = vmatpush1.msra.mxu0 %v14526_v52  ;;  %v14537_v52 = vld [vmem:[#allocation66_spill] sm:$0xff] }
 0x5a5   :  { %2453 = vmatprep.subr.mxu0 %v14527_v61  ;;  %v14538_v61 = vld [vmem:[#allocation61_spill] sm:$0xff] }
 0x5a6   :  { %2454 = vmatpush1.msra.mxu0 %v14528_v13  ;;  %v14539_v13 = vld [vmem:[#allocation68_spill] sm:$0xff] }
 0x5a7   :  { %2455 = vmatprep.subr.mxu0 %v14529_v1  ;;  %v14540_v1 = vld [vmem:[#allocation63_spill] sm:$0xff] }
 0x5a8   :  { %2456 = vmatpush1.msra.mxu0 %v14530_v36  ;;  %v14541_v36 = vld [vmem:[#allocation70_spill] sm:$0xff] }
 0x5a9   :  { %2457 = vmatprep.subr.mxu0 %v14531_v24  ;;  %v14542_v24 = vld [vmem:[#allocation145_spill] sm:$0xff] }
 0x5aa   :  { %2458 = vmatpush1.msra.mxu0 %v14532_v44  ;;  %v14543_v44 = vld [vmem:[#allocation65_spill] sm:$0xff] }
 0x5ab   :  { %2459 = vmatprep.subr.mxu0 %v14533_v21  ;;  %v14544_v21 = vld [vmem:[#allocation72_spill] sm:$0xff] }
 0x5ac   :  { %2460 = vmatpush1.msra.mxu0 %v14534_v34  ;;  %v14545_v34 = vld [vmem:[#allocation67_spill] sm:$0xff] }
 0x5ad   :  { %2461 = vmatprep.subr.mxu0 %v14535_v29  ;;  %v14546_v29 = vld [vmem:[#allocation73_spill] sm:$0xff] }
 0x5ae   :  { %2462 = vmatpush2.msra.mxu0 %v14536_v10  ;;  %v14547_v10 = vld [vmem:[#allocation69_spill] sm:$0xff] }
 0x5af   :  { %2463 = vmatprep.subr.mxu0 %v14537_v52  ;;  %v14548_v52 = vld [vmem:[#allocation75_spill] sm:$0xff] }
 0x5b0   :  { %2464 = vmatpush2.msra.mxu0 %v14538_v61  ;;  %v14549_v61 = vld [vmem:[#allocation71_spill] sm:$0xff] }
 0x5b1   :  { %2465 = vmatprep.subr.mxu0 %v14539_v13  ;;  %v14550_v13 = vld [vmem:[#allocation77_spill] sm:$0xff] }
 0x5b2   :  { %2466 = vmatpush2.msra.mxu0 %v14540_v1  ;;  %v14551_v1 = vld [vmem:[#allocation74_spill] sm:$0xff] }
 0x5b3   :  { %2467 = vmatprep.subr.mxu0 %v14541_v36  ;;  %v14552_v36 = vld [vmem:[#allocation79_spill] sm:$0xff] }
 0x5b4   :  { %2468 = vmatpush2.msra.mxu0 %v14542_v24  ;;  %v14553_v24 = vld [vmem:[#allocation146_spill] sm:$0xff] }
 0x5b5   :  { %2469 = vmatprep.subr.mxu0 %v14543_v44  ;;  %v14554_v44 = vld [vmem:[#allocation147_spill] sm:$0xff] }
 0x5b6   :  { %2470 = vmatpush2.msra.mxu0 %v14544_v21  ;;  %v14555_v21 = vld [vmem:[#allocation148_spill] sm:$0xff] }
 0x5b7   :  { %2471 = vmatprep.subr.mxu0 %v14545_v34  ;;  %v14556_v34 = vld [vmem:[#allocation149_spill] sm:$0xff] }
 0x5b8   :  { %2472 = vmatpush2.msra.mxu0 %v14546_v29  ;;  %v14557_v29 = vld [vmem:[#allocation150_spill] sm:$0xff] }
 0x5b9   :  { %2473 = vmatprep.subr.mxu0 %v14547_v10  ;;  %v14558_v10 = vld [vmem:[#allocation151_spill] sm:$0xff] }
 0x5ba   :  { %2474 = vmatpush2.msra.mxu0 %v14548_v52  ;;  %v14559_v52 = vld [vmem:[#allocation152_spill] sm:$0xff] }
 0x5bb   :  { %2475 = vmatprep.subr.mxu0 %v14549_v61  ;;  %v14560_v61 = vld [vmem:[#allocation153_spill] sm:$0xff] }
 0x5bc   :  { %2476 = vmatpush2.msra.mxu0 %v14550_v13  ;;  %v14561_v13 = vld [vmem:[#allocation154_spill] sm:$0xff] }
 0x5bd   :  { %2477 = vmatprep.subr.mxu0 %v14551_v1  ;;  %v14562_v1 = vld [vmem:[#allocation155_spill] sm:$0xff] }
 0x5be   :  { %2478 = vmatpush2.msra.mxu0 %v14552_v36  ;;  %v14563_v36 = vld [vmem:[#allocation156_spill] sm:$0xff] }
 0x5bf   :  { %2479 = vmatprep.subr.mxu0 %v14553_v24  ;;  %v14564_v24 = vld [vmem:[#allocation157_spill] sm:$0xff] }
 0x5c0   :  { %2480 = vmatpush2.msra.mxu0 %v14554_v44  ;;  %v14565_v44 = vld [vmem:[#allocation158_spill] sm:$0xff] }
 0x5c1   :  { %2481 = vmatprep.subr.mxu0 %v14555_v21  ;;  %v14566_v21 = vld [vmem:[#allocation159_spill] sm:$0xff] }
 0x5c2   :  { %2482 = vmatpush2.msra.mxu0 %v14556_v34  ;;  %v10165_v34 = vld [vmem:[#allocation9 + $0x2d8] sm:$0xff] }
 0x5c3   :  { %2483 = vmatprep.subr.mxu0 %v14557_v29  ;;  %14567 = vst [vmem:[#allocation203_spill] sm:$0xff] %v10165_v34  ;;  %v14568_v29 = vld [vmem:[#allocation34_spill] sm:$0xff] }
 0x5c4   :  { %2484 = vmatpush2.msra.mxu0 %v14558_v10 }
 0x5c5   :  { %2485 = vmatprep.subr.mxu0 %v14559_v52 }
 0x5c6   :  { %2486 = vmatpush2.msra.mxu0 %v14560_v61 }
 0x5c7   :  { %2487 = vmatprep.subr.mxu0 %v14561_v13 }
 0x5c8   :  { %2488 = vmatpush2.msra.mxu0 %v14562_v1 }
 0x5c9   :  { %2489 = vmatprep.subr.mxu0 %v14563_v36 }
 0x5ca   :  { %2490 = vmatpush2.msra.mxu0 %v14564_v24 }
 0x5cb   :  { %2491 = vmatprep.subr.mxu0 %v14565_v44 }
 0x5cc   :  { %2492 = vmatpush2.msra.mxu0 %v14566_v21 }
 0x5cd   :  { %2645 = vmatprep.subr.mxu0 %v10165_v34 }
 0x60d   :  { %v2167_v10 = vpop.f32.mrf.mxu0  ;;  %v2238_v36 = vpop.f32.mrf.mxu1 }
 0x60e   :  { %v2314_v61 = vadd.f32 %v2167_v10, %v14568_v29  ;;  %v2316_v44 = vadd.f32 %v2238_v36, %v14570_v59 }
 0x60f   :  { %v2169_v52 = vpop.f32.mrf.mxu0  ;;  %v2240_v24 = vpop.f32.mrf.mxu1 }
 0x610   :  { %v2315_v13 = vadd.f32 %v2169_v52, %v14569_v3  ;;  %v6350_v30 = vmul.f32 -1.442695, %v2314_v61  ;;  %v2317_v21 = vadd.f32 %v2240_v24, %v14571_v47  ;;  %v6352_v22 = vmul.f32 -1.442695, %v2316_v44 }
 0x612   :  { %v6351_v1 = vmul.f32 -1.442695, %v2315_v13  ;;  %6527 = vpow2.f32 %v6350_v30  ;;  %v6353_v19 = vmul.f32 -1.442695, %v2317_v21 }
 0x614   :  { %6529 = vpow2.f32 %v6351_v1 }
 0x615   :  { %6531 = vpow2.f32 %v6352_v22 }
 0x616   :  { %6533 = vpow2.f32 %v6353_v19 }
 0x61f   :  { %v6528_v4 = vpop.eup %6527 }
 0x620   :  { %v2330_v43 = vadd.f32 1.0, %v6528_v4  ;;  %v14572_v4 = vld [vmem:[#allocation38_spill] sm:$0xff] }
 0x621   :  { %v6530_v34 = vpop.eup %6529 }
 0x622   :  { %v2331_v10 = vadd.f32 1.0, %v6530_v34  ;;  %6535 = vrcp.f32 %v2330_v43  ;;  %v6532_v61 = vpop.eup %6531  ;;  %v14573_v43 = vld [vmem:[#allocation33_spill] sm:$0xff] }
 0x623   :  { %v6534_v52 = vpop.eup %6533  ;;  %v2332_v30 = vadd.f32 1.0, %v6532_v61 }
 0x624   :  { %6537 = vrcp.f32 %v2331_v10  ;;  %v2333_v1 = vadd.f32 1.0, %v6534_v52 }
 0x625   :  { %6539 = vrcp.f32 %v2332_v30 }
 0x626   :  { %6541 = vrcp.f32 %v2333_v1 }
 0x62f   :  { %v6536_v36 = vpop.eup %6535 }
 0x631   :  { %v6538_v44 = vpop.eup %6537 }
 0x632   :  { %v6540_v10 = vpop.eup %6539 }
 0x633   :  { %v6542_v61 = vpop.eup %6541  ;;  %v2350_v47 = vsub.f32 1.0, %v6540_v10  ;;  %v2354_v30 = vmul.f32 %v6540_v10, %v9840_v11  ;;  %v14601_v11 = vld [vmem:[#allocation101_spill] sm:$0xff] }
 0x634   :  { %v14609_v10 = vld [vmem:[#allocation109_spill] sm:$0xff] }
 0x64d   :  { %v2309_v13 = vpop.f32.mrf.mxu0 }
 0x64e   :  { %v2342_v3 = vadd.f32 %v2309_v13, %v8543_v17  ;;  %v2351_v13 = vsub.f32 1.0, %v6542_v61 }
 0x64f   :  { %v2311_v59 = vpop.f32.mrf.mxu0 }
 0x650   :  { %v2344_v24 = vmul.f32 %v6536_v36, %v2342_v3  ;;  %v2343_v21 = vadd.f32 %v2311_v59, %v14431_v56  ;;  %v2355_v59 = vmul.f32 %v6542_v61, %v9838_v33  ;;  %v14600_v33 = vld [vmem:[#allocation174_spill] sm:$0xff]  ;;  %v14610_v61 = vld [vmem:[#allocation179_spill] sm:$0xff] }
 0x652   :  { %v2346_v19 = vadd.f32 %v2344_v24, %v14572_v4  ;;  %v2345_v22 = vmul.f32 %v6538_v44, %v2343_v21  ;;  %v14603_v24 = vld [vmem:[#allocation103_spill] sm:$0xff]  ;;  %v14604_v21 = vld [vmem:[#allocation176_spill] sm:$0xff]  ;;  %v14605_v44 = vld [vmem:[#allocation105_spill] sm:$0xff] }
 0x654   :  { %6543 = vtanh.f32 %v2346_v19  ;;  %v2347_v34 = vadd.f32 %v2345_v22, %v14573_v43  ;;  %v14606_v19 = vld [vmem:[#allocation177_spill] sm:$0xff]  ;;  %v14607_v22 = vld [vmem:[#allocation107_spill] sm:$0xff] }
 0x656   :  { %6545 = vtanh.f32 %v2347_v34  ;;  %v14608_v34 = vld [vmem:[#allocation178_spill] sm:$0xff] }
 0x661   :  { %v6544_v52 = vpop.eup %6543 }
 0x662   :  { %v2352_v29 = vmul.f32 %v6544_v52, %v2350_v47  ;;  %v14599_v47 = vld [vmem:[#allocation99_spill] sm:$0xff] }
 0x663   :  { %v6546_v17 = vpop.eup %6545  ;;  %v14611_v52 = vld [vmem:[#allocation111_spill] sm:$0xff] }
 0x664   :  { %v2353_v3 = vmul.f32 %v6546_v17, %v2351_v13  ;;  %v10180_v36 = vadd.f32 %v2354_v30, %v2352_v29  ;;  %v14574_v17 = vld [vmem:[#allocation81_spill] sm:$0xff]  ;;  %v14602_v29 = vld [vmem:[#allocation175_spill] sm:$0xff]  ;;  %v14612_v13 = vld [vmem:[#allocation180_spill] sm:$0xff] }
 0x665   :  { %v14615_v30 = vld [vmem:[#allocation115_spill] sm:$0xff] }
 0x666   :  { %v10178_v1 = vadd.f32 %v2355_v59, %v2353_v3  ;;  %v14613_v3 = vld [vmem:[#allocation113_spill] sm:$0xff] }
 0x667   :  { %v14614_v59 = vld [vmem:[#allocation181_spill] sm:$0xff] }
 0x668   :  { %2422 = vmatprep.mubr.f32.mxu1 %v10178_v1  ;;  %2493 = vmatprep.mubr.f32.mxu0 %v10178_v1 }
 0x669   :  { %2423 = vmatmul.mubr.f32.vlgmr.msra.gmra.mxu1 %v10180_v36  ;;  %2494 = vmatmul.mubr.f32.vlgmr.msra.gmra.mxu0 %v10180_v36 }
 0x66a   :  { %2501 = vmatpush1.msra.mxu1 %v9846_v9  ;;  %2564 = vmatprep.mubr.f32.mxu1 %v10178_v1 }
 0x66b   :  { %2502 = vmatprep.subr.mxu1 %v9850_v46  ;;  %2646 = vmatpush1.msra.mxu0 %v9381_v41  ;;  %v14575_v41 = vld [vmem:[#allocation54_spill] sm:$0xff] }
 0x66c   :  { %2503 = vmatpush1.msra.mxu1 %v9854_v6  ;;  %2647 = vmatprep.subr.mxu0 %v9385_v12  ;;  %v14576_v12 = vld [vmem:[#allocation49_spill] sm:$0xff] }
 0x66d   :  { %2504 = vmatprep.subr.mxu1 %v9858_v7  ;;  %2648 = vmatpush1.msra.mxu0 %v9389_v39  ;;  %v14577_v39 = vld [vmem:[#allocation160_spill] sm:$0xff] }
 0x66e   :  { %2505 = vmatpush1.msra.mxu1 %v9862_v14  ;;  %2649 = vmatprep.subr.mxu0 %v9393_v38  ;;  %v14578_v38 = vld [vmem:[#allocation161_spill] sm:$0xff] }
 0x66f   :  { %2506 = vmatprep.subr.mxu1 %v9866_v15  ;;  %2650 = vmatpush1.msra.mxu0 %v9397_v50  ;;  %v14579_v50 = vld [vmem:[#allocation162_spill] sm:$0xff] }
 0x670   :  { %2507 = vmatpush1.msra.mxu1 %v9870_v58  ;;  %2651 = vmatprep.subr.mxu0 %v9401_v23  ;;  %v14580_v23 = vld [vmem:[#allocation163_spill] sm:$0xff] }
 0x671   :  { %2508 = vmatprep.subr.mxu1 %v9874_v35  ;;  %2652 = vmatpush1.msra.mxu0 %v9405_v63  ;;  %v14581_v63 = vld [vmem:[#allocation164_spill] sm:$0xff] }
 0x672   :  { %2509 = vmatpush1.msra.mxu1 %v9878_v27  ;;  %2653 = vmatprep.subr.mxu0 %v9409_v55  ;;  %v14582_v55 = vld [vmem:[#allocation165_spill] sm:$0xff] }
 0x673   :  { %2510 = vmatprep.subr.mxu1 %v9882_v32  ;;  %2654 = vmatpush1.msra.mxu0 %v9413_v53  ;;  %v14583_v53 = vld [vmem:[#allocation83_spill] sm:$0xff] }
 0x674   :  { %2511 = vmatpush1.msra.mxu1 %v9886_v57  ;;  %2655 = vmatprep.subr.mxu0 %v9417_v60  ;;  %v14584_v60 = vld [vmem:[#allocation166_spill] sm:$0xff] }
 0x675   :  { %2512 = vmatprep.subr.mxu1 %v9890_v26  ;;  %2656 = vmatpush1.msra.mxu0 %v9421_v0  ;;  %v14585_v0 = vld [vmem:[#allocation85_spill] sm:$0xff] }
 0x676   :  { %2513 = vmatpush1.msra.mxu1 %v9894_v20  ;;  %2657 = vmatprep.subr.mxu0 %v9425_v8  ;;  %v14586_v8 = vld [vmem:[#allocation167_spill] sm:$0xff] }
 0x677   :  { %2514 = vmatprep.subr.mxu1 %v9898_v62  ;;  %2658 = vmatpush1.msra.mxu0 %v9429_v5  ;;  %v14587_v5 = vld [vmem:[#allocation87_spill] sm:$0xff] }
 0x678   :  { %2515 = vmatpush1.msra.mxu1 %v9902_v16  ;;  %2659 = vmatprep.subr.mxu0 %v9433_v42  ;;  %v14588_v42 = vld [vmem:[#allocation168_spill] sm:$0xff] }
 0x679   :  { %2516 = vmatprep.subr.mxu1 %v9906_v37  ;;  %2660 = vmatpush1.msra.mxu0 %v9437_v40  ;;  %v14589_v40 = vld [vmem:[#allocation89_spill] sm:$0xff] }
 0x67a   :  { %2517 = vmatpush1.msra.mxu1 %v9910_v45  ;;  %2661 = vmatprep.subr.mxu0 %v9441_v18  ;;  %v14590_v18 = vld [vmem:[#allocation169_spill] sm:$0xff] }
 0x67b   :  { %2518 = vmatprep.subr.mxu1 %v14574_v17  ;;  %2662 = vmatpush1.msra.mxu0 %v9445_v54  ;;  %v14591_v54 = vld [vmem:[#allocation91_spill] sm:$0xff] }
 0x67c   :  { %2519 = vmatpush1.msra.mxu1 %v14575_v41  ;;  %2663 = vmatprep.subr.mxu0 %v9449_v48  ;;  %v14592_v48 = vld [vmem:[#allocation170_spill] sm:$0xff] }
 0x67d   :  { %2520 = vmatprep.subr.mxu1 %v14576_v12  ;;  %2664 = vmatpush1.msra.mxu0 %v9453_v25  ;;  %v14593_v25 = vld [vmem:[#allocation93_spill] sm:$0xff] }
 0x67e   :  { %2521 = vmatpush1.msra.mxu1 %v14577_v39  ;;  %2665 = vmatprep.subr.mxu0 %v9457_v51  ;;  %v14594_v51 = vld [vmem:[#allocation171_spill] sm:$0xff] }
 0x67f   :  { %2522 = vmatprep.subr.mxu1 %v14578_v38  ;;  %2666 = vmatpush1.msra.mxu0 %v9461_v2  ;;  %v14595_v2 = vld [vmem:[#allocation95_spill] sm:$0xff] }
 0x680   :  { %2523 = vmatpush1.msra.mxu1 %v14579_v50  ;;  %2667 = vmatprep.subr.mxu0 %v9465_v49  ;;  %v14596_v49 = vld [vmem:[#allocation172_spill] sm:$0xff] }
 0x681   :  { %2524 = vmatprep.subr.mxu1 %v14580_v23  ;;  %2668 = vmatpush1.msra.mxu0 %v9469_v28  ;;  %v14597_v28 = vld [vmem:[#allocation97_spill] sm:$0xff] }
 0x682   :  { %2525 = vmatpush1.msra.mxu1 %v14581_v63  ;;  %2669 = vmatprep.subr.mxu0 %v9473_v31  ;;  %v14598_v31 = vld [vmem:[#allocation173_spill] sm:$0xff] }
 0x683   :  { %2526 = vmatprep.subr.mxu1 %v14582_v55  ;;  %2670 = vmatpush1.msra.mxu0 %v14583_v53  ;;  %v14616_v53 = vld [vmem:[#allocation182_spill] sm:$0xff] }
 0x684   :  { %2527 = vmatpush1.msra.mxu1 %v14584_v60  ;;  %2671 = vmatprep.subr.mxu0 %v14585_v0  ;;  %v14617_v0 = vld [vmem:[#allocation118_spill] sm:$0xff] }
 0x685   :  { %2528 = vmatprep.subr.mxu1 %v14586_v8  ;;  %2672 = vmatpush1.msra.mxu0 %v14587_v5  ;;  %v14618_v5 = vld [vmem:[#allocation183_spill] sm:$0xff] }
 0x686   :  { %2529 = vmatpush1.msra.mxu1 %v14588_v42  ;;  %2673 = vmatprep.subr.mxu0 %v14589_v40  ;;  %v14619_v40 = vld [vmem:[#allocation120_spill] sm:$0xff] }
 0x687   :  { %2530 = vmatprep.subr.mxu1 %v14590_v18  ;;  %2674 = vmatpush1.msra.mxu0 %v14591_v54  ;;  %v14620_v54 = vld [vmem:[#allocation184_spill] sm:$0xff] }
 0x688   :  { %2531 = vmatpush1.msra.mxu1 %v14592_v48  ;;  %2675 = vmatprep.subr.mxu0 %v14593_v25  ;;  %v14621_v25 = vld [vmem:[#allocation123_spill] sm:$0xff] }
 0x689   :  { %2532 = vmatprep.subr.mxu1 %v14594_v51  ;;  %2676 = vmatpush1.msra.mxu0 %v14595_v2  ;;  %v14622_v2 = vld [vmem:[#allocation185_spill] sm:$0xff] }
 0x68a   :  { %2533 = vmatpush2.msra.mxu1 %v14596_v49  ;;  %2677 = vmatprep.subr.mxu0 %v14597_v28  ;;  %v14623_v28 = vld [vmem:[#allocation125_spill] sm:$0xff] }
 0x68b   :  { %2534 = vmatprep.subr.mxu1 %v14598_v31  ;;  %2678 = vmatpush2.msra.mxu0 %v14599_v47  ;;  %v14624_v47 = vld [vmem:[#allocation186_spill] sm:$0xff] }
 0x68c   :  { %2535 = vmatpush2.msra.mxu1 %v14600_v33  ;;  %2679 = vmatprep.subr.mxu0 %v14601_v11  ;;  %v14625_v11 = vld [vmem:[#allocation130_spill] sm:$0xff] }
 0x68d   :  { %2536 = vmatprep.subr.mxu1 %v14602_v29  ;;  %2680 = vmatpush2.msra.mxu0 %v14603_v24  ;;  %v14626_v24 = vld [vmem:[#allocation187_spill] sm:$0xff] }
 0x68e   :  { %2537 = vmatpush2.msra.mxu1 %v14604_v21  ;;  %2681 = vmatprep.subr.mxu0 %v14605_v44  ;;  %v14627_v44 = vld [vmem:[#allocation76_spill] sm:$0xff] }
 0x68f   :  { %2538 = vmatprep.subr.mxu1 %v14606_v19  ;;  %2682 = vmatpush2.msra.mxu0 %v14607_v22  ;;  %v14628_v22 = vld [vmem:[#allocation188_spill] sm:$0xff] }
 0x690   :  { %2539 = vmatpush2.msra.mxu1 %v14608_v34  ;;  %2683 = vmatprep.subr.mxu0 %v14609_v10  ;;  %v14629_v10 = vld [vmem:[#allocation78_spill] sm:$0xff] }
 0x691   :  { %2540 = vmatprep.subr.mxu1 %v14610_v61  ;;  %2684 = vmatpush2.msra.mxu0 %v14611_v52  ;;  %v14630_v52 = vld [vmem:[#allocation189_spill] sm:$0xff] }
 0x692   :  { %2541 = vmatpush2.msra.mxu1 %v14612_v13  ;;  %2685 = vmatprep.subr.mxu0 %v14613_v3  ;;  %v14631_v3 = vld [vmem:[#allocation80_spill] sm:$0xff] }
 0x693   :  { %2542 = vmatprep.subr.mxu1 %v14614_v59  ;;  %2686 = vmatpush2.msra.mxu0 %v14615_v30  ;;  %v14632_v30 = vld [vmem:[#allocation190_spill] sm:$0xff]  ;;  %v14728_v59 = vld [vmem:[#allocation31_spill] sm:$0xff] }
 0x694   :  { %2543 = vmatpush2.msra.mxu1 %v14616_v53  ;;  %2687 = vmatprep.subr.mxu0 %v14617_v0  ;;  %v14633_v0 = vld [vmem:[#allocation82_spill] sm:$0xff]  ;;  %v14727_v53 = vld [vmem:[#allocation36_spill] sm:$0xff] }
 0x695   :  { %2544 = vmatprep.subr.mxu1 %v14618_v5  ;;  %2688 = vmatpush2.msra.mxu0 %v14619_v40  ;;  %v14634_v40 = vld [vmem:[#allocation191_spill] sm:$0xff] }
 0x696   :  { %2545 = vmatpush2.msra.mxu1 %v14620_v54  ;;  %2689 = vmatprep.subr.mxu0 %v14621_v25  ;;  %v14635_v25 = vld [vmem:[#allocation84_spill] sm:$0xff] }
 0x697   :  { %2546 = vmatprep.subr.mxu1 %v14622_v2  ;;  %2690 = vmatpush2.msra.mxu0 %v14623_v28  ;;  %v14636_v28 = vld [vmem:[#allocation192_spill] sm:$0xff]  ;;  %v14726_v2 = vld [vmem:[#allocation30_spill] sm:$0xff] }
 0x698   :  { %2547 = vmatpush2.msra.mxu1 %v14624_v47  ;;  %2691 = vmatprep.subr.mxu0 %v14625_v11  ;;  %v14637_v11 = vld [vmem:[#allocation86_spill] sm:$0xff] }
 0x699   :  { %2548 = vmatprep.subr.mxu1 %v14626_v24  ;;  %2692 = vmatpush2.msra.mxu0 %v14627_v44  ;;  %v14638_v44 = vld [vmem:[#allocation193_spill] sm:$0xff]  ;;  %v14725_v47 = vld [vmem:[#allocation34_spill] sm:$0xff] }
 0x69a   :  { %2549 = vmatpush2.msra.mxu1 %v14628_v22  ;;  %2693 = vmatprep.subr.mxu0 %v14629_v10  ;;  %v14639_v22 = vld [vmem:[#allocation88_spill] sm:$0xff]  ;;  %v14640_v10 = vld [vmem:[#allocation194_spill] sm:$0xff] }
 0x69b   :  { %2550 = vmatprep.subr.mxu1 %v14630_v52  ;;  %2694 = vmatpush2.msra.mxu0 %v14631_v3  ;;  %v14641_v52 = vld [vmem:[#allocation90_spill] sm:$0xff]  ;;  %v14642_v3 = vld [vmem:[#allocation195_spill] sm:$0xff] }
 0x69c   :  { %2551 = vmatpush2.msra.mxu1 %v14632_v30  ;;  %2695 = vmatprep.subr.mxu0 %v14633_v0  ;;  %v14643_v30 = vld [vmem:[#allocation92_spill] sm:$0xff] }
 0x69d   :  { %2552 = vmatprep.subr.mxu1 %v14634_v40  ;;  %2696 = vmatpush2.msra.mxu0 %v14635_v25  ;;  %v14644_v0 = vld [vmem:[#allocation196_spill] sm:$0xff]  ;;  %v14645_v40 = vld [vmem:[#allocation94_spill] sm:$0xff]  ;;  %v14646_v25 = vld [vmem:[#allocation197_spill] sm:$0xff] }
 0x69e   :  { %2553 = vmatpush2.msra.mxu1 %v14636_v28  ;;  %2697 = vmatprep.subr.mxu0 %v14637_v11  ;;  %v14647_v28 = vld [vmem:[#allocation96_spill] sm:$0xff]  ;;  %v14648_v11 = vld [vmem:[#allocation198_spill] sm:$0xff] }
 0x69f   :  { %2554 = vmatprep.subr.mxu1 %v14638_v44  ;;  %2698 = vmatpush2.msra.mxu0 %v14639_v22  ;;  %v14649_v44 = vld [vmem:[#allocation98_spill] sm:$0xff]  ;;  %v14650_v22 = vld [vmem:[#allocation199_spill] sm:$0xff] }
 0x6a0   :  { %2555 = vmatpush2.msra.mxu1 %v14640_v10  ;;  %2699 = vmatprep.subr.mxu0 %v14641_v52  ;;  %v14651_v10 = vld [vmem:[#allocation100_spill] sm:$0xff] }
 0x6a1   :  { %2556 = vmatprep.subr.mxu1 %v14642_v3  ;;  %2700 = vmatpush2.msra.mxu0 %v14643_v30  ;;  %v14652_v52 = vld [vmem:[#allocation200_spill] sm:$0xff]  ;;  %v14653_v3 = vld [vmem:[#allocation102_spill] sm:$0xff]  ;;  %v14654_v30 = vld [vmem:[#allocation201_spill] sm:$0xff] }
 0x6a2   :  { %2557 = vmatpush2.msra.mxu1 %v14644_v0  ;;  %2701 = vmatprep.subr.mxu0 %v14645_v40  ;;  %v14655_v0 = vld [vmem:[#allocation104_spill] sm:$0xff]  ;;  %v14656_v40 = vld [vmem:[#allocation202_spill] sm:$0xff] }
 0x6a3   :  { %2558 = vmatprep.subr.mxu1 %v14646_v25  ;;  %2702 = vmatpush2.msra.mxu0 %v14647_v28  ;;  %v14657_v25 = vld [vmem:[#allocation106_spill] sm:$0xff]  ;;  %v14658_v28 = vld [vmem:[#allocation108_spill] sm:$0xff] }
 0x6a4   :  { %2559 = vmatpush2.msra.mxu1 %v14648_v11  ;;  %2703 = vmatprep.subr.mxu0 %v14649_v44  ;;  %v14659_v44 = vld [vmem:[#allocation110_spill] sm:$0xff] }
 0x6a5   :  { %2560 = vmatprep.subr.mxu1 %v14650_v22  ;;  %2704 = vmatpush2.msra.mxu0 %v14651_v10  ;;  %v14660_v22 = vld [vmem:[#allocation112_spill] sm:$0xff]  ;;  %v14661_v10 = vld [vmem:[#allocation114_spill] sm:$0xff] }
 0x6a6   :  { %2561 = vmatpush2.msra.mxu1 %v14652_v52  ;;  %2705 = vmatprep.subr.mxu0 %v14653_v3  ;;  %v14662_v52 = vld [vmem:[#allocation116_spill] sm:$0xff]  ;;  %v14663_v3 = vld [vmem:[#allocation117_spill] sm:$0xff]  ;;  %v14668_v11 = vld [vmem:[#allocation126_spill] sm:$0xff] }
 0x6a7   :  { %2562 = vmatprep.subr.mxu1 %v14654_v30  ;;  %2706 = vmatpush2.msra.mxu0 %v14655_v0  ;;  %v14664_v30 = vld [vmem:[#allocation119_spill] sm:$0xff]  ;;  %v14665_v0 = vld [vmem:[#allocation121_spill] sm:$0xff] }
 0x6a8   :  { %2563 = vmatpush2.msra.mxu1 %v14656_v40  ;;  %2707 = vmatprep.subr.mxu0 %v14657_v25  ;;  %v14666_v40 = vld [vmem:[#allocation122_spill] sm:$0xff]  ;;  %v14667_v25 = vld [vmem:[#allocation124_spill] sm:$0xff] }
 0x6a9   :  { %2565 = vmatmul.mubr.f32.vlgmr.msra.gmra.mxu1 %v10180_v36  ;;  %2716 = vmatprep.subr.mxu1 %v14658_v28  ;;  %v14669_v28 = vld [vmem:[#allocation127_spill] sm:$0xff] }
 0x6aa   :  { %2717 = vmatpush1.msra.mxu1 %v14659_v44  ;;  %2708 = vmatpush2.msra.mxu0 %v14660_v22  ;;  %v14670_v44 = vld [vmem:[#allocation128_spill] sm:$0xff]  ;;  %v14671_v22 = vld [vmem:[#allocation129_spill] sm:$0xff] }
 0x6ab   :  { %2718 = vmatprep.subr.mxu1 %v14661_v10  ;;  %2787 = vmatprep.subr.mxu0 %v14662_v52  ;;  %v14672_v10 = vld [vmem:[#allocation131_spill] sm:$0xff]  ;;  %v14673_v52 = vld [vmem:[#allocation132_spill] sm:$0xff] }
 0x6ac   :  { %2719 = vmatpush1.msra.mxu1 %v14663_v3  ;;  %v14674_v3 = vld [vmem:[#allocation133_spill] sm:$0xff] }
 0x6ad   :  { %2720 = vmatprep.subr.mxu1 %v14664_v30  ;;  %v14675_v30 = vld [vmem:[#allocation134_spill] sm:$0xff] }
 0x6ae   :  { %2721 = vmatpush1.msra.mxu1 %v14665_v0  ;;  %v14676_v0 = vld [vmem:[#allocation135_spill] sm:$0xff] }
 0x6af   :  { %2722 = vmatprep.subr.mxu1 %v14666_v40  ;;  %v14677_v40 = vld [vmem:[#allocation136_spill] sm:$0xff] }
 0x6b0   :  { %2723 = vmatpush1.msra.mxu1 %v14667_v25  ;;  %v14678_v25 = vld [vmem:[#allocation137_spill] sm:$0xff] }
 0x6b1   :  { %2724 = vmatprep.subr.mxu1 %v14668_v11  ;;  %v14679_v11 = vld [vmem:[#allocation138_spill] sm:$0xff] }
 0x6b2   :  { %2725 = vmatpush1.msra.mxu1 %v14669_v28  ;;  %v14680_v28 = vld [vmem:[#allocation139_spill] sm:$0xff] }
 0x6b3   :  { %2726 = vmatprep.subr.mxu1 %v14670_v44  ;;  %v14681_v44 = vld [vmem:[#allocation140_spill] sm:$0xff] }
 0x6b4   :  { %2727 = vmatpush1.msra.mxu1 %v14671_v22  ;;  %v14682_v22 = vld [vmem:[#allocation141_spill] sm:$0xff] }
 0x6b5   :  { %2728 = vmatprep.subr.mxu1 %v14672_v10  ;;  %v14683_v10 = vld [vmem:[#allocation142_spill] sm:$0xff] }
 0x6b6   :  { %2729 = vmatpush1.msra.mxu1 %v14673_v52  ;;  %v14684_v52 = vld [vmem:[#allocation143_spill] sm:$0xff] }
 0x6b7   :  { %2730 = vmatprep.subr.mxu1 %v14674_v3  ;;  %v14685_v3 = vld [vmem:[#allocation144_spill] sm:$0xff] }
 0x6b8   :  { %2731 = vmatpush1.msra.mxu1 %v14675_v30  ;;  %v14686_v30 = vld [vmem:[#allocation58_spill] sm:$0xff] }
 0x6b9   :  { %2732 = vmatprep.subr.mxu1 %v14676_v0  ;;  %v14687_v0 = vld [vmem:[#allocation53_spill] sm:$0xff] }
 0x6ba   :  { %2733 = vmatpush1.msra.mxu1 %v14677_v40  ;;  %v14688_v40 = vld [vmem:[#allocation60_spill] sm:$0xff] }
 0x6bb   :  { %2734 = vmatprep.subr.mxu1 %v14678_v25  ;;  %v14689_v25 = vld [vmem:[#allocation55_spill] sm:$0xff] }
 0x6bc   :  { %2735 = vmatpush1.msra.mxu1 %v14679_v11  ;;  %v14690_v11 = vld [vmem:[#allocation62_spill] sm:$0xff] }
 0x6bd   :  { %2736 = vmatprep.subr.mxu1 %v14680_v28  ;;  %v14691_v28 = vld [vmem:[#allocation57_spill] sm:$0xff] }
 0x6be   :  { %2737 = vmatpush1.msra.mxu1 %v14681_v44  ;;  %v14692_v44 = vld [vmem:[#allocation64_spill] sm:$0xff] }
 0x6bf   :  { %2738 = vmatprep.subr.mxu1 %v14682_v22  ;;  %v14693_v22 = vld [vmem:[#allocation59_spill] sm:$0xff] }
 0x6c0   :  { %2739 = vmatpush1.msra.mxu1 %v14683_v10  ;;  %v14694_v10 = vld [vmem:[#allocation66_spill] sm:$0xff] }
 0x6c1   :  { %2740 = vmatprep.subr.mxu1 %v14684_v52  ;;  %v14695_v52 = vld [vmem:[#allocation61_spill] sm:$0xff] }
 0x6c2   :  { %2741 = vmatpush1.msra.mxu1 %v14685_v3  ;;  %v14696_v3 = vld [vmem:[#allocation68_spill] sm:$0xff] }
 0x6c3   :  { %2742 = vmatprep.subr.mxu1 %v14686_v30  ;;  %v14697_v30 = vld [vmem:[#allocation63_spill] sm:$0xff] }
 0x6c4   :  { %2743 = vmatpush1.msra.mxu1 %v14687_v0  ;;  %v14698_v0 = vld [vmem:[#allocation70_spill] sm:$0xff] }
 0x6c5   :  { %2744 = vmatprep.subr.mxu1 %v14688_v40  ;;  %v14699_v40 = vld [vmem:[#allocation145_spill] sm:$0xff] }
 0x6c6   :  { %2745 = vmatpush1.msra.mxu1 %v14689_v25  ;;  %v14700_v25 = vld [vmem:[#allocation65_spill] sm:$0xff] }
 0x6c7   :  { %2746 = vmatprep.subr.mxu1 %v14690_v11  ;;  %v14701_v11 = vld [vmem:[#allocation72_spill] sm:$0xff] }
 0x6c8   :  { %2747 = vmatpush1.msra.mxu1 %v14691_v28  ;;  %v14702_v28 = vld [vmem:[#allocation67_spill] sm:$0xff] }
 0x6c9   :  { %2748 = vmatprep.subr.mxu1 %v14692_v44  ;;  %v14703_v44 = vld [vmem:[#allocation73_spill] sm:$0xff] }
 0x6ca   :  { %2749 = vmatpush2.msra.mxu1 %v14693_v22  ;;  %v14704_v22 = vld [vmem:[#allocation69_spill] sm:$0xff] }
 0x6cb   :  { %2750 = vmatprep.subr.mxu1 %v14694_v10  ;;  %v14705_v10 = vld [vmem:[#allocation75_spill] sm:$0xff] }
 0x6cc   :  { %2751 = vmatpush2.msra.mxu1 %v14695_v52  ;;  %v14706_v52 = vld [vmem:[#allocation71_spill] sm:$0xff] }
 0x6cd   :  { %2752 = vmatprep.subr.mxu1 %v14696_v3  ;;  %v14707_v3 = vld [vmem:[#allocation77_spill] sm:$0xff] }
 0x6ce   :  { %2753 = vmatpush2.msra.mxu1 %v14697_v30  ;;  %v14708_v30 = vld [vmem:[#allocation74_spill] sm:$0xff] }
 0x6cf   :  { %2754 = vmatprep.subr.mxu1 %v14698_v0  ;;  %v14709_v0 = vld [vmem:[#allocation79_spill] sm:$0xff] }
 0x6d0   :  { %2755 = vmatpush2.msra.mxu1 %v14699_v40  ;;  %v14710_v40 = vld [vmem:[#allocation146_spill] sm:$0xff] }
 0x6d1   :  { %2756 = vmatprep.subr.mxu1 %v14700_v25  ;;  %v14711_v25 = vld [vmem:[#allocation147_spill] sm:$0xff] }
 0x6d2   :  { %2757 = vmatpush2.msra.mxu1 %v14701_v11  ;;  %v14712_v11 = vld [vmem:[#allocation148_spill] sm:$0xff] }
 0x6d3   :  { %2758 = vmatprep.subr.mxu1 %v14702_v28  ;;  %v14713_v28 = vld [vmem:[#allocation149_spill] sm:$0xff] }
 0x6d4   :  { %2759 = vmatpush2.msra.mxu1 %v14703_v44  ;;  %v14714_v44 = vld [vmem:[#allocation150_spill] sm:$0xff] }
 0x6d5   :  { %2760 = vmatprep.subr.mxu1 %v14704_v22  ;;  %v14715_v22 = vld [vmem:[#allocation151_spill] sm:$0xff] }
 0x6d6   :  { %2761 = vmatpush2.msra.mxu1 %v14705_v10  ;;  %v14716_v10 = vld [vmem:[#allocation152_spill] sm:$0xff] }
 0x6d7   :  { %2762 = vmatprep.subr.mxu1 %v14706_v52  ;;  %v14717_v52 = vld [vmem:[#allocation153_spill] sm:$0xff] }
 0x6d8   :  { %2763 = vmatpush2.msra.mxu1 %v14707_v3  ;;  %v14718_v3 = vld [vmem:[#allocation154_spill] sm:$0xff] }
 0x6d9   :  { %2764 = vmatprep.subr.mxu1 %v14708_v30  ;;  %v14719_v30 = vld [vmem:[#allocation155_spill] sm:$0xff] }
 0x6da   :  { %2765 = vmatpush2.msra.mxu1 %v14709_v0  ;;  %v14720_v0 = vld [vmem:[#allocation156_spill] sm:$0xff] }
 0x6db   :  { %2766 = vmatprep.subr.mxu1 %v14710_v40  ;;  %v14721_v40 = vld [vmem:[#allocation157_spill] sm:$0xff] }
 0x6dc   :  { %2767 = vmatpush2.msra.mxu1 %v14711_v25  ;;  %v14722_v25 = vld [vmem:[#allocation158_spill] sm:$0xff] }
 0x6dd   :  { %2768 = vmatprep.subr.mxu1 %v14712_v11  ;;  %v14723_v11 = vld [vmem:[#allocation159_spill] sm:$0xff] }
 0x6de   :  { %2769 = vmatpush2.msra.mxu1 %v14713_v28  ;;  %v14724_v28 = vld [vmem:[#allocation203_spill] sm:$0xff] }
 0x6df   :  { %2770 = vmatprep.subr.mxu1 %v14714_v44 }
 0x6e0   :  { %2771 = vmatpush2.msra.mxu1 %v14715_v22 }
 0x6e1   :  { %2772 = vmatprep.subr.mxu1 %v14716_v10 }
 0x6e2   :  { %2773 = vmatpush2.msra.mxu1 %v14717_v52 }
 0x6e3   :  { %2774 = vmatprep.subr.mxu1 %v14718_v3 }
 0x6e4   :  { %2775 = vmatpush2.msra.mxu1 %v14719_v30 }
 0x6e5   :  { %2776 = vmatprep.subr.mxu1 %v14720_v0 }
 0x6e6   :  { %2777 = vmatpush2.msra.mxu1 %v14721_v40 }
 0x6e7   :  { %2778 = vmatprep.subr.mxu1 %v14722_v25 }
 0x6e8   :  { %2779 = vmatpush2.msra.mxu1 %v14723_v11 }
 0x6e9   :  { %2930 = vmatprep.subr.mxu1 %v14724_v28 }
 0x729   :  { %v2424_v44 = vpop.f32.mrf.mxu1  ;;  %v2495_v30 = vpop.f32.mrf.mxu0 }
 0x72a   :  { %v2575_v24 = vrot.slane %v2424_v44, 6  ;;  %v2577_v40 = vrot.slane %v2495_v30, 6 }
 0x72b   :  { %v2426_v22 = vpop.f32.mrf.mxu1  ;;  %v2497_v0 = vpop.f32.mrf.mxu0 }
 0x72c   :  { %v2576_v10 = vrot.slane %v2426_v22, 6  ;;  %v2583_v52 = vadd.f32 %v2575_v24, %v14725_v47  ;;  %v2578_v25 = vrot.slane %v2497_v0, 6  ;;  %v2585_v11 = vadd.f32 %v2577_v40, %v14727_v53 }
 0x72e   :  { %v2584_v3 = vadd.f32 %v2576_v10, %v14726_v2  ;;  %v6354_v54 = vmul.f32 -1.442695, %v2583_v52  ;;  %v2586_v28 = vadd.f32 %v2578_v25, %v14728_v59  ;;  %v6356_v13 = vmul.f32 -1.442695, %v2585_v11 }
 0x730   :  { %v6355_v5 = vmul.f32 -1.442695, %v2584_v3  ;;  %6547 = vpow2.f32 %v6354_v54  ;;  %v6357_v61 = vmul.f32 -1.442695, %v2586_v28 }
 0x732   :  { %6549 = vpow2.f32 %v6355_v5  ;;  %v14729_v5 = vld [vmem:[#allocation56_spill] sm:$0xff] }
 0x733   :  { %6551 = vpow2.f32 %v6356_v13 }
 0x734   :  { %6553 = vpow2.f32 %v6357_v61 }
 0x73d   :  { %v6548_v44 = vpop.eup %6547 }
 0x73e   :  { %v2599_v24 = vadd.f32 1.0, %v6548_v44 }
 0x73f   :  { %v6550_v22 = vpop.eup %6549 }
 0x740   :  { %v2600_v10 = vadd.f32 1.0, %v6550_v22  ;;  %6555 = vrcp.f32 %v2599_v24  ;;  %v6552_v52 = vpop.eup %6551 }
 0x741   :  { %v6554_v54 = vpop.eup %6553  ;;  %v2601_v30 = vadd.f32 1.0, %v6552_v52 }
 0x742   :  { %6557 = vrcp.f32 %v2600_v10  ;;  %v2602_v40 = vadd.f32 1.0, %v6554_v54 }
 0x743   :  { %6559 = vrcp.f32 %v2601_v30  ;;  %v2632_v30 = vrot.slane %v10178_v1, 6  ;;  %v7116_v1 = vld [vmem:[#allocation9 + $0x2d0] sm:$0xff] }
 0x744   :  { %6561 = vrcp.f32 %v2602_v40 }
 0x74d   :  { %v6556_v11 = vpop.eup %6555 }
 0x74f   :  { %v6558_v44 = vpop.eup %6557 }
 0x750   :  { %v6560_v10 = vpop.eup %6559 }
 0x751   :  { %v6562_v52 = vpop.eup %6561 }
 0x769   :  { %v2566_v3 = vpop.f32.mrf.mxu1 }
 0x76a   :  { %v2611_v0 = vadd.f32 %v2566_v3, %v14729_v5  ;;  %v2625_v3 = vsub.f32 1.0, %v6560_v10 }
 0x76b   :  { %v2568_v2 = vpop.f32.mrf.mxu1 }
 0x76c   :  { %v2615_v53 = vrot.slane %v2611_v0, 6  ;;  %v2612_v25 = vadd.f32 %v2568_v2, %v14431_v56  ;;  %v2631_v0 = vrot.slane %v10180_v36, 6  ;;  %v2626_v2 = vsub.f32 1.0, %v6562_v52  ;;  %v7118_v36 = vld [vmem:[#allocation9 + $0x2a0] sm:$0xff] }
 0x76d   :  { %v2636_v56 = vmul.f32 %v6562_v52, %v2632_v30  ;;  %v14732_v52 = vld [vmem:[#allocation181_spill] sm:$0xff] }
 0x76e   :  { %v2619_v13 = vmul.f32 %v6556_v11, %v2615_v53  ;;  %v2616_v28 = vrot.slane %v2612_v25, 6  ;;  %v2635_v11 = vmul.f32 %v6560_v10, %v2631_v0  ;;  %v14731_v10 = vld [vmem:[#allocation180_spill] sm:$0xff]  ;;  %v14736_v30 = vld [vmem:[#allocation185_spill] sm:$0xff] }
 0x76f   :  { %v14735_v0 = vld [vmem:[#allocation184_spill] sm:$0xff] }
 0x770   :  { %v2621_v61 = vadd.f32 %v2619_v13, %v14572_v4  ;;  %v2620_v22 = vmul.f32 %v6558_v44, %v2616_v28 }
 0x772   :  { %6563 = vtanh.f32 %v2621_v61  ;;  %v2622_v24 = vadd.f32 %v2620_v22, %v14573_v43  ;;  %v7119_v22 = vld [vmem:[#allocation9 + $0x278] sm:$0xff] }
 0x774   :  { %6565 = vtanh.f32 %v2622_v24  ;;  %v14730_v24 = vld [vmem:[#allocation179_spill] sm:$0xff] }
 0x77f   :  { %v6564_v54 = vpop.eup %6563 }
 0x780   :  { %v2627_v53 = vmul.f32 %v6564_v54, %v2625_v3  ;;  %v14733_v3 = vld [vmem:[#allocation182_spill] sm:$0xff]  ;;  %v14734_v54 = vld [vmem:[#allocation183_spill] sm:$0xff] }
 0x781   :  { %v6566_v25 = vpop.eup %6565 }
 0x782   :  { %v2628_v40 = vmul.f32 %v6566_v25, %v2626_v2  ;;  %v10390_v13 = vadd.f32 %v2635_v11, %v2627_v53  ;;  %v7159_v2 = vld [vmem:[#allocation9 + $0x4b8] sm:$0xff]  ;;  %v7160_v53 = vld [vmem:[#allocation9 + $0x4b0] sm:$0xff]  ;;  %v14737_v25 = vld [vmem:[#allocation186_spill] sm:$0xff] }
 0x783   :  { %v7161_v11 = vld [vmem:[#allocation9 + $0x488] sm:$0xff] }
 0x784   :  { %v10392_v28 = vadd.f32 %v2636_v56, %v2628_v40  ;;  %v10396_v61 = vrot.slane %v10390_v13, 2  ;;  %v7117_v56 = vld [vmem:[#allocation9 + $0x2a8] sm:$0xff] }
 0x785   :  { %v14738_v40 = vld [vmem:[#allocation187_spill] sm:$0xff] }
 0x786   :  { %v2642_v44 = vrot.slane %v10392_v28, 2 }
 0x788   :  { %2709 = vmatprep.mubr.f32.mxu0 %v2642_v44  ;;  %2780 = vmatprep.mubr.f32.mxu1 %v2642_v44 }
 0x789   :  { %2710 = vmatmul.mubr.f32.vlgmr.msra.gmra.mxu0 %v10396_v61  ;;  %2781 = vmatmul.mubr.f32.vlgmr.msra.gmra.mxu1 %v10396_v61 }
 0x78a   :  { %2788 = vmatpush1.msra.mxu0 %v9846_v9  ;;  %2851 = vmatprep.mubr.f32.mxu0 %v2642_v44  ;;  %v7120_v9 = vld [vmem:[#allocation9 + $0x270] sm:$0xff]  ;;  %v7162_v44 = vld [vmem:[#allocation9 + $0x480] sm:$0xff] }
 0x78b   :  { %2789 = vmatprep.subr.mxu0 %v9850_v46  ;;  %2931 = vmatpush1.msra.mxu1 %v7116_v1  ;;  %v7121_v46 = vld [vmem:[#allocation9 + $0x248] sm:$0xff]  ;;  %v14739_v1 = vld [vmem:[#allocation188_spill] sm:$0xff] }
 0x78c   :  { %2790 = vmatpush1.msra.mxu0 %v9854_v6  ;;  %2932 = vmatprep.subr.mxu1 %v7117_v56  ;;  %v7122_v6 = vld [vmem:[#allocation9 + $0x240] sm:$0xff]  ;;  %v7163_v56 = vld [vmem:[#allocation9 + $0x458] sm:$0xff] }
 0x78d   :  { %2791 = vmatprep.subr.mxu0 %v9858_v7  ;;  %2933 = vmatpush1.msra.mxu1 %v7118_v36  ;;  %v7123_v7 = vld [vmem:[#allocation9 + $0x218] sm:$0xff] }
 0x78e   :  { %2792 = vmatpush1.msra.mxu0 %v9862_v14  ;;  %2934 = vmatprep.subr.mxu1 %v7119_v22  ;;  %v7124_v14 = vld [vmem:[#allocation9 + $0x210] sm:$0xff]  ;;  %v14740_v36 = vld [vmem:[#allocation189_spill] sm:$0xff] }
 0x78f   :  { %2793 = vmatprep.subr.mxu0 %v9866_v15  ;;  %2935 = vmatpush1.msra.mxu1 %v7120_v9  ;;  %v7125_v15 = vld [vmem:[#allocation9 + $0x1e8] sm:$0xff]  ;;  %v7164_v22 = vld [vmem:[#allocation9 + $0x450] sm:$0xff] }
 0x790   :  { %2794 = vmatpush1.msra.mxu0 %v9870_v58  ;;  %2936 = vmatprep.subr.mxu1 %v7121_v46  ;;  %v7126_v58 = vld [vmem:[#allocation9 + $0x1e0] sm:$0xff]  ;;  %v7165_v46 = vld [vmem:[#allocation9 + $0x428] sm:$0xff] }
 0x791   :  { %2795 = vmatprep.subr.mxu0 %v9874_v35  ;;  %2937 = vmatpush1.msra.mxu1 %v7122_v6  ;;  %v7127_v35 = vld [vmem:[#allocation9 + $0x1b8] sm:$0xff]  ;;  %v14741_v9 = vld [vmem:[#allocation190_spill] sm:$0xff]  ;;  %v14742_v6 = vld [vmem:[#allocation191_spill] sm:$0xff] }
 0x792   :  { %2796 = vmatpush1.msra.mxu0 %v9878_v27  ;;  %2938 = vmatprep.subr.mxu1 %v7123_v7  ;;  %v7128_v27 = vld [vmem:[#allocation9 + $0x1b0] sm:$0xff]  ;;  %v7166_v7 = vld [vmem:[#allocation9 + $0x420] sm:$0xff] }
 0x793   :  { %2797 = vmatprep.subr.mxu0 %v9882_v32  ;;  %2939 = vmatpush1.msra.mxu1 %v7124_v14  ;;  %v7129_v32 = vld [vmem:[#allocation9 + $0x188] sm:$0xff]  ;;  %v14743_v14 = vld [vmem:[#allocation192_spill] sm:$0xff] }
 0x794   :  { %2798 = vmatpush1.msra.mxu0 %v9886_v57  ;;  %2940 = vmatprep.subr.mxu1 %v7125_v15  ;;  %v7130_v57 = vld [vmem:[#allocation9 + $0x180] sm:$0xff]  ;;  %v7167_v15 = vld [vmem:[#allocation9 + $0x3f8] sm:$0xff] }
 0x795   :  { %2799 = vmatprep.subr.mxu0 %v9890_v26  ;;  %2941 = vmatpush1.msra.mxu1 %v7126_v58  ;;  %v7131_v26 = vld [vmem:[#allocation9 + $0x158] sm:$0xff] }
 0x796   :  { %2800 = vmatpush1.msra.mxu0 %v9894_v20  ;;  %2942 = vmatprep.subr.mxu1 %v7127_v35  ;;  %v7132_v20 = vld [vmem:[#allocation9 + $0x150] sm:$0xff]  ;;  %v14744_v58 = vld [vmem:[#allocation193_spill] sm:$0xff] }
 0x797   :  { %2801 = vmatprep.subr.mxu0 %v9898_v62  ;;  %2943 = vmatpush1.msra.mxu1 %v7128_v27  ;;  %v7133_v62 = vld [vmem:[#allocation9 + $0x128] sm:$0xff]  ;;  %v7168_v35 = vld [vmem:[#allocation9 + $0x3f0] sm:$0xff] }
 0x798   :  { %2802 = vmatpush1.msra.mxu0 %v9902_v16  ;;  %2944 = vmatprep.subr.mxu1 %v7129_v32  ;;  %v7134_v16 = vld [vmem:[#allocation9 + $0x120] sm:$0xff]  ;;  %v7169_v32 = vld [vmem:[#allocation9 + $0x3c8] sm:$0xff] }
 0x799   :  { %2803 = vmatprep.subr.mxu0 %v9906_v37  ;;  %2945 = vmatpush1.msra.mxu1 %v7130_v57  ;;  %v7135_v37 = vld [vmem:[#allocation9 + $0xf8] sm:$0xff]  ;;  %v14745_v27 = vld [vmem:[#allocation194_spill] sm:$0xff]  ;;  %v14746_v57 = vld [vmem:[#allocation195_spill] sm:$0xff] }
 0x79a   :  { %2804 = vmatpush1.msra.mxu0 %v9910_v45  ;;  %2946 = vmatprep.subr.mxu1 %v7131_v26  ;;  %v7136_v45 = vld [vmem:[#allocation9 + $0xf0] sm:$0xff]  ;;  %v7170_v26 = vld [vmem:[#allocation9 + $0x3c0] sm:$0xff] }
 0x79b   :  { %2805 = vmatprep.subr.mxu0 %v14574_v17  ;;  %2947 = vmatpush1.msra.mxu1 %v7132_v20  ;;  %v7137_v17 = vld [vmem:[#allocation9 + $0xc8] sm:$0xff]  ;;  %v14747_v20 = vld [vmem:[#allocation196_spill] sm:$0xff] }
 0x79c   :  { %2806 = vmatpush1.msra.mxu0 %v14575_v41  ;;  %2948 = vmatprep.subr.mxu1 %v7133_v62  ;;  %v7138_v41 = vld [vmem:[#allocation9 + $0xc0] sm:$0xff]  ;;  %v7171_v62 = vld [vmem:[#allocation9 + $0x398] sm:$0xff] }
 0x79d   :  { %2807 = vmatprep.subr.mxu0 %v14576_v12  ;;  %2949 = vmatpush1.msra.mxu1 %v7134_v16  ;;  %v7139_v12 = vld [vmem:[#allocation9 + $0x98] sm:$0xff] }
 0x79e   :  { %2808 = vmatpush1.msra.mxu0 %v14577_v39  ;;  %2950 = vmatprep.subr.mxu1 %v7135_v37  ;;  %v7140_v39 = vld [vmem:[#allocation9 + $0x90] sm:$0xff]  ;;  %v14748_v16 = vld [vmem:[#allocation197_spill] sm:$0xff] }
 0x79f   :  { %2809 = vmatprep.subr.mxu0 %v14578_v38  ;;  %2951 = vmatpush1.msra.mxu1 %v7136_v45  ;;  %v7141_v38 = vld [vmem:[#allocation9 + $0x68] sm:$0xff]  ;;  %v7172_v37 = vld [vmem:[#allocation9 + $0x390] sm:$0xff] }
 0x7a0   :  { %2810 = vmatpush1.msra.mxu0 %v14579_v50  ;;  %2952 = vmatprep.subr.mxu1 %v7137_v17  ;;  %v7142_v50 = vld [vmem:[#allocation9 + $0x60] sm:$0xff]  ;;  %v7173_v17 = vld [vmem:[#allocation9 + $0x368] sm:$0xff] }
 0x7a1   :  { %2811 = vmatprep.subr.mxu0 %v14580_v23  ;;  %2953 = vmatpush1.msra.mxu1 %v7138_v41  ;;  %v7143_v23 = vld [vmem:[#allocation9 + $0x38] sm:$0xff]  ;;  %v14749_v45 = vld [vmem:[#allocation198_spill] sm:$0xff]  ;;  %v14750_v41 = vld [vmem:[#allocation199_spill] sm:$0xff] }
 0x7a2   :  { %2812 = vmatpush1.msra.mxu0 %v14581_v63  ;;  %2954 = vmatprep.subr.mxu1 %v7139_v12  ;;  %v7144_v63 = vld [vmem:[#allocation9 + $0x30] sm:$0xff]  ;;  %v7174_v12 = vld [vmem:[#allocation9 + $0x360] sm:$0xff] }
 0x7a3   :  { %2813 = vmatprep.subr.mxu0 %v14582_v55  ;;  %2955 = vmatpush1.msra.mxu1 %v7140_v39  ;;  %v7145_v55 = vld [vmem:[#allocation9 + $0x8] sm:$0xff]  ;;  %v14751_v39 = vld [vmem:[#allocation200_spill] sm:$0xff] }
 0x7a4   :  { %2814 = vmatpush1.msra.mxu0 %v14584_v60  ;;  %2956 = vmatprep.subr.mxu1 %v7141_v38  ;;  %v7146_v60 = vld [vmem:[#allocation9] sm:$0xff]  ;;  %v7175_v38 = vld [vmem:[#allocation9 + $0x338] sm:$0xff] }
 0x7a5   :  { %2815 = vmatprep.subr.mxu0 %v14586_v8  ;;  %2957 = vmatpush1.msra.mxu1 %v7142_v50  ;;  %v7147_v8 = vld [vmem:[#allocation9 + $0x5d8] sm:$0xff] }
 0x7a6   :  { %2816 = vmatpush1.msra.mxu0 %v14588_v42  ;;  %2958 = vmatprep.subr.mxu1 %v7143_v23  ;;  %v7148_v42 = vld [vmem:[#allocation9 + $0x5d0] sm:$0xff]  ;;  %v14752_v50 = vld [vmem:[#allocation201_spill] sm:$0xff] }
 0x7a7   :  { %2817 = vmatprep.subr.mxu0 %v14590_v18  ;;  %2959 = vmatpush1.msra.mxu1 %v7144_v63  ;;  %v7149_v18 = vld [vmem:[#allocation9 + $0x5a8] sm:$0xff]  ;;  %v7176_v23 = vld [vmem:[#allocation9 + $0x330] sm:$0xff] }
 0x7a8   :  { %2818 = vmatpush1.msra.mxu0 %v14592_v48  ;;  %2960 = vmatprep.subr.mxu1 %v7145_v55  ;;  %v7150_v48 = vld [vmem:[#allocation9 + $0x5a0] sm:$0xff]  ;;  %v7177_v55 = vld [vmem:[#allocation9 + $0x308] sm:$0xff] }
 0x7a9   :  { %2819 = vmatprep.subr.mxu0 %v14594_v51  ;;  %2961 = vmatpush1.msra.mxu1 %v7146_v60  ;;  %v7151_v51 = vld [vmem:[#allocation9 + $0x578] sm:$0xff]  ;;  %v14753_v63 = vld [vmem:[#allocation202_spill] sm:$0xff] }
 0x7aa   :  { %2820 = vmatpush2.msra.mxu0 %v14596_v49  ;;  %2962 = vmatprep.subr.mxu1 %v7147_v8  ;;  %v7152_v49 = vld [vmem:[#allocation9 + $0x570] sm:$0xff]  ;;  %v7178_v60 = vld [vmem:[#allocation9 + $0x2e8] sm:$0xff]  ;;  %v7179_v8 = vld [vmem:[#allocation9 + $0x2e0] sm:$0xff] }
 0x7ab   :  { %2821 = vmatprep.subr.mxu0 %v14598_v31  ;;  %2963 = vmatpush2.msra.mxu1 %v7148_v42  ;;  %v7153_v31 = vld [vmem:[#allocation9 + $0x548] sm:$0xff]  ;;  %v7180_v42 = vld [vmem:[#allocation9 + $0x300] sm:$0xff] }
 0x7ac   :  { %2822 = vmatpush2.msra.mxu0 %v14600_v33  ;;  %2964 = vmatprep.subr.mxu1 %v7149_v18  ;;  %v7154_v33 = vld [vmem:[#allocation9 + $0x540] sm:$0xff]  ;;  %v7181_v18 = vld [vmem:[#allocation9 + $0x2b8] sm:$0xff] }
 0x7ad   :  { %2823 = vmatprep.subr.mxu0 %v14602_v29  ;;  %2965 = vmatpush2.msra.mxu1 %v7150_v48  ;;  %v7155_v29 = vld [vmem:[#allocation9 + $0x518] sm:$0xff] }
 0x7ae   :  { %2824 = vmatpush2.msra.mxu0 %v14604_v21  ;;  %2966 = vmatprep.subr.mxu1 %v7151_v51  ;;  %v7156_v21 = vld [vmem:[#allocation9 + $0x510] sm:$0xff]  ;;  %v7182_v48 = vld [vmem:[#allocation9 + $0x2f8] sm:$0xff] }
 0x7af   :  { %2825 = vmatprep.subr.mxu0 %v14606_v19  ;;  %2967 = vmatpush2.msra.mxu1 %v7152_v49  ;;  %v7157_v19 = vld [vmem:[#allocation9 + $0x4e8] sm:$0xff]  ;;  %v7183_v51 = vld [vmem:[#allocation9 + $0x2b0] sm:$0xff] }
 0x7b0   :  { %2826 = vmatpush2.msra.mxu0 %v14608_v34  ;;  %2968 = vmatprep.subr.mxu1 %v7153_v31  ;;  %v7158_v34 = vld [vmem:[#allocation9 + $0x4e0] sm:$0xff]  ;;  %v7184_v49 = vld [vmem:[#allocation9 + $0x288] sm:$0xff] }
 0x7b1   :  { %2827 = vmatprep.subr.mxu0 %v14730_v24  ;;  %2969 = vmatpush2.msra.mxu1 %v7154_v33  ;;  %v7185_v31 = vld [vmem:[#allocation9 + $0x280] sm:$0xff]  ;;  %v7186_v24 = vld [vmem:[#allocation9 + $0x258] sm:$0xff]  ;;  %v7187_v33 = vld [vmem:[#allocation9 + $0x250] sm:$0xff] }
 0x7b2   :  { %2828 = vmatpush2.msra.mxu0 %v14731_v10  ;;  %2970 = vmatprep.subr.mxu1 %v7155_v29  ;;  %v7189_v10 = vld [vmem:[#allocation9 + $0x220] sm:$0xff]  ;;  %v7190_v29 = vld [vmem:[#allocation9 + $0x1f8] sm:$0xff] }
 0x7b3   :  { %2829 = vmatprep.subr.mxu0 %v14732_v52  ;;  %2971 = vmatpush2.msra.mxu1 %v7156_v21  ;;  %v7191_v52 = vld [vmem:[#allocation9 + $0x1f0] sm:$0xff]  ;;  %v7192_v21 = vld [vmem:[#allocation9 + $0x1c8] sm:$0xff] }
 0x7b4   :  { %2830 = vmatpush2.msra.mxu0 %v14733_v3  ;;  %2972 = vmatprep.subr.mxu1 %v7157_v19  ;;  %v7193_v3 = vld [vmem:[#allocation9 + $0x1c0] sm:$0xff]  ;;  %v7194_v19 = vld [vmem:[#allocation9 + $0x198] sm:$0xff] }
 0x7b5   :  { %2831 = vmatprep.subr.mxu0 %v14734_v54  ;;  %2973 = vmatpush2.msra.mxu1 %v7158_v34  ;;  %v7195_v54 = vld [vmem:[#allocation9 + $0x190] sm:$0xff]  ;;  %v7196_v34 = vld [vmem:[#allocation9 + $0x168] sm:$0xff] }
 0x7b6   :  { %2832 = vmatpush2.msra.mxu0 %v14735_v0  ;;  %2974 = vmatprep.subr.mxu1 %v7159_v2  ;;  %v7197_v0 = vld [vmem:[#allocation9 + $0x160] sm:$0xff]  ;;  %v7198_v2 = vld [vmem:[#allocation9 + $0x138] sm:$0xff] }
 0x7b7   :  { %2833 = vmatprep.subr.mxu0 %v14736_v30  ;;  %2975 = vmatpush2.msra.mxu1 %v7160_v53  ;;  %v7199_v30 = vld [vmem:[#allocation9 + $0x130] sm:$0xff]  ;;  %v7200_v53 = vld [vmem:[#allocation9 + $0x108] sm:$0xff] }
 0x7b8   :  { %2834 = vmatpush2.msra.mxu0 %v14737_v25  ;;  %2976 = vmatprep.subr.mxu1 %v7161_v11  ;;  %v7201_v25 = vld [vmem:[#allocation9 + $0x100] sm:$0xff]  ;;  %v7202_v11 = vld [vmem:[#allocation9 + $0xd8] sm:$0xff] }
 0x7b9   :  { %2835 = vmatprep.subr.mxu0 %v14738_v40  ;;  %2977 = vmatpush2.msra.mxu1 %v7162_v44  ;;  %v7203_v40 = vld [vmem:[#allocation9 + $0xd0] sm:$0xff]  ;;  %v7204_v44 = vld [vmem:[#allocation9 + $0xa8] sm:$0xff] }
 0x7ba   :  { %2836 = vmatpush2.msra.mxu0 %v14739_v1  ;;  %2978 = vmatprep.subr.mxu1 %v7163_v56  ;;  %v7205_v1 = vld [vmem:[#allocation9 + $0xa0] sm:$0xff]  ;;  %v7206_v56 = vld [vmem:[#allocation9 + $0x78] sm:$0xff] }
 0x7bb   :  { %2837 = vmatprep.subr.mxu0 %v14740_v36  ;;  %2979 = vmatpush2.msra.mxu1 %v7164_v22  ;;  %v7207_v36 = vld [vmem:[#allocation9 + $0x70] sm:$0xff]  ;;  %v7208_v22 = vld [vmem:[#allocation9 + $0x48] sm:$0xff] }
 0x7bc   :  { %2838 = vmatpush2.msra.mxu0 %v14741_v9  ;;  %2980 = vmatprep.subr.mxu1 %v7165_v46  ;;  %v7209_v9 = vld [vmem:[#allocation9 + $0x40] sm:$0xff]  ;;  %v7210_v46 = vld [vmem:[#allocation9 + $0x18] sm:$0xff] }
 0x7bd   :  { %2839 = vmatprep.subr.mxu0 %v14742_v6  ;;  %2981 = vmatpush2.msra.mxu1 %v7166_v7  ;;  %v7211_v6 = vld [vmem:[#allocation9 + $0x10] sm:$0xff]  ;;  %v7212_v7 = vld [vmem:[#allocation9 + $0x5e8] sm:$0xff] }
 0x7be   :  { %2840 = vmatpush2.msra.mxu0 %v14743_v14  ;;  %2982 = vmatprep.subr.mxu1 %v7167_v15  ;;  %v7213_v14 = vld [vmem:[#allocation9 + $0x5e0] sm:$0xff]  ;;  %v7214_v15 = vld [vmem:[#allocation9 + $0x5b8] sm:$0xff] }
 0x7bf   :  { %2841 = vmatprep.subr.mxu0 %v14744_v58  ;;  %2983 = vmatpush2.msra.mxu1 %v7168_v35  ;;  %v7215_v58 = vld [vmem:[#allocation9 + $0x5b0] sm:$0xff]  ;;  %v7216_v35 = vld [vmem:[#allocation9 + $0x588] sm:$0xff] }
 0x7c0   :  { %2842 = vmatpush2.msra.mxu0 %v14745_v27  ;;  %2984 = vmatprep.subr.mxu1 %v7169_v32  ;;  %v7217_v27 = vld [vmem:[#allocation9 + $0x580] sm:$0xff]  ;;  %v7218_v32 = vld [vmem:[#allocation9 + $0x558] sm:$0xff] }
 0x7c1   :  { %2843 = vmatprep.subr.mxu0 %v14746_v57  ;;  %2985 = vmatpush2.msra.mxu1 %v7170_v26  ;;  %v7219_v57 = vld [vmem:[#allocation9 + $0x550] sm:$0xff]  ;;  %v7220_v26 = vld [vmem:[#allocation9 + $0x528] sm:$0xff] }
 0x7c2   :  { %2844 = vmatpush2.msra.mxu0 %v14747_v20  ;;  %2986 = vmatprep.subr.mxu1 %v7171_v62  ;;  %v7221_v20 = vld [vmem:[#allocation9 + $0x520] sm:$0xff]  ;;  %v7222_v62 = vld [vmem:[#allocation9 + $0x4f8] sm:$0xff] }
 0x7c3   :  { %2845 = vmatprep.subr.mxu0 %v14748_v16  ;;  %2987 = vmatpush2.msra.mxu1 %v7172_v37  ;;  %v7223_v16 = vld [vmem:[#allocation9 + $0x4f0] sm:$0xff]  ;;  %v7224_v37 = vld [vmem:[#allocation9 + $0x4c8] sm:$0xff] }
 0x7c4   :  { %2846 = vmatpush2.msra.mxu0 %v14749_v45  ;;  %2988 = vmatprep.subr.mxu1 %v7173_v17  ;;  %v7225_v45 = vld [vmem:[#allocation9 + $0x4c0] sm:$0xff]  ;;  %v7226_v17 = vld [vmem:[#allocation9 + $0x498] sm:$0xff] }
 0x7c5   :  { %2847 = vmatprep.subr.mxu0 %v14750_v41  ;;  %2989 = vmatpush2.msra.mxu1 %v7174_v12  ;;  %v7227_v41 = vld [vmem:[#allocation9 + $0x490] sm:$0xff]  ;;  %v7228_v12 = vld [vmem:[#allocation9 + $0x468] sm:$0xff] }
 0x7c6   :  { %2848 = vmatpush2.msra.mxu0 %v14751_v39  ;;  %2990 = vmatprep.subr.mxu1 %v7175_v38  ;;  %v7229_v39 = vld [vmem:[#allocation9 + $0x460] sm:$0xff]  ;;  %v7230_v38 = vld [vmem:[#allocation9 + $0x438] sm:$0xff] }
 0x7c7   :  { %2849 = vmatprep.subr.mxu0 %v14752_v50  ;;  %2991 = vmatpush2.msra.mxu1 %v7176_v23  ;;  %v7231_v50 = vld [vmem:[#allocation9 + $0x430] sm:$0xff]  ;;  %v7232_v23 = vld [vmem:[#allocation9 + $0x408] sm:$0xff] }
 0x7c8   :  { %2850 = vmatpush2.msra.mxu0 %v14753_v63  ;;  %2992 = vmatprep.subr.mxu1 %v7177_v55  ;;  %v7233_v63 = vld [vmem:[#allocation9 + $0x400] sm:$0xff]  ;;  %v7234_v55 = vld [vmem:[#allocation9 + $0x3d8] sm:$0xff] }
 0x7c9   :  { %2852 = vmatmul.mubr.f32.vlgmr.msra.gmra.mxu0 %v10396_v61  ;;  %3001 = vmatprep.subr.mxu0 %v7178_v60  ;;  %v7188_v61 = vld [vmem:[#allocation9 + $0x228] sm:$0xff]  ;;  %v7235_v60 = vld [vmem:[#allocation9 + $0x3d0] sm:$0xff] }
 0x7ca   :  { %3002 = vmatpush1.msra.mxu0 %v7179_v8  ;;  %2993 = vmatpush2.msra.mxu1 %v7180_v42  ;;  %v7236_v8 = vld [vmem:[#allocation9 + $0x3a8] sm:$0xff]  ;;  %v7237_v42 = vld [vmem:[#allocation9 + $0x3a0] sm:$0xff] }
 0x7cb   :  { %3003 = vmatprep.subr.mxu0 %v7181_v18  ;;  %3072 = vmatprep.subr.mxu1 %v7182_v48  ;;  %v7238_v18 = vld [vmem:[#allocation9 + $0x378] sm:$0xff]  ;;  %v7239_v48 = vld [vmem:[#allocation9 + $0x370] sm:$0xff] }
 0x7cc   :  { %3004 = vmatpush1.msra.mxu0 %v7183_v51  ;;  %v7240_v51 = vld [vmem:[#allocation9 + $0x348] sm:$0xff] }
 0x7cd   :  { %3005 = vmatprep.subr.mxu0 %v7184_v49  ;;  %v7241_v49 = vld [vmem:[#allocation9 + $0x340] sm:$0xff] }
 0x7ce   :  { %3006 = vmatpush1.msra.mxu0 %v7185_v31  ;;  %v7242_v31 = vld [vmem:[#allocation9 + $0x318] sm:$0xff] }
 0x7cf   :  { %3007 = vmatprep.subr.mxu0 %v7186_v24  ;;  %v7243_v24 = vld [vmem:[#allocation9 + $0x310] sm:$0xff] }
 0x7d0   :  { %3008 = vmatpush1.msra.mxu0 %v7187_v33 }
 0x7d1   :  { %3009 = vmatprep.subr.mxu0 %v7188_v61 }
 0x7d2   :  { %3010 = vmatpush1.msra.mxu0 %v7189_v10 }
 0x7d3   :  { %3011 = vmatprep.subr.mxu0 %v7190_v29 }
 0x7d4   :  { %3012 = vmatpush1.msra.mxu0 %v7191_v52 }
 0x7d5   :  { %3013 = vmatprep.subr.mxu0 %v7192_v21  ;;  %v14754_v21 = vld [vmem:[#allocation30_spill] sm:$0xff] }
 0x7d6   :  { %3014 = vmatpush1.msra.mxu0 %v7193_v3 }
 0x7d7   :  { %3015 = vmatprep.subr.mxu0 %v7194_v19 }
 0x7d8   :  { %3016 = vmatpush1.msra.mxu0 %v7195_v54 }
 0x7d9   :  { %3017 = vmatprep.subr.mxu0 %v7196_v34 }
 0x7da   :  { %3018 = vmatpush1.msra.mxu0 %v7197_v0 }
 0x7db   :  { %3019 = vmatprep.subr.mxu0 %v7198_v2 }
 0x7dc   :  { %3020 = vmatpush1.msra.mxu0 %v7199_v30 }
 0x7dd   :  { %3021 = vmatprep.subr.mxu0 %v7200_v53  ;;  %v14755_v53 = vld [vmem:[#allocation36_spill] sm:$0xff] }
 0x7de   :  { %3022 = vmatpush1.msra.mxu0 %v7201_v25 }
 0x7df   :  { %3023 = vmatprep.subr.mxu0 %v7202_v11 }
 0x7e0   :  { %3024 = vmatpush1.msra.mxu0 %v7203_v40 }
 0x7e1   :  { %3025 = vmatprep.subr.mxu0 %v7204_v44 }
 0x7e2   :  { %3026 = vmatpush1.msra.mxu0 %v7205_v1 }
 0x7e3   :  { %3027 = vmatprep.subr.mxu0 %v7206_v56 }
 0x7e4   :  { %3028 = vmatpush1.msra.mxu0 %v7207_v36 }
 0x7e5   :  { %3029 = vmatprep.subr.mxu0 %v7208_v22 }
 0x7e6   :  { %3030 = vmatpush1.msra.mxu0 %v7209_v9 }
 0x7e7   :  { %3031 = vmatprep.subr.mxu0 %v7210_v46 }
 0x7e8   :  { %3032 = vmatpush1.msra.mxu0 %v7211_v6 }
 0x7e9   :  { %3033 = vmatprep.subr.mxu0 %v7212_v7 }
 0x7ea   :  { %3034 = vmatpush2.msra.mxu0 %v7213_v14 }
 0x7eb   :  { %3035 = vmatprep.subr.mxu0 %v7214_v15 }
 0x7ec   :  { %3036 = vmatpush2.msra.mxu0 %v7215_v58 }
 0x7ed   :  { %3037 = vmatprep.subr.mxu0 %v7216_v35 }
 0x7ee   :  { %3038 = vmatpush2.msra.mxu0 %v7217_v27  ;;  %v14756_v27 = vld [vmem:[#allocation51_spill] sm:$0xff] }
 0x7ef   :  { %3039 = vmatprep.subr.mxu0 %v7218_v32 }
 0x7f0   :  { %3040 = vmatpush2.msra.mxu0 %v7219_v57 }
 0x7f1   :  { %3041 = vmatprep.subr.mxu0 %v7220_v26 }
 0x7f2   :  { %3042 = vmatpush2.msra.mxu0 %v7221_v20 }
 0x7f3   :  { %3043 = vmatprep.subr.mxu0 %v7222_v62 }
 0x7f4   :  { %3044 = vmatpush2.msra.mxu0 %v7223_v16 }
 0x7f5   :  { %3045 = vmatprep.subr.mxu0 %v7224_v37 }
 0x7f6   :  { %3046 = vmatpush2.msra.mxu0 %v7225_v45 }
 0x7f7   :  { %3047 = vmatprep.subr.mxu0 %v7226_v17 }
 0x7f8   :  { %3048 = vmatpush2.msra.mxu0 %v7227_v41 }
 0x7f9   :  { %3049 = vmatprep.subr.mxu0 %v7228_v12 }
 0x7fa   :  { %3050 = vmatpush2.msra.mxu0 %v7229_v39 }
 0x7fb   :  { %3051 = vmatprep.subr.mxu0 %v7230_v38  ;;  %v2916_v38 = vrot.slane %v10390_v13, 6  ;;  %v7244_v13 = vld [vmem:[#allocation9 + $0x2f0] sm:$0xff] }
 0x7fc   :  { %3052 = vmatpush2.msra.mxu0 %v7231_v50  ;;  %v2917_v50 = vrot.slane %v10392_v28, 6  ;;  %v7245_v28 = vld [vmem:[#allocation9 + $0x2c8] sm:$0xff] }
 0x7fd   :  { %3053 = vmatprep.subr.mxu0 %v7232_v23 }
 0x7fe   :  { %3054 = vmatpush2.msra.mxu0 %v7233_v63 }
 0x7ff   :  { %3055 = vmatprep.subr.mxu0 %v7234_v55 }
 0x800   :  { %3056 = vmatpush2.msra.mxu0 %v7235_v60 }
 0x801   :  { %3057 = vmatprep.subr.mxu0 %v7236_v8 }
 0x802   :  { %3058 = vmatpush2.msra.mxu0 %v7237_v42 }
 0x803   :  { %3059 = vmatprep.subr.mxu0 %v7238_v18 }
 0x804   :  { %3060 = vmatpush2.msra.mxu0 %v7239_v48 }
 0x805   :  { %3061 = vmatprep.subr.mxu0 %v7240_v51 }
 0x806   :  { %3062 = vmatpush2.msra.mxu0 %v7241_v49 }
 0x807   :  { %3063 = vmatprep.subr.mxu0 %v7242_v31  ;;  %v7246_v31 = vld [vmem:[#allocation9 + $0x2c0] sm:$0xff] }
 0x808   :  { %3064 = vmatpush2.msra.mxu0 %v7243_v24  ;;  %v7247_v24 = vld [vmem:[#allocation9 + $0x298] sm:$0xff] }
 0x849   :  { %v2711_v33 = vpop.f32.mrf.mxu0  ;;  %v2782_v54 = vpop.f32.mrf.mxu1 }
 0x84a   :  { %v2862_v10 = vrot.slane %v2711_v33, 4  ;;  %v2864_v2 = vrot.slane %v2782_v54, 4  ;;  %v7248_v33 = vld [vmem:[#allocation9 + $0x290] sm:$0xff]  ;;  %v7255_v54 = vld [vmem:[#allocation9 + $0x1d8] sm:$0xff] }
 0x84b   :  { %v2713_v61 = vpop.f32.mrf.mxu0  ;;  %v2784_v0 = vpop.f32.mrf.mxu1 }
 0x84c   :  { %v2863_v29 = vrot.slane %v2713_v61, 4  ;;  %v2870_v52 = vadd.f32 %v2862_v10, %v14725_v47  ;;  %v2865_v30 = vrot.slane %v2784_v0, 4  ;;  %v2872_v25 = vadd.f32 %v2864_v2, %v14755_v53  ;;  %v7249_v61 = vld [vmem:[#allocation9 + $0x268] sm:$0xff]  ;;  %v7250_v10 = vld [vmem:[#allocation9 + $0x260] sm:$0xff] }
 0x84d   :  { %v7257_v0 = vld [vmem:[#allocation9 + $0x1a8] sm:$0xff]  ;;  %v7258_v2 = vld [vmem:[#allocation9 + $0x1a0] sm:$0xff] }
 0x84e   :  { %v2871_v3 = vadd.f32 %v2863_v29, %v14754_v21  ;;  %v6358_v19 = vmul.f32 -1.442695, %v2870_v52  ;;  %v2873_v11 = vadd.f32 %v2865_v30, %v14728_v59  ;;  %v6360_v40 = vmul.f32 -1.442695, %v2872_v25  ;;  %v7251_v29 = vld [vmem:[#allocation9 + $0x238] sm:$0xff]  ;;  %v7252_v52 = vld [vmem:[#allocation9 + $0x230] sm:$0xff] }
 0x84f   :  { %v7259_v30 = vld [vmem:[#allocation9 + $0x178] sm:$0xff]  ;;  %v7260_v25 = vld [vmem:[#allocation9 + $0x170] sm:$0xff] }
 0x850   :  { %v6359_v34 = vmul.f32 -1.442695, %v2871_v3  ;;  %6567 = vpow2.f32 %v6358_v19  ;;  %v6361_v44 = vmul.f32 -1.442695, %v2873_v11  ;;  %v7253_v3 = vld [vmem:[#allocation9 + $0x208] sm:$0xff]  ;;  %v7254_v19 = vld [vmem:[#allocation9 + $0x200] sm:$0xff] }
 0x851   :  { %v7261_v11 = vld [vmem:[#allocation9 + $0x148] sm:$0xff] }
 0x852   :  { %6569 = vpow2.f32 %v6359_v34  ;;  %v7256_v34 = vld [vmem:[#allocation9 + $0x1d0] sm:$0xff] }
 0x853   :  { %6571 = vpow2.f32 %v6360_v40  ;;  %v7262_v40 = vld [vmem:[#allocation9 + $0x140] sm:$0xff] }
 0x854   :  { %6573 = vpow2.f32 %v6361_v44  ;;  %v7263_v44 = vld [vmem:[#allocation9 + $0x118] sm:$0xff] }
 0x85d   :  { %v6568_v1 = vpop.eup %6567 }
 0x85e   :  { %v2886_v36 = vadd.f32 1.0, %v6568_v1  ;;  %v7264_v1 = vld [vmem:[#allocation9 + $0x110] sm:$0xff] }
 0x85f   :  { %v6570_v56 = vpop.eup %6569 }
 0x860   :  { %v2887_v22 = vadd.f32 1.0, %v6570_v56  ;;  %6575 = vrcp.f32 %v2886_v36  ;;  %v6572_v9 = vpop.eup %6571  ;;  %v7265_v56 = vld [vmem:[#allocation9 + $0xe8] sm:$0xff]  ;;  %v7266_v36 = vld [vmem:[#allocation9 + $0xe0] sm:$0xff] }
 0x861   :  { %v6574_v46 = vpop.eup %6573  ;;  %v2888_v7 = vadd.f32 1.0, %v6572_v9  ;;  %v7268_v9 = vld [vmem:[#allocation9 + $0xb0] sm:$0xff] }
 0x862   :  { %6577 = vrcp.f32 %v2887_v22  ;;  %v2889_v58 = vadd.f32 1.0, %v6574_v46  ;;  %v7267_v22 = vld [vmem:[#allocation9 + $0xb8] sm:$0xff]  ;;  %v7269_v46 = vld [vmem:[#allocation9 + $0x88] sm:$0xff] }
 0x863   :  { %6579 = vrcp.f32 %v2888_v7  ;;  %v7271_v7 = vld [vmem:[#allocation9 + $0x58] sm:$0xff] }
 0x864   :  { %6581 = vrcp.f32 %v2889_v58  ;;  %v7274_v58 = vld [vmem:[#allocation9 + $0x20] sm:$0xff] }
 0x86d   :  { %v6576_v57 = vpop.eup %6575 }
 0x86f   :  { %v6578_v62 = vpop.eup %6577 }
 0x870   :  { %v6580_v17 = vpop.eup %6579 }
 0x871   :  { %v6582_v41 = vpop.eup %6581  ;;  %v2912_v12 = vsub.f32 1.0, %v6580_v17  ;;  %v2920_v60 = vmul.f32 %v6580_v17, %v2916_v38  ;;  %v7284_v17 = vld [vmem:[#allocation9 + $0x530] sm:$0xff] }
 0x872   :  { %v2913_v23 = vsub.f32 1.0, %v6582_v41  ;;  %v2921_v42 = vmul.f32 %v6582_v41, %v2917_v50  ;;  %v7285_v41 = vld [vmem:[#allocation9 + $0x508] sm:$0xff]  ;;  %v7288_v38 = vld [vmem:[#allocation9 + $0x4d0] sm:$0xff] }
 0x873   :  { %v7289_v50 = vld [vmem:[#allocation9 + $0x4a8] sm:$0xff] }
 0x889   :  { %v2853_v6 = vpop.f32.mrf.mxu0 }
 0x88a   :  { %v2898_v14 = vadd.f32 %v2853_v6, %v14729_v5  ;;  %v7270_v6 = vld [vmem:[#allocation9 + $0x80] sm:$0xff] }
 0x88b   :  { %v2855_v15 = vpop.f32.mrf.mxu0 }
 0x88c   :  { %v2902_v35 = vrot.slane %v2898_v14, 4  ;;  %v2899_v32 = vadd.f32 %v2855_v15, %v14756_v27  ;;  %v7272_v14 = vld [vmem:[#allocation9 + $0x50] sm:$0xff]  ;;  %v7273_v15 = vld [vmem:[#allocation9 + $0x28] sm:$0xff] }
 0x88e   :  { %v2906_v26 = vmul.f32 %v6576_v57, %v2902_v35  ;;  %v2903_v20 = vrot.slane %v2899_v32, 4  ;;  %v7275_v35 = vld [vmem:[#allocation9 + $0x5f8] sm:$0xff]  ;;  %v7276_v32 = vld [vmem:[#allocation9 + $0x5f0] sm:$0xff]  ;;  %v7277_v57 = vld [vmem:[#allocation9 + $0x5c8] sm:$0xff] }
 0x890   :  { %v2908_v16 = vadd.f32 %v2906_v26, %v14572_v4  ;;  %v2907_v37 = vmul.f32 %v6578_v62, %v2903_v20  ;;  %v7278_v26 = vld [vmem:[#allocation9 + $0x5c0] sm:$0xff]  ;;  %v7279_v20 = vld [vmem:[#allocation9 + $0x598] sm:$0xff]  ;;  %v7280_v62 = vld [vmem:[#allocation9 + $0x590] sm:$0xff] }
 0x892   :  { %6583 = vtanh.f32 %v2908_v16  ;;  %v2909_v45 = vadd.f32 %v2907_v37, %v14573_v43  ;;  %v7281_v16 = vld [vmem:[#allocation9 + $0x568] sm:$0xff]  ;;  %v7282_v37 = vld [vmem:[#allocation9 + $0x560] sm:$0xff] }
 0x894   :  { %6585 = vtanh.f32 %v2909_v45  ;;  %v7283_v45 = vld [vmem:[#allocation9 + $0x538] sm:$0xff] }
 0x89f   :  { %v6584_v39 = vpop.eup %6583 }
 0x8a0   :  { %v2914_v63 = vmul.f32 %v6584_v39, %v2912_v12  ;;  %v7286_v12 = vld [vmem:[#allocation9 + $0x500] sm:$0xff]  ;;  %v7287_v39 = vld [vmem:[#allocation9 + $0x4d8] sm:$0xff] }
 0x8a1   :  { %v6586_v55 = vpop.eup %6585 }
 0x8a2   :  { %v2915_v8 = vmul.f32 %v6586_v55, %v2913_v23  ;;  %v10474_v18 = vadd.f32 %v2920_v60, %v2914_v63  ;;  %v7290_v23 = vld [vmem:[#allocation9 + $0x4a0] sm:$0xff]  ;;  %v7291_v63 = vld [vmem:[#allocation9 + $0x478] sm:$0xff]  ;;  %v7292_v55 = vld [vmem:[#allocation9 + $0x470] sm:$0xff] }
 0x8a3   :  { %v7293_v60 = vld [vmem:[#allocation9 + $0x448] sm:$0xff] }
 0x8a4   :  { %v10476_v48 = vadd.f32 %v2921_v42, %v2915_v8  ;;  %v10480_v49 = vrot.slane %v10474_v18, 4  ;;  %v7294_v8 = vld [vmem:[#allocation9 + $0x440] sm:$0xff]  ;;  %v7295_v42 = vld [vmem:[#allocation9 + $0x418] sm:$0xff] }
 0x8a6   :  { %v2927_v51 = vrot.slane %v10476_v48, 4 }
 0x8a8   :  { %2994 = vmatprep.mubr.f32.mxu1 %v2927_v51  ;;  %3065 = vmatprep.mubr.f32.mxu0 %v2927_v51 }
 0x8a9   :  { %2995 = vmatmul.mubr.f32.vlgmr.msra.gmra.mxu1 %v10480_v49  ;;  %3066 = vmatmul.mubr.f32.vlgmr.msra.gmra.mxu0 %v10480_v49 }
 0x8aa   :  { %3073 = vmatpush1.msra.mxu1 %v7244_v13  ;;  %3136 = vmatprep.mubr.f32.mxu1 %v2927_v51  ;;  %v7296_v51 = vld [vmem:[#allocation9 + $0x410] sm:$0xff]  ;;  %v7297_v13 = vld [vmem:[#allocation9 + $0x3e8] sm:$0xff] }
 0x8ab   :  { %3074 = vmatprep.subr.mxu1 %v7245_v28  ;;  %v7298_v28 = vld [vmem:[#allocation9 + $0x3e0] sm:$0xff] }
 0x8ac   :  { %3075 = vmatpush1.msra.mxu1 %v7246_v31  ;;  %v7299_v31 = vld [vmem:[#allocation9 + $0x3b8] sm:$0xff] }
 0x8ad   :  { %3076 = vmatprep.subr.mxu1 %v7247_v24  ;;  %v7300_v24 = vld [vmem:[#allocation9 + $0x3b0] sm:$0xff] }
 0x8ae   :  { %3077 = vmatpush1.msra.mxu1 %v7248_v33  ;;  %v7301_v33 = vld [vmem:[#allocation9 + $0x388] sm:$0xff] }
 0x8af   :  { %3078 = vmatprep.subr.mxu1 %v7249_v61  ;;  %v7302_v61 = vld [vmem:[#allocation9 + $0x380] sm:$0xff] }
 0x8b0   :  { %3079 = vmatpush1.msra.mxu1 %v7250_v10  ;;  %v7303_v10 = vld [vmem:[#allocation9 + $0x358] sm:$0xff] }
 0x8b1   :  { %3080 = vmatprep.subr.mxu1 %v7251_v29  ;;  %v7304_v29 = vld [vmem:[#allocation9 + $0x350] sm:$0xff] }
 0x8b2   :  { %3081 = vmatpush1.msra.mxu1 %v7252_v52  ;;  %v7305_v52 = vld [vmem:[#allocation9 + $0x328] sm:$0xff] }
 0x8b3   :  { %3082 = vmatprep.subr.mxu1 %v7253_v3  ;;  %v7306_v3 = vld [vmem:[#allocation9 + $0x320] sm:$0xff] }
 0x8b4   :  { %3083 = vmatpush1.msra.mxu1 %v7254_v19  ;;  %v3240_v19 = vld [vmem:[#allocation12 + $0xf8] sm:$0xff] }
 0x8b5   :  { %3084 = vmatprep.subr.mxu1 %v7255_v54  ;;  %v3239_v54 = vld [vmem:[#allocation12 + $0xf0] sm:$0xff]  ;;  %3291 = vmatprep.subr.mxu0 %v3240_v19  ;;  %v3250_v19 = vld [vmem:[#allocation12 + $0x148] sm:$0xff] }
 0x8b6   :  { %3085 = vmatpush1.msra.mxu1 %v7256_v34  ;;  %v3238_v34 = vld [vmem:[#allocation12 + $0xe8] sm:$0xff]  ;;  %3292 = vmatpush1.msra.mxu0 %v3239_v54  ;;  %v3249_v54 = vld [vmem:[#allocation12 + $0x140] sm:$0xff] }
 0x8b7   :  { %3086 = vmatprep.subr.mxu1 %v7257_v0  ;;  %v3237_v0 = vld [vmem:[#allocation12 + $0xe0] sm:$0xff]  ;;  %3293 = vmatprep.subr.mxu0 %v3238_v34  ;;  %v3248_v34 = vld [vmem:[#allocation12 + $0x138] sm:$0xff] }
 0x8b8   :  { %3087 = vmatpush1.msra.mxu1 %v7258_v2  ;;  %v3236_v2 = vld [vmem:[#allocation12 + $0xd8] sm:$0xff]  ;;  %3294 = vmatpush1.msra.mxu0 %v3237_v0  ;;  %v3247_v0 = vld [vmem:[#allocation12 + $0x130] sm:$0xff] }
 0x8b9   :  { %3088 = vmatprep.subr.mxu1 %v7259_v30  ;;  %v3235_v30 = vld [vmem:[#allocation12 + $0xd0] sm:$0xff]  ;;  %3295 = vmatprep.subr.mxu0 %v3236_v2  ;;  %v3246_v2 = vld [vmem:[#allocation12 + $0x128] sm:$0xff] }
 0x8ba   :  { %3089 = vmatpush1.msra.mxu1 %v7260_v25  ;;  %v3234_v25 = vld [vmem:[#allocation12 + $0xc8] sm:$0xff]  ;;  %3296 = vmatpush1.msra.mxu0 %v3235_v30  ;;  %v3245_v30 = vld [vmem:[#allocation12 + $0x120] sm:$0xff] }
 0x8bb   :  { %3090 = vmatprep.subr.mxu1 %v7261_v11  ;;  %v3233_v11 = vld [vmem:[#allocation12 + $0xc0] sm:$0xff]  ;;  %3297 = vmatprep.subr.mxu0 %v3234_v25  ;;  %v3244_v25 = vld [vmem:[#allocation12 + $0x118] sm:$0xff] }
 0x8bc   :  { %3091 = vmatpush1.msra.mxu1 %v7262_v40  ;;  %v3232_v40 = vld [vmem:[#allocation12 + $0xb8] sm:$0xff]  ;;  %3298 = vmatpush1.msra.mxu0 %v3233_v11  ;;  %v3243_v11 = vld [vmem:[#allocation12 + $0x110] sm:$0xff] }
 0x8bd   :  { %3092 = vmatprep.subr.mxu1 %v7263_v44  ;;  %v3231_v44 = vld [vmem:[#allocation12 + $0xb0] sm:$0xff]  ;;  %3299 = vmatprep.subr.mxu0 %v3232_v40  ;;  %v3242_v40 = vld [vmem:[#allocation12 + $0x108] sm:$0xff] }
 0x8be   :  { %3093 = vmatpush1.msra.mxu1 %v7264_v1  ;;  %v3230_v1 = vld [vmem:[#allocation12 + $0xa8] sm:$0xff]  ;;  %3300 = vmatpush1.msra.mxu0 %v3231_v44  ;;  %v3241_v44 = vld [vmem:[#allocation12 + $0x100] sm:$0xff] }
 0x8bf   :  { %3094 = vmatprep.subr.mxu1 %v7265_v56  ;;  %v3228_v56 = vld [vmem:[#allocation12 + $0x98] sm:$0xff]  ;;  %3301 = vmatprep.subr.mxu0 %v3230_v1 }
 0x8c0   :  { %3095 = vmatpush1.msra.mxu1 %v7266_v36  ;;  %v3227_v36 = vld [vmem:[#allocation12 + $0x90] sm:$0xff]  ;;  %v10485_v1 = vld [vmem:[#allocation17 + $0x2d8] sm:$0xff] }
 0x8c1   :  { %3096 = vmatprep.subr.mxu1 %v7267_v22  ;;  %v3226_v22 = vld [vmem:[#allocation12 + $0x88] sm:$0xff] }
 0x8c2   :  { %3097 = vmatpush1.msra.mxu1 %v7268_v9  ;;  %v3225_v9 = vld [vmem:[#allocation12 + $0x80] sm:$0xff] }
 0x8c3   :  { %3098 = vmatprep.subr.mxu1 %v7269_v46  ;;  %v3224_v46 = vld [vmem:[#allocation12 + $0x78] sm:$0xff] }
 0x8c4   :  { %3099 = vmatpush1.msra.mxu1 %v7270_v6  ;;  %v3223_v6 = vld [vmem:[#allocation12 + $0x70] sm:$0xff] }
 0x8c5   :  { %3100 = vmatprep.subr.mxu1 %v7271_v7  ;;  %v3222_v7 = vld [vmem:[#allocation12 + $0x68] sm:$0xff] }
 0x8c6   :  { %3101 = vmatpush1.msra.mxu1 %v7272_v14  ;;  %v3221_v14 = vld [vmem:[#allocation12 + $0x60] sm:$0xff] }
 0x8c7   :  { %3102 = vmatprep.subr.mxu1 %v7273_v15  ;;  %v3220_v15 = vld [vmem:[#allocation12 + $0x58] sm:$0xff] }
 0x8c8   :  { %3103 = vmatpush1.msra.mxu1 %v7274_v58  ;;  %v3219_v58 = vld [vmem:[#allocation12 + $0x50] sm:$0xff] }
 0x8c9   :  { %3104 = vmatprep.subr.mxu1 %v7275_v35  ;;  %v3218_v35 = vld [vmem:[#allocation12 + $0x48] sm:$0xff] }
 0x8ca   :  { %3105 = vmatpush2.msra.mxu1 %v7276_v32  ;;  %v3217_v32 = vld [vmem:[#allocation12 + $0x40] sm:$0xff] }
 0x8cb   :  { %3106 = vmatprep.subr.mxu1 %v7277_v57  ;;  %v3216_v57 = vld [vmem:[#allocation12 + $0x38] sm:$0xff] }
 0x8cc   :  { %3107 = vmatpush2.msra.mxu1 %v7278_v26  ;;  %v3215_v26 = vld [vmem:[#allocation12 + $0x30] sm:$0xff] }
 0x8cd   :  { %3108 = vmatprep.subr.mxu1 %v7279_v20  ;;  %v3214_v20 = vld [vmem:[#allocation12 + $0x28] sm:$0xff] }
 0x8ce   :  { %3109 = vmatpush2.msra.mxu1 %v7280_v62  ;;  %v3213_v62 = vld [vmem:[#allocation12 + $0x20] sm:$0xff] }
 0x8cf   :  { %3110 = vmatprep.subr.mxu1 %v7281_v16  ;;  %v3212_v16 = vld [vmem:[#allocation12 + $0x18] sm:$0xff] }
 0x8d0   :  { %3111 = vmatpush2.msra.mxu1 %v7282_v37  ;;  %v3211_v37 = vld [vmem:[#allocation12 + $0x10] sm:$0xff] }
 0x8d1   :  { %3112 = vmatprep.subr.mxu1 %v7283_v45  ;;  %v3210_v45 = vld [vmem:[#allocation12 + $0x8] sm:$0xff] }
 0x8d2   :  { %3113 = vmatpush2.msra.mxu1 %v7284_v17  ;;  %v3209_v17 = vld [vmem:[#allocation12] sm:$0xff] }
 0x8d3   :  { %3114 = vmatprep.subr.mxu1 %v7285_v41  ;;  %v3272_v41 = vld [vmem:[#allocation12 + $0x1f8] sm:$0xff] }
 0x8d4   :  { %3115 = vmatpush2.msra.mxu1 %v7286_v12  ;;  %v3271_v12 = vld [vmem:[#allocation12 + $0x1f0] sm:$0xff] }
 0x8d5   :  { %3116 = vmatprep.subr.mxu1 %v7287_v39  ;;  %v3270_v39 = vld [vmem:[#allocation12 + $0x1e8] sm:$0xff] }
 0x8d6   :  { %3117 = vmatpush2.msra.mxu1 %v7288_v38  ;;  %v3269_v38 = vld [vmem:[#allocation12 + $0x1e0] sm:$0xff] }
 0x8d7   :  { %3118 = vmatprep.subr.mxu1 %v7289_v50  ;;  %v3268_v50 = vld [vmem:[#allocation12 + $0x1d8] sm:$0xff] }
 0x8d8   :  { %3119 = vmatpush2.msra.mxu1 %v7290_v23  ;;  %v3267_v23 = vld [vmem:[#allocation12 + $0x1d0] sm:$0xff] }
 0x8d9   :  { %3120 = vmatprep.subr.mxu1 %v7291_v63  ;;  %v3266_v63 = vld [vmem:[#allocation12 + $0x1c8] sm:$0xff] }
 0x8da   :  { %3121 = vmatpush2.msra.mxu1 %v7292_v55  ;;  %v3265_v55 = vld [vmem:[#allocation12 + $0x1c0] sm:$0xff] }
 0x8db   :  { %3122 = vmatprep.subr.mxu1 %v7293_v60  ;;  %v3264_v60 = vld [vmem:[#allocation12 + $0x1b8] sm:$0xff] }
 0x8dc   :  { %3123 = vmatpush2.msra.mxu1 %v7294_v8  ;;  %v3263_v8 = vld [vmem:[#allocation12 + $0x1b0] sm:$0xff] }
 0x8dd   :  { %3124 = vmatprep.subr.mxu1 %v7295_v42  ;;  %v3262_v42 = vld [vmem:[#allocation12 + $0x1a8] sm:$0xff] }
 0x8de   :  { %3125 = vmatpush2.msra.mxu1 %v7296_v51  ;;  %v3261_v51 = vld [vmem:[#allocation12 + $0x1a0] sm:$0xff] }
 0x8df   :  { %3126 = vmatprep.subr.mxu1 %v7297_v13  ;;  %v3260_v13 = vld [vmem:[#allocation12 + $0x198] sm:$0xff] }
 0x8e0   :  { %3127 = vmatpush2.msra.mxu1 %v7298_v28  ;;  %v3259_v28 = vld [vmem:[#allocation12 + $0x190] sm:$0xff] }
 0x8e1   :  { %3128 = vmatprep.subr.mxu1 %v7299_v31  ;;  %v3258_v31 = vld [vmem:[#allocation12 + $0x188] sm:$0xff] }
 0x8e2   :  { %3129 = vmatpush2.msra.mxu1 %v7300_v24  ;;  %v3257_v24 = vld [vmem:[#allocation12 + $0x180] sm:$0xff] }
 0x8e3   :  { %3130 = vmatprep.subr.mxu1 %v7301_v33  ;;  %v3256_v33 = vld [vmem:[#allocation12 + $0x178] sm:$0xff] }
 0x8e4   :  { %3131 = vmatpush2.msra.mxu1 %v7302_v61  ;;  %v3255_v61 = vld [vmem:[#allocation12 + $0x170] sm:$0xff] }
 0x8e5   :  { %3132 = vmatprep.subr.mxu1 %v7303_v10  ;;  %v3254_v10 = vld [vmem:[#allocation12 + $0x168] sm:$0xff] }
 0x8e6   :  { %3133 = vmatpush2.msra.mxu1 %v7304_v29  ;;  %v3253_v29 = vld [vmem:[#allocation12 + $0x160] sm:$0xff] }
 0x8e7   :  { %3134 = vmatprep.subr.mxu1 %v7305_v52  ;;  %v3252_v52 = vld [vmem:[#allocation12 + $0x158] sm:$0xff] }
 0x8e8   :  { %3135 = vmatpush2.msra.mxu1 %v7306_v3  ;;  %v3251_v3 = vld [vmem:[#allocation12 + $0x150] sm:$0xff] }
 0x8e9   :  { %3137 = vmatmul.mubr.f32.vlgmr.msra.gmra.mxu1 %v10480_v49  ;;  %v3229_v49 = vld [vmem:[#allocation12 + $0xa0] sm:$0xff]  ;;  %3556 = vmatprep.subr.mxu1 %v10485_v1 }
 0x8ea   :  { %3302 = vmatpush1.msra.mxu0 %v3229_v49  ;;  %v10487_v49 = vld [vmem:[#allocation17 + $0x2d0] sm:$0xff] }
 0x8eb   :  { %3303 = vmatprep.subr.mxu0 %v3228_v56  ;;  %v3457_v56 = vld [vmem:[#allocation17 + $0x2e8] sm:$0xff]  ;;  %3557 = vmatpush1.msra.mxu1 %v10487_v49 }
 0x8ec   :  { %3304 = vmatpush1.msra.mxu0 %v3227_v36  ;;  %v10490_v36 = vld [vmem:[#allocation17 + $0x2a8] sm:$0xff] }
 0x8ed   :  { %3305 = vmatprep.subr.mxu0 %v3226_v22  ;;  %v10492_v22 = vld [vmem:[#allocation17 + $0x2a0] sm:$0xff]  ;;  %3558 = vmatprep.subr.mxu1 %v10490_v36 }
 0x8ee   :  { %3306 = vmatpush1.msra.mxu0 %v3225_v9  ;;  %v10495_v9 = vld [vmem:[#allocation17 + $0x278] sm:$0xff]  ;;  %3559 = vmatpush1.msra.mxu1 %v10492_v22 }
 0x8ef   :  { %3307 = vmatprep.subr.mxu0 %v3224_v46  ;;  %v10498_v46 = vld [vmem:[#allocation17 + $0x270] sm:$0xff]  ;;  %3560 = vmatprep.subr.mxu1 %v10495_v9 }
 0x8f0   :  { %3308 = vmatpush1.msra.mxu0 %v3223_v6  ;;  %v10501_v6 = vld [vmem:[#allocation17 + $0x248] sm:$0xff]  ;;  %3561 = vmatpush1.msra.mxu1 %v10498_v46 }
 0x8f1   :  { %3309 = vmatprep.subr.mxu0 %v3222_v7  ;;  %v10504_v7 = vld [vmem:[#allocation17 + $0x240] sm:$0xff]  ;;  %3562 = vmatprep.subr.mxu1 %v10501_v6 }
 0x8f2   :  { %3310 = vmatpush1.msra.mxu0 %v3221_v14  ;;  %v10507_v14 = vld [vmem:[#allocation17 + $0x218] sm:$0xff]  ;;  %3563 = vmatpush1.msra.mxu1 %v10504_v7 }
 0x8f3   :  { %3311 = vmatprep.subr.mxu0 %v3220_v15  ;;  %v10510_v15 = vld [vmem:[#allocation17 + $0x210] sm:$0xff]  ;;  %3564 = vmatprep.subr.mxu1 %v10507_v14 }
 0x8f4   :  { %3312 = vmatpush1.msra.mxu0 %v3219_v58  ;;  %v10513_v58 = vld [vmem:[#allocation17 + $0x1e8] sm:$0xff]  ;;  %3565 = vmatpush1.msra.mxu1 %v10510_v15 }
 0x8f5   :  { %3313 = vmatprep.subr.mxu0 %v3218_v35  ;;  %v10516_v35 = vld [vmem:[#allocation17 + $0x1e0] sm:$0xff]  ;;  %3566 = vmatprep.subr.mxu1 %v10513_v58 }
 0x8f6   :  { %3314 = vmatpush1.msra.mxu0 %v3217_v32  ;;  %v10519_v32 = vld [vmem:[#allocation17 + $0x1b8] sm:$0xff]  ;;  %3567 = vmatpush1.msra.mxu1 %v10516_v35 }
 0x8f7   :  { %3315 = vmatprep.subr.mxu0 %v3216_v57  ;;  %v10522_v57 = vld [vmem:[#allocation17 + $0x1b0] sm:$0xff]  ;;  %3568 = vmatprep.subr.mxu1 %v10519_v32 }
 0x8f8   :  { %3316 = vmatpush1.msra.mxu0 %v3215_v26  ;;  %v10525_v26 = vld [vmem:[#allocation17 + $0x188] sm:$0xff]  ;;  %3569 = vmatpush1.msra.mxu1 %v10522_v57 }
 0x8f9   :  { %3317 = vmatprep.subr.mxu0 %v3214_v20  ;;  %v10528_v20 = vld [vmem:[#allocation17 + $0x180] sm:$0xff]  ;;  %3570 = vmatprep.subr.mxu1 %v10525_v26 }
 0x8fa   :  { %3318 = vmatpush1.msra.mxu0 %v3213_v62  ;;  %v10531_v62 = vld [vmem:[#allocation17 + $0x158] sm:$0xff]  ;;  %3571 = vmatpush1.msra.mxu1 %v10528_v20 }
 0x8fb   :  { %3319 = vmatprep.subr.mxu0 %v3212_v16  ;;  %v10534_v16 = vld [vmem:[#allocation17 + $0x150] sm:$0xff]  ;;  %3572 = vmatprep.subr.mxu1 %v10531_v62 }
 0x8fc   :  { %3320 = vmatpush1.msra.mxu0 %v3211_v37  ;;  %v10537_v37 = vld [vmem:[#allocation17 + $0x128] sm:$0xff]  ;;  %3573 = vmatpush1.msra.mxu1 %v10534_v16 }
 0x8fd   :  { %3321 = vmatprep.subr.mxu0 %v3210_v45  ;;  %v10540_v45 = vld [vmem:[#allocation17 + $0x120] sm:$0xff]  ;;  %3574 = vmatprep.subr.mxu1 %v10537_v37 }
 0x8fe   :  { %3322 = vmatpush1.msra.mxu0 %v3209_v17  ;;  %v10543_v17 = vld [vmem:[#allocation17 + $0xf8] sm:$0xff]  ;;  %3575 = vmatpush1.msra.mxu1 %v10540_v45 }
 0x8ff   :  { %3323 = vmatprep.subr.mxu0 %v3272_v41  ;;  %v10546_v41 = vld [vmem:[#allocation17 + $0xf0] sm:$0xff]  ;;  %3576 = vmatprep.subr.mxu1 %v10543_v17 }
 0x900   :  { %3324 = vmatpush2.msra.mxu0 %v3271_v12  ;;  %v10549_v12 = vld [vmem:[#allocation17 + $0xc8] sm:$0xff]  ;;  %3577 = vmatpush1.msra.mxu1 %v10546_v41 }
 0x901   :  { %3325 = vmatprep.subr.mxu0 %v3270_v39  ;;  %v10552_v39 = vld [vmem:[#allocation17 + $0xc0] sm:$0xff]  ;;  %3578 = vmatprep.subr.mxu1 %v10549_v12 }
 0x902   :  { %3326 = vmatpush2.msra.mxu0 %v3269_v38  ;;  %v10555_v38 = vld [vmem:[#allocation17 + $0x98] sm:$0xff]  ;;  %3579 = vmatpush1.msra.mxu1 %v10552_v39 }
 0x903   :  { %3327 = vmatprep.subr.mxu0 %v3268_v50  ;;  %v10558_v50 = vld [vmem:[#allocation17 + $0x90] sm:$0xff]  ;;  %3580 = vmatprep.subr.mxu1 %v10555_v38 }
 0x904   :  { %3328 = vmatpush2.msra.mxu0 %v3267_v23  ;;  %v10561_v23 = vld [vmem:[#allocation17 + $0x68] sm:$0xff]  ;;  %3581 = vmatpush1.msra.mxu1 %v10558_v50 }
 0x905   :  { %3329 = vmatprep.subr.mxu0 %v3266_v63  ;;  %v10564_v63 = vld [vmem:[#allocation17 + $0x60] sm:$0xff]  ;;  %3582 = vmatprep.subr.mxu1 %v10561_v23 }
 0x906   :  { %3330 = vmatpush2.msra.mxu0 %v3265_v55  ;;  %v10567_v55 = vld [vmem:[#allocation17 + $0x38] sm:$0xff]  ;;  %3583 = vmatpush1.msra.mxu1 %v10564_v63 }
 0x907   :  { %3331 = vmatprep.subr.mxu0 %v3264_v60  ;;  %v10570_v60 = vld [vmem:[#allocation17 + $0x30] sm:$0xff]  ;;  %3584 = vmatprep.subr.mxu1 %v10567_v55 }
 0x908   :  { %3332 = vmatpush2.msra.mxu0 %v3263_v8  ;;  %v10573_v8 = vld [vmem:[#allocation17 + $0x8] sm:$0xff]  ;;  %3585 = vmatpush1.msra.mxu1 %v10570_v60 }
 0x909   :  { %3333 = vmatprep.subr.mxu0 %v3262_v42  ;;  %v10576_v42 = vld [vmem:[#allocation17] sm:$0xff]  ;;  %3586 = vmatprep.subr.mxu1 %v10573_v8 }
 0x90a   :  { %3334 = vmatpush2.msra.mxu0 %v3261_v51  ;;  %v10579_v51 = vld [vmem:[#allocation17 + $0x5d8] sm:$0xff]  ;;  %3587 = vmatpush1.msra.mxu1 %v10576_v42 }
 0x90b   :  { %3335 = vmatprep.subr.mxu0 %v3260_v13  ;;  %v10582_v13 = vld [vmem:[#allocation17 + $0x5d0] sm:$0xff]  ;;  %3588 = vmatprep.subr.mxu1 %v10579_v51 }
 0x90c   :  { %3336 = vmatpush2.msra.mxu0 %v3259_v28  ;;  %v10585_v28 = vld [vmem:[#allocation17 + $0x5a8] sm:$0xff]  ;;  %3589 = vmatpush2.msra.mxu1 %v10582_v13 }
 0x90d   :  { %3337 = vmatprep.subr.mxu0 %v3258_v31  ;;  %v10588_v31 = vld [vmem:[#allocation17 + $0x5a0] sm:$0xff]  ;;  %3590 = vmatprep.subr.mxu1 %v10585_v28 }
 0x90e   :  { %3338 = vmatpush2.msra.mxu0 %v3257_v24  ;;  %v10591_v24 = vld [vmem:[#allocation17 + $0x578] sm:$0xff]  ;;  %3591 = vmatpush2.msra.mxu1 %v10588_v31 }
 0x90f   :  { %3339 = vmatprep.subr.mxu0 %v3256_v33  ;;  %v10594_v33 = vld [vmem:[#allocation17 + $0x570] sm:$0xff]  ;;  %3592 = vmatprep.subr.mxu1 %v10591_v24 }
 0x910   :  { %3340 = vmatpush2.msra.mxu0 %v3255_v61  ;;  %v10597_v61 = vld [vmem:[#allocation17 + $0x548] sm:$0xff]  ;;  %3593 = vmatpush2.msra.mxu1 %v10594_v33 }
 0x911   :  { %3341 = vmatprep.subr.mxu0 %v3254_v10  ;;  %14757 = vst [vmem:[#allocation38_spill] sm:$0xff] %v10597_v61  ;;  %v10600_v10 = vld [vmem:[#allocation17 + $0x540] sm:$0xff]  ;;  %3594 = vmatprep.subr.mxu1 %v10597_v61 }
 0x912   :  { %3342 = vmatpush2.msra.mxu0 %v3253_v29  ;;  %14758 = vst [vmem:[#allocation33_spill] sm:$0xff] %v10600_v10  ;;  %v10603_v29 = vld [vmem:[#allocation17 + $0x518] sm:$0xff]  ;;  %3595 = vmatpush2.msra.mxu1 %v10600_v10 }
 0x913   :  { %3343 = vmatprep.subr.mxu0 %v3252_v52  ;;  %14759 = vst [vmem:[#allocation81_spill] sm:$0xff] %v10603_v29  ;;  %v10606_v52 = vld [vmem:[#allocation17 + $0x510] sm:$0xff]  ;;  %3596 = vmatprep.subr.mxu1 %v10603_v29 }
 0x914   :  { %3344 = vmatpush2.msra.mxu0 %v3251_v3  ;;  %14760 = vst [vmem:[#allocation54_spill] sm:$0xff] %v10606_v52  ;;  %v10609_v3 = vld [vmem:[#allocation17 + $0x4e8] sm:$0xff]  ;;  %3597 = vmatpush2.msra.mxu1 %v10606_v52 }
 0x915   :  { %3345 = vmatprep.subr.mxu0 %v3250_v19  ;;  %14761 = vst [vmem:[#allocation49_spill] sm:$0xff] %v10609_v3  ;;  %v10612_v19 = vld [vmem:[#allocation17 + $0x4e0] sm:$0xff]  ;;  %3598 = vmatprep.subr.mxu1 %v10609_v3 }
 0x916   :  { %3346 = vmatpush2.msra.mxu0 %v3249_v54  ;;  %14762 = vst [vmem:[#allocation160_spill] sm:$0xff] %v10612_v19  ;;  %v10615_v54 = vld [vmem:[#allocation17 + $0x4b8] sm:$0xff]  ;;  %3599 = vmatpush2.msra.mxu1 %v10612_v19 }
 0x917   :  { %3347 = vmatprep.subr.mxu0 %v3248_v34  ;;  %14763 = vst [vmem:[#allocation161_spill] sm:$0xff] %v10615_v54  ;;  %3600 = vmatprep.subr.mxu1 %v10615_v54 }
 0x918   :  { %3348 = vmatpush2.msra.mxu0 %v3247_v0 }
 0x919   :  { %3349 = vmatprep.subr.mxu0 %v3246_v2 }
 0x91a   :  { %3350 = vmatpush2.msra.mxu0 %v3245_v30 }
 0x91b   :  { %3351 = vmatprep.subr.mxu0 %v3244_v25 }
 0x91c   :  { %3352 = vmatpush2.msra.mxu0 %v3243_v11 }
 0x91d   :  { %3353 = vmatprep.subr.mxu0 %v3242_v40 }
 0x91e   :  { %3354 = vmatpush2.msra.mxu0 %v3241_v44 }
 0x91f   :  { %3627 = vmatprep.subr.mxu0 %v3457_v56 }
 0x969   :  { %v2996_v34 = vpop.f32.mrf.mxu1  ;;  %v3067_v44 = vpop.f32.mrf.mxu0 }
 0x96a   :  { %v3147_v2 = vrot.slane %v2996_v34, 2  ;;  %v3149_v29 = vrot.slane %v3067_v44, 2 }
 0x96b   :  { %v2998_v0 = vpop.f32.mrf.mxu1  ;;  %v3069_v52 = vpop.f32.mrf.mxu0 }
 0x96c   :  { %v3148_v30 = vrot.slane %v2998_v0, 2  ;;  %v3155_v25 = vadd.f32 %v3147_v2, %v14725_v47  ;;  %v3150_v3 = vrot.slane %v3069_v52, 2  ;;  %v3157_v19 = vadd.f32 %v3149_v29, %v14755_v53 }
 0x96e   :  { %v3156_v11 = vadd.f32 %v3148_v30, %v14754_v21  ;;  %v6362_v40 = vmul.f32 -1.442695, %v3155_v25  ;;  %v3158_v54 = vadd.f32 %v3150_v3, %v14728_v59  ;;  %v6364_v10 = vmul.f32 -1.442695, %v3157_v19 }
 0x970   :  { %v6363_v56 = vmul.f32 -1.442695, %v3156_v11  ;;  %6587 = vpow2.f32 %v6362_v40  ;;  %v6365_v61 = vmul.f32 -1.442695, %v3158_v54 }
 0x972   :  { %6589 = vpow2.f32 %v6363_v56 }
 0x973   :  { %6591 = vpow2.f32 %v6364_v10 }
 0x974   :  { %6593 = vpow2.f32 %v6365_v61 }
 0x97d   :  { %v6588_v34 = vpop.eup %6587 }
 0x97e   :  { %v3171_v47 = vadd.f32 1.0, %v6588_v34 }
 0x97f   :  { %v6590_v0 = vpop.eup %6589 }
 0x980   :  { %v3172_v21 = vadd.f32 1.0, %v6590_v0  ;;  %6595 = vrcp.f32 %v3171_v47  ;;  %v6592_v2 = vpop.eup %6591 }
 0x981   :  { %v6594_v30 = vpop.eup %6593  ;;  %v3173_v11 = vadd.f32 1.0, %v6592_v2 }
 0x982   :  { %6597 = vrcp.f32 %v3172_v21  ;;  %v3174_v53 = vadd.f32 1.0, %v6594_v30  ;;  %v3201_v21 = vrot.slane %v10474_v18, 6  ;;  %v10637_v18 = vld [vmem:[#allocation17 + $0x288] sm:$0xff] }
 0x983   :  { %6599 = vrcp.f32 %v3173_v11  ;;  %14767 = vst [vmem:[#allocation165_spill] sm:$0xff] %v10637_v18 }
 0x984   :  { %6601 = vrcp.f32 %v3174_v53 }
 0x98d   :  { %v6596_v3 = vpop.eup %6595 }
 0x98f   :  { %v6598_v54 = vpop.eup %6597 }
 0x990   :  { %v6600_v34 = vpop.eup %6599 }
 0x991   :  { %v3197_v0 = vsub.f32 1.0, %v6600_v34  ;;  %v3205_v11 = vmul.f32 %v6600_v34, %v3201_v21  ;;  %v10658_v34 = vld [vmem:[#allocation17 + $0x1f0] sm:$0xff] }
 0x992   :  { %14774 = vst [vmem:[#allocation89_spill] sm:$0xff] %v10658_v34  ;;  %v10670_v21 = vld [vmem:[#allocation17 + $0x190] sm:$0xff] }
 0x993   :  { %14778 = vst [vmem:[#allocation93_spill] sm:$0xff] %v10670_v21 }
 0x9a9   :  { %v3138_v25 = vpop.f32.mrf.mxu1 }
 0x9aa   :  { %v3183_v52 = vadd.f32 %v3138_v25, %v14729_v5  ;;  %v6602_v5 = vpop.eup %6601 }
 0x9ab   :  { %v3140_v40 = vpop.f32.mrf.mxu1  ;;  %v3198_v2 = vsub.f32 1.0, %v6602_v5 }
 0x9ac   :  { %v3187_v29 = vrot.slane %v3183_v52, 2  ;;  %v3184_v59 = vadd.f32 %v3140_v40, %v14756_v27  ;;  %v3202_v27 = vrot.slane %v10476_v48, 6  ;;  %v10640_v48 = vld [vmem:[#allocation17 + $0x280] sm:$0xff] }
 0x9ad   :  { %14768 = vst [vmem:[#allocation83_spill] sm:$0xff] %v10640_v48 }
 0x9ae   :  { %v3191_v10 = vmul.f32 %v6596_v3, %v3187_v29  ;;  %v3188_v19 = vrot.slane %v3184_v59, 2  ;;  %v3206_v40 = vmul.f32 %v6602_v5, %v3202_v27  ;;  %v10632_v3 = vld [vmem:[#allocation17 + $0x2b8] sm:$0xff]  ;;  %v10661_v5 = vld [vmem:[#allocation17 + $0x1c8] sm:$0xff] }
 0x9af   :  { %14765 = vst [vmem:[#allocation163_spill] sm:$0xff] %v10632_v3  ;;  %14775 = vst [vmem:[#allocation169_spill] sm:$0xff] %v10661_v5  ;;  %v10673_v27 = vld [vmem:[#allocation17 + $0x168] sm:$0xff] }
 0x9b0   :  { %v3193_v61 = vadd.f32 %v3191_v10, %v14572_v4  ;;  %v3192_v44 = vmul.f32 %v6598_v54, %v3188_v19  ;;  %v10634_v10 = vld [vmem:[#allocation17 + $0x2b0] sm:$0xff]  ;;  %v10643_v19 = vld [vmem:[#allocation17 + $0x258] sm:$0xff]  ;;  %14779 = vst [vmem:[#allocation171_spill] sm:$0xff] %v10673_v27 }
 0x9b1   :  { %14766 = vst [vmem:[#allocation164_spill] sm:$0xff] %v10634_v10  ;;  %14769 = vst [vmem:[#allocation166_spill] sm:$0xff] %v10643_v19  ;;  %v10646_v54 = vld [vmem:[#allocation17 + $0x250] sm:$0xff] }
 0x9b2   :  { %6603 = vtanh.f32 %v3193_v61  ;;  %v3194_v56 = vadd.f32 %v3192_v44, %v14573_v43  ;;  %v10630_v43 = vld [vmem:[#allocation17 + $0x2e0] sm:$0xff]  ;;  %14770 = vst [vmem:[#allocation85_spill] sm:$0xff] %v10646_v54  ;;  %v10649_v61 = vld [vmem:[#allocation17 + $0x228] sm:$0xff] }
 0x9b3   :  { %14764 = vst [vmem:[#allocation162_spill] sm:$0xff] %v10630_v43  ;;  %14771 = vst [vmem:[#allocation167_spill] sm:$0xff] %v10649_v61  ;;  %v10652_v44 = vld [vmem:[#allocation17 + $0x220] sm:$0xff] }
 0x9b4   :  { %6605 = vtanh.f32 %v3194_v56  ;;  %14772 = vst [vmem:[#allocation87_spill] sm:$0xff] %v10652_v44  ;;  %v10655_v56 = vld [vmem:[#allocation17 + $0x1f8] sm:$0xff] }
 0x9b5   :  { %14773 = vst [vmem:[#allocation168_spill] sm:$0xff] %v10655_v56 }
 0x9bf   :  { %v6604_v47 = vpop.eup %6603 }
 0x9c0   :  { %v3199_v30 = vmul.f32 %v6604_v47, %v3197_v0  ;;  %v10664_v0 = vld [vmem:[#allocation17 + $0x1c0] sm:$0xff]  ;;  %v10667_v47 = vld [vmem:[#allocation17 + $0x198] sm:$0xff] }
 0x9c1   :  { %v6606_v25 = vpop.eup %6605  ;;  %14776 = vst [vmem:[#allocation91_spill] sm:$0xff] %v10664_v0  ;;  %14777 = vst [vmem:[#allocation170_spill] sm:$0xff] %v10667_v47 }
 0x9c2   :  { %v3200_v52 = vmul.f32 %v6606_v25, %v3198_v2  ;;  %v3207_v4 = vadd.f32 %v3205_v11, %v3199_v30  ;;  %v10676_v2 = vld [vmem:[#allocation17 + $0x160] sm:$0xff]  ;;  %v10679_v30 = vld [vmem:[#allocation17 + $0x138] sm:$0xff]  ;;  %v10682_v25 = vld [vmem:[#allocation17 + $0x130] sm:$0xff] }
 0x9c3   :  { %14780 = vst [vmem:[#allocation95_spill] sm:$0xff] %v10676_v2  ;;  %14781 = vst [vmem:[#allocation172_spill] sm:$0xff] %v10679_v30  ;;  %v10685_v11 = vld [vmem:[#allocation17 + $0x108] sm:$0xff] }
 0x9c4   :  { %v3208_v53 = vadd.f32 %v3206_v40, %v3200_v52  ;;  %v3287_v59 = vrot.slane %v3207_v4, 6  ;;  %14782 = vst [vmem:[#allocation97_spill] sm:$0xff] %v10682_v25  ;;  %14783 = vst [vmem:[#allocation173_spill] sm:$0xff] %v10685_v11  ;;  %v10688_v52 = vld [vmem:[#allocation17 + $0x100] sm:$0xff]  ;;  %v10691_v40 = vld [vmem:[#allocation17 + $0xd8] sm:$0xff] }
 0x9c5   :  { %14784 = vst [vmem:[#allocation99_spill] sm:$0xff] %v10688_v52  ;;  %14785 = vst [vmem:[#allocation174_spill] sm:$0xff] %v10691_v40  ;;  %v10694_v4 = vld [vmem:[#allocation17 + $0xd0] sm:$0xff] }
 0x9c6   :  { %v3288_v29 = vrot.slane %v3208_v53, 6  ;;  %14786 = vst [vmem:[#allocation101_spill] sm:$0xff] %v10694_v4  ;;  %v10697_v53 = vld [vmem:[#allocation17 + $0xa8] sm:$0xff] }
 0x9c7   :  { %14787 = vst [vmem:[#allocation175_spill] sm:$0xff] %v10697_v53 }
 0x9c8   :  { %3355 = vmatprep.mubr.f32.mxu0 %v3288_v29  ;;  %v10700_v29 = vld [vmem:[#allocation17 + $0xa0] sm:$0xff] }
 0x9c9   :  { %3356 = vmatmul.mubr.f32.vlgmr.msra.gmra.mxu0 %v3287_v59  ;;  %14788 = vst [vmem:[#allocation103_spill] sm:$0xff] %v10700_v29  ;;  %v10703_v59 = vld [vmem:[#allocation17 + $0x78] sm:$0xff] }
 0x9ca   :  { %3628 = vmatpush1.msra.mxu0 %v10630_v43  ;;  %14789 = vst [vmem:[#allocation176_spill] sm:$0xff] %v10703_v59 }
 0x9cb   :  { %3629 = vmatprep.subr.mxu0 %v10632_v3  ;;  %v10865_v3 = vld [vmem:[#allocation17 + $0x318] sm:$0xff] }
 0x9cc   :  { %3630 = vmatpush1.msra.mxu0 %v10634_v10  ;;  %v10859_v10 = vld [vmem:[#allocation17 + $0x340] sm:$0xff]  ;;  %14831 = vst [vmem:[#allocation128_spill] sm:$0xff] %v10865_v3 }
 0x9cd   :  { %3631 = vmatprep.subr.mxu0 %v10637_v18  ;;  %v10853_v18 = vld [vmem:[#allocation17 + $0x348] sm:$0xff]  ;;  %14829 = vst [vmem:[#allocation126_spill] sm:$0xff] %v10859_v10 }
 0x9ce   :  { %3632 = vmatpush1.msra.mxu0 %v10640_v48  ;;  %v10847_v48 = vld [vmem:[#allocation17 + $0x370] sm:$0xff]  ;;  %14827 = vst [vmem:[#allocation122_spill] sm:$0xff] %v10853_v18 }
 0x9cf   :  { %3633 = vmatprep.subr.mxu0 %v10643_v19  ;;  %v10841_v19 = vld [vmem:[#allocation17 + $0x378] sm:$0xff]  ;;  %14825 = vst [vmem:[#allocation119_spill] sm:$0xff] %v10847_v48 }
 0x9d0   :  { %3634 = vmatpush1.msra.mxu0 %v10646_v54  ;;  %v10839_v54 = vld [vmem:[#allocation17 + $0x360] sm:$0xff]  ;;  %14823 = vst [vmem:[#allocation116_spill] sm:$0xff] %v10841_v19 }
 0x9d1   :  { %3635 = vmatprep.subr.mxu0 %v10649_v61  ;;  %v10833_v61 = vld [vmem:[#allocation17 + $0x368] sm:$0xff]  ;;  %14822 = vst [vmem:[#allocation114_spill] sm:$0xff] %v10839_v54 }
 0x9d2   :  { %3636 = vmatpush1.msra.mxu0 %v10652_v44  ;;  %v10829_v44 = vld [vmem:[#allocation17 + $0x3a8] sm:$0xff]  ;;  %14820 = vst [vmem:[#allocation110_spill] sm:$0xff] %v10833_v61 }
 0x9d3   :  { %3637 = vmatprep.subr.mxu0 %v10655_v56  ;;  %v10823_v56 = vld [vmem:[#allocation17 + $0x3d0] sm:$0xff]  ;;  %14819 = vst [vmem:[#allocation108_spill] sm:$0xff] %v10829_v44 }
 0x9d4   :  { %3638 = vmatpush1.msra.mxu0 %v10658_v34  ;;  %v10821_v34 = vld [vmem:[#allocation17 + $0x398] sm:$0xff]  ;;  %14818 = vst [vmem:[#allocation106_spill] sm:$0xff] %v10823_v56 }
 0x9d5   :  { %3639 = vmatprep.subr.mxu0 %v10661_v5  ;;  %v10815_v5 = vld [vmem:[#allocation17 + $0x3c0] sm:$0xff] }
 0x9d6   :  { %3640 = vmatpush1.msra.mxu0 %v10664_v0  ;;  %v10813_v0 = vld [vmem:[#allocation17 + $0x400] sm:$0xff] }
 0x9d7   :  { %3641 = vmatprep.subr.mxu0 %v10667_v47  ;;  %v10807_v47 = vld [vmem:[#allocation17 + $0x408] sm:$0xff]  ;;  %14816 = vst [vmem:[#allocation102_spill] sm:$0xff] %v10813_v0 }
 0x9d8   :  { %3642 = vmatpush1.msra.mxu0 %v10670_v21  ;;  %v10803_v21 = vld [vmem:[#allocation17 + $0x430] sm:$0xff]  ;;  %14815 = vst [vmem:[#allocation100_spill] sm:$0xff] %v10807_v47 }
 0x9d9   :  { %3643 = vmatprep.subr.mxu0 %v10673_v27  ;;  %v10797_v27 = vld [vmem:[#allocation17 + $0x438] sm:$0xff]  ;;  %14814 = vst [vmem:[#allocation98_spill] sm:$0xff] %v10803_v21 }
 0x9da   :  { %3644 = vmatpush1.msra.mxu0 %v10676_v2  ;;  %v10791_v2 = vld [vmem:[#allocation17 + $0x460] sm:$0xff]  ;;  %14813 = vst [vmem:[#allocation96_spill] sm:$0xff] %v10797_v27 }
 0x9db   :  { %3645 = vmatprep.subr.mxu0 %v10679_v30  ;;  %v10785_v30 = vld [vmem:[#allocation17 + $0x468] sm:$0xff]  ;;  %14812 = vst [vmem:[#allocation94_spill] sm:$0xff] %v10791_v2 }
 0x9dc   :  { %3646 = vmatpush1.msra.mxu0 %v10682_v25  ;;  %v10706_v25 = vld [vmem:[#allocation17 + $0x70] sm:$0xff]  ;;  %14811 = vst [vmem:[#allocation92_spill] sm:$0xff] %v10785_v30 }
 0x9dd   :  { %3647 = vmatprep.subr.mxu0 %v10685_v11  ;;  %14790 = vst [vmem:[#allocation105_spill] sm:$0xff] %v10706_v25  ;;  %v10709_v11 = vld [vmem:[#allocation17 + $0x48] sm:$0xff] }
 0x9de   :  { %3648 = vmatpush1.msra.mxu0 %v10688_v52  ;;  %14791 = vst [vmem:[#allocation177_spill] sm:$0xff] %v10709_v11  ;;  %v10712_v52 = vld [vmem:[#allocation17 + $0x40] sm:$0xff] }
 0x9df   :  { %3649 = vmatprep.subr.mxu0 %v10691_v40  ;;  %14792 = vst [vmem:[#allocation107_spill] sm:$0xff] %v10712_v52  ;;  %v10715_v40 = vld [vmem:[#allocation17 + $0x18] sm:$0xff] }
 0x9e0   :  { %3650 = vmatpush1.msra.mxu0 %v10694_v4  ;;  %14793 = vst [vmem:[#allocation178_spill] sm:$0xff] %v10715_v40  ;;  %v10718_v4 = vld [vmem:[#allocation17 + $0x10] sm:$0xff] }
 0x9e1   :  { %3651 = vmatprep.subr.mxu0 %v10697_v53  ;;  %14794 = vst [vmem:[#allocation109_spill] sm:$0xff] %v10718_v4  ;;  %v10721_v53 = vld [vmem:[#allocation17 + $0x5e8] sm:$0xff] }
 0x9e2   :  { %3652 = vmatpush1.msra.mxu0 %v10700_v29  ;;  %14795 = vst [vmem:[#allocation111_spill] sm:$0xff] %v10721_v53  ;;  %v10724_v29 = vld [vmem:[#allocation17 + $0x5e0] sm:$0xff] }
 0x9e3   :  { %3653 = vmatprep.subr.mxu0 %v10703_v59  ;;  %14796 = vst [vmem:[#allocation113_spill] sm:$0xff] %v10724_v29  ;;  %v10727_v59 = vld [vmem:[#allocation17 + $0x5b8] sm:$0xff] }
 0x9e4   :  { %3654 = vmatpush1.msra.mxu0 %v10706_v25  ;;  %14797 = vst [vmem:[#allocation115_spill] sm:$0xff] %v10727_v59  ;;  %v10730_v25 = vld [vmem:[#allocation17 + $0x5b0] sm:$0xff] }
 0x9e5   :  { %3655 = vmatprep.subr.mxu0 %v10709_v11  ;;  %14798 = vst [vmem:[#allocation118_spill] sm:$0xff] %v10730_v25  ;;  %v10733_v11 = vld [vmem:[#allocation17 + $0x588] sm:$0xff] }
 0x9e6   :  { %3656 = vmatpush1.msra.mxu0 %v10712_v52  ;;  %14799 = vst [vmem:[#allocation120_spill] sm:$0xff] %v10733_v11  ;;  %v10736_v52 = vld [vmem:[#allocation17 + $0x580] sm:$0xff] }
 0x9e7   :  { %3657 = vmatprep.subr.mxu0 %v10715_v40  ;;  %14800 = vst [vmem:[#allocation123_spill] sm:$0xff] %v10736_v52  ;;  %v10739_v40 = vld [vmem:[#allocation17 + $0x558] sm:$0xff] }
 0x9e8   :  { %3658 = vmatpush1.msra.mxu0 %v10718_v4  ;;  %14801 = vst [vmem:[#allocation125_spill] sm:$0xff] %v10739_v40  ;;  %v10742_v4 = vld [vmem:[#allocation17 + $0x550] sm:$0xff] }
 0x9e9   :  { %3659 = vmatprep.subr.mxu0 %v10721_v53  ;;  %14802 = vst [vmem:[#allocation130_spill] sm:$0xff] %v10742_v4  ;;  %v10745_v53 = vld [vmem:[#allocation17 + $0x528] sm:$0xff] }
 0x9ea   :  { %3660 = vmatpush2.msra.mxu0 %v10724_v29  ;;  %14803 = vst [vmem:[#allocation76_spill] sm:$0xff] %v10745_v53  ;;  %v10748_v29 = vld [vmem:[#allocation17 + $0x520] sm:$0xff] }
 0x9eb   :  { %3661 = vmatprep.subr.mxu0 %v10727_v59  ;;  %14804 = vst [vmem:[#allocation78_spill] sm:$0xff] %v10748_v29  ;;  %v10751_v59 = vld [vmem:[#allocation17 + $0x4f8] sm:$0xff] }
 0x9ec   :  { %3662 = vmatpush2.msra.mxu0 %v10730_v25  ;;  %14805 = vst [vmem:[#allocation80_spill] sm:$0xff] %v10751_v59  ;;  %v10754_v25 = vld [vmem:[#allocation17 + $0x4f0] sm:$0xff] }
 0x9ed   :  { %3663 = vmatprep.subr.mxu0 %v10733_v11  ;;  %14806 = vst [vmem:[#allocation82_spill] sm:$0xff] %v10754_v25  ;;  %v10761_v11 = vld [vmem:[#allocation17 + $0x4c8] sm:$0xff] }
 0x9ee   :  { %3664 = vmatpush2.msra.mxu0 %v10736_v52  ;;  %v10759_v52 = vld [vmem:[#allocation17 + $0x4b0] sm:$0xff]  ;;  %14807 = vst [vmem:[#allocation84_spill] sm:$0xff] %v10761_v11 }
 0x9ef   :  { %3665 = vmatprep.subr.mxu0 %v10739_v40  ;;  %3601 = vmatpush2.msra.mxu1 %v10759_v52  ;;  %v10767_v40 = vld [vmem:[#allocation17 + $0x4c0] sm:$0xff] }
 0x9f0   :  { %3666 = vmatpush2.msra.mxu0 %v10742_v4  ;;  %v10765_v4 = vld [vmem:[#allocation17 + $0x488] sm:$0xff]  ;;  %14808 = vst [vmem:[#allocation86_spill] sm:$0xff] %v10767_v40 }
 0x9f1   :  { %3667 = vmatprep.subr.mxu0 %v10745_v53  ;;  %3602 = vmatprep.subr.mxu1 %v10765_v4  ;;  %v10779_v53 = vld [vmem:[#allocation17 + $0x490] sm:$0xff] }
 0x9f2   :  { %3668 = vmatpush2.msra.mxu0 %v10748_v29  ;;  %v10771_v29 = vld [vmem:[#allocation17 + $0x480] sm:$0xff]  ;;  %14810 = vst [vmem:[#allocation90_spill] sm:$0xff] %v10779_v53 }
 0x9f3   :  { %3669 = vmatprep.subr.mxu0 %v10751_v59  ;;  %v10773_v59 = vld [vmem:[#allocation17 + $0x498] sm:$0xff]  ;;  %3603 = vmatpush2.msra.mxu1 %v10771_v29 }
 0x9f4   :  { %3670 = vmatpush2.msra.mxu0 %v10754_v25  ;;  %14809 = vst [vmem:[#allocation88_spill] sm:$0xff] %v10773_v59  ;;  %v10777_v25 = vld [vmem:[#allocation17 + $0x458] sm:$0xff] }
 0x9f5   :  { %3671 = vmatprep.subr.mxu0 %v10761_v11  ;;  %3604 = vmatprep.subr.mxu1 %v10777_v25  ;;  %v10783_v11 = vld [vmem:[#allocation17 + $0x450] sm:$0xff] }
 0x9f6   :  { %3672 = vmatpush2.msra.mxu0 %v10767_v40  ;;  %3605 = vmatpush2.msra.mxu1 %v10783_v11  ;;  %v10789_v40 = vld [vmem:[#allocation17 + $0x428] sm:$0xff] }
 0x9f7   :  { %3673 = vmatprep.subr.mxu0 %v10773_v59  ;;  %3606 = vmatprep.subr.mxu1 %v10789_v40  ;;  %v10795_v59 = vld [vmem:[#allocation17 + $0x420] sm:$0xff] }
 0x9f8   :  { %3674 = vmatpush2.msra.mxu0 %v10779_v53  ;;  %v10799_v53 = vld [vmem:[#allocation17 + $0x3f8] sm:$0xff]  ;;  %3607 = vmatpush2.msra.mxu1 %v10795_v59 }
 0x9f9   :  { %3675 = vmatprep.subr.mxu0 %v10785_v30  ;;  %v10805_v30 = vld [vmem:[#allocation17 + $0x3f0] sm:$0xff]  ;;  %3608 = vmatprep.subr.mxu1 %v10799_v53 }
 0x9fa   :  { %3676 = vmatpush2.msra.mxu0 %v10791_v2  ;;  %v10811_v2 = vld [vmem:[#allocation17 + $0x3c8] sm:$0xff]  ;;  %3609 = vmatpush2.msra.mxu1 %v10805_v30 }
 0x9fb   :  { %3677 = vmatprep.subr.mxu0 %v10797_v27  ;;  %v10819_v27 = vld [vmem:[#allocation17 + $0x3d8] sm:$0xff]  ;;  %3610 = vmatprep.subr.mxu1 %v10811_v2 }
 0x9fc   :  { %3678 = vmatpush2.msra.mxu0 %v10803_v21  ;;  %14817 = vst [vmem:[#allocation104_spill] sm:$0xff] %v10819_v27  ;;  %v10827_v21 = vld [vmem:[#allocation17 + $0x390] sm:$0xff]  ;;  %3611 = vmatpush2.msra.mxu1 %v10815_v5 }
 0x9fd   :  { %3679 = vmatprep.subr.mxu0 %v10807_v47  ;;  %v10835_v47 = vld [vmem:[#allocation17 + $0x3a0] sm:$0xff]  ;;  %3612 = vmatprep.subr.mxu1 %v10821_v34 }
 0x9fe   :  { %3680 = vmatpush2.msra.mxu0 %v10813_v0  ;;  %14821 = vst [vmem:[#allocation112_spill] sm:$0xff] %v10835_v47  ;;  %3613 = vmatpush2.msra.mxu1 %v10827_v21  ;;  %v10845_v0 = vld [vmem:[#allocation17 + $0x338] sm:$0xff] }
 0x9ff   :  { %3681 = vmatprep.subr.mxu0 %v10819_v27  ;;  %14824 = vst [vmem:[#allocation117_spill] sm:$0xff] %v10845_v0  ;;  %3614 = vmatprep.subr.mxu1 %v10833_v61  ;;  %v10851_v27 = vld [vmem:[#allocation17 + $0x330] sm:$0xff] }
 0xa00   :  { %3682 = vmatpush2.msra.mxu0 %v10823_v56  ;;  %14826 = vst [vmem:[#allocation121_spill] sm:$0xff] %v10851_v27  ;;  %3615 = vmatpush2.msra.mxu1 %v10839_v54  ;;  %v10857_v56 = vld [vmem:[#allocation17 + $0x308] sm:$0xff]  ;;  %v10884_v61 = vld [vmem:[#allocation17 + $0x2f0] sm:$0xff] }
 0xa01   :  { %3683 = vmatprep.subr.mxu0 %v10829_v44  ;;  %14828 = vst [vmem:[#allocation124_spill] sm:$0xff] %v10857_v56  ;;  %3616 = vmatprep.subr.mxu1 %v10845_v0  ;;  %v10863_v44 = vld [vmem:[#allocation17 + $0x300] sm:$0xff] }
 0xa02   :  { %3684 = vmatpush2.msra.mxu0 %v10835_v47  ;;  %14830 = vst [vmem:[#allocation127_spill] sm:$0xff] %v10863_v44  ;;  %3617 = vmatpush2.msra.mxu1 %v10851_v27  ;;  %v10875_v47 = vld [vmem:[#allocation17 + $0x2f8] sm:$0xff] }
 0xa03   :  { %3685 = vmatprep.subr.mxu0 %v10841_v19  ;;  %3618 = vmatprep.subr.mxu1 %v10857_v56  ;;  %v10873_v19 = vld [vmem:[#allocation17 + $0x310] sm:$0xff]  ;;  %v14834_v56 = vld [vmem:[#allocation29_spill] sm:$0xff] }
 0xa04   :  { %3686 = vmatpush2.msra.mxu0 %v10847_v48  ;;  %3619 = vmatpush2.msra.mxu1 %v10863_v44  ;;  %14832 = vst [vmem:[#allocation129_spill] sm:$0xff] %v10873_v19  ;;  %v3273_v48 = vld [vmem:[#allocation14] sm:$0x3] }
 0xa05   :  { %3687 = vmatprep.subr.mxu0 %v10853_v18  ;;  %3698 = vmatprep.subr.mxu1 %v10875_v47  ;;  %v14833_v18 = vld [vmem:[#allocation32_spill] sm:$0xff]  ;;  %v3282_v27 = vrot.slane %v3273_v48, %v14834_v56 }
 0xa06   :  { %3688 = vmatpush2.msra.mxu0 %v10859_v10  ;;  %v3278_v43 = vrot.slane %v3273_v48, %v14833_v18  ;;  %v10901_v48 = vld [vmem:[#allocation17 + $0x290] sm:$0xff] }
 0xa07   :  { %3689 = vmatprep.subr.mxu0 %v10865_v3 }
 0xa08   :  { %3690 = vmatpush2.msra.mxu0 %v10873_v19 }
 0xa09   :  { %4007 = vmatprep.subr.mxu0 %v10485_v1  ;;  %v10890_v1 = vld [vmem:[#allocation17 + $0x2c8] sm:$0xff] }
 0xa89   :  { %v3357_v10 = vpop.f32.mrf.mxu0 }
 0xa8a   :  { %v3358_v0 = vadd.f32 %v3357_v10, %v3278_v43  ;;  %v10894_v43 = vld [vmem:[#allocation17 + $0x2c0] sm:$0xff]  ;;  %v10898_v10 = vld [vmem:[#allocation17 + $0x298] sm:$0xff] }
 0xa8b   :  { %v3359_v44 = vpop.f32.mrf.mxu0 }
 0xa8c   :  { %v3360_v54 = vadd.f32 %v3359_v44, %v3282_v27  ;;  %v10909_v44 = vld [vmem:[#allocation17 + $0x260] sm:$0xff] }
 0xa8d   :  { %v14841_v27 = vld [vmem:[#allocation38_spill] sm:$0xff] }
 0xa8e   :  { %6607 = vtanh.f32 %v3360_v54  ;;  %v10905_v54 = vld [vmem:[#allocation17 + $0x268] sm:$0xff] }
 0xa8f   :  { %6609 = vtanh.f32 %v3358_v0  ;;  %v10913_v0 = vld [vmem:[#allocation17 + $0x238] sm:$0xff] }
 0xa9b   :  { %v10882_v3 = vpop.eup %6607 }
 0xa9c   :  { %v10886_v19 = vpop.eup %6609  ;;  %3620 = vmatprep.mubr.f32.mxu1 %v10882_v3  ;;  %3691 = vmatprep.mubr.f32.mxu0 %v10882_v3 }
 0xa9d   :  { %3621 = vmatmul.mubr.f32.vlgmr.msra.gmra.mxu1 %v10886_v19  ;;  %3692 = vmatmul.mubr.f32.vlgmr.msra.gmra.mxu0 %v10886_v19 }
 0xa9e   :  { %3699 = vmatpush1.msra.mxu1 %v10884_v61  ;;  %3762 = vmatprep.mubr.f32.mxu1 %v10882_v3 }
 0xa9f   :  { %3700 = vmatprep.subr.mxu1 %v10890_v1  ;;  %4008 = vmatpush1.msra.mxu0 %v10487_v49  ;;  %v10917_v49 = vld [vmem:[#allocation17 + $0x230] sm:$0xff] }
 0xaa0   :  { %3701 = vmatpush1.msra.mxu1 %v10894_v43  ;;  %4009 = vmatprep.subr.mxu0 %v10490_v36  ;;  %v10921_v36 = vld [vmem:[#allocation17 + $0x208] sm:$0xff] }
 0xaa1   :  { %3702 = vmatprep.subr.mxu1 %v10898_v10  ;;  %4010 = vmatpush1.msra.mxu0 %v10492_v22  ;;  %v10925_v22 = vld [vmem:[#allocation17 + $0x200] sm:$0xff] }
 0xaa2   :  { %3703 = vmatpush1.msra.mxu1 %v10901_v48  ;;  %4011 = vmatprep.subr.mxu0 %v10495_v9  ;;  %v10929_v9 = vld [vmem:[#allocation17 + $0x1d8] sm:$0xff] }
 0xaa3   :  { %3704 = vmatprep.subr.mxu1 %v10905_v54  ;;  %4012 = vmatpush1.msra.mxu0 %v10498_v46  ;;  %v10933_v46 = vld [vmem:[#allocation17 + $0x1d0] sm:$0xff] }
 0xaa4   :  { %3705 = vmatpush1.msra.mxu1 %v10909_v44  ;;  %4013 = vmatprep.subr.mxu0 %v10501_v6  ;;  %v10937_v6 = vld [vmem:[#allocation17 + $0x1a8] sm:$0xff] }
 0xaa5   :  { %3706 = vmatprep.subr.mxu1 %v10913_v0  ;;  %4014 = vmatpush1.msra.mxu0 %v10504_v7  ;;  %v10941_v7 = vld [vmem:[#allocation17 + $0x1a0] sm:$0xff] }
 0xaa6   :  { %3707 = vmatpush1.msra.mxu1 %v10917_v49  ;;  %4015 = vmatprep.subr.mxu0 %v10507_v14  ;;  %v10945_v14 = vld [vmem:[#allocation17 + $0x178] sm:$0xff] }
 0xaa7   :  { %3708 = vmatprep.subr.mxu1 %v10921_v36  ;;  %4016 = vmatpush1.msra.mxu0 %v10510_v15  ;;  %v10949_v15 = vld [vmem:[#allocation17 + $0x170] sm:$0xff] }
 0xaa8   :  { %3709 = vmatpush1.msra.mxu1 %v10925_v22  ;;  %4017 = vmatprep.subr.mxu0 %v10513_v58  ;;  %v10953_v58 = vld [vmem:[#allocation17 + $0x148] sm:$0xff] }
 0xaa9   :  { %3710 = vmatprep.subr.mxu1 %v10929_v9  ;;  %4018 = vmatpush1.msra.mxu0 %v10516_v35  ;;  %v10957_v35 = vld [vmem:[#allocation17 + $0x140] sm:$0xff] }
 0xaaa   :  { %3711 = vmatpush1.msra.mxu1 %v10933_v46  ;;  %4019 = vmatprep.subr.mxu0 %v10519_v32  ;;  %v10961_v32 = vld [vmem:[#allocation17 + $0x118] sm:$0xff] }
 0xaab   :  { %3712 = vmatprep.subr.mxu1 %v10937_v6  ;;  %4020 = vmatpush1.msra.mxu0 %v10522_v57  ;;  %v10965_v57 = vld [vmem:[#allocation17 + $0x110] sm:$0xff] }
 0xaac   :  { %3713 = vmatpush1.msra.mxu1 %v10941_v7  ;;  %4021 = vmatprep.subr.mxu0 %v10525_v26  ;;  %v10969_v26 = vld [vmem:[#allocation17 + $0xe8] sm:$0xff] }
 0xaad   :  { %3714 = vmatprep.subr.mxu1 %v10945_v14  ;;  %4022 = vmatpush1.msra.mxu0 %v10528_v20  ;;  %v10973_v20 = vld [vmem:[#allocation17 + $0xe0] sm:$0xff] }
 0xaae   :  { %3715 = vmatpush1.msra.mxu1 %v10949_v15  ;;  %4023 = vmatprep.subr.mxu0 %v10531_v62  ;;  %v10977_v62 = vld [vmem:[#allocation17 + $0xb8] sm:$0xff] }
 0xaaf   :  { %3716 = vmatprep.subr.mxu1 %v10953_v58  ;;  %4024 = vmatpush1.msra.mxu0 %v10534_v16  ;;  %v10981_v16 = vld [vmem:[#allocation17 + $0xb0] sm:$0xff] }
 0xab0   :  { %3717 = vmatpush1.msra.mxu1 %v10957_v35  ;;  %4025 = vmatprep.subr.mxu0 %v10537_v37  ;;  %v10985_v37 = vld [vmem:[#allocation17 + $0x88] sm:$0xff] }
 0xab1   :  { %3718 = vmatprep.subr.mxu1 %v10961_v32  ;;  %4026 = vmatpush1.msra.mxu0 %v10540_v45  ;;  %v10989_v45 = vld [vmem:[#allocation17 + $0x80] sm:$0xff] }
 0xab2   :  { %3719 = vmatpush1.msra.mxu1 %v10965_v57  ;;  %4027 = vmatprep.subr.mxu0 %v10543_v17  ;;  %v10993_v17 = vld [vmem:[#allocation17 + $0x58] sm:$0xff] }
 0xab3   :  { %3720 = vmatprep.subr.mxu1 %v10969_v26  ;;  %4028 = vmatpush1.msra.mxu0 %v10546_v41  ;;  %v10997_v41 = vld [vmem:[#allocation17 + $0x50] sm:$0xff] }
 0xab4   :  { %3721 = vmatpush1.msra.mxu1 %v10973_v20  ;;  %4029 = vmatprep.subr.mxu0 %v10549_v12  ;;  %v11001_v12 = vld [vmem:[#allocation17 + $0x28] sm:$0xff] }
 0xab5   :  { %3722 = vmatprep.subr.mxu1 %v10977_v62  ;;  %4030 = vmatpush1.msra.mxu0 %v10552_v39  ;;  %v11005_v39 = vld [vmem:[#allocation17 + $0x20] sm:$0xff] }
 0xab6   :  { %3723 = vmatpush1.msra.mxu1 %v10981_v16  ;;  %4031 = vmatprep.subr.mxu0 %v10555_v38  ;;  %v11009_v38 = vld [vmem:[#allocation17 + $0x5f8] sm:$0xff] }
 0xab7   :  { %3724 = vmatprep.subr.mxu1 %v10985_v37  ;;  %4032 = vmatpush1.msra.mxu0 %v10558_v50  ;;  %v11013_v50 = vld [vmem:[#allocation17 + $0x5f0] sm:$0xff] }
 0xab8   :  { %3725 = vmatpush1.msra.mxu1 %v10989_v45  ;;  %4033 = vmatprep.subr.mxu0 %v10561_v23  ;;  %v11017_v23 = vld [vmem:[#allocation17 + $0x5c8] sm:$0xff] }
 0xab9   :  { %3726 = vmatprep.subr.mxu1 %v10993_v17  ;;  %4034 = vmatpush1.msra.mxu0 %v10564_v63  ;;  %v11021_v63 = vld [vmem:[#allocation17 + $0x5c0] sm:$0xff] }
 0xaba   :  { %3727 = vmatpush1.msra.mxu1 %v10997_v41  ;;  %4035 = vmatprep.subr.mxu0 %v10567_v55  ;;  %v11025_v55 = vld [vmem:[#allocation17 + $0x598] sm:$0xff] }
 0xabb   :  { %3728 = vmatprep.subr.mxu1 %v11001_v12  ;;  %4036 = vmatpush1.msra.mxu0 %v10570_v60  ;;  %v11029_v60 = vld [vmem:[#allocation17 + $0x590] sm:$0xff] }
 0xabc   :  { %3729 = vmatpush1.msra.mxu1 %v11005_v39  ;;  %4037 = vmatprep.subr.mxu0 %v10573_v8  ;;  %14835 = vst [vmem:[#allocation131_spill] sm:$0xff] %v11029_v60  ;;  %v11033_v8 = vld [vmem:[#allocation17 + $0x568] sm:$0xff] }
 0xabd   :  { %3730 = vmatprep.subr.mxu1 %v11009_v38  ;;  %4038 = vmatpush1.msra.mxu0 %v10576_v42  ;;  %14836 = vst [vmem:[#allocation132_spill] sm:$0xff] %v11033_v8  ;;  %v11037_v42 = vld [vmem:[#allocation17 + $0x560] sm:$0xff] }
 0xabe   :  { %3731 = vmatpush2.msra.mxu1 %v11013_v50  ;;  %4039 = vmatprep.subr.mxu0 %v10579_v51  ;;  %14837 = vst [vmem:[#allocation133_spill] sm:$0xff] %v11037_v42  ;;  %v11041_v51 = vld [vmem:[#allocation17 + $0x538] sm:$0xff] }
 0xabf   :  { %3732 = vmatprep.subr.mxu1 %v11017_v23  ;;  %4040 = vmatpush2.msra.mxu0 %v10582_v13  ;;  %14838 = vst [vmem:[#allocation134_spill] sm:$0xff] %v11041_v51  ;;  %v11045_v13 = vld [vmem:[#allocation17 + $0x530] sm:$0xff] }
 0xac0   :  { %3733 = vmatpush2.msra.mxu1 %v11021_v63  ;;  %4041 = vmatprep.subr.mxu0 %v10585_v28  ;;  %14839 = vst [vmem:[#allocation135_spill] sm:$0xff] %v11045_v13  ;;  %v11049_v28 = vld [vmem:[#allocation17 + $0x508] sm:$0xff] }
 0xac1   :  { %3734 = vmatprep.subr.mxu1 %v11025_v55  ;;  %4042 = vmatpush2.msra.mxu0 %v10588_v31  ;;  %14840 = vst [vmem:[#allocation136_spill] sm:$0xff] %v11049_v28  ;;  %v11053_v31 = vld [vmem:[#allocation17 + $0x500] sm:$0xff] }
 0xac2   :  { %3735 = vmatpush2.msra.mxu1 %v11029_v60  ;;  %4043 = vmatprep.subr.mxu0 %v10591_v24  ;;  %v14842_v60 = vld [vmem:[#allocation33_spill] sm:$0xff] }
 0xac3   :  { %3736 = vmatprep.subr.mxu1 %v11033_v8  ;;  %4044 = vmatpush2.msra.mxu0 %v10594_v33  ;;  %v11057_v24 = vld [vmem:[#allocation17 + $0x4d8] sm:$0xff]  ;;  %v11061_v33 = vld [vmem:[#allocation17 + $0x4d0] sm:$0xff] }
 0xac4   :  { %3737 = vmatpush2.msra.mxu1 %v11037_v42  ;;  %4045 = vmatprep.subr.mxu0 %v14841_v27  ;;  %v14843_v8 = vld [vmem:[#allocation81_spill] sm:$0xff]  ;;  %v14844_v42 = vld [vmem:[#allocation54_spill] sm:$0xff]  ;;  %v11065_v27 = vld [vmem:[#allocation17 + $0x4a8] sm:$0xff] }
 0xac5   :  { %3738 = vmatprep.subr.mxu1 %v11041_v51  ;;  %4046 = vmatpush2.msra.mxu0 %v14842_v60  ;;  %v14845_v51 = vld [vmem:[#allocation49_spill] sm:$0xff]  ;;  %v11069_v60 = vld [vmem:[#allocation17 + $0x4a0] sm:$0xff] }
 0xac6   :  { %3739 = vmatpush2.msra.mxu1 %v11045_v13  ;;  %4047 = vmatprep.subr.mxu0 %v14843_v8  ;;  %v14846_v13 = vld [vmem:[#allocation160_spill] sm:$0xff]  ;;  %v11073_v8 = vld [vmem:[#allocation17 + $0x478] sm:$0xff] }
 0xac7   :  { %3740 = vmatprep.subr.mxu1 %v11049_v28  ;;  %4048 = vmatpush2.msra.mxu0 %v14844_v42  ;;  %v14847_v28 = vld [vmem:[#allocation161_spill] sm:$0xff]  ;;  %v11077_v42 = vld [vmem:[#allocation17 + $0x470] sm:$0xff] }
 0xac8   :  { %3741 = vmatpush2.msra.mxu1 %v11053_v31  ;;  %4049 = vmatprep.subr.mxu0 %v14845_v51  ;;  %14848 = vst [vmem:[#allocation137_spill] sm:$0xff] %v11077_v42  ;;  %v11081_v51 = vld [vmem:[#allocation17 + $0x448] sm:$0xff] }
 0xac9   :  { %3742 = vmatprep.subr.mxu1 %v11057_v24  ;;  %4050 = vmatpush2.msra.mxu0 %v14846_v13  ;;  %14849 = vst [vmem:[#allocation138_spill] sm:$0xff] %v11081_v51  ;;  %v11085_v13 = vld [vmem:[#allocation17 + $0x440] sm:$0xff] }
 0xaca   :  { %3743 = vmatpush2.msra.mxu1 %v11061_v33  ;;  %4051 = vmatprep.subr.mxu0 %v14847_v28  ;;  %14850 = vst [vmem:[#allocation139_spill] sm:$0xff] %v11085_v13  ;;  %v11089_v28 = vld [vmem:[#allocation17 + $0x418] sm:$0xff] }
 0xacb   :  { %3744 = vmatprep.subr.mxu1 %v11065_v27  ;;  %4052 = vmatpush2.msra.mxu0 %v10759_v52  ;;  %14851 = vst [vmem:[#allocation140_spill] sm:$0xff] %v11089_v28  ;;  %v11093_v52 = vld [vmem:[#allocation17 + $0x410] sm:$0xff] }
 0xacc   :  { %3745 = vmatpush2.msra.mxu1 %v11069_v60  ;;  %4053 = vmatprep.subr.mxu0 %v10765_v4  ;;  %14852 = vst [vmem:[#allocation141_spill] sm:$0xff] %v11093_v52  ;;  %v11097_v4 = vld [vmem:[#allocation17 + $0x3e8] sm:$0xff] }
 0xacd   :  { %3746 = vmatprep.subr.mxu1 %v11073_v8  ;;  %4054 = vmatpush2.msra.mxu0 %v10771_v29  ;;  %14853 = vst [vmem:[#allocation142_spill] sm:$0xff] %v11097_v4  ;;  %v11101_v29 = vld [vmem:[#allocation17 + $0x3e0] sm:$0xff] }
 0xace   :  { %3747 = vmatpush2.msra.mxu1 %v11077_v42  ;;  %4055 = vmatprep.subr.mxu0 %v10777_v25  ;;  %14854 = vst [vmem:[#allocation143_spill] sm:$0xff] %v11101_v29  ;;  %v11105_v25 = vld [vmem:[#allocation17 + $0x3b8] sm:$0xff] }
 0xacf   :  { %3748 = vmatprep.subr.mxu1 %v11081_v51  ;;  %4056 = vmatpush2.msra.mxu0 %v10783_v11  ;;  %14855 = vst [vmem:[#allocation144_spill] sm:$0xff] %v11105_v25  ;;  %v11109_v11 = vld [vmem:[#allocation17 + $0x3b0] sm:$0xff] }
 0xad0   :  { %3749 = vmatpush2.msra.mxu1 %v11085_v13  ;;  %4057 = vmatprep.subr.mxu0 %v10789_v40  ;;  %14856 = vst [vmem:[#allocation58_spill] sm:$0xff] %v11109_v11  ;;  %v11113_v40 = vld [vmem:[#allocation17 + $0x388] sm:$0xff] }
 0xad1   :  { %3750 = vmatprep.subr.mxu1 %v11089_v28  ;;  %4058 = vmatpush2.msra.mxu0 %v10795_v59  ;;  %14857 = vst [vmem:[#allocation53_spill] sm:$0xff] %v11113_v40  ;;  %v11117_v59 = vld [vmem:[#allocation17 + $0x380] sm:$0xff] }
 0xad2   :  { %3751 = vmatpush2.msra.mxu1 %v11093_v52  ;;  %4059 = vmatprep.subr.mxu0 %v10799_v53  ;;  %14858 = vst [vmem:[#allocation60_spill] sm:$0xff] %v11117_v59  ;;  %v11121_v53 = vld [vmem:[#allocation17 + $0x358] sm:$0xff] }
 0xad3   :  { %3752 = vmatprep.subr.mxu1 %v11097_v4  ;;  %4060 = vmatpush2.msra.mxu0 %v10805_v30  ;;  %14859 = vst [vmem:[#allocation55_spill] sm:$0xff] %v11121_v53  ;;  %v11125_v30 = vld [vmem:[#allocation17 + $0x350] sm:$0xff]  ;;  %v14935_v4 = vld [vmem:[#allocation37_spill] sm:$0xff] }
 0xad4   :  { %3753 = vmatpush2.msra.mxu1 %v11101_v29  ;;  %4061 = vmatprep.subr.mxu0 %v10811_v2  ;;  %14860 = vst [vmem:[#allocation62_spill] sm:$0xff] %v11125_v30  ;;  %v11129_v2 = vld [vmem:[#allocation17 + $0x328] sm:$0xff]  ;;  %v14933_v29 = vld [vmem:[#allocation40_spill] sm:$0xff] }
 0xad5   :  { %3754 = vmatprep.subr.mxu1 %v11105_v25  ;;  %4062 = vmatpush2.msra.mxu0 %v10815_v5  ;;  %14861 = vst [vmem:[#allocation57_spill] sm:$0xff] %v11129_v2  ;;  %v14862_v25 = vld [vmem:[#allocation110_spill] sm:$0xff] }
 0xad6   :  { %3755 = vmatpush2.msra.mxu1 %v11109_v11  ;;  %4063 = vmatprep.subr.mxu0 %v10821_v34  ;;  %v11133_v5 = vld [vmem:[#allocation17 + $0x320] sm:$0xff]  ;;  %v14865_v34 = vld [vmem:[#allocation117_spill] sm:$0xff] }
 0xad7   :  { %3756 = vmatprep.subr.mxu1 %v11113_v40  ;;  %4064 = vmatpush2.msra.mxu0 %v10827_v21  ;;  %14863 = vst [vmem:[#allocation64_spill] sm:$0xff] %v11133_v5  ;;  %v14864_v11 = vld [vmem:[#allocation114_spill] sm:$0xff]  ;;  %v14866_v40 = vld [vmem:[#allocation121_spill] sm:$0xff]  ;;  %v14867_v21 = vld [vmem:[#allocation124_spill] sm:$0xff] }
 0xad8   :  { %3757 = vmatpush2.msra.mxu1 %v11117_v59  ;;  %4065 = vmatprep.subr.mxu0 %v14862_v25  ;;  %v7307_v25 = vld [vmem:[#allocation17 + $0x2e8] sm:$0xff] }
 0xad9   :  { %3758 = vmatprep.subr.mxu1 %v11121_v53  ;;  %4066 = vmatpush2.msra.mxu0 %v14864_v11  ;;  %v14868_v53 = vld [vmem:[#allocation162_spill] sm:$0xff]  ;;  %v14869_v59 = vld [vmem:[#allocation127_spill] sm:$0xff] }
 0xada   :  { %3759 = vmatpush2.msra.mxu1 %v11125_v30  ;;  %4067 = vmatprep.subr.mxu0 %v14865_v34  ;;  %v14870_v11 = vld [vmem:[#allocation163_spill] sm:$0xff]  ;;  %v14871_v34 = vld [vmem:[#allocation164_spill] sm:$0xff] }
 0xadb   :  { %3760 = vmatprep.subr.mxu1 %v11129_v2  ;;  %4068 = vmatpush2.msra.mxu0 %v14866_v40  ;;  %v14872_v2 = vld [vmem:[#allocation165_spill] sm:$0xff]  ;;  %v14873_v40 = vld [vmem:[#allocation83_spill] sm:$0xff] }
 0xadc   :  { %3761 = vmatpush2.msra.mxu1 %v11133_v5  ;;  %4069 = vmatprep.subr.mxu0 %v14867_v21  ;;  %v14874_v5 = vld [vmem:[#allocation166_spill] sm:$0xff]  ;;  %v14875_v21 = vld [vmem:[#allocation85_spill] sm:$0xff]  ;;  %v14876_v30 = vld [vmem:[#allocation167_spill] sm:$0xff] }
 0xadd   :  { %3763 = vmatmul.mubr.f32.vlgmr.msra.gmra.mxu1 %v10886_v19  ;;  %4078 = vmatprep.subr.mxu1 %v7307_v25  ;;  %v14877_v25 = vld [vmem:[#allocation87_spill] sm:$0xff] }
 0xade   :  { %4079 = vmatpush1.msra.mxu1 %v14868_v53  ;;  %4070 = vmatpush2.msra.mxu0 %v14869_v59  ;;  %v14878_v53 = vld [vmem:[#allocation168_spill] sm:$0xff]  ;;  %v14879_v59 = vld [vmem:[#allocation89_spill] sm:$0xff] }
 0xadf   :  { %4080 = vmatprep.subr.mxu1 %v14870_v11  ;;  %4149 = vmatprep.subr.mxu0 %v10875_v47  ;;  %v14880_v11 = vld [vmem:[#allocation169_spill] sm:$0xff]  ;;  %v14881_v47 = vld [vmem:[#allocation91_spill] sm:$0xff] }
 0xae0   :  { %4081 = vmatpush1.msra.mxu1 %v14871_v34  ;;  %v14882_v34 = vld [vmem:[#allocation170_spill] sm:$0xff] }
 0xae1   :  { %4082 = vmatprep.subr.mxu1 %v14872_v2  ;;  %v14883_v2 = vld [vmem:[#allocation93_spill] sm:$0xff] }
 0xae2   :  { %4083 = vmatpush1.msra.mxu1 %v14873_v40  ;;  %v14884_v40 = vld [vmem:[#allocation171_spill] sm:$0xff] }
 0xae3   :  { %4084 = vmatprep.subr.mxu1 %v14874_v5  ;;  %v14885_v5 = vld [vmem:[#allocation95_spill] sm:$0xff] }
 0xae4   :  { %4085 = vmatpush1.msra.mxu1 %v14875_v21  ;;  %v14886_v21 = vld [vmem:[#allocation172_spill] sm:$0xff] }
 0xae5   :  { %4086 = vmatprep.subr.mxu1 %v14876_v30  ;;  %v14887_v30 = vld [vmem:[#allocation97_spill] sm:$0xff] }
 0xae6   :  { %4087 = vmatpush1.msra.mxu1 %v14877_v25  ;;  %v14888_v25 = vld [vmem:[#allocation173_spill] sm:$0xff] }
 0xae7   :  { %4088 = vmatprep.subr.mxu1 %v14878_v53  ;;  %v14889_v53 = vld [vmem:[#allocation99_spill] sm:$0xff] }
 0xae8   :  { %4089 = vmatpush1.msra.mxu1 %v14879_v59  ;;  %v14890_v59 = vld [vmem:[#allocation174_spill] sm:$0xff] }
 0xae9   :  { %4090 = vmatprep.subr.mxu1 %v14880_v11  ;;  %v14891_v11 = vld [vmem:[#allocation101_spill] sm:$0xff] }
 0xaea   :  { %4091 = vmatpush1.msra.mxu1 %v14881_v47  ;;  %v14892_v47 = vld [vmem:[#allocation175_spill] sm:$0xff] }
 0xaeb   :  { %4092 = vmatprep.subr.mxu1 %v14882_v34  ;;  %v14893_v34 = vld [vmem:[#allocation103_spill] sm:$0xff] }
 0xaec   :  { %4093 = vmatpush1.msra.mxu1 %v14883_v2  ;;  %v14894_v2 = vld [vmem:[#allocation176_spill] sm:$0xff] }
 0xaed   :  { %4094 = vmatprep.subr.mxu1 %v14884_v40  ;;  %v14895_v40 = vld [vmem:[#allocation105_spill] sm:$0xff] }
 0xaee   :  { %4095 = vmatpush1.msra.mxu1 %v14885_v5  ;;  %v14896_v5 = vld [vmem:[#allocation177_spill] sm:$0xff] }
 0xaef   :  { %4096 = vmatprep.subr.mxu1 %v14886_v21  ;;  %v14897_v21 = vld [vmem:[#allocation107_spill] sm:$0xff] }
 0xaf0   :  { %4097 = vmatpush1.msra.mxu1 %v14887_v30  ;;  %v14898_v30 = vld [vmem:[#allocation178_spill] sm:$0xff] }
 0xaf1   :  { %4098 = vmatprep.subr.mxu1 %v14888_v25  ;;  %v14899_v25 = vld [vmem:[#allocation109_spill] sm:$0xff] }
 0xaf2   :  { %4099 = vmatpush1.msra.mxu1 %v14889_v53  ;;  %v14900_v53 = vld [vmem:[#allocation111_spill] sm:$0xff] }
 0xaf3   :  { %4100 = vmatprep.subr.mxu1 %v14890_v59  ;;  %v14901_v59 = vld [vmem:[#allocation113_spill] sm:$0xff] }
 0xaf4   :  { %4101 = vmatpush1.msra.mxu1 %v14891_v11  ;;  %v14902_v11 = vld [vmem:[#allocation115_spill] sm:$0xff] }
 0xaf5   :  { %4102 = vmatprep.subr.mxu1 %v14892_v47  ;;  %v14903_v47 = vld [vmem:[#allocation118_spill] sm:$0xff] }
 0xaf6   :  { %4103 = vmatpush1.msra.mxu1 %v14893_v34  ;;  %v14904_v34 = vld [vmem:[#allocation120_spill] sm:$0xff] }
 0xaf7   :  { %4104 = vmatprep.subr.mxu1 %v14894_v2  ;;  %v14905_v2 = vld [vmem:[#allocation123_spill] sm:$0xff] }
 0xaf8   :  { %4105 = vmatpush1.msra.mxu1 %v14895_v40  ;;  %v14906_v40 = vld [vmem:[#allocation125_spill] sm:$0xff] }
 0xaf9   :  { %4106 = vmatprep.subr.mxu1 %v14896_v5  ;;  %v14907_v5 = vld [vmem:[#allocation130_spill] sm:$0xff] }
 0xafa   :  { %4107 = vmatpush1.msra.mxu1 %v14897_v21  ;;  %v14908_v21 = vld [vmem:[#allocation76_spill] sm:$0xff] }
 0xafb   :  { %4108 = vmatprep.subr.mxu1 %v14898_v30  ;;  %v14909_v30 = vld [vmem:[#allocation78_spill] sm:$0xff] }
 0xafc   :  { %4109 = vmatpush1.msra.mxu1 %v14899_v25  ;;  %v14910_v25 = vld [vmem:[#allocation80_spill] sm:$0xff] }
 0xafd   :  { %4110 = vmatprep.subr.mxu1 %v14900_v53  ;;  %v14911_v53 = vld [vmem:[#allocation82_spill] sm:$0xff] }
 0xafe   :  { %4111 = vmatpush2.msra.mxu1 %v14901_v59  ;;  %v14912_v59 = vld [vmem:[#allocation84_spill] sm:$0xff] }
 0xaff   :  { %4112 = vmatprep.subr.mxu1 %v14902_v11  ;;  %v14913_v11 = vld [vmem:[#allocation86_spill] sm:$0xff] }
 0xb00   :  { %4113 = vmatpush2.msra.mxu1 %v14903_v47  ;;  %v14914_v47 = vld [vmem:[#allocation88_spill] sm:$0xff] }
 0xb01   :  { %4114 = vmatprep.subr.mxu1 %v14904_v34  ;;  %v14915_v34 = vld [vmem:[#allocation90_spill] sm:$0xff] }
 0xb02   :  { %4115 = vmatpush2.msra.mxu1 %v14905_v2  ;;  %v14916_v2 = vld [vmem:[#allocation92_spill] sm:$0xff] }
 0xb03   :  { %4116 = vmatprep.subr.mxu1 %v14906_v40  ;;  %v14917_v40 = vld [vmem:[#allocation94_spill] sm:$0xff] }
 0xb04   :  { %4117 = vmatpush2.msra.mxu1 %v14907_v5  ;;  %v14918_v5 = vld [vmem:[#allocation96_spill] sm:$0xff] }
 0xb05   :  { %4118 = vmatprep.subr.mxu1 %v14908_v21  ;;  %v14919_v21 = vld [vmem:[#allocation98_spill] sm:$0xff] }
 0xb06   :  { %4119 = vmatpush2.msra.mxu1 %v14909_v30  ;;  %v14920_v30 = vld [vmem:[#allocation100_spill] sm:$0xff] }
 0xb07   :  { %4120 = vmatprep.subr.mxu1 %v14910_v25  ;;  %v14921_v25 = vld [vmem:[#allocation102_spill] sm:$0xff] }
 0xb08   :  { %4121 = vmatpush2.msra.mxu1 %v14911_v53  ;;  %v14922_v53 = vld [vmem:[#allocation104_spill] sm:$0xff] }
 0xb09   :  { %4122 = vmatprep.subr.mxu1 %v14912_v59  ;;  %v14923_v59 = vld [vmem:[#allocation106_spill] sm:$0xff] }
 0xb0a   :  { %4123 = vmatpush2.msra.mxu1 %v14913_v11  ;;  %v14924_v11 = vld [vmem:[#allocation108_spill] sm:$0xff] }
 0xb0b   :  { %4124 = vmatprep.subr.mxu1 %v14914_v47  ;;  %v14925_v47 = vld [vmem:[#allocation112_spill] sm:$0xff] }
 0xb0c   :  { %4125 = vmatpush2.msra.mxu1 %v14915_v34  ;;  %v14926_v34 = vld [vmem:[#allocation116_spill] sm:$0xff] }
 0xb0d   :  { %4126 = vmatprep.subr.mxu1 %v14916_v2  ;;  %v14927_v2 = vld [vmem:[#allocation119_spill] sm:$0xff] }
 0xb0e   :  { %4127 = vmatpush2.msra.mxu1 %v14917_v40  ;;  %v14928_v40 = vld [vmem:[#allocation122_spill] sm:$0xff] }
 0xb0f   :  { %4128 = vmatprep.subr.mxu1 %v14918_v5  ;;  %v14929_v5 = vld [vmem:[#allocation126_spill] sm:$0xff] }
 0xb10   :  { %4129 = vmatpush2.msra.mxu1 %v14919_v21  ;;  %v14930_v21 = vld [vmem:[#allocation128_spill] sm:$0xff] }
 0xb11   :  { %4130 = vmatprep.subr.mxu1 %v14920_v30  ;;  %v14931_v30 = vld [vmem:[#allocation129_spill] sm:$0xff] }
 0xb12   :  { %4131 = vmatpush2.msra.mxu1 %v14921_v25 }
 0xb13   :  { %4132 = vmatprep.subr.mxu1 %v14922_v53  ;;  %v14932_v53 = vld [vmem:[#allocation42_spill] sm:$0xff] }
 0xb14   :  { %4133 = vmatpush2.msra.mxu1 %v14923_v59  ;;  %v11210_v59 = vadd.f32 %v14933_v29, %v14932_v53 }
 0xb15   :  { %4134 = vmatprep.subr.mxu1 %v14924_v11 }
 0xb16   :  { %4135 = vmatpush2.msra.mxu1 %v14925_v47  ;;  %14934 = vst [vmem:[#allocation59_spill] sm:$0xff] %v11210_v59  ;;  %v14936_v47 = vld [vmem:[#allocation35_spill] sm:$0xff] }
 0xb17   :  { %4136 = vmatprep.subr.mxu1 %v14926_v34  ;;  %v11214_v52 = vadd.f32 %v14936_v47, %v14935_v4 }
 0xb18   :  { %4137 = vmatpush2.msra.mxu1 %v14927_v2 }
 0xb19   :  { %4138 = vmatprep.subr.mxu1 %v14928_v40  ;;  %14937 = vst [vmem:[#allocation66_spill] sm:$0xff] %v11214_v52 }
 0xb1a   :  { %4139 = vmatpush2.msra.mxu1 %v14929_v5 }
 0xb1b   :  { %4140 = vmatprep.subr.mxu1 %v14930_v21  ;;  %v7308_v21 = vld [vmem:[%s12978_s10] sm:$0x3f] }
 0xb1c   :  { %4141 = vmatpush2.msra.mxu1 %v14931_v30  ;;  %v14938_v30 = vld [vmem:[#allocation28_spill] sm:$0xff] }
 0xb1d   :  { %v14939_v28 = vsub.s32 2, %v14938_v30  ;;  %v14941_v53 = vsub.s32 3, %v14938_v30 }
 0xb1f   :  { %v11223_v13 = vrot.slane %v7308_v21, %v14939_v28  ;;  %v11227_v4 = vrot.slane %v7308_v21, %v14941_v53  ;;  %v783_v53 = vld [vmem:[%s12979_s11] sm:$0x3] }
 0xb21   :  { %14940 = vst [vmem:[#allocation61_spill] sm:$0xff] %v11223_v13  ;;  %14942 = vst [vmem:[#allocation68_spill] sm:$0xff] %v11227_v4 }
 0xb5d   :  { %v3622_v25 = vpop.f32.mrf.mxu1  ;;  %v3693_v29 = vpop.f32.mrf.mxu0 }
 0xb5e   :  { %v3769_v34 = vadd.f32 %v3622_v25, %v11210_v59  ;;  %v14943_v25 = vld [vmem:[#allocation48_spill] sm:$0xff] }
 0xb5f   :  { %v3624_v11 = vpop.f32.mrf.mxu1  ;;  %v3695_v47 = vpop.f32.mrf.mxu0 }
 0xb60   :  { %v3770_v2 = vadd.f32 %v3624_v11, %v11214_v52  ;;  %v6366_v40 = vmul.f32 -1.442695, %v3769_v34  ;;  %v11231_v11 = vadd.f32 %v14943_v25, %v11223_v13  ;;  %v14945_v34 = vld [vmem:[#allocation43_spill] sm:$0xff]  ;;  %v14949_v13 = vld [vmem:[#allocation46_spill] sm:$0xff] }
 0xb62   :  { %v6367_v5 = vmul.f32 -1.442695, %v3770_v2  ;;  %6611 = vpow2.f32 %v6366_v40  ;;  %14944 = vst [vmem:[#allocation63_spill] sm:$0xff] %v11231_v11  ;;  %v11235_v2 = vadd.f32 %v14945_v34, %v11227_v4  ;;  %v3771_v52 = vadd.f32 %v3693_v29, %v11231_v11 }
 0xb63   :  { %v11243_v34 = vrot.slane %v783_v53, %v14833_v18 }
 0xb64   :  { %6613 = vpow2.f32 %v6367_v5  ;;  %14946 = vst [vmem:[#allocation70_spill] sm:$0xff] %v11235_v2  ;;  %v3772_v28 = vadd.f32 %v3695_v47, %v11235_v2  ;;  %v6368_v40 = vmul.f32 -1.442695, %v3771_v52  ;;  %v11246_v52 = vrot.slane %v783_v53, %v14834_v56 }
 0xb65   :  { %14947 = vst [vmem:[#allocation145_spill] sm:$0xff] %v11243_v34 }
 0xb66   :  { %v6369_v59 = vmul.f32 -1.442695, %v3772_v28  ;;  %6615 = vpow2.f32 %v6368_v40  ;;  %14948 = vst [vmem:[#allocation65_spill] sm:$0xff] %v11246_v52 }
 0xb68   :  { %6617 = vpow2.f32 %v6369_v59 }
 0xb6f   :  { %v6612_v51 = vpop.eup %6611 }
 0xb70   :  { %v3785_v30 = vadd.f32 1.0, %v6612_v51 }
 0xb71   :  { %v6614_v21 = vpop.eup %6613 }
 0xb72   :  { %v3786_v5 = vadd.f32 1.0, %v6614_v21  ;;  %6619 = vrcp.f32 %v3785_v30 }
 0xb73   :  { %v6616_v25 = vpop.eup %6615 }
 0xb74   :  { %6621 = vrcp.f32 %v3786_v5  ;;  %v3787_v47 = vadd.f32 1.0, %v6616_v25  ;;  %v14950_v25 = vld [vmem:[#allocation41_spill] sm:$0xff] }
 0xb75   :  { %v6618_v29 = vpop.eup %6617 }
 0xb76   :  { %v3788_v40 = vadd.f32 1.0, %v6618_v29  ;;  %6623 = vrcp.f32 %v3787_v47 }
 0xb78   :  { %6625 = vrcp.f32 %v3788_v40 }
 0xb7f   :  { %v6620_v59 = vpop.eup %6619 }
 0xb81   :  { %v6622_v4 = vpop.eup %6621 }
 0xb83   :  { %v6624_v56 = vpop.eup %6623 }
 0xb84   :  { %v3805_v29 = vsub.f32 1.0, %v6624_v56  ;;  %v3809_v47 = vmul.f32 %v6624_v56, %v10886_v19  ;;  %v14952_v19 = vld [vmem:[#allocation132_spill] sm:$0xff]  ;;  %v11409_v56 = vld [vmem:[#allocation17 + $0x180] sm:$0xff] }
 0xb85   :  { %v6626_v53 = vpop.eup %6625 }
 0xb9d   :  { %v3764_v28 = vpop.f32.mrf.mxu1 }
 0xb9e   :  { %v3797_v51 = vadd.f32 %v3764_v28, %v11243_v34  ;;  %v3806_v28 = vsub.f32 1.0, %v6626_v53 }
 0xb9f   :  { %v3766_v21 = vpop.f32.mrf.mxu1 }
 0xba0   :  { %v3799_v30 = vmul.f32 %v6620_v59, %v3797_v51  ;;  %v3798_v5 = vadd.f32 %v3766_v21, %v11246_v52  ;;  %v3810_v21 = vmul.f32 %v6626_v53, %v10882_v3  ;;  %v14951_v3 = vld [vmem:[#allocation131_spill] sm:$0xff]  ;;  %v11411_v53 = vld [vmem:[#allocation17 + $0x190] sm:$0xff] }
 0xba1   :  { %14985 = vst [vmem:[#allocation150_spill] sm:$0xff] %v11411_v53 }
 0xba2   :  { %v3801_v18 = vadd.f32 %v3799_v30, %v14949_v13  ;;  %v3800_v2 = vmul.f32 %v6622_v4, %v3798_v5  ;;  %v11391_v4 = vld [vmem:[#allocation17 + $0x1b8] sm:$0xff]  ;;  %v11403_v5 = vld [vmem:[#allocation17 + $0x188] sm:$0xff] }
 0xba4   :  { %6627 = vtanh.f32 %v3801_v18  ;;  %v3802_v11 = vadd.f32 %v3800_v2, %v14950_v25  ;;  %v11397_v2 = vld [vmem:[#allocation17 + $0x1b0] sm:$0xff]  ;;  %v11405_v18 = vld [vmem:[#allocation17 + $0x198] sm:$0xff] }
 0xba5   :  { %14984 = vst [vmem:[#allocation149_spill] sm:$0xff] %v11405_v18 }
 0xba6   :  { %6629 = vtanh.f32 %v3802_v11  ;;  %v11393_v11 = vld [vmem:[#allocation17 + $0x1c8] sm:$0xff] }
 0xba7   :  { %14982 = vst [vmem:[#allocation147_spill] sm:$0xff] %v11393_v11 }
 0xbb1   :  { %v6628_v42 = vpop.eup %6627 }
 0xbb2   :  { %v3807_v34 = vmul.f32 %v6628_v42, %v3805_v29  ;;  %v11387_v42 = vld [vmem:[#allocation17 + $0x1f0] sm:$0xff]  ;;  %v11415_v29 = vld [vmem:[#allocation17 + $0x158] sm:$0xff] }
 0xbb3   :  { %v6630_v51 = vpop.eup %6629  ;;  %14981 = vst [vmem:[#allocation146_spill] sm:$0xff] %v11387_v42 }
 0xbb4   :  { %v3808_v59 = vmul.f32 %v6630_v51, %v3806_v28  ;;  %v11254_v40 = vadd.f32 %v3809_v47, %v3807_v34  ;;  %v11399_v34 = vld [vmem:[#allocation17 + $0x1c0] sm:$0xff]  ;;  %v11417_v28 = vld [vmem:[#allocation17 + $0x168] sm:$0xff]  ;;  %v11421_v47 = vld [vmem:[#allocation17 + $0x150] sm:$0xff] }
 0xbb5   :  { %14983 = vst [vmem:[#allocation148_spill] sm:$0xff] %v11399_v34  ;;  %14986 = vst [vmem:[#allocation151_spill] sm:$0xff] %v11417_v28  ;;  %v11423_v51 = vld [vmem:[#allocation17 + $0x160] sm:$0xff] }
 0xbb6   :  { %v11256_v30 = vadd.f32 %v3810_v21, %v3808_v59  ;;  %3813 = vst [vmem:[#allocation2 + $0x10] sm:$0x3] %v11254_v40  ;;  %14987 = vst [vmem:[#allocation152_spill] sm:$0xff] %v11423_v51  ;;  %v11427_v59 = vld [vmem:[#allocation17 + $0x128] sm:$0xff]  ;;  %v11429_v21 = vld [vmem:[#allocation17 + $0x138] sm:$0xff] }
 0xbb7   :  { %14988 = vst [vmem:[#allocation153_spill] sm:$0xff] %v11429_v21 }
 0xbb8   :  { %3814 = vst [vmem:[#allocation2] sm:$0x3] %v11256_v30  ;;  %4071 = vmatprep.mubr.f32.mxu0 %v11256_v30  ;;  %4142 = vmatprep.mubr.f32.mxu1 %v11256_v30 }
 0xbb9   :  { %4072 = vmatmul.mubr.f32.vlgmr.msra.gmra.mxu0 %v11254_v40  ;;  %4143 = vmatmul.mubr.f32.vlgmr.msra.gmra.mxu1 %v11254_v40 }
 0xbba   :  { %4150 = vmatpush1.msra.mxu0 %v10884_v61  ;;  %4213 = vmatprep.mubr.f32.mxu0 %v11256_v30  ;;  %v14953_v61 = vld [vmem:[#allocation133_spill] sm:$0xff] }
 0xbbb   :  { %4151 = vmatprep.subr.mxu0 %v10890_v1  ;;  %v14954_v1 = vld [vmem:[#allocation134_spill] sm:$0xff] }
 0xbbc   :  { %4152 = vmatpush1.msra.mxu0 %v10894_v43  ;;  %v14955_v43 = vld [vmem:[#allocation135_spill] sm:$0xff] }
 0xbbd   :  { %4153 = vmatprep.subr.mxu0 %v10898_v10  ;;  %v14956_v10 = vld [vmem:[#allocation136_spill] sm:$0xff] }
 0xbbe   :  { %4154 = vmatpush1.msra.mxu0 %v10901_v48  ;;  %v14957_v48 = vld [vmem:[#allocation137_spill] sm:$0xff] }
 0xbbf   :  { %4155 = vmatprep.subr.mxu0 %v10905_v54  ;;  %v14958_v54 = vld [vmem:[#allocation138_spill] sm:$0xff] }
 0xbc0   :  { %4156 = vmatpush1.msra.mxu0 %v10909_v44  ;;  %v14959_v44 = vld [vmem:[#allocation139_spill] sm:$0xff] }
 0xbc1   :  { %4157 = vmatprep.subr.mxu0 %v10913_v0  ;;  %v14960_v0 = vld [vmem:[#allocation140_spill] sm:$0xff] }
 0xbc2   :  { %4158 = vmatpush1.msra.mxu0 %v10917_v49  ;;  %v14961_v49 = vld [vmem:[#allocation141_spill] sm:$0xff] }
 0xbc3   :  { %4159 = vmatprep.subr.mxu0 %v10921_v36  ;;  %v14962_v36 = vld [vmem:[#allocation142_spill] sm:$0xff] }
 0xbc4   :  { %4160 = vmatpush1.msra.mxu0 %v10925_v22  ;;  %v14963_v22 = vld [vmem:[#allocation143_spill] sm:$0xff] }
 0xbc5   :  { %4161 = vmatprep.subr.mxu0 %v10929_v9  ;;  %v14964_v9 = vld [vmem:[#allocation144_spill] sm:$0xff] }
 0xbc6   :  { %4162 = vmatpush1.msra.mxu0 %v10933_v46  ;;  %v14965_v46 = vld [vmem:[#allocation58_spill] sm:$0xff] }
 0xbc7   :  { %4163 = vmatprep.subr.mxu0 %v10937_v6  ;;  %v14966_v6 = vld [vmem:[#allocation53_spill] sm:$0xff] }
 0xbc8   :  { %4164 = vmatpush1.msra.mxu0 %v10941_v7  ;;  %v14967_v7 = vld [vmem:[#allocation60_spill] sm:$0xff] }
 0xbc9   :  { %4165 = vmatprep.subr.mxu0 %v10945_v14  ;;  %v14968_v14 = vld [vmem:[#allocation55_spill] sm:$0xff] }
 0xbca   :  { %4166 = vmatpush1.msra.mxu0 %v10949_v15  ;;  %v14969_v15 = vld [vmem:[#allocation62_spill] sm:$0xff] }
 0xbcb   :  { %4167 = vmatprep.subr.mxu0 %v10953_v58  ;;  %v14970_v58 = vld [vmem:[#allocation57_spill] sm:$0xff] }
 0xbcc   :  { %4168 = vmatpush1.msra.mxu0 %v10957_v35  ;;  %v14971_v35 = vld [vmem:[#allocation64_spill] sm:$0xff] }
 0xbcd   :  { %4169 = vmatprep.subr.mxu0 %v10961_v32  ;;  %v11329_v32 = vld [vmem:[#allocation17 + $0x2d8] sm:$0xff] }
 0xbce   :  { %4170 = vmatpush1.msra.mxu0 %v10965_v57  ;;  %v11331_v57 = vld [vmem:[#allocation17 + $0x2d0] sm:$0xff]  ;;  %4488 = vmatprep.subr.mxu1 %v11329_v32 }
 0xbcf   :  { %4171 = vmatprep.subr.mxu0 %v10969_v26  ;;  %v4383_v26 = vld [vmem:[#allocation17 + $0x2e8] sm:$0xff]  ;;  %4489 = vmatpush1.msra.mxu1 %v11331_v57 }
 0xbd0   :  { %4172 = vmatpush1.msra.mxu0 %v10973_v20  ;;  %v11334_v20 = vld [vmem:[#allocation17 + $0x2a8] sm:$0xff] }
 0xbd1   :  { %4173 = vmatprep.subr.mxu0 %v10977_v62  ;;  %v4382_v62 = vld [vmem:[#allocation17 + $0x2e0] sm:$0xff]  ;;  %4490 = vmatprep.subr.mxu1 %v11334_v20 }
 0xbd2   :  { %4174 = vmatpush1.msra.mxu0 %v10981_v16  ;;  %v11336_v16 = vld [vmem:[#allocation17 + $0x2a0] sm:$0xff] }
 0xbd3   :  { %4175 = vmatprep.subr.mxu0 %v10985_v37  ;;  %v11339_v37 = vld [vmem:[#allocation17 + $0x2b8] sm:$0xff]  ;;  %4491 = vmatpush1.msra.mxu1 %v11336_v16 }
 0xbd4   :  { %4176 = vmatpush1.msra.mxu0 %v10989_v45  ;;  %14972 = vst [vmem:[#allocation72_spill] sm:$0xff] %v11339_v37  ;;  %v11341_v45 = vld [vmem:[#allocation17 + $0x278] sm:$0xff] }
 0xbd5   :  { %4177 = vmatprep.subr.mxu0 %v10993_v17  ;;  %v11343_v17 = vld [vmem:[#allocation17 + $0x2b0] sm:$0xff]  ;;  %4492 = vmatprep.subr.mxu1 %v11341_v45 }
 0xbd6   :  { %4178 = vmatpush1.msra.mxu0 %v10997_v41  ;;  %14973 = vst [vmem:[#allocation67_spill] sm:$0xff] %v11343_v17  ;;  %v11347_v41 = vld [vmem:[#allocation17 + $0x270] sm:$0xff] }
 0xbd7   :  { %4179 = vmatprep.subr.mxu0 %v11001_v12  ;;  %v11349_v12 = vld [vmem:[#allocation17 + $0x288] sm:$0xff]  ;;  %4493 = vmatpush1.msra.mxu1 %v11347_v41 }
 0xbd8   :  { %4180 = vmatpush1.msra.mxu0 %v11005_v39  ;;  %14974 = vst [vmem:[#allocation73_spill] sm:$0xff] %v11349_v12  ;;  %v11353_v39 = vld [vmem:[#allocation17 + $0x248] sm:$0xff] }
 0xbd9   :  { %4181 = vmatprep.subr.mxu0 %v11009_v38  ;;  %v11355_v38 = vld [vmem:[#allocation17 + $0x280] sm:$0xff]  ;;  %4494 = vmatprep.subr.mxu1 %v11353_v39 }
 0xbda   :  { %4182 = vmatpush2.msra.mxu0 %v11013_v50  ;;  %14975 = vst [vmem:[#allocation69_spill] sm:$0xff] %v11355_v38  ;;  %v11357_v50 = vld [vmem:[#allocation17 + $0x258] sm:$0xff] }
 0xbdb   :  { %4183 = vmatprep.subr.mxu0 %v11017_v23  ;;  %14976 = vst [vmem:[#allocation75_spill] sm:$0xff] %v11357_v50  ;;  %v11361_v23 = vld [vmem:[#allocation17 + $0x240] sm:$0xff] }
 0xbdc   :  { %4184 = vmatpush2.msra.mxu0 %v11021_v63  ;;  %v11363_v63 = vld [vmem:[#allocation17 + $0x250] sm:$0xff]  ;;  %4495 = vmatpush1.msra.mxu1 %v11361_v23 }
 0xbdd   :  { %4185 = vmatprep.subr.mxu0 %v11025_v55  ;;  %14977 = vst [vmem:[#allocation71_spill] sm:$0xff] %v11363_v63  ;;  %v11367_v55 = vld [vmem:[#allocation17 + $0x218] sm:$0xff] }
 0xbde   :  { %4186 = vmatpush2.msra.mxu0 %v14951_v3  ;;  %4496 = vmatprep.subr.mxu1 %v11367_v55  ;;  %v11433_v3 = vld [vmem:[#allocation17 + $0x120] sm:$0xff] }
 0xbdf   :  { %4187 = vmatprep.subr.mxu0 %v14952_v19  ;;  %v11435_v19 = vld [vmem:[#allocation17 + $0x130] sm:$0xff] }
 0xbe0   :  { %4188 = vmatpush2.msra.mxu0 %v14953_v61  ;;  %14989 = vst [vmem:[#allocation154_spill] sm:$0xff] %v11435_v19  ;;  %v11439_v61 = vld [vmem:[#allocation17 + $0xf8] sm:$0xff] }
 0xbe1   :  { %4189 = vmatprep.subr.mxu0 %v14954_v1  ;;  %v11441_v1 = vld [vmem:[#allocation17 + $0x108] sm:$0xff] }
 0xbe2   :  { %4190 = vmatpush2.msra.mxu0 %v14955_v43  ;;  %14990 = vst [vmem:[#allocation155_spill] sm:$0xff] %v11441_v1  ;;  %v11445_v43 = vld [vmem:[#allocation17 + $0xf0] sm:$0xff] }
 0xbe3   :  { %4191 = vmatprep.subr.mxu0 %v14956_v10  ;;  %v11447_v10 = vld [vmem:[#allocation17 + $0x100] sm:$0xff] }
 0xbe4   :  { %4192 = vmatpush2.msra.mxu0 %v11053_v31  ;;  %v11369_v31 = vld [vmem:[#allocation17 + $0x228] sm:$0xff]  ;;  %14991 = vst [vmem:[#allocation156_spill] sm:$0xff] %v11447_v10 }
 0xbe5   :  { %4193 = vmatprep.subr.mxu0 %v11057_v24  ;;  %14978 = vst [vmem:[#allocation77_spill] sm:$0xff] %v11369_v31  ;;  %v11373_v24 = vld [vmem:[#allocation17 + $0x210] sm:$0xff] }
 0xbe6   :  { %4194 = vmatpush2.msra.mxu0 %v11061_v33  ;;  %v11375_v33 = vld [vmem:[#allocation17 + $0x220] sm:$0xff]  ;;  %4497 = vmatpush1.msra.mxu1 %v11373_v24 }
 0xbe7   :  { %4195 = vmatprep.subr.mxu0 %v11065_v27  ;;  %14979 = vst [vmem:[#allocation74_spill] sm:$0xff] %v11375_v33  ;;  %v11379_v27 = vld [vmem:[#allocation17 + $0x1e8] sm:$0xff] }
 0xbe8   :  { %4196 = vmatpush2.msra.mxu0 %v11069_v60  ;;  %v11381_v60 = vld [vmem:[#allocation17 + $0x1f8] sm:$0xff]  ;;  %4498 = vmatprep.subr.mxu1 %v11379_v27 }
 0xbe9   :  { %4197 = vmatprep.subr.mxu0 %v11073_v8  ;;  %14980 = vst [vmem:[#allocation79_spill] sm:$0xff] %v11381_v60  ;;  %v11385_v8 = vld [vmem:[#allocation17 + $0x1e0] sm:$0xff] }
 0xbea   :  { %4198 = vmatpush2.msra.mxu0 %v14957_v48  ;;  %4499 = vmatpush1.msra.mxu1 %v11385_v8  ;;  %v11451_v48 = vld [vmem:[#allocation17 + $0xc8] sm:$0xff] }
 0xbeb   :  { %4199 = vmatprep.subr.mxu0 %v14958_v54  ;;  %4500 = vmatprep.subr.mxu1 %v11391_v4  ;;  %v11453_v54 = vld [vmem:[#allocation17 + $0xd8] sm:$0xff] }
 0xbec   :  { %4200 = vmatpush2.msra.mxu0 %v14959_v44  ;;  %4501 = vmatpush1.msra.mxu1 %v11397_v2  ;;  %14992 = vst [vmem:[#allocation157_spill] sm:$0xff] %v11453_v54  ;;  %v11457_v44 = vld [vmem:[#allocation17 + $0xc0] sm:$0xff] }
 0xbed   :  { %4201 = vmatprep.subr.mxu0 %v14960_v0  ;;  %4502 = vmatprep.subr.mxu1 %v11403_v5  ;;  %v11459_v0 = vld [vmem:[#allocation17 + $0xd0] sm:$0xff] }
 0xbee   :  { %4202 = vmatpush2.msra.mxu0 %v14961_v49  ;;  %4503 = vmatpush1.msra.mxu1 %v11409_v56  ;;  %14993 = vst [vmem:[#allocation158_spill] sm:$0xff] %v11459_v0  ;;  %v11463_v49 = vld [vmem:[#allocation17 + $0x98] sm:$0xff] }
 0xbef   :  { %4203 = vmatprep.subr.mxu0 %v14962_v36  ;;  %4504 = vmatprep.subr.mxu1 %v11415_v29  ;;  %v11465_v36 = vld [vmem:[#allocation17 + $0xa8] sm:$0xff] }
 0xbf0   :  { %4204 = vmatpush2.msra.mxu0 %v14963_v22  ;;  %4505 = vmatpush1.msra.mxu1 %v11421_v47  ;;  %14994 = vst [vmem:[#allocation159_spill] sm:$0xff] %v11465_v36  ;;  %v11469_v22 = vld [vmem:[#allocation17 + $0x90] sm:$0xff] }
 0xbf1   :  { %4205 = vmatprep.subr.mxu0 %v14964_v9  ;;  %4506 = vmatprep.subr.mxu1 %v11427_v59  ;;  %v11471_v9 = vld [vmem:[#allocation17 + $0xa0] sm:$0xff] }
 0xbf2   :  { %4206 = vmatpush2.msra.mxu0 %v14965_v46  ;;  %4507 = vmatpush1.msra.mxu1 %v11433_v3  ;;  %14995 = vst [vmem:[#allocation203_spill] sm:$0xff] %v11471_v9  ;;  %v11475_v46 = vld [vmem:[#allocation17 + $0x68] sm:$0xff] }
 0xbf3   :  { %4207 = vmatprep.subr.mxu0 %v14966_v6  ;;  %4508 = vmatprep.subr.mxu1 %v11439_v61  ;;  %v11477_v6 = vld [vmem:[#allocation17 + $0x78] sm:$0xff] }
 0xbf4   :  { %4208 = vmatpush2.msra.mxu0 %v14967_v7  ;;  %4509 = vmatpush1.msra.mxu1 %v11445_v43  ;;  %14996 = vst [vmem:[#allocation34_spill] sm:$0xff] %v11477_v6  ;;  %v11481_v7 = vld [vmem:[#allocation17 + $0x60] sm:$0xff] }
 0xbf5   :  { %4209 = vmatprep.subr.mxu0 %v14968_v14  ;;  %4510 = vmatprep.subr.mxu1 %v11451_v48  ;;  %v11483_v14 = vld [vmem:[#allocation17 + $0x70] sm:$0xff] }
 0xbf6   :  { %4210 = vmatpush2.msra.mxu0 %v14969_v15  ;;  %4511 = vmatpush1.msra.mxu1 %v11457_v44  ;;  %14997 = vst [vmem:[#allocation31_spill] sm:$0xff] %v11483_v14  ;;  %v11487_v15 = vld [vmem:[#allocation17 + $0x38] sm:$0xff] }
 0xbf7   :  { %4211 = vmatprep.subr.mxu0 %v14970_v58  ;;  %4512 = vmatprep.subr.mxu1 %v11463_v49  ;;  %v11489_v58 = vld [vmem:[#allocation17 + $0x48] sm:$0xff] }
 0xbf8   :  { %4212 = vmatpush2.msra.mxu0 %v14971_v35  ;;  %4513 = vmatpush1.msra.mxu1 %v11469_v22  ;;  %14998 = vst [vmem:[#allocation56_spill] sm:$0xff] %v11489_v58  ;;  %v11493_v35 = vld [vmem:[#allocation17 + $0x30] sm:$0xff] }
 0xbf9   :  { %4214 = vmatmul.mubr.f32.vlgmr.msra.gmra.mxu0 %v11254_v40  ;;  %4559 = vmatprep.subr.mxu0 %v4383_v26  ;;  %v11495_v26 = vld [vmem:[#allocation17 + $0x40] sm:$0xff] }
 0xbfa   :  { %4560 = vmatpush1.msra.mxu0 %v4382_v62  ;;  %4514 = vmatprep.subr.mxu1 %v11475_v46  ;;  %14999 = vst [vmem:[#allocation179_spill] sm:$0xff] %v11495_v26  ;;  %v11499_v62 = vld [vmem:[#allocation17 + $0x8] sm:$0xff] }
 0xbfb   :  { %4561 = vmatprep.subr.mxu0 %v11339_v37  ;;  %4515 = vmatpush1.msra.mxu1 %v11481_v7  ;;  %v11634_v37 = vld [vmem:[#allocation17 + $0x3f0] sm:$0xff] }
 0xbfc   :  { %4562 = vmatpush1.msra.mxu0 %v11343_v17  ;;  %4516 = vmatprep.subr.mxu1 %v11487_v15  ;;  %v11628_v17 = vld [vmem:[#allocation17 + $0x3f8] sm:$0xff]  ;;  %15035 = vst [vmem:[#allocation110_spill] sm:$0xff] %v11634_v37 }
 0xbfd   :  { %4563 = vmatprep.subr.mxu0 %v11349_v12  ;;  %4517 = vmatpush1.msra.mxu1 %v11493_v35  ;;  %v11624_v12 = vld [vmem:[#allocation17 + $0x438] sm:$0xff]  ;;  %15033 = vst [vmem:[#allocation160_spill] sm:$0xff] %v11628_v17 }
 0xbfe   :  { %4564 = vmatpush1.msra.mxu0 %v11355_v38  ;;  %4518 = vmatprep.subr.mxu1 %v11499_v62  ;;  %v11618_v38 = vld [vmem:[#allocation17 + $0x460] sm:$0xff]  ;;  %15032 = vst [vmem:[#allocation49_spill] sm:$0xff] %v11624_v12 }
 0xbff   :  { %4565 = vmatprep.subr.mxu0 %v11357_v50  ;;  %v11616_v50 = vld [vmem:[#allocation17 + $0x428] sm:$0xff]  ;;  %15030 = vst [vmem:[#allocation81_spill] sm:$0xff] %v11618_v38 }
 0xc00   :  { %4566 = vmatpush1.msra.mxu0 %v11363_v63  ;;  %v11610_v63 = vld [vmem:[#allocation17 + $0x450] sm:$0xff]  ;;  %15029 = vst [vmem:[#allocation33_spill] sm:$0xff] %v11616_v50 }
 0xc01   :  { %4567 = vmatprep.subr.mxu0 %v11369_v31  ;;  %v11608_v31 = vld [vmem:[#allocation17 + $0x490] sm:$0xff]  ;;  %15027 = vst [vmem:[#allocation29_spill] sm:$0xff] %v11610_v63 }
 0xc02   :  { %4568 = vmatpush1.msra.mxu0 %v11375_v33  ;;  %v11602_v33 = vld [vmem:[#allocation17 + $0x498] sm:$0xff]  ;;  %15026 = vst [vmem:[#allocation32_spill] sm:$0xff] %v11608_v31 }
 0xc03   :  { %4569 = vmatprep.subr.mxu0 %v11381_v60  ;;  %v11598_v60 = vld [vmem:[#allocation17 + $0x4c0] sm:$0xff]  ;;  %15024 = vst [vmem:[#allocation36_spill] sm:$0xff] %v11602_v33 }
 0xc04   :  { %4570 = vmatpush1.msra.mxu0 %v11387_v42  ;;  %v11592_v42 = vld [vmem:[#allocation17 + $0x4c8] sm:$0xff]  ;;  %15022 = vst [vmem:[#allocation202_spill] sm:$0xff] %v11598_v60 }
 0xc05   :  { %4571 = vmatprep.subr.mxu0 %v11393_v11  ;;  %v11586_v11 = vld [vmem:[#allocation17 + $0x4f0] sm:$0xff]  ;;  %15020 = vst [vmem:[#allocation200_spill] sm:$0xff] %v11592_v42 }
 0xc06   :  { %4572 = vmatpush1.msra.mxu0 %v11399_v34  ;;  %v11580_v34 = vld [vmem:[#allocation17 + $0x4f8] sm:$0xff]  ;;  %15018 = vst [vmem:[#allocation198_spill] sm:$0xff] %v11586_v11 }
 0xc07   :  { %4573 = vmatprep.subr.mxu0 %v11405_v18  ;;  %v11574_v18 = vld [vmem:[#allocation17 + $0x520] sm:$0xff]  ;;  %15016 = vst [vmem:[#allocation196_spill] sm:$0xff] %v11580_v34 }
 0xc08   :  { %4574 = vmatpush1.msra.mxu0 %v11411_v53  ;;  %v11568_v53 = vld [vmem:[#allocation17 + $0x528] sm:$0xff]  ;;  %15014 = vst [vmem:[#allocation194_spill] sm:$0xff] %v11574_v18 }
 0xc09   :  { %4575 = vmatprep.subr.mxu0 %v11417_v28  ;;  %v11562_v28 = vld [vmem:[#allocation17 + $0x550] sm:$0xff]  ;;  %15012 = vst [vmem:[#allocation192_spill] sm:$0xff] %v11568_v53 }
 0xc0a   :  { %4576 = vmatpush1.msra.mxu0 %v11423_v51  ;;  %v11556_v51 = vld [vmem:[#allocation17 + $0x558] sm:$0xff]  ;;  %15010 = vst [vmem:[#allocation190_spill] sm:$0xff] %v11562_v28 }
 0xc0b   :  { %4577 = vmatprep.subr.mxu0 %v11429_v21  ;;  %v11550_v21 = vld [vmem:[#allocation17 + $0x580] sm:$0xff]  ;;  %15008 = vst [vmem:[#allocation188_spill] sm:$0xff] %v11556_v51 }
 0xc0c   :  { %4578 = vmatpush1.msra.mxu0 %v11435_v19  ;;  %v11544_v19 = vld [vmem:[#allocation17 + $0x588] sm:$0xff]  ;;  %15007 = vst [vmem:[#allocation187_spill] sm:$0xff] %v11550_v21 }
 0xc0d   :  { %4579 = vmatprep.subr.mxu0 %v11441_v1  ;;  %v11538_v1 = vld [vmem:[#allocation17 + $0x5b0] sm:$0xff]  ;;  %15006 = vst [vmem:[#allocation186_spill] sm:$0xff] %v11544_v19 }
 0xc0e   :  { %4580 = vmatpush1.msra.mxu0 %v11447_v10  ;;  %v11536_v10 = vld [vmem:[#allocation17 + $0x578] sm:$0xff]  ;;  %15005 = vst [vmem:[#allocation185_spill] sm:$0xff] %v11538_v1 }
 0xc0f   :  { %4581 = vmatprep.subr.mxu0 %v11453_v54  ;;  %v11526_v54 = vld [vmem:[#allocation17 + $0x5e0] sm:$0xff] }
 0xc10   :  { %4582 = vmatpush1.msra.mxu0 %v11459_v0  ;;  %v11507_v0 = vld [vmem:[#allocation17 + $0x10] sm:$0xff]  ;;  %15003 = vst [vmem:[#allocation183_spill] sm:$0xff] %v11526_v54 }
 0xc11   :  { %4583 = vmatprep.subr.mxu0 %v11465_v36  ;;  %v11501_v36 = vld [vmem:[#allocation17 + $0x18] sm:$0xff]  ;;  %15001 = vst [vmem:[#allocation181_spill] sm:$0xff] %v11507_v0 }
 0xc12   :  { %4584 = vmatpush1.msra.mxu0 %v11471_v9  ;;  %15000 = vst [vmem:[#allocation180_spill] sm:$0xff] %v11501_v36  ;;  %v11505_v9 = vld [vmem:[#allocation17] sm:$0xff] }
 0xc13   :  { %4585 = vmatprep.subr.mxu0 %v11477_v6  ;;  %v11511_v6 = vld [vmem:[#allocation17 + $0x5d8] sm:$0xff]  ;;  %4519 = vmatpush1.msra.mxu1 %v11505_v9 }
 0xc14   :  { %4586 = vmatpush1.msra.mxu0 %v11483_v14  ;;  %4520 = vmatprep.subr.mxu1 %v11511_v6  ;;  %v11520_v14 = vld [vmem:[#allocation17 + $0x5e8] sm:$0xff] }
 0xc15   :  { %4587 = vmatprep.subr.mxu0 %v11489_v58  ;;  %v11518_v58 = vld [vmem:[#allocation17 + $0x5d0] sm:$0xff]  ;;  %15002 = vst [vmem:[#allocation182_spill] sm:$0xff] %v11520_v14 }
 0xc16   :  { %4588 = vmatpush1.msra.mxu0 %v11495_v26  ;;  %4521 = vmatpush2.msra.mxu1 %v11518_v58  ;;  %v11524_v26 = vld [vmem:[#allocation17 + $0x5a8] sm:$0xff] }
 0xc17   :  { %4589 = vmatprep.subr.mxu0 %v11501_v36  ;;  %4522 = vmatprep.subr.mxu1 %v11524_v26  ;;  %v11530_v36 = vld [vmem:[#allocation17 + $0x5a0] sm:$0xff] }
 0xc18   :  { %4590 = vmatpush1.msra.mxu0 %v11507_v0  ;;  %v11532_v0 = vld [vmem:[#allocation17 + $0x5b8] sm:$0xff]  ;;  %4523 = vmatpush2.msra.mxu1 %v11530_v36 }
 0xc19   :  { %4591 = vmatprep.subr.mxu0 %v11520_v14  ;;  %15004 = vst [vmem:[#allocation184_spill] sm:$0xff] %v11532_v0  ;;  %4524 = vmatprep.subr.mxu1 %v11536_v10  ;;  %v11542_v14 = vld [vmem:[#allocation17 + $0x570] sm:$0xff] }
 0xc1a   :  { %4592 = vmatpush2.msra.mxu0 %v11526_v54  ;;  %4525 = vmatpush2.msra.mxu1 %v11542_v14  ;;  %v11548_v54 = vld [vmem:[#allocation17 + $0x548] sm:$0xff] }
 0xc1b   :  { %4593 = vmatprep.subr.mxu0 %v11532_v0  ;;  %4526 = vmatprep.subr.mxu1 %v11548_v54  ;;  %v11554_v0 = vld [vmem:[#allocation17 + $0x540] sm:$0xff] }
 0xc1c   :  { %4594 = vmatpush2.msra.mxu0 %v11538_v1  ;;  %4527 = vmatpush2.msra.mxu1 %v11554_v0  ;;  %v11560_v1 = vld [vmem:[#allocation17 + $0x518] sm:$0xff] }
 0xc1d   :  { %4595 = vmatprep.subr.mxu0 %v11544_v19  ;;  %15009 = vst [vmem:[#allocation189_spill] sm:$0xff] %v11560_v1  ;;  %4528 = vmatprep.subr.mxu1 %v11560_v1  ;;  %v11566_v19 = vld [vmem:[#allocation17 + $0x510] sm:$0xff] }
 0xc1e   :  { %4596 = vmatpush2.msra.mxu0 %v11550_v21  ;;  %15011 = vst [vmem:[#allocation191_spill] sm:$0xff] %v11566_v19  ;;  %4529 = vmatpush2.msra.mxu1 %v11566_v19  ;;  %v11572_v21 = vld [vmem:[#allocation17 + $0x4e8] sm:$0xff] }
 0xc1f   :  { %4597 = vmatprep.subr.mxu0 %v11556_v51  ;;  %15013 = vst [vmem:[#allocation193_spill] sm:$0xff] %v11572_v21  ;;  %4530 = vmatprep.subr.mxu1 %v11572_v21  ;;  %v11578_v51 = vld [vmem:[#allocation17 + $0x4e0] sm:$0xff] }
 0xc20   :  { %4598 = vmatpush2.msra.mxu0 %v11562_v28  ;;  %15015 = vst [vmem:[#allocation195_spill] sm:$0xff] %v11578_v51  ;;  %4531 = vmatpush2.msra.mxu1 %v11578_v51  ;;  %v11584_v28 = vld [vmem:[#allocation17 + $0x4b8] sm:$0xff]  ;;  %v15061_v51 = vld [vmem:[#allocation63_spill] sm:$0xff]  ;;  %v15062_v21 = vld [vmem:[#allocation70_spill] sm:$0xff] }
 0xc21   :  { %4599 = vmatprep.subr.mxu0 %v11568_v53  ;;  %15017 = vst [vmem:[#allocation197_spill] sm:$0xff] %v11584_v28  ;;  %4532 = vmatprep.subr.mxu1 %v11584_v28  ;;  %v11590_v53 = vld [vmem:[#allocation17 + $0x4b0] sm:$0xff] }
 0xc22   :  { %4600 = vmatpush2.msra.mxu0 %v11574_v18  ;;  %15019 = vst [vmem:[#allocation199_spill] sm:$0xff] %v11590_v53  ;;  %v11594_v18 = vld [vmem:[#allocation17 + $0x488] sm:$0xff]  ;;  %4533 = vmatpush2.msra.mxu1 %v11590_v53 }
 0xc23   :  { %4601 = vmatprep.subr.mxu0 %v11580_v34  ;;  %15021 = vst [vmem:[#allocation201_spill] sm:$0xff] %v11594_v18  ;;  %v11600_v34 = vld [vmem:[#allocation17 + $0x480] sm:$0xff]  ;;  %4534 = vmatprep.subr.mxu1 %v11594_v18 }
 0xc24   :  { %4602 = vmatpush2.msra.mxu0 %v11586_v11  ;;  %15023 = vst [vmem:[#allocation30_spill] sm:$0xff] %v11600_v34  ;;  %v11606_v11 = vld [vmem:[#allocation17 + $0x458] sm:$0xff]  ;;  %4535 = vmatpush2.msra.mxu1 %v11600_v34 }
 0xc25   :  { %4603 = vmatprep.subr.mxu0 %v11592_v42  ;;  %15025 = vst [vmem:[#allocation51_spill] sm:$0xff] %v11606_v11  ;;  %v11614_v42 = vld [vmem:[#allocation17 + $0x468] sm:$0xff]  ;;  %4536 = vmatprep.subr.mxu1 %v11606_v11 }
 0xc26   :  { %4604 = vmatpush2.msra.mxu0 %v11598_v60  ;;  %15028 = vst [vmem:[#allocation38_spill] sm:$0xff] %v11614_v42  ;;  %v11622_v60 = vld [vmem:[#allocation17 + $0x420] sm:$0xff]  ;;  %4537 = vmatpush2.msra.mxu1 %v11610_v63  ;;  %v11636_v11 = vld [vmem:[#allocation17 + $0x408] sm:$0xff] }
 0xc27   :  { %4605 = vmatprep.subr.mxu0 %v11602_v33  ;;  %15031 = vst [vmem:[#allocation54_spill] sm:$0xff] %v11622_v60  ;;  %v11630_v33 = vld [vmem:[#allocation17 + $0x430] sm:$0xff]  ;;  %4538 = vmatprep.subr.mxu1 %v11616_v50  ;;  %15036 = vst [vmem:[#allocation114_spill] sm:$0xff] %v11636_v11  ;;  %v11642_v63 = vld [vmem:[#allocation17 + $0x400] sm:$0xff] }
 0xc28   :  { %4606 = vmatpush2.msra.mxu0 %v11608_v31  ;;  %15034 = vst [vmem:[#allocation161_spill] sm:$0xff] %v11630_v33  ;;  %4539 = vmatpush2.msra.mxu1 %v11622_v60  ;;  %v11640_v31 = vld [vmem:[#allocation17 + $0x3c8] sm:$0xff]  ;;  %15038 = vst [vmem:[#allocation121_spill] sm:$0xff] %v11642_v63  ;;  %v11648_v50 = vld [vmem:[#allocation17 + $0x3d8] sm:$0xff] }
 0xc29   :  { %4607 = vmatprep.subr.mxu0 %v11614_v42  ;;  %15037 = vst [vmem:[#allocation117_spill] sm:$0xff] %v11640_v31  ;;  %4540 = vmatprep.subr.mxu1 %v11628_v17  ;;  %v11646_v42 = vld [vmem:[#allocation17 + $0x3c0] sm:$0xff]  ;;  %15040 = vst [vmem:[#allocation162_spill] sm:$0xff] %v11648_v50  ;;  %v11654_v60 = vld [vmem:[#allocation17 + $0x3d0] sm:$0xff] }
 0xc2a   :  { %4608 = vmatpush2.msra.mxu0 %v11618_v38  ;;  %15039 = vst [vmem:[#allocation124_spill] sm:$0xff] %v11646_v42  ;;  %4541 = vmatpush2.msra.mxu1 %v11634_v37  ;;  %v11652_v38 = vld [vmem:[#allocation17 + $0x398] sm:$0xff]  ;;  %15042 = vst [vmem:[#allocation163_spill] sm:$0xff] %v11654_v60  ;;  %v11660_v17 = vld [vmem:[#allocation17 + $0x3a8] sm:$0xff] }
 0xc2b   :  { %4609 = vmatprep.subr.mxu0 %v11624_v12  ;;  %15041 = vst [vmem:[#allocation127_spill] sm:$0xff] %v11652_v38  ;;  %4542 = vmatprep.subr.mxu1 %v11640_v31  ;;  %v11658_v12 = vld [vmem:[#allocation17 + $0x390] sm:$0xff]  ;;  %15044 = vst [vmem:[#allocation165_spill] sm:$0xff] %v11660_v17  ;;  %v11666_v37 = vld [vmem:[#allocation17 + $0x3a0] sm:$0xff] }
 0xc2c   :  { %4610 = vmatpush2.msra.mxu0 %v11630_v33  ;;  %15043 = vst [vmem:[#allocation164_spill] sm:$0xff] %v11658_v12  ;;  %4543 = vmatpush2.msra.mxu1 %v11646_v42  ;;  %v11664_v33 = vld [vmem:[#allocation17 + $0x368] sm:$0xff]  ;;  %15046 = vst [vmem:[#allocation166_spill] sm:$0xff] %v11666_v37  ;;  %v11672_v31 = vld [vmem:[#allocation17 + $0x378] sm:$0xff] }
 0xc2d   :  { %4611 = vmatprep.subr.mxu0 %v11636_v11  ;;  %15045 = vst [vmem:[#allocation83_spill] sm:$0xff] %v11664_v33  ;;  %4544 = vmatprep.subr.mxu1 %v11652_v38  ;;  %v11670_v11 = vld [vmem:[#allocation17 + $0x360] sm:$0xff]  ;;  %15048 = vst [vmem:[#allocation167_spill] sm:$0xff] %v11672_v31  ;;  %v11678_v42 = vld [vmem:[#allocation17 + $0x370] sm:$0xff] }
 0xc2e   :  { %4612 = vmatpush2.msra.mxu0 %v11642_v63  ;;  %15047 = vst [vmem:[#allocation85_spill] sm:$0xff] %v11670_v11  ;;  %4545 = vmatpush2.msra.mxu1 %v11658_v12  ;;  %v11676_v63 = vld [vmem:[#allocation17 + $0x338] sm:$0xff]  ;;  %15050 = vst [vmem:[#allocation168_spill] sm:$0xff] %v11678_v42  ;;  %v11684_v38 = vld [vmem:[#allocation17 + $0x348] sm:$0xff] }
 0xc2f   :  { %4613 = vmatprep.subr.mxu0 %v11648_v50  ;;  %15049 = vst [vmem:[#allocation87_spill] sm:$0xff] %v11676_v63  ;;  %4546 = vmatprep.subr.mxu1 %v11664_v33  ;;  %v11682_v50 = vld [vmem:[#allocation17 + $0x330] sm:$0xff]  ;;  %15052 = vst [vmem:[#allocation169_spill] sm:$0xff] %v11684_v38  ;;  %v11690_v12 = vld [vmem:[#allocation17 + $0x340] sm:$0xff] }
 0xc30   :  { %4614 = vmatpush2.msra.mxu0 %v11654_v60  ;;  %15051 = vst [vmem:[#allocation89_spill] sm:$0xff] %v11682_v50  ;;  %4547 = vmatpush2.msra.mxu1 %v11670_v11  ;;  %v11688_v60 = vld [vmem:[#allocation17 + $0x308] sm:$0xff]  ;;  %15054 = vst [vmem:[#allocation170_spill] sm:$0xff] %v11690_v12  ;;  %v11696_v33 = vld [vmem:[#allocation17 + $0x318] sm:$0xff] }
 0xc31   :  { %4615 = vmatprep.subr.mxu0 %v11660_v17  ;;  %15053 = vst [vmem:[#allocation91_spill] sm:$0xff] %v11688_v60  ;;  %4548 = vmatprep.subr.mxu1 %v11676_v63  ;;  %v11694_v17 = vld [vmem:[#allocation17 + $0x300] sm:$0xff]  ;;  %15056 = vst [vmem:[#allocation171_spill] sm:$0xff] %v11696_v33  ;;  %v15059_v63 = vld [vmem:[#allocation59_spill] sm:$0xff] }
 0xc32   :  { %4616 = vmatpush2.msra.mxu0 %v11666_v37  ;;  %15055 = vst [vmem:[#allocation93_spill] sm:$0xff] %v11694_v17  ;;  %4549 = vmatpush2.msra.mxu1 %v11682_v50  ;;  %v11706_v37 = vld [vmem:[#allocation17 + $0x2f8] sm:$0xff]  ;;  %v15060_v11 = vld [vmem:[#allocation66_spill] sm:$0xff] }
 0xc33   :  { %4617 = vmatprep.subr.mxu0 %v11672_v31  ;;  %4550 = vmatprep.subr.mxu1 %v11688_v60  ;;  %v11704_v31 = vld [vmem:[#allocation17 + $0x310] sm:$0xff]  ;;  %15058 = vst [vmem:[#allocation172_spill] sm:$0xff] %v11706_v37 }
 0xc34   :  { %4618 = vmatpush2.msra.mxu0 %v11678_v42  ;;  %4551 = vmatpush2.msra.mxu1 %v11694_v17  ;;  %15057 = vst [vmem:[#allocation95_spill] sm:$0xff] %v11704_v31 }
 0xc35   :  { %4619 = vmatprep.subr.mxu0 %v11684_v38  ;;  %4630 = vmatprep.subr.mxu1 %v11706_v37 }
 0xc36   :  { %4620 = vmatpush2.msra.mxu0 %v11690_v12 }
 0xc37   :  { %4621 = vmatprep.subr.mxu0 %v11696_v33 }
 0xc38   :  { %4622 = vmatpush2.msra.mxu0 %v11704_v31 }
 0xc39   :  { %4967 = vmatprep.subr.mxu0 %v11329_v32 }
 0xc79   :  { %v4073_v42 = vpop.f32.mrf.mxu0  ;;  %v4144_v33 = vpop.f32.mrf.mxu1 }
 0xc7a   :  { %v4224_v50 = vrot.slane %v4073_v42, 6  ;;  %v4226_v28 = vrot.slane %v4144_v33, 6 }
 0xc7b   :  { %v4075_v38 = vpop.f32.mrf.mxu0  ;;  %v4146_v53 = vpop.f32.mrf.mxu1 }
 0xc7c   :  { %v4225_v60 = vrot.slane %v4075_v38, 6  ;;  %v4232_v12 = vadd.f32 %v4224_v50, %v15059_v63  ;;  %v4227_v31 = vrot.slane %v4146_v53, 6  ;;  %v4234_v37 = vadd.f32 %v4226_v28, %v15061_v51 }
 0xc7e   :  { %v4233_v17 = vadd.f32 %v4225_v60, %v15060_v11  ;;  %v6370_v34 = vmul.f32 -1.442695, %v4232_v12  ;;  %v4235_v32 = vadd.f32 %v4227_v31, %v15062_v21  ;;  %v6372_v19 = vmul.f32 -1.442695, %v4234_v37 }
 0xc80   :  { %v6371_v18 = vmul.f32 -1.442695, %v4233_v17  ;;  %6631 = vpow2.f32 %v6370_v34  ;;  %v6373_v1 = vmul.f32 -1.442695, %v4235_v32 }
 0xc82   :  { %6633 = vpow2.f32 %v6371_v18  ;;  %v15063_v18 = vld [vmem:[#allocation145_spill] sm:$0xff] }
 0xc83   :  { %6635 = vpow2.f32 %v6372_v19 }
 0xc84   :  { %6637 = vpow2.f32 %v6373_v1 }
 0xc8d   :  { %v6632_v42 = vpop.eup %6631 }
 0xc8e   :  { %v4248_v50 = vadd.f32 1.0, %v6632_v42 }
 0xc8f   :  { %v6634_v38 = vpop.eup %6633 }
 0xc90   :  { %v4249_v60 = vadd.f32 1.0, %v6634_v38  ;;  %6639 = vrcp.f32 %v4248_v50  ;;  %v6636_v17 = vpop.eup %6635 }
 0xc91   :  { %v6638_v12 = vpop.eup %6637  ;;  %v4250_v33 = vadd.f32 1.0, %v6636_v17 }
 0xc92   :  { %6641 = vrcp.f32 %v4249_v60  ;;  %v4251_v28 = vadd.f32 1.0, %v6638_v12  ;;  %v4280_v12 = vrot.slane %v11254_v40, 6 }
 0xc93   :  { %6643 = vrcp.f32 %v4250_v33  ;;  %v4281_v33 = vrot.slane %v11256_v30, 6  ;;  %v11733_v30 = vld [vmem:[#allocation17 + $0x2c8] sm:$0xff] }
 0xc94   :  { %6645 = vrcp.f32 %v4251_v28 }
 0xc9d   :  { %v6640_v31 = vpop.eup %6639 }
 0xc9f   :  { %v6642_v42 = vpop.eup %6641 }
 0xca0   :  { %v6644_v60 = vpop.eup %6643 }
 0xca1   :  { %v6646_v17 = vpop.eup %6645 }
 0xcb9   :  { %v4215_v34 = vpop.f32.mrf.mxu0 }
 0xcba   :  { %v4260_v53 = vadd.f32 %v4215_v34, %v15063_v18  ;;  %v4274_v34 = vsub.f32 1.0, %v6644_v60 }
 0xcbb   :  { %v4217_v11 = vpop.f32.mrf.mxu0 }
 0xcbc   :  { %v4264_v51 = vrot.slane %v4260_v53, 6  ;;  %v4261_v37 = vadd.f32 %v4217_v11, %v11246_v52  ;;  %v4275_v11 = vsub.f32 1.0, %v6646_v17  ;;  %v4285_v52 = vmul.f32 %v6646_v17, %v4281_v33  ;;  %v11751_v17 = vld [vmem:[#allocation17 + $0x260] sm:$0xff]  ;;  %v15075_v33 = vld [vmem:[#allocation195_spill] sm:$0xff] }
 0xcbe   :  { %v4268_v19 = vmul.f32 %v6640_v31, %v4264_v51  ;;  %v4265_v32 = vrot.slane %v4261_v37, 6  ;;  %v4284_v37 = vmul.f32 %v6644_v60, %v4280_v12  ;;  %v11747_v60 = vld [vmem:[#allocation17 + $0x268] sm:$0xff]  ;;  %v15069_v12 = vld [vmem:[#allocation189_spill] sm:$0xff] }
 0xcc0   :  { %v4270_v1 = vadd.f32 %v4268_v19, %v14949_v13  ;;  %v4269_v38 = vmul.f32 %v6642_v42, %v4265_v32 }
 0xcc2   :  { %6647 = vtanh.f32 %v4270_v1  ;;  %v4271_v50 = vadd.f32 %v4269_v38, %v14950_v25  ;;  %v11731_v1 = vld [vmem:[#allocation17 + $0x2f0] sm:$0xff]  ;;  %v11740_v38 = vld [vmem:[#allocation17 + $0x298] sm:$0xff] }
 0xcc4   :  { %6649 = vtanh.f32 %v4271_v50  ;;  %v11743_v50 = vld [vmem:[#allocation17 + $0x290] sm:$0xff] }
 0xccf   :  { %v6648_v53 = vpop.eup %6647 }
 0xcd0   :  { %v4276_v51 = vmul.f32 %v6648_v53, %v4274_v34  ;;  %v11755_v34 = vld [vmem:[#allocation17 + $0x238] sm:$0xff]  ;;  %v15071_v53 = vld [vmem:[#allocation191_spill] sm:$0xff] }
 0xcd1   :  { %v6650_v31 = vpop.eup %6649 }
 0xcd2   :  { %v4277_v28 = vmul.f32 %v6650_v31, %v4275_v11  ;;  %v11721_v19 = vadd.f32 %v4284_v37, %v4276_v51  ;;  %v15073_v11 = vld [vmem:[#allocation193_spill] sm:$0xff]  ;;  %v11919_v31 = vld [vmem:[#allocation17 + $0x470] sm:$0xff] }
 0xcd3   :  { %v11915_v51 = vld [vmem:[#allocation17 + $0x478] sm:$0xff]  ;;  %15078 = vst [vmem:[#allocation177_spill] sm:$0xff] %v11919_v31 }
 0xcd4   :  { %v11723_v32 = vadd.f32 %v4285_v52, %v4277_v28  ;;  %4288 = vst [vmem:[#allocation2 + $0x10] sm:$0xc] %v11721_v19  ;;  %v11729_v40 = vrot.slane %v11721_v19, 2  ;;  %v11737_v52 = vld [vmem:[#allocation17 + $0x2c0] sm:$0xff]  ;;  %15076 = vst [vmem:[#allocation105_spill] sm:$0xff] %v11915_v51  ;;  %v15077_v37 = vld [vmem:[#allocation197_spill] sm:$0xff] }
 0xcd5   :  { %v15079_v28 = vld [vmem:[#allocation199_spill] sm:$0xff] }
 0xcd6   :  { %4289 = vst [vmem:[#allocation2] sm:$0xc] %v11723_v32  ;;  %v4485_v42 = vrot.slane %v11723_v32, 2 }
 0xcd8   :  { %4552 = vmatprep.mubr.f32.mxu1 %v4485_v42  ;;  %4623 = vmatprep.mubr.f32.mxu0 %v4485_v42 }
 0xcd9   :  { %4553 = vmatmul.mubr.f32.vlgmr.msra.gmra.mxu1 %v11729_v40  ;;  %4624 = vmatmul.mubr.f32.vlgmr.msra.gmra.mxu0 %v11729_v40 }
 0xcda   :  { %4631 = vmatpush1.msra.mxu1 %v11731_v1  ;;  %4694 = vmatprep.mubr.f32.mxu1 %v4485_v42  ;;  %v11923_v42 = vld [vmem:[#allocation17 + $0x448] sm:$0xff] }
 0xcdb   :  { %4632 = vmatprep.subr.mxu1 %v11733_v30  ;;  %4968 = vmatpush1.msra.mxu0 %v11331_v57  ;;  %v11759_v57 = vld [vmem:[#allocation17 + $0x230] sm:$0xff]  ;;  %15080 = vst [vmem:[#allocation107_spill] sm:$0xff] %v11923_v42 }
 0xcdc   :  { %4633 = vmatpush1.msra.mxu1 %v11737_v52  ;;  %4969 = vmatprep.subr.mxu0 %v11334_v20  ;;  %v11763_v20 = vld [vmem:[#allocation17 + $0x208] sm:$0xff] }
 0xcdd   :  { %4634 = vmatprep.subr.mxu1 %v11740_v38  ;;  %4970 = vmatpush1.msra.mxu0 %v11336_v16  ;;  %v11767_v16 = vld [vmem:[#allocation17 + $0x200] sm:$0xff] }
 0xcde   :  { %4635 = vmatpush1.msra.mxu1 %v11743_v50  ;;  %4971 = vmatprep.subr.mxu0 %v11341_v45  ;;  %v11771_v45 = vld [vmem:[#allocation17 + $0x1d8] sm:$0xff] }
 0xcdf   :  { %4636 = vmatprep.subr.mxu1 %v11747_v60  ;;  %4972 = vmatpush1.msra.mxu0 %v11347_v41  ;;  %v11775_v41 = vld [vmem:[#allocation17 + $0x1d0] sm:$0xff] }
 0xce0   :  { %4637 = vmatpush1.msra.mxu1 %v11751_v17  ;;  %4973 = vmatprep.subr.mxu0 %v11353_v39  ;;  %v11779_v39 = vld [vmem:[#allocation17 + $0x1a8] sm:$0xff] }
 0xce1   :  { %4638 = vmatprep.subr.mxu1 %v11755_v34  ;;  %4974 = vmatpush1.msra.mxu0 %v11361_v23  ;;  %v11783_v23 = vld [vmem:[#allocation17 + $0x1a0] sm:$0xff] }
 0xce2   :  { %4639 = vmatpush1.msra.mxu1 %v11759_v57  ;;  %4975 = vmatprep.subr.mxu0 %v11367_v55  ;;  %v11787_v55 = vld [vmem:[#allocation17 + $0x178] sm:$0xff] }
 0xce3   :  { %4640 = vmatprep.subr.mxu1 %v11763_v20  ;;  %4976 = vmatpush1.msra.mxu0 %v11373_v24  ;;  %v11791_v24 = vld [vmem:[#allocation17 + $0x170] sm:$0xff] }
 0xce4   :  { %4641 = vmatpush1.msra.mxu1 %v11767_v16  ;;  %4977 = vmatprep.subr.mxu0 %v11379_v27  ;;  %v11795_v27 = vld [vmem:[#allocation17 + $0x148] sm:$0xff] }
 0xce5   :  { %4642 = vmatprep.subr.mxu1 %v11771_v45  ;;  %4978 = vmatpush1.msra.mxu0 %v11385_v8  ;;  %v11799_v8 = vld [vmem:[#allocation17 + $0x140] sm:$0xff] }
 0xce6   :  { %4643 = vmatpush1.msra.mxu1 %v11775_v41  ;;  %4979 = vmatprep.subr.mxu0 %v11391_v4  ;;  %v11803_v4 = vld [vmem:[#allocation17 + $0x118] sm:$0xff] }
 0xce7   :  { %4644 = vmatprep.subr.mxu1 %v11779_v39  ;;  %4980 = vmatpush1.msra.mxu0 %v11397_v2  ;;  %v11807_v2 = vld [vmem:[#allocation17 + $0x110] sm:$0xff] }
 0xce8   :  { %4645 = vmatpush1.msra.mxu1 %v11783_v23  ;;  %4981 = vmatprep.subr.mxu0 %v11403_v5  ;;  %v11811_v5 = vld [vmem:[#allocation17 + $0xe8] sm:$0xff] }
 0xce9   :  { %4646 = vmatprep.subr.mxu1 %v11787_v55  ;;  %4982 = vmatpush1.msra.mxu0 %v11409_v56  ;;  %v11815_v56 = vld [vmem:[#allocation17 + $0xe0] sm:$0xff] }
 0xcea   :  { %4647 = vmatpush1.msra.mxu1 %v11791_v24  ;;  %4983 = vmatprep.subr.mxu0 %v11415_v29  ;;  %v11819_v29 = vld [vmem:[#allocation17 + $0xb8] sm:$0xff] }
 0xceb   :  { %4648 = vmatprep.subr.mxu1 %v11795_v27  ;;  %4984 = vmatpush1.msra.mxu0 %v11421_v47  ;;  %v11823_v47 = vld [vmem:[#allocation17 + $0xb0] sm:$0xff] }
 0xcec   :  { %4649 = vmatpush1.msra.mxu1 %v11799_v8  ;;  %4985 = vmatprep.subr.mxu0 %v11427_v59  ;;  %v11827_v59 = vld [vmem:[#allocation17 + $0x88] sm:$0xff] }
 0xced   :  { %4650 = vmatprep.subr.mxu1 %v11803_v4  ;;  %4986 = vmatpush1.msra.mxu0 %v11433_v3  ;;  %v11831_v3 = vld [vmem:[#allocation17 + $0x80] sm:$0xff] }
 0xcee   :  { %4651 = vmatpush1.msra.mxu1 %v11807_v2  ;;  %4987 = vmatprep.subr.mxu0 %v11439_v61  ;;  %v11835_v61 = vld [vmem:[#allocation17 + $0x58] sm:$0xff] }
 0xcef   :  { %4652 = vmatprep.subr.mxu1 %v11811_v5  ;;  %4988 = vmatpush1.msra.mxu0 %v11445_v43  ;;  %v11839_v43 = vld [vmem:[#allocation17 + $0x50] sm:$0xff] }
 0xcf0   :  { %4653 = vmatpush1.msra.mxu1 %v11815_v56  ;;  %4989 = vmatprep.subr.mxu0 %v11451_v48  ;;  %v11843_v48 = vld [vmem:[#allocation17 + $0x28] sm:$0xff] }
 0xcf1   :  { %4654 = vmatprep.subr.mxu1 %v11819_v29  ;;  %4990 = vmatpush1.msra.mxu0 %v11457_v44  ;;  %v11847_v44 = vld [vmem:[#allocation17 + $0x20] sm:$0xff] }
 0xcf2   :  { %4655 = vmatpush1.msra.mxu1 %v11823_v47  ;;  %4991 = vmatprep.subr.mxu0 %v11463_v49  ;;  %v11851_v49 = vld [vmem:[#allocation17 + $0x5f8] sm:$0xff] }
 0xcf3   :  { %4656 = vmatprep.subr.mxu1 %v11827_v59  ;;  %4992 = vmatpush1.msra.mxu0 %v11469_v22  ;;  %v11855_v22 = vld [vmem:[#allocation17 + $0x5f0] sm:$0xff] }
 0xcf4   :  { %4657 = vmatpush1.msra.mxu1 %v11831_v3  ;;  %4993 = vmatprep.subr.mxu0 %v11475_v46  ;;  %v11859_v46 = vld [vmem:[#allocation17 + $0x5c8] sm:$0xff] }
 0xcf5   :  { %4658 = vmatprep.subr.mxu1 %v11835_v61  ;;  %4994 = vmatpush1.msra.mxu0 %v11481_v7  ;;  %v11863_v7 = vld [vmem:[#allocation17 + $0x5c0] sm:$0xff] }
 0xcf6   :  { %4659 = vmatpush1.msra.mxu1 %v11839_v43  ;;  %4995 = vmatprep.subr.mxu0 %v11487_v15  ;;  %v11867_v15 = vld [vmem:[#allocation17 + $0x598] sm:$0xff] }
 0xcf7   :  { %4660 = vmatprep.subr.mxu1 %v11843_v48  ;;  %4996 = vmatpush1.msra.mxu0 %v11493_v35  ;;  %v11871_v35 = vld [vmem:[#allocation17 + $0x590] sm:$0xff] }
 0xcf8   :  { %4661 = vmatpush1.msra.mxu1 %v11847_v44  ;;  %4997 = vmatprep.subr.mxu0 %v11499_v62  ;;  %v11875_v62 = vld [vmem:[#allocation17 + $0x568] sm:$0xff] }
 0xcf9   :  { %4662 = vmatprep.subr.mxu1 %v11851_v49  ;;  %4998 = vmatpush1.msra.mxu0 %v11505_v9  ;;  %v11879_v9 = vld [vmem:[#allocation17 + $0x560] sm:$0xff] }
 0xcfa   :  { %4663 = vmatpush2.msra.mxu1 %v11855_v22  ;;  %4999 = vmatprep.subr.mxu0 %v11511_v6  ;;  %v11883_v6 = vld [vmem:[#allocation17 + $0x538] sm:$0xff] }
 0xcfb   :  { %4664 = vmatprep.subr.mxu1 %v11859_v46  ;;  %5000 = vmatpush2.msra.mxu0 %v11518_v58  ;;  %15064 = vst [vmem:[#allocation97_spill] sm:$0xff] %v11883_v6  ;;  %v11887_v58 = vld [vmem:[#allocation17 + $0x530] sm:$0xff] }
 0xcfc   :  { %4665 = vmatpush2.msra.mxu1 %v11863_v7  ;;  %5001 = vmatprep.subr.mxu0 %v11524_v26  ;;  %15065 = vst [vmem:[#allocation173_spill] sm:$0xff] %v11887_v58  ;;  %v11891_v26 = vld [vmem:[#allocation17 + $0x508] sm:$0xff] }
 0xcfd   :  { %4666 = vmatprep.subr.mxu1 %v11867_v15  ;;  %5002 = vmatpush2.msra.mxu0 %v11530_v36  ;;  %15066 = vst [vmem:[#allocation99_spill] sm:$0xff] %v11891_v26  ;;  %v11895_v36 = vld [vmem:[#allocation17 + $0x500] sm:$0xff] }
 0xcfe   :  { %4667 = vmatpush2.msra.mxu1 %v11871_v35  ;;  %5003 = vmatprep.subr.mxu0 %v11536_v10  ;;  %15067 = vst [vmem:[#allocation174_spill] sm:$0xff] %v11895_v36  ;;  %v11899_v10 = vld [vmem:[#allocation17 + $0x4d8] sm:$0xff] }
 0xcff   :  { %4668 = vmatprep.subr.mxu1 %v11875_v62  ;;  %5004 = vmatpush2.msra.mxu0 %v11542_v14  ;;  %15068 = vst [vmem:[#allocation101_spill] sm:$0xff] %v11899_v10  ;;  %v11903_v14 = vld [vmem:[#allocation17 + $0x4d0] sm:$0xff] }
 0xd00   :  { %4669 = vmatpush2.msra.mxu1 %v11879_v9  ;;  %5005 = vmatprep.subr.mxu0 %v11548_v54  ;;  %15070 = vst [vmem:[#allocation175_spill] sm:$0xff] %v11903_v14  ;;  %v11907_v54 = vld [vmem:[#allocation17 + $0x4a8] sm:$0xff] }
 0xd01   :  { %4670 = vmatprep.subr.mxu1 %v11883_v6  ;;  %5006 = vmatpush2.msra.mxu0 %v11554_v0  ;;  %15072 = vst [vmem:[#allocation103_spill] sm:$0xff] %v11907_v54  ;;  %v11911_v0 = vld [vmem:[#allocation17 + $0x4a0] sm:$0xff] }
 0xd02   :  { %4671 = vmatpush2.msra.mxu1 %v11887_v58  ;;  %5007 = vmatprep.subr.mxu0 %v15069_v12  ;;  %15074 = vst [vmem:[#allocation176_spill] sm:$0xff] %v11911_v0  ;;  %v15081_v12 = vld [vmem:[#allocation201_spill] sm:$0xff] }
 0xd03   :  { %4672 = vmatprep.subr.mxu1 %v11891_v26  ;;  %5008 = vmatpush2.msra.mxu0 %v15071_v53  ;;  %v11927_v53 = vld [vmem:[#allocation17 + $0x440] sm:$0xff]  ;;  %v15176_v26 = vld [vmem:[#allocation63_spill] sm:$0xff] }
 0xd04   :  { %4673 = vmatpush2.msra.mxu1 %v11895_v36  ;;  %5009 = vmatprep.subr.mxu0 %v15073_v11  ;;  %15082 = vst [vmem:[#allocation178_spill] sm:$0xff] %v11927_v53  ;;  %v15083_v11 = vld [vmem:[#allocation30_spill] sm:$0xff] }
 0xd05   :  { %4674 = vmatprep.subr.mxu1 %v11899_v10  ;;  %5010 = vmatpush2.msra.mxu0 %v15075_v33  ;;  %v11931_v33 = vld [vmem:[#allocation17 + $0x418] sm:$0xff] }
 0xd06   :  { %4675 = vmatpush2.msra.mxu1 %v11903_v14  ;;  %5011 = vmatprep.subr.mxu0 %v15077_v37  ;;  %15084 = vst [vmem:[#allocation109_spill] sm:$0xff] %v11931_v33  ;;  %v15085_v37 = vld [vmem:[#allocation51_spill] sm:$0xff]  ;;  %v15175_v14 = vld [vmem:[#allocation66_spill] sm:$0xff] }
 0xd07   :  { %4676 = vmatprep.subr.mxu1 %v11907_v54  ;;  %5012 = vmatpush2.msra.mxu0 %v15079_v28  ;;  %v11935_v28 = vld [vmem:[#allocation17 + $0x410] sm:$0xff] }
 0xd08   :  { %4677 = vmatpush2.msra.mxu1 %v11911_v0  ;;  %5013 = vmatprep.subr.mxu0 %v15081_v12  ;;  %15086 = vst [vmem:[#allocation111_spill] sm:$0xff] %v11935_v28  ;;  %v15087_v0 = vld [vmem:[#allocation29_spill] sm:$0xff]  ;;  %v11939_v12 = vld [vmem:[#allocation17 + $0x3e8] sm:$0xff] }
 0xd09   :  { %4678 = vmatprep.subr.mxu1 %v11915_v51  ;;  %5014 = vmatpush2.msra.mxu0 %v15083_v11  ;;  %15088 = vst [vmem:[#allocation113_spill] sm:$0xff] %v11939_v12  ;;  %v15089_v51 = vld [vmem:[#allocation33_spill] sm:$0xff]  ;;  %v11943_v11 = vld [vmem:[#allocation17 + $0x3e0] sm:$0xff] }
 0xd0a   :  { %4679 = vmatpush2.msra.mxu1 %v11919_v31  ;;  %5015 = vmatprep.subr.mxu0 %v15085_v37  ;;  %15090 = vst [vmem:[#allocation115_spill] sm:$0xff] %v11943_v11  ;;  %v15091_v31 = vld [vmem:[#allocation54_spill] sm:$0xff]  ;;  %v11947_v37 = vld [vmem:[#allocation17 + $0x3b8] sm:$0xff] }
 0xd0b   :  { %4680 = vmatprep.subr.mxu1 %v11923_v42  ;;  %5016 = vmatpush2.msra.mxu0 %v15087_v0  ;;  %15092 = vst [vmem:[#allocation118_spill] sm:$0xff] %v11947_v37  ;;  %v15093_v42 = vld [vmem:[#allocation160_spill] sm:$0xff] }
 0xd0c   :  { %4681 = vmatpush2.msra.mxu1 %v11927_v53  ;;  %5017 = vmatprep.subr.mxu0 %v15089_v51  ;;  %v11951_v0 = vld [vmem:[#allocation17 + $0x3b0] sm:$0xff]  ;;  %v15095_v53 = vld [vmem:[#allocation110_spill] sm:$0xff]  ;;  %v11955_v51 = vld [vmem:[#allocation17 + $0x388] sm:$0xff] }
 0xd0d   :  { %4682 = vmatprep.subr.mxu1 %v11931_v33  ;;  %5018 = vmatpush2.msra.mxu0 %v15091_v31  ;;  %15094 = vst [vmem:[#allocation120_spill] sm:$0xff] %v11951_v0  ;;  %15096 = vst [vmem:[#allocation123_spill] sm:$0xff] %v11955_v51  ;;  %v15097_v33 = vld [vmem:[#allocation117_spill] sm:$0xff]  ;;  %v11959_v31 = vld [vmem:[#allocation17 + $0x380] sm:$0xff] }
 0xd0e   :  { %4683 = vmatpush2.msra.mxu1 %v11935_v28  ;;  %5019 = vmatprep.subr.mxu0 %v15093_v42  ;;  %15098 = vst [vmem:[#allocation125_spill] sm:$0xff] %v11959_v31  ;;  %v15099_v28 = vld [vmem:[#allocation124_spill] sm:$0xff]  ;;  %v11963_v42 = vld [vmem:[#allocation17 + $0x358] sm:$0xff] }
 0xd0f   :  { %4684 = vmatprep.subr.mxu1 %v11939_v12  ;;  %5020 = vmatpush2.msra.mxu0 %v15095_v53  ;;  %15100 = vst [vmem:[#allocation130_spill] sm:$0xff] %v11963_v42  ;;  %v15101_v12 = vld [vmem:[#allocation127_spill] sm:$0xff]  ;;  %v11967_v53 = vld [vmem:[#allocation17 + $0x350] sm:$0xff] }
 0xd10   :  { %4685 = vmatpush2.msra.mxu1 %v11943_v11  ;;  %5021 = vmatprep.subr.mxu0 %v15097_v33  ;;  %15102 = vst [vmem:[#allocation76_spill] sm:$0xff] %v11967_v53  ;;  %v15103_v11 = vld [vmem:[#allocation164_spill] sm:$0xff]  ;;  %v11971_v33 = vld [vmem:[#allocation17 + $0x328] sm:$0xff] }
 0xd11   :  { %4686 = vmatprep.subr.mxu1 %v11947_v37  ;;  %5022 = vmatpush2.msra.mxu0 %v15099_v28  ;;  %15104 = vst [vmem:[#allocation78_spill] sm:$0xff] %v11971_v33  ;;  %v15105_v37 = vld [vmem:[#allocation83_spill] sm:$0xff]  ;;  %v11975_v28 = vld [vmem:[#allocation17 + $0x320] sm:$0xff] }
 0xd12   :  { %4687 = vmatpush2.msra.mxu1 %v11951_v0  ;;  %5023 = vmatprep.subr.mxu0 %v15101_v12  ;;  %15106 = vst [vmem:[#allocation80_spill] sm:$0xff] %v11975_v28  ;;  %v15107_v0 = vld [vmem:[#allocation85_spill] sm:$0xff]  ;;  %v15108_v12 = vld [vmem:[#allocation87_spill] sm:$0xff] }
 0xd13   :  { %4688 = vmatprep.subr.mxu1 %v11955_v51  ;;  %5024 = vmatpush2.msra.mxu0 %v15103_v11  ;;  %v15109_v51 = vld [vmem:[#allocation89_spill] sm:$0xff]  ;;  %v15110_v11 = vld [vmem:[#allocation91_spill] sm:$0xff] }
 0xd14   :  { %4689 = vmatpush2.msra.mxu1 %v11959_v31  ;;  %5025 = vmatprep.subr.mxu0 %v15105_v37  ;;  %v7309_v37 = vld [vmem:[#allocation17 + $0x2e8] sm:$0xff]  ;;  %v15111_v31 = vld [vmem:[#allocation93_spill] sm:$0xff] }
 0xd15   :  { %4690 = vmatprep.subr.mxu1 %v11963_v42  ;;  %5026 = vmatpush2.msra.mxu0 %v15107_v0  ;;  %v7310_v42 = vld [vmem:[#allocation17 + $0x2e0] sm:$0xff]  ;;  %v15112_v0 = vld [vmem:[#allocation72_spill] sm:$0xff] }
 0xd16   :  { %4691 = vmatpush2.msra.mxu1 %v11967_v53  ;;  %5027 = vmatprep.subr.mxu0 %v15108_v12  ;;  %v15113_v53 = vld [vmem:[#allocation172_spill] sm:$0xff]  ;;  %v15114_v12 = vld [vmem:[#allocation67_spill] sm:$0xff] }
 0xd17   :  { %4692 = vmatprep.subr.mxu1 %v11971_v33  ;;  %5028 = vmatpush2.msra.mxu0 %v15109_v51  ;;  %v15115_v33 = vld [vmem:[#allocation73_spill] sm:$0xff] }
 0xd18   :  { %4693 = vmatpush2.msra.mxu1 %v11975_v28  ;;  %5029 = vmatprep.subr.mxu0 %v15110_v11  ;;  %v15116_v51 = vld [vmem:[#allocation69_spill] sm:$0xff]  ;;  %v15117_v28 = vld [vmem:[#allocation75_spill] sm:$0xff] }
 0xd19   :  { %4695 = vmatmul.mubr.f32.vlgmr.msra.gmra.mxu1 %v11729_v40  ;;  %5038 = vmatprep.subr.mxu1 %v7309_v37  ;;  %v15118_v11 = vld [vmem:[#allocation71_spill] sm:$0xff]  ;;  %v15119_v40 = vld [vmem:[#allocation77_spill] sm:$0xff]  ;;  %v15120_v37 = vld [vmem:[#allocation74_spill] sm:$0xff] }
 0xd1a   :  { %5039 = vmatpush1.msra.mxu1 %v7310_v42  ;;  %5030 = vmatpush2.msra.mxu0 %v15111_v31  ;;  %v15121_v42 = vld [vmem:[#allocation79_spill] sm:$0xff]  ;;  %v15122_v31 = vld [vmem:[#allocation146_spill] sm:$0xff] }
 0xd1b   :  { %5040 = vmatprep.subr.mxu1 %v15112_v0  ;;  %5109 = vmatprep.subr.mxu0 %v15113_v53  ;;  %v15123_v0 = vld [vmem:[#allocation147_spill] sm:$0xff]  ;;  %v15124_v53 = vld [vmem:[#allocation148_spill] sm:$0xff] }
 0xd1c   :  { %5041 = vmatpush1.msra.mxu1 %v15114_v12  ;;  %v15125_v12 = vld [vmem:[#allocation149_spill] sm:$0xff] }
 0xd1d   :  { %5042 = vmatprep.subr.mxu1 %v15115_v33  ;;  %v15126_v33 = vld [vmem:[#allocation150_spill] sm:$0xff] }
 0xd1e   :  { %5043 = vmatpush1.msra.mxu1 %v15116_v51  ;;  %v15127_v51 = vld [vmem:[#allocation151_spill] sm:$0xff] }
 0xd1f   :  { %5044 = vmatprep.subr.mxu1 %v15117_v28  ;;  %v15128_v28 = vld [vmem:[#allocation152_spill] sm:$0xff] }
 0xd20   :  { %5045 = vmatpush1.msra.mxu1 %v15118_v11  ;;  %v15129_v11 = vld [vmem:[#allocation153_spill] sm:$0xff] }
 0xd21   :  { %5046 = vmatprep.subr.mxu1 %v15119_v40  ;;  %v15130_v40 = vld [vmem:[#allocation154_spill] sm:$0xff] }
 0xd22   :  { %5047 = vmatpush1.msra.mxu1 %v15120_v37  ;;  %v15131_v37 = vld [vmem:[#allocation155_spill] sm:$0xff] }
 0xd23   :  { %5048 = vmatprep.subr.mxu1 %v15121_v42  ;;  %v15132_v42 = vld [vmem:[#allocation156_spill] sm:$0xff] }
 0xd24   :  { %5049 = vmatpush1.msra.mxu1 %v15122_v31  ;;  %v15133_v31 = vld [vmem:[#allocation157_spill] sm:$0xff] }
 0xd25   :  { %5050 = vmatprep.subr.mxu1 %v15123_v0  ;;  %v15134_v0 = vld [vmem:[#allocation158_spill] sm:$0xff] }
 0xd26   :  { %5051 = vmatpush1.msra.mxu1 %v15124_v53  ;;  %v15135_v53 = vld [vmem:[#allocation159_spill] sm:$0xff] }
 0xd27   :  { %5052 = vmatprep.subr.mxu1 %v15125_v12  ;;  %v15136_v12 = vld [vmem:[#allocation203_spill] sm:$0xff] }
 0xd28   :  { %5053 = vmatpush1.msra.mxu1 %v15126_v33  ;;  %v15137_v33 = vld [vmem:[#allocation34_spill] sm:$0xff] }
 0xd29   :  { %5054 = vmatprep.subr.mxu1 %v15127_v51  ;;  %v15138_v51 = vld [vmem:[#allocation31_spill] sm:$0xff] }
 0xd2a   :  { %5055 = vmatpush1.msra.mxu1 %v15128_v28  ;;  %v15139_v28 = vld [vmem:[#allocation56_spill] sm:$0xff] }
 0xd2b   :  { %5056 = vmatprep.subr.mxu1 %v15129_v11  ;;  %v15140_v11 = vld [vmem:[#allocation179_spill] sm:$0xff] }
 0xd2c   :  { %5057 = vmatpush1.msra.mxu1 %v15130_v40  ;;  %v15141_v40 = vld [vmem:[#allocation180_spill] sm:$0xff] }
 0xd2d   :  { %5058 = vmatprep.subr.mxu1 %v15131_v37  ;;  %v15142_v37 = vld [vmem:[#allocation181_spill] sm:$0xff] }
 0xd2e   :  { %5059 = vmatpush1.msra.mxu1 %v15132_v42  ;;  %v15143_v42 = vld [vmem:[#allocation182_spill] sm:$0xff] }
 0xd2f   :  { %5060 = vmatprep.subr.mxu1 %v15133_v31  ;;  %v15144_v31 = vld [vmem:[#allocation183_spill] sm:$0xff] }
 0xd30   :  { %5061 = vmatpush1.msra.mxu1 %v15134_v0  ;;  %v15145_v0 = vld [vmem:[#allocation184_spill] sm:$0xff] }
 0xd31   :  { %5062 = vmatprep.subr.mxu1 %v15135_v53  ;;  %v15146_v53 = vld [vmem:[#allocation185_spill] sm:$0xff] }
 0xd32   :  { %5063 = vmatpush1.msra.mxu1 %v15136_v12  ;;  %v15147_v12 = vld [vmem:[#allocation186_spill] sm:$0xff] }
 0xd33   :  { %5064 = vmatprep.subr.mxu1 %v15137_v33  ;;  %v15148_v33 = vld [vmem:[#allocation187_spill] sm:$0xff] }
 0xd34   :  { %5065 = vmatpush1.msra.mxu1 %v15138_v51  ;;  %v15149_v51 = vld [vmem:[#allocation188_spill] sm:$0xff] }
 0xd35   :  { %5066 = vmatprep.subr.mxu1 %v15139_v28  ;;  %v15150_v28 = vld [vmem:[#allocation190_spill] sm:$0xff] }
 0xd36   :  { %5067 = vmatpush1.msra.mxu1 %v15140_v11  ;;  %v15151_v11 = vld [vmem:[#allocation192_spill] sm:$0xff] }
 0xd37   :  { %5068 = vmatprep.subr.mxu1 %v15141_v40  ;;  %v15152_v40 = vld [vmem:[#allocation194_spill] sm:$0xff] }
 0xd38   :  { %5069 = vmatpush1.msra.mxu1 %v15142_v37  ;;  %v15153_v37 = vld [vmem:[#allocation196_spill] sm:$0xff] }
 0xd39   :  { %5070 = vmatprep.subr.mxu1 %v15143_v42  ;;  %v15154_v42 = vld [vmem:[#allocation198_spill] sm:$0xff] }
 0xd3a   :  { %5071 = vmatpush2.msra.mxu1 %v15144_v31  ;;  %v15155_v31 = vld [vmem:[#allocation200_spill] sm:$0xff] }
 0xd3b   :  { %5072 = vmatprep.subr.mxu1 %v15145_v0  ;;  %v15156_v0 = vld [vmem:[#allocation202_spill] sm:$0xff] }
 0xd3c   :  { %5073 = vmatpush2.msra.mxu1 %v15146_v53  ;;  %v15157_v53 = vld [vmem:[#allocation36_spill] sm:$0xff] }
 0xd3d   :  { %5074 = vmatprep.subr.mxu1 %v15147_v12  ;;  %v15158_v12 = vld [vmem:[#allocation32_spill] sm:$0xff] }
 0xd3e   :  { %5075 = vmatpush2.msra.mxu1 %v15148_v33  ;;  %v15159_v33 = vld [vmem:[#allocation38_spill] sm:$0xff] }
 0xd3f   :  { %5076 = vmatprep.subr.mxu1 %v15149_v51  ;;  %v15160_v51 = vld [vmem:[#allocation81_spill] sm:$0xff] }
 0xd40   :  { %5077 = vmatpush2.msra.mxu1 %v15150_v28  ;;  %v15161_v28 = vld [vmem:[#allocation49_spill] sm:$0xff] }
 0xd41   :  { %5078 = vmatprep.subr.mxu1 %v15151_v11  ;;  %v15162_v11 = vld [vmem:[#allocation161_spill] sm:$0xff] }
 0xd42   :  { %5079 = vmatpush2.msra.mxu1 %v15152_v40  ;;  %v15163_v40 = vld [vmem:[#allocation114_spill] sm:$0xff] }
 0xd43   :  { %5080 = vmatprep.subr.mxu1 %v15153_v37  ;;  %v15164_v37 = vld [vmem:[#allocation121_spill] sm:$0xff] }
 0xd44   :  { %5081 = vmatpush2.msra.mxu1 %v15154_v42  ;;  %v15165_v42 = vld [vmem:[#allocation162_spill] sm:$0xff] }
 0xd45   :  { %5082 = vmatprep.subr.mxu1 %v15155_v31  ;;  %v15166_v31 = vld [vmem:[#allocation163_spill] sm:$0xff] }
 0xd46   :  { %5083 = vmatpush2.msra.mxu1 %v15156_v0  ;;  %v15167_v0 = vld [vmem:[#allocation165_spill] sm:$0xff] }
 0xd47   :  { %5084 = vmatprep.subr.mxu1 %v15157_v53  ;;  %v15168_v53 = vld [vmem:[#allocation166_spill] sm:$0xff] }
 0xd48   :  { %5085 = vmatpush2.msra.mxu1 %v15158_v12  ;;  %v15169_v12 = vld [vmem:[#allocation167_spill] sm:$0xff] }
 0xd49   :  { %5086 = vmatprep.subr.mxu1 %v15159_v33  ;;  %v15170_v33 = vld [vmem:[#allocation168_spill] sm:$0xff] }
 0xd4a   :  { %5087 = vmatpush2.msra.mxu1 %v15160_v51  ;;  %v15171_v51 = vld [vmem:[#allocation169_spill] sm:$0xff] }
 0xd4b   :  { %5088 = vmatprep.subr.mxu1 %v15161_v28  ;;  %v15172_v28 = vld [vmem:[#allocation170_spill] sm:$0xff] }
 0xd4c   :  { %5089 = vmatpush2.msra.mxu1 %v15162_v11  ;;  %v15173_v11 = vld [vmem:[#allocation171_spill] sm:$0xff] }
 0xd4d   :  { %5090 = vmatprep.subr.mxu1 %v15163_v40  ;;  %v15174_v40 = vld [vmem:[#allocation95_spill] sm:$0xff] }
 0xd4e   :  { %5091 = vmatpush2.msra.mxu1 %v15164_v37 }
 0xd4f   :  { %5092 = vmatprep.subr.mxu1 %v15165_v42 }
 0xd50   :  { %5093 = vmatpush2.msra.mxu1 %v15166_v31 }
 0xd51   :  { %5094 = vmatprep.subr.mxu1 %v15167_v0 }
 0xd52   :  { %5095 = vmatpush2.msra.mxu1 %v15168_v53 }
 0xd53   :  { %5096 = vmatprep.subr.mxu1 %v15169_v12 }
 0xd54   :  { %5097 = vmatpush2.msra.mxu1 %v15170_v33 }
 0xd55   :  { %5098 = vmatprep.subr.mxu1 %v15171_v51 }
 0xd56   :  { %5099 = vmatpush2.msra.mxu1 %v15172_v28 }
 0xd57   :  { %5100 = vmatprep.subr.mxu1 %v15173_v11 }
 0xd58   :  { %5101 = vmatpush2.msra.mxu1 %v15174_v40 }
 0xd99   :  { %v4554_v37 = vpop.f32.mrf.mxu1  ;;  %v4625_v12 = vpop.f32.mrf.mxu0 }
 0xd9a   :  { %v4705_v54 = vrot.slane %v4554_v37, 4  ;;  %v4707_v51 = vrot.slane %v4625_v12, 4 }
 0xd9b   :  { %v4556_v42 = vpop.f32.mrf.mxu1  ;;  %v4627_v33 = vpop.f32.mrf.mxu0 }
 0xd9c   :  { %v4706_v31 = vrot.slane %v4556_v42, 4  ;;  %v4713_v0 = vadd.f32 %v4705_v54, %v15059_v63  ;;  %v4708_v28 = vrot.slane %v4627_v33, 4  ;;  %v4715_v11 = vadd.f32 %v4707_v51, %v15176_v26 }
 0xd9e   :  { %v4714_v53 = vadd.f32 %v4706_v31, %v15175_v14  ;;  %v6374_v10 = vmul.f32 -1.442695, %v4713_v0  ;;  %v4716_v40 = vadd.f32 %v4708_v28, %v15062_v21  ;;  %v6376_v58 = vmul.f32 -1.442695, %v4715_v11  ;;  %v15177_v28 = vld [vmem:[#allocation65_spill] sm:$0xff] }
 0xda0   :  { %v6375_v36 = vmul.f32 -1.442695, %v4714_v53  ;;  %6651 = vpow2.f32 %v6374_v10  ;;  %v6377_v6 = vmul.f32 -1.442695, %v4716_v40 }
 0xda2   :  { %6653 = vpow2.f32 %v6375_v36 }
 0xda3   :  { %6655 = vpow2.f32 %v6376_v58 }
 0xda4   :  { %6657 = vpow2.f32 %v6377_v6 }
 0xdad   :  { %v6652_v37 = vpop.eup %6651 }
 0xdae   :  { %v4729_v54 = vadd.f32 1.0, %v6652_v37 }
 0xdaf   :  { %v6654_v42 = vpop.eup %6653 }
 0xdb0   :  { %v4730_v31 = vadd.f32 1.0, %v6654_v42  ;;  %6659 = vrcp.f32 %v4729_v54  ;;  %v6656_v0 = vpop.eup %6655 }
 0xdb1   :  { %v6658_v10 = vpop.eup %6657  ;;  %v4731_v12 = vadd.f32 1.0, %v6656_v0 }
 0xdb2   :  { %6661 = vrcp.f32 %v4730_v31  ;;  %v4732_v51 = vadd.f32 1.0, %v6658_v10  ;;  %v4759_v10 = vrot.slane %v11721_v19, 6 }
 0xdb3   :  { %6663 = vrcp.f32 %v4731_v12  ;;  %v4760_v12 = vrot.slane %v11723_v32, 6  ;;  %v15178_v32 = vld [vmem:[#allocation97_spill] sm:$0xff] }
 0xdb4   :  { %6665 = vrcp.f32 %v4732_v51 }
 0xdbd   :  { %v6660_v40 = vpop.eup %6659 }
 0xdbf   :  { %v6662_v37 = vpop.eup %6661 }
 0xdc0   :  { %v6664_v31 = vpop.eup %6663 }
 0xdc1   :  { %v6666_v0 = vpop.eup %6665 }
 0xdd9   :  { %v4696_v53 = vpop.f32.mrf.mxu1 }
 0xdda   :  { %v4741_v36 = vadd.f32 %v4696_v53, %v15063_v18  ;;  %v4755_v53 = vsub.f32 1.0, %v6664_v31 }
 0xddb   :  { %v4698_v33 = vpop.f32.mrf.mxu1 }
 0xddc   :  { %v4745_v26 = vrot.slane %v4741_v36, 4  ;;  %v4742_v11 = vadd.f32 %v4698_v33, %v15177_v28  ;;  %v4756_v33 = vsub.f32 1.0, %v6666_v0  ;;  %v4764_v28 = vmul.f32 %v6666_v0, %v4760_v12  ;;  %v12187_v0 = vld [vmem:[#allocation17 + $0x1f8] sm:$0xff]  ;;  %v12203_v12 = vld [vmem:[#allocation17 + $0x1b0] sm:$0xff] }
 0xddd   :  { %15210 = vst [vmem:[#allocation98_spill] sm:$0xff] %v12187_v0 }
 0xdde   :  { %v4749_v58 = vmul.f32 %v6660_v40, %v4745_v26  ;;  %v4746_v21 = vrot.slane %v4742_v11, 4  ;;  %v4763_v11 = vmul.f32 %v6664_v31, %v4759_v10  ;;  %v12185_v31 = vld [vmem:[#allocation17 + $0x1e8] sm:$0xff]  ;;  %v12193_v10 = vld [vmem:[#allocation17 + $0x1f0] sm:$0xff] }
 0xddf   :  { %15211 = vst [vmem:[#allocation100_spill] sm:$0xff] %v12193_v10 }
 0xde0   :  { %v4751_v6 = vadd.f32 %v4749_v58, %v14949_v13  ;;  %v4750_v42 = vmul.f32 %v6662_v37, %v4746_v21 }
 0xde2   :  { %6667 = vtanh.f32 %v4751_v6  ;;  %v4752_v54 = vadd.f32 %v4750_v42, %v14950_v25  ;;  %v12175_v6 = vld [vmem:[#allocation17 + $0x228] sm:$0xff]  ;;  %v12179_v42 = vld [vmem:[#allocation17 + $0x210] sm:$0xff] }
 0xde3   :  { %15208 = vst [vmem:[#allocation94_spill] sm:$0xff] %v12175_v6 }
 0xde4   :  { %6669 = vtanh.f32 %v4752_v54  ;;  %v12181_v54 = vld [vmem:[#allocation17 + $0x220] sm:$0xff] }
 0xde5   :  { %15209 = vst [vmem:[#allocation96_spill] sm:$0xff] %v12181_v54 }
 0xdef   :  { %v6668_v36 = vpop.eup %6667 }
 0xdf0   :  { %v4757_v26 = vmul.f32 %v6668_v36, %v4755_v53  ;;  %v12191_v53 = vld [vmem:[#allocation17 + $0x1e0] sm:$0xff]  ;;  %v12197_v36 = vld [vmem:[#allocation17 + $0x1b8] sm:$0xff] }
 0xdf1   :  { %v6670_v40 = vpop.eup %6669 }
 0xdf2   :  { %v4758_v51 = vmul.f32 %v6670_v40, %v4756_v33  ;;  %v12059_v58 = vadd.f32 %v4763_v11, %v4757_v26  ;;  %v12199_v33 = vld [vmem:[#allocation17 + $0x1c8] sm:$0xff]  ;;  %v12205_v26 = vld [vmem:[#allocation17 + $0x1c0] sm:$0xff]  ;;  %v12211_v40 = vld [vmem:[#allocation17 + $0x198] sm:$0xff] }
 0xdf3   :  { %15212 = vst [vmem:[#allocation102_spill] sm:$0xff] %v12199_v33  ;;  %15213 = vst [vmem:[#allocation104_spill] sm:$0xff] %v12205_v26  ;;  %v12209_v11 = vld [vmem:[#allocation17 + $0x188] sm:$0xff] }
 0xdf4   :  { %v12061_v21 = vadd.f32 %v4764_v28, %v4758_v51  ;;  %4767 = vst [vmem:[#allocation2 + $0x10] sm:$0x30] %v12059_v58  ;;  %v12067_v19 = vrot.slane %v12059_v58, 4  ;;  %v12173_v28 = vld [vmem:[#allocation17 + $0x218] sm:$0xff]  ;;  %15214 = vst [vmem:[#allocation106_spill] sm:$0xff] %v12211_v40  ;;  %v12215_v51 = vld [vmem:[#allocation17 + $0x180] sm:$0xff] }
 0xdf6   :  { %4768 = vst [vmem:[#allocation2] sm:$0x30] %v12061_v21  ;;  %v4964_v37 = vrot.slane %v12061_v21, 4 }
 0xdf8   :  { %5031 = vmatprep.mubr.f32.mxu0 %v4964_v37  ;;  %5102 = vmatprep.mubr.f32.mxu1 %v4964_v37 }
 0xdf9   :  { %5032 = vmatmul.mubr.f32.vlgmr.msra.gmra.mxu0 %v12067_v19  ;;  %5103 = vmatmul.mubr.f32.vlgmr.msra.gmra.mxu1 %v12067_v19 }
 0xdfa   :  { %5110 = vmatpush1.msra.mxu0 %v11731_v1  ;;  %5173 = vmatprep.mubr.f32.mxu0 %v4964_v37  ;;  %v15179_v1 = vld [vmem:[#allocation173_spill] sm:$0xff]  ;;  %v12217_v37 = vld [vmem:[#allocation17 + $0x190] sm:$0xff] }
 0xdfb   :  { %5111 = vmatprep.subr.mxu0 %v11733_v30  ;;  %v15180_v30 = vld [vmem:[#allocation99_spill] sm:$0xff]  ;;  %15215 = vst [vmem:[#allocation108_spill] sm:$0xff] %v12217_v37 }
 0xdfc   :  { %5112 = vmatpush1.msra.mxu0 %v11737_v52  ;;  %v15181_v52 = vld [vmem:[#allocation174_spill] sm:$0xff] }
 0xdfd   :  { %5113 = vmatprep.subr.mxu0 %v11740_v38  ;;  %v15182_v38 = vld [vmem:[#allocation101_spill] sm:$0xff] }
 0xdfe   :  { %5114 = vmatpush1.msra.mxu0 %v11743_v50  ;;  %v15183_v50 = vld [vmem:[#allocation175_spill] sm:$0xff] }
 0xdff   :  { %5115 = vmatprep.subr.mxu0 %v11747_v60  ;;  %v15184_v60 = vld [vmem:[#allocation103_spill] sm:$0xff] }
 0xe00   :  { %5116 = vmatpush1.msra.mxu0 %v11751_v17  ;;  %v15185_v17 = vld [vmem:[#allocation176_spill] sm:$0xff] }
 0xe01   :  { %5117 = vmatprep.subr.mxu0 %v11755_v34  ;;  %v15186_v34 = vld [vmem:[#allocation105_spill] sm:$0xff] }
 0xe02   :  { %5118 = vmatpush1.msra.mxu0 %v11759_v57  ;;  %v15187_v57 = vld [vmem:[#allocation177_spill] sm:$0xff] }
 0xe03   :  { %5119 = vmatprep.subr.mxu0 %v11763_v20  ;;  %v15188_v20 = vld [vmem:[#allocation107_spill] sm:$0xff] }
 0xe04   :  { %5120 = vmatpush1.msra.mxu0 %v11767_v16  ;;  %v15189_v16 = vld [vmem:[#allocation178_spill] sm:$0xff] }
 0xe05   :  { %5121 = vmatprep.subr.mxu0 %v11771_v45  ;;  %v15190_v45 = vld [vmem:[#allocation109_spill] sm:$0xff] }
 0xe06   :  { %5122 = vmatpush1.msra.mxu0 %v11775_v41  ;;  %v15191_v41 = vld [vmem:[#allocation111_spill] sm:$0xff] }
 0xe07   :  { %5123 = vmatprep.subr.mxu0 %v11779_v39  ;;  %v15192_v39 = vld [vmem:[#allocation113_spill] sm:$0xff] }
 0xe08   :  { %5124 = vmatpush1.msra.mxu0 %v11783_v23  ;;  %v15193_v23 = vld [vmem:[#allocation115_spill] sm:$0xff] }
 0xe09   :  { %5125 = vmatprep.subr.mxu0 %v11787_v55  ;;  %v15194_v55 = vld [vmem:[#allocation118_spill] sm:$0xff] }
 0xe0a   :  { %5126 = vmatpush1.msra.mxu0 %v11791_v24  ;;  %v15195_v24 = vld [vmem:[#allocation120_spill] sm:$0xff] }
 0xe0b   :  { %5127 = vmatprep.subr.mxu0 %v11795_v27  ;;  %v15196_v27 = vld [vmem:[#allocation123_spill] sm:$0xff] }
 0xe0c   :  { %5128 = vmatpush1.msra.mxu0 %v11799_v8  ;;  %v15197_v8 = vld [vmem:[#allocation125_spill] sm:$0xff] }
 0xe0d   :  { %5129 = vmatprep.subr.mxu0 %v11803_v4  ;;  %v15198_v4 = vld [vmem:[#allocation130_spill] sm:$0xff] }
 0xe0e   :  { %5130 = vmatpush1.msra.mxu0 %v11807_v2  ;;  %v15199_v2 = vld [vmem:[#allocation76_spill] sm:$0xff] }
 0xe0f   :  { %5131 = vmatprep.subr.mxu0 %v11811_v5  ;;  %v15200_v5 = vld [vmem:[#allocation78_spill] sm:$0xff] }
 0xe10   :  { %5132 = vmatpush1.msra.mxu0 %v11815_v56  ;;  %v15201_v56 = vld [vmem:[#allocation80_spill] sm:$0xff] }
 0xe11   :  { %5133 = vmatprep.subr.mxu0 %v11819_v29  ;;  %v12135_v29 = vld [vmem:[#allocation17 + $0x2d8] sm:$0xff] }
 0xe12   :  { %5134 = vmatpush1.msra.mxu0 %v11823_v47  ;;  %v12137_v47 = vld [vmem:[#allocation17 + $0x2d0] sm:$0xff]  ;;  %5446 = vmatprep.subr.mxu1 %v12135_v29 }
 0xe13   :  { %5135 = vmatprep.subr.mxu0 %v11827_v59  ;;  %v5341_v59 = vld [vmem:[#allocation17 + $0x2e8] sm:$0xff]  ;;  %5447 = vmatpush1.msra.mxu1 %v12137_v47 }
 0xe14   :  { %5136 = vmatpush1.msra.mxu0 %v11831_v3  ;;  %v12140_v3 = vld [vmem:[#allocation17 + $0x2a8] sm:$0xff] }
 0xe15   :  { %5137 = vmatprep.subr.mxu0 %v11835_v61  ;;  %v5340_v61 = vld [vmem:[#allocation17 + $0x2e0] sm:$0xff]  ;;  %5448 = vmatprep.subr.mxu1 %v12140_v3 }
 0xe16   :  { %5138 = vmatpush1.msra.mxu0 %v11839_v43  ;;  %v12142_v43 = vld [vmem:[#allocation17 + $0x2a0] sm:$0xff] }
 0xe17   :  { %5139 = vmatprep.subr.mxu0 %v11843_v48  ;;  %v12145_v48 = vld [vmem:[#allocation17 + $0x2b8] sm:$0xff]  ;;  %5449 = vmatpush1.msra.mxu1 %v12142_v43 }
 0xe18   :  { %5140 = vmatpush1.msra.mxu0 %v11847_v44  ;;  %15202 = vst [vmem:[#allocation82_spill] sm:$0xff] %v12145_v48  ;;  %v12147_v44 = vld [vmem:[#allocation17 + $0x278] sm:$0xff] }
 0xe19   :  { %5141 = vmatprep.subr.mxu0 %v11851_v49  ;;  %v12149_v49 = vld [vmem:[#allocation17 + $0x2b0] sm:$0xff]  ;;  %5450 = vmatprep.subr.mxu1 %v12147_v44 }
 0xe1a   :  { %5142 = vmatpush2.msra.mxu0 %v11855_v22  ;;  %15203 = vst [vmem:[#allocation84_spill] sm:$0xff] %v12149_v49  ;;  %v12153_v22 = vld [vmem:[#allocation17 + $0x270] sm:$0xff] }
 0xe1b   :  { %5143 = vmatprep.subr.mxu0 %v11859_v46  ;;  %v12155_v46 = vld [vmem:[#allocation17 + $0x288] sm:$0xff]  ;;  %5451 = vmatpush1.msra.mxu1 %v12153_v22 }
 0xe1c   :  { %5144 = vmatpush2.msra.mxu0 %v11863_v7  ;;  %15204 = vst [vmem:[#allocation86_spill] sm:$0xff] %v12155_v46  ;;  %v12159_v7 = vld [vmem:[#allocation17 + $0x248] sm:$0xff] }
 0xe1d   :  { %5145 = vmatprep.subr.mxu0 %v11867_v15  ;;  %v12161_v15 = vld [vmem:[#allocation17 + $0x280] sm:$0xff]  ;;  %5452 = vmatprep.subr.mxu1 %v12159_v7 }
 0xe1e   :  { %5146 = vmatpush2.msra.mxu0 %v11871_v35  ;;  %15205 = vst [vmem:[#allocation88_spill] sm:$0xff] %v12161_v15  ;;  %v12163_v35 = vld [vmem:[#allocation17 + $0x258] sm:$0xff] }
 0xe1f   :  { %5147 = vmatprep.subr.mxu0 %v11875_v62  ;;  %15206 = vst [vmem:[#allocation90_spill] sm:$0xff] %v12163_v35  ;;  %v12167_v62 = vld [vmem:[#allocation17 + $0x240] sm:$0xff] }
 0xe20   :  { %5148 = vmatpush2.msra.mxu0 %v11879_v9  ;;  %v12169_v9 = vld [vmem:[#allocation17 + $0x250] sm:$0xff]  ;;  %5453 = vmatpush1.msra.mxu1 %v12167_v62 }
 0xe21   :  { %5149 = vmatprep.subr.mxu0 %v15178_v32  ;;  %15207 = vst [vmem:[#allocation92_spill] sm:$0xff] %v12169_v9  ;;  %5454 = vmatprep.subr.mxu1 %v12173_v28  ;;  %v12223_v32 = vld [vmem:[#allocation17 + $0x168] sm:$0xff] }
 0xe22   :  { %5150 = vmatpush2.msra.mxu0 %v15179_v1  ;;  %5455 = vmatpush1.msra.mxu1 %v12179_v42  ;;  %15216 = vst [vmem:[#allocation112_spill] sm:$0xff] %v12223_v32  ;;  %v12227_v1 = vld [vmem:[#allocation17 + $0x150] sm:$0xff] }
 0xe23   :  { %5151 = vmatprep.subr.mxu0 %v15180_v30  ;;  %5456 = vmatprep.subr.mxu1 %v12185_v31  ;;  %v12229_v30 = vld [vmem:[#allocation17 + $0x160] sm:$0xff] }
 0xe24   :  { %5152 = vmatpush2.msra.mxu0 %v15181_v52  ;;  %5457 = vmatpush1.msra.mxu1 %v12191_v53  ;;  %15217 = vst [vmem:[#allocation116_spill] sm:$0xff] %v12229_v30  ;;  %v12233_v52 = vld [vmem:[#allocation17 + $0x128] sm:$0xff] }
 0xe25   :  { %5153 = vmatprep.subr.mxu0 %v15182_v38  ;;  %5458 = vmatprep.subr.mxu1 %v12197_v36  ;;  %v12235_v38 = vld [vmem:[#allocation17 + $0x138] sm:$0xff] }
 0xe26   :  { %5154 = vmatpush2.msra.mxu0 %v15183_v50  ;;  %5459 = vmatpush1.msra.mxu1 %v12203_v12  ;;  %15218 = vst [vmem:[#allocation119_spill] sm:$0xff] %v12235_v38  ;;  %v12239_v50 = vld [vmem:[#allocation17 + $0x120] sm:$0xff] }
 0xe27   :  { %5155 = vmatprep.subr.mxu0 %v15184_v60  ;;  %5460 = vmatprep.subr.mxu1 %v12209_v11  ;;  %v12241_v60 = vld [vmem:[#allocation17 + $0x130] sm:$0xff] }
 0xe28   :  { %5156 = vmatpush2.msra.mxu0 %v15185_v17  ;;  %5461 = vmatpush1.msra.mxu1 %v12215_v51  ;;  %15219 = vst [vmem:[#allocation122_spill] sm:$0xff] %v12241_v60  ;;  %v12245_v17 = vld [vmem:[#allocation17 + $0xf8] sm:$0xff] }
 0xe29   :  { %5157 = vmatprep.subr.mxu0 %v15186_v34  ;;  %v12247_v34 = vld [vmem:[#allocation17 + $0x108] sm:$0xff] }
 0xe2a   :  { %5158 = vmatpush2.msra.mxu0 %v15187_v57  ;;  %15220 = vst [vmem:[#allocation126_spill] sm:$0xff] %v12247_v34  ;;  %v12251_v57 = vld [vmem:[#allocation17 + $0xf0] sm:$0xff] }
 0xe2b   :  { %5159 = vmatprep.subr.mxu0 %v15188_v20  ;;  %v12253_v20 = vld [vmem:[#allocation17 + $0x100] sm:$0xff] }
 0xe2c   :  { %5160 = vmatpush2.msra.mxu0 %v15189_v16  ;;  %15221 = vst [vmem:[#allocation128_spill] sm:$0xff] %v12253_v20  ;;  %v12257_v16 = vld [vmem:[#allocation17 + $0xc8] sm:$0xff] }
 0xe2d   :  { %5161 = vmatprep.subr.mxu0 %v15190_v45  ;;  %v12259_v45 = vld [vmem:[#allocation17 + $0xd8] sm:$0xff] }
 0xe2e   :  { %5162 = vmatpush2.msra.mxu0 %v15191_v41  ;;  %15222 = vst [vmem:[#allocation129_spill] sm:$0xff] %v12259_v45  ;;  %v12263_v41 = vld [vmem:[#allocation17 + $0xc0] sm:$0xff] }
 0xe2f   :  { %5163 = vmatprep.subr.mxu0 %v15192_v39  ;;  %v12265_v39 = vld [vmem:[#allocation17 + $0xd0] sm:$0xff] }
 0xe30   :  { %5164 = vmatpush2.msra.mxu0 %v15193_v23  ;;  %15223 = vst [vmem:[#allocation42_spill] sm:$0xff] %v12265_v39  ;;  %v12269_v23 = vld [vmem:[#allocation17 + $0x98] sm:$0xff] }
 0xe31   :  { %5165 = vmatprep.subr.mxu0 %v15194_v55  ;;  %v12271_v55 = vld [vmem:[#allocation17 + $0xa8] sm:$0xff] }
 0xe32   :  { %5166 = vmatpush2.msra.mxu0 %v15195_v24  ;;  %15224 = vst [vmem:[#allocation40_spill] sm:$0xff] %v12271_v55  ;;  %v12275_v24 = vld [vmem:[#allocation17 + $0x90] sm:$0xff] }
 0xe33   :  { %5167 = vmatprep.subr.mxu0 %v15196_v27  ;;  %v12277_v27 = vld [vmem:[#allocation17 + $0xa0] sm:$0xff] }
 0xe34   :  { %5168 = vmatpush2.msra.mxu0 %v15197_v8  ;;  %15225 = vst [vmem:[#allocation37_spill] sm:$0xff] %v12277_v27  ;;  %v12281_v8 = vld [vmem:[#allocation17 + $0x68] sm:$0xff] }
 0xe35   :  { %5169 = vmatprep.subr.mxu0 %v15198_v4  ;;  %v12283_v4 = vld [vmem:[#allocation17 + $0x78] sm:$0xff] }
 0xe36   :  { %5170 = vmatpush2.msra.mxu0 %v15199_v2  ;;  %15226 = vst [vmem:[#allocation35_spill] sm:$0xff] %v12283_v4  ;;  %v12287_v2 = vld [vmem:[#allocation17 + $0x60] sm:$0xff] }
 0xe37   :  { %5171 = vmatprep.subr.mxu0 %v15200_v5  ;;  %v12289_v5 = vld [vmem:[#allocation17 + $0x70] sm:$0xff] }
 0xe38   :  { %5172 = vmatpush2.msra.mxu0 %v15201_v56  ;;  %15227 = vst [vmem:[#allocation28_spill] sm:$0xff] %v12289_v5  ;;  %v12293_v56 = vld [vmem:[#allocation17 + $0x38] sm:$0xff] }
 0xe39   :  { %5174 = vmatmul.mubr.f32.vlgmr.msra.gmra.mxu0 %v12067_v19  ;;  %5517 = vmatprep.subr.mxu0 %v5341_v59  ;;  %v12221_v19 = vld [vmem:[#allocation17 + $0x158] sm:$0xff]  ;;  %v12295_v59 = vld [vmem:[#allocation17 + $0x48] sm:$0xff] }
 0xe3a   :  { %5518 = vmatpush1.msra.mxu0 %v5340_v61  ;;  %5462 = vmatprep.subr.mxu1 %v12221_v19  ;;  %15228 = vst [vmem:[#allocation48_spill] sm:$0xff] %v12295_v59  ;;  %v12299_v61 = vld [vmem:[#allocation17 + $0x30] sm:$0xff] }
 0xe3b   :  { %5519 = vmatprep.subr.mxu0 %v12145_v48  ;;  %5463 = vmatpush1.msra.mxu1 %v12227_v1  ;;  %v12430_v48 = vld [vmem:[#allocation17 + $0x438] sm:$0xff] }
 0xe3c   :  { %5520 = vmatpush1.msra.mxu0 %v12149_v49  ;;  %5464 = vmatprep.subr.mxu1 %v12233_v52  ;;  %v12424_v49 = vld [vmem:[#allocation17 + $0x460] sm:$0xff]  ;;  %15262 = vst [vmem:[#allocation51_spill] sm:$0xff] %v12430_v48 }
 0xe3d   :  { %5521 = vmatprep.subr.mxu0 %v12155_v46  ;;  %5465 = vmatpush1.msra.mxu1 %v12239_v50  ;;  %v12422_v46 = vld [vmem:[#allocation17 + $0x428] sm:$0xff]  ;;  %15260 = vst [vmem:[#allocation201_spill] sm:$0xff] %v12424_v49 }
 0xe3e   :  { %5522 = vmatpush1.msra.mxu0 %v12161_v15  ;;  %5466 = vmatprep.subr.mxu1 %v12245_v17  ;;  %v12416_v15 = vld [vmem:[#allocation17 + $0x450] sm:$0xff]  ;;  %15259 = vst [vmem:[#allocation199_spill] sm:$0xff] %v12422_v46 }
 0xe3f   :  { %5523 = vmatprep.subr.mxu0 %v12163_v35  ;;  %5467 = vmatpush1.msra.mxu1 %v12251_v57  ;;  %v12414_v35 = vld [vmem:[#allocation17 + $0x490] sm:$0xff]  ;;  %15257 = vst [vmem:[#allocation195_spill] sm:$0xff] %v12416_v15 }
 0xe40   :  { %5524 = vmatpush1.msra.mxu0 %v12169_v9  ;;  %5468 = vmatprep.subr.mxu1 %v12257_v16  ;;  %v12408_v9 = vld [vmem:[#allocation17 + $0x498] sm:$0xff]  ;;  %15256 = vst [vmem:[#allocation193_spill] sm:$0xff] %v12414_v35 }
 0xe41   :  { %5525 = vmatprep.subr.mxu0 %v12175_v6  ;;  %5469 = vmatpush1.msra.mxu1 %v12263_v41  ;;  %v12404_v6 = vld [vmem:[#allocation17 + $0x4c0] sm:$0xff]  ;;  %15254 = vst [vmem:[#allocation189_spill] sm:$0xff] %v12408_v9 }
 0xe42   :  { %5526 = vmatpush1.msra.mxu0 %v12181_v54  ;;  %5470 = vmatprep.subr.mxu1 %v12269_v23  ;;  %v12398_v54 = vld [vmem:[#allocation17 + $0x4c8] sm:$0xff]  ;;  %15252 = vst [vmem:[#allocation64_spill] sm:$0xff] %v12404_v6 }
 0xe43   :  { %5527 = vmatprep.subr.mxu0 %v12187_v0  ;;  %5471 = vmatpush1.msra.mxu1 %v12275_v24  ;;  %v12392_v0 = vld [vmem:[#allocation17 + $0x4f0] sm:$0xff]  ;;  %15250 = vst [vmem:[#allocation62_spill] sm:$0xff] %v12398_v54 }
 0xe44   :  { %5528 = vmatpush1.msra.mxu0 %v12193_v10  ;;  %5472 = vmatprep.subr.mxu1 %v12281_v8  ;;  %v12386_v10 = vld [vmem:[#allocation17 + $0x4f8] sm:$0xff]  ;;  %15248 = vst [vmem:[#allocation60_spill] sm:$0xff] %v12392_v0 }
 0xe45   :  { %5529 = vmatprep.subr.mxu0 %v12199_v33  ;;  %5473 = vmatpush1.msra.mxu1 %v12287_v2  ;;  %v12380_v33 = vld [vmem:[#allocation17 + $0x520] sm:$0xff]  ;;  %15246 = vst [vmem:[#allocation58_spill] sm:$0xff] %v12386_v10 }
 0xe46   :  { %5530 = vmatpush1.msra.mxu0 %v12205_v26  ;;  %5474 = vmatprep.subr.mxu1 %v12293_v56  ;;  %v12374_v26 = vld [vmem:[#allocation17 + $0x528] sm:$0xff]  ;;  %15244 = vst [vmem:[#allocation143_spill] sm:$0xff] %v12380_v33 }
 0xe47   :  { %5531 = vmatprep.subr.mxu0 %v12211_v40  ;;  %5475 = vmatpush1.msra.mxu1 %v12299_v61  ;;  %v12368_v40 = vld [vmem:[#allocation17 + $0x550] sm:$0xff]  ;;  %15242 = vst [vmem:[#allocation141_spill] sm:$0xff] %v12374_v26 }
 0xe48   :  { %5532 = vmatpush1.msra.mxu0 %v12217_v37  ;;  %v12362_v37 = vld [vmem:[#allocation17 + $0x558] sm:$0xff]  ;;  %15240 = vst [vmem:[#allocation139_spill] sm:$0xff] %v12368_v40 }
 0xe49   :  { %5533 = vmatprep.subr.mxu0 %v12223_v32  ;;  %v12356_v32 = vld [vmem:[#allocation17 + $0x580] sm:$0xff]  ;;  %15238 = vst [vmem:[#allocation137_spill] sm:$0xff] %v12362_v37 }
 0xe4a   :  { %5534 = vmatpush1.msra.mxu0 %v12229_v30  ;;  %v12350_v30 = vld [vmem:[#allocation17 + $0x588] sm:$0xff]  ;;  %15237 = vst [vmem:[#allocation136_spill] sm:$0xff] %v12356_v32 }
 0xe4b   :  { %5535 = vmatprep.subr.mxu0 %v12235_v38  ;;  %v12344_v38 = vld [vmem:[#allocation17 + $0x5b0] sm:$0xff]  ;;  %15236 = vst [vmem:[#allocation135_spill] sm:$0xff] %v12350_v30 }
 0xe4c   :  { %5536 = vmatpush1.msra.mxu0 %v12241_v60  ;;  %v12342_v60 = vld [vmem:[#allocation17 + $0x578] sm:$0xff]  ;;  %15235 = vst [vmem:[#allocation134_spill] sm:$0xff] %v12344_v38 }
 0xe4d   :  { %5537 = vmatprep.subr.mxu0 %v12247_v34  ;;  %v12332_v34 = vld [vmem:[#allocation17 + $0x5e0] sm:$0xff] }
 0xe4e   :  { %5538 = vmatpush1.msra.mxu0 %v12253_v20  ;;  %v12313_v20 = vld [vmem:[#allocation17 + $0x10] sm:$0xff]  ;;  %15233 = vst [vmem:[#allocation132_spill] sm:$0xff] %v12332_v34 }
 0xe4f   :  { %5539 = vmatprep.subr.mxu0 %v12259_v45  ;;  %v12307_v45 = vld [vmem:[#allocation17 + $0x18] sm:$0xff]  ;;  %15231 = vst [vmem:[#allocation41_spill] sm:$0xff] %v12313_v20 }
 0xe50   :  { %5540 = vmatpush1.msra.mxu0 %v12265_v39  ;;  %v12301_v39 = vld [vmem:[#allocation17 + $0x40] sm:$0xff]  ;;  %15230 = vst [vmem:[#allocation46_spill] sm:$0xff] %v12307_v45 }
 0xe51   :  { %5541 = vmatprep.subr.mxu0 %v12271_v55  ;;  %15229 = vst [vmem:[#allocation43_spill] sm:$0xff] %v12301_v39  ;;  %v12305_v55 = vld [vmem:[#allocation17 + $0x8] sm:$0xff] }
 0xe52   :  { %5542 = vmatpush1.msra.mxu0 %v12277_v27  ;;  %v12311_v27 = vld [vmem:[#allocation17] sm:$0xff]  ;;  %5476 = vmatprep.subr.mxu1 %v12305_v55 }
 0xe53   :  { %5543 = vmatprep.subr.mxu0 %v12283_v4  ;;  %v12317_v4 = vld [vmem:[#allocation17 + $0x5d8] sm:$0xff]  ;;  %5477 = vmatpush1.msra.mxu1 %v12311_v27 }
 0xe54   :  { %5544 = vmatpush1.msra.mxu0 %v12289_v5  ;;  %5478 = vmatprep.subr.mxu1 %v12317_v4  ;;  %v12326_v5 = vld [vmem:[#allocation17 + $0x5e8] sm:$0xff] }
 0xe55   :  { %5545 = vmatprep.subr.mxu0 %v12295_v59  ;;  %v12324_v59 = vld [vmem:[#allocation17 + $0x5d0] sm:$0xff]  ;;  %15232 = vst [vmem:[#allocation131_spill] sm:$0xff] %v12326_v5 }
 0xe56   :  { %5546 = vmatpush1.msra.mxu0 %v12301_v39  ;;  %5479 = vmatpush2.msra.mxu1 %v12324_v59  ;;  %v12330_v39 = vld [vmem:[#allocation17 + $0x5a8] sm:$0xff] }
 0xe57   :  { %5547 = vmatprep.subr.mxu0 %v12307_v45  ;;  %5480 = vmatprep.subr.mxu1 %v12330_v39  ;;  %v12336_v45 = vld [vmem:[#allocation17 + $0x5a0] sm:$0xff] }
 0xe58   :  { %5548 = vmatpush1.msra.mxu0 %v12313_v20  ;;  %v12338_v20 = vld [vmem:[#allocation17 + $0x5b8] sm:$0xff]  ;;  %5481 = vmatpush2.msra.mxu1 %v12336_v45 }
 0xe59   :  { %5549 = vmatprep.subr.mxu0 %v12326_v5  ;;  %15234 = vst [vmem:[#allocation133_spill] sm:$0xff] %v12338_v20  ;;  %5482 = vmatprep.subr.mxu1 %v12342_v60  ;;  %v12348_v5 = vld [vmem:[#allocation17 + $0x570] sm:$0xff] }
 0xe5a   :  { %5550 = vmatpush2.msra.mxu0 %v12332_v34  ;;  %5483 = vmatpush2.msra.mxu1 %v12348_v5  ;;  %v12354_v34 = vld [vmem:[#allocation17 + $0x548] sm:$0xff] }
 0xe5b   :  { %5551 = vmatprep.subr.mxu0 %v12338_v20  ;;  %5484 = vmatprep.subr.mxu1 %v12354_v34  ;;  %v12360_v20 = vld [vmem:[#allocation17 + $0x540] sm:$0xff] }
 0xe5c   :  { %5552 = vmatpush2.msra.mxu0 %v12344_v38  ;;  %5485 = vmatpush2.msra.mxu1 %v12360_v20  ;;  %v12366_v38 = vld [vmem:[#allocation17 + $0x518] sm:$0xff] }
 0xe5d   :  { %5553 = vmatprep.subr.mxu0 %v12350_v30  ;;  %15239 = vst [vmem:[#allocation138_spill] sm:$0xff] %v12366_v38  ;;  %5486 = vmatprep.subr.mxu1 %v12366_v38  ;;  %v12372_v30 = vld [vmem:[#allocation17 + $0x510] sm:$0xff] }
 0xe5e   :  { %5554 = vmatpush2.msra.mxu0 %v12356_v32  ;;  %15241 = vst [vmem:[#allocation140_spill] sm:$0xff] %v12372_v30  ;;  %5487 = vmatpush2.msra.mxu1 %v12372_v30  ;;  %v12378_v32 = vld [vmem:[#allocation17 + $0x4e8] sm:$0xff] }
 0xe5f   :  { %5555 = vmatprep.subr.mxu0 %v12362_v37  ;;  %15243 = vst [vmem:[#allocation142_spill] sm:$0xff] %v12378_v32  ;;  %5488 = vmatprep.subr.mxu1 %v12378_v32  ;;  %v12384_v37 = vld [vmem:[#allocation17 + $0x4e0] sm:$0xff] }
 0xe60   :  { %5556 = vmatpush2.msra.mxu0 %v12368_v40  ;;  %15245 = vst [vmem:[#allocation144_spill] sm:$0xff] %v12384_v37  ;;  %5489 = vmatpush2.msra.mxu1 %v12384_v37  ;;  %v12390_v40 = vld [vmem:[#allocation17 + $0x4b8] sm:$0xff]  ;;  %v15289_v37 = vld [vmem:[#allocation63_spill] sm:$0xff]  ;;  %v15290_v32 = vld [vmem:[#allocation70_spill] sm:$0xff] }
 0xe61   :  { %5557 = vmatprep.subr.mxu0 %v12374_v26  ;;  %15247 = vst [vmem:[#allocation53_spill] sm:$0xff] %v12390_v40  ;;  %5490 = vmatprep.subr.mxu1 %v12390_v40  ;;  %v12396_v26 = vld [vmem:[#allocation17 + $0x4b0] sm:$0xff] }
 0xe62   :  { %5558 = vmatpush2.msra.mxu0 %v12380_v33  ;;  %15249 = vst [vmem:[#allocation55_spill] sm:$0xff] %v12396_v26  ;;  %v12400_v33 = vld [vmem:[#allocation17 + $0x488] sm:$0xff]  ;;  %5491 = vmatpush2.msra.mxu1 %v12396_v26 }
 0xe63   :  { %5559 = vmatprep.subr.mxu0 %v12386_v10  ;;  %15251 = vst [vmem:[#allocation57_spill] sm:$0xff] %v12400_v33  ;;  %v12406_v10 = vld [vmem:[#allocation17 + $0x480] sm:$0xff]  ;;  %5492 = vmatprep.subr.mxu1 %v12400_v33  ;;  %v12440_v33 = vld [vmem:[#allocation17 + $0x3f0] sm:$0xff] }
 0xe64   :  { %5560 = vmatpush2.msra.mxu0 %v12392_v0  ;;  %15253 = vst [vmem:[#allocation59_spill] sm:$0xff] %v12406_v10  ;;  %v12412_v0 = vld [vmem:[#allocation17 + $0x458] sm:$0xff]  ;;  %5493 = vmatpush2.msra.mxu1 %v12406_v10  ;;  %15265 = vst [vmem:[#allocation54_spill] sm:$0xff] %v12440_v33 }
 0xe65   :  { %5561 = vmatprep.subr.mxu0 %v12398_v54  ;;  %15255 = vst [vmem:[#allocation191_spill] sm:$0xff] %v12412_v0  ;;  %v12420_v54 = vld [vmem:[#allocation17 + $0x468] sm:$0xff]  ;;  %5494 = vmatprep.subr.mxu1 %v12412_v0  ;;  %v12434_v10 = vld [vmem:[#allocation17 + $0x3f8] sm:$0xff] }
 0xe66   :  { %5562 = vmatpush2.msra.mxu0 %v12404_v6  ;;  %15258 = vst [vmem:[#allocation197_spill] sm:$0xff] %v12420_v54  ;;  %v12428_v6 = vld [vmem:[#allocation17 + $0x420] sm:$0xff]  ;;  %5495 = vmatpush2.msra.mxu1 %v12416_v15  ;;  %15263 = vst [vmem:[#allocation29_spill] sm:$0xff] %v12434_v10  ;;  %v12442_v0 = vld [vmem:[#allocation17 + $0x408] sm:$0xff] }
 0xe67   :  { %5563 = vmatprep.subr.mxu0 %v12408_v9  ;;  %15261 = vst [vmem:[#allocation30_spill] sm:$0xff] %v12428_v6  ;;  %v12436_v9 = vld [vmem:[#allocation17 + $0x430] sm:$0xff]  ;;  %5496 = vmatprep.subr.mxu1 %v12422_v46  ;;  %15266 = vst [vmem:[#allocation160_spill] sm:$0xff] %v12442_v0  ;;  %v12448_v15 = vld [vmem:[#allocation17 + $0x400] sm:$0xff] }
 0xe68   :  { %5564 = vmatpush2.msra.mxu0 %v12414_v35  ;;  %15264 = vst [vmem:[#allocation33_spill] sm:$0xff] %v12436_v9  ;;  %5497 = vmatpush2.msra.mxu1 %v12428_v6  ;;  %v12446_v35 = vld [vmem:[#allocation17 + $0x3c8] sm:$0xff]  ;;  %15268 = vst [vmem:[#allocation117_spill] sm:$0xff] %v12448_v15  ;;  %v12454_v46 = vld [vmem:[#allocation17 + $0x3d8] sm:$0xff] }
 0xe69   :  { %5565 = vmatprep.subr.mxu0 %v12420_v54  ;;  %15267 = vst [vmem:[#allocation110_spill] sm:$0xff] %v12446_v35  ;;  %5498 = vmatprep.subr.mxu1 %v12434_v10  ;;  %v12452_v54 = vld [vmem:[#allocation17 + $0x3c0] sm:$0xff]  ;;  %15270 = vst [vmem:[#allocation127_spill] sm:$0xff] %v12454_v46  ;;  %v12460_v6 = vld [vmem:[#allocation17 + $0x3d0] sm:$0xff] }
 0xe6a   :  { %5566 = vmatpush2.msra.mxu0 %v12424_v49  ;;  %15269 = vst [vmem:[#allocation124_spill] sm:$0xff] %v12452_v54  ;;  %5499 = vmatpush2.msra.mxu1 %v12440_v33  ;;  %v12458_v49 = vld [vmem:[#allocation17 + $0x398] sm:$0xff]  ;;  %15272 = vst [vmem:[#allocation83_spill] sm:$0xff] %v12460_v6  ;;  %v12466_v10 = vld [vmem:[#allocation17 + $0x3a8] sm:$0xff] }
 0xe6b   :  { %5567 = vmatprep.subr.mxu0 %v12430_v48  ;;  %15271 = vst [vmem:[#allocation164_spill] sm:$0xff] %v12458_v49  ;;  %5500 = vmatprep.subr.mxu1 %v12446_v35  ;;  %v12464_v48 = vld [vmem:[#allocation17 + $0x390] sm:$0xff]  ;;  %15274 = vst [vmem:[#allocation87_spill] sm:$0xff] %v12466_v10  ;;  %v12472_v33 = vld [vmem:[#allocation17 + $0x3a0] sm:$0xff] }
 0xe6c   :  { %5568 = vmatpush2.msra.mxu0 %v12436_v9  ;;  %15273 = vst [vmem:[#allocation85_spill] sm:$0xff] %v12464_v48  ;;  %5501 = vmatpush2.msra.mxu1 %v12452_v54  ;;  %v12470_v9 = vld [vmem:[#allocation17 + $0x368] sm:$0xff]  ;;  %15276 = vst [vmem:[#allocation91_spill] sm:$0xff] %v12472_v33  ;;  %v12478_v35 = vld [vmem:[#allocation17 + $0x378] sm:$0xff] }
 0xe6d   :  { %5569 = vmatprep.subr.mxu0 %v12442_v0  ;;  %15275 = vst [vmem:[#allocation89_spill] sm:$0xff] %v12470_v9  ;;  %5502 = vmatprep.subr.mxu1 %v12458_v49  ;;  %v12476_v0 = vld [vmem:[#allocation17 + $0x360] sm:$0xff]  ;;  %15278 = vst [vmem:[#allocation72_spill] sm:$0xff] %v12478_v35  ;;  %v12484_v54 = vld [vmem:[#allocation17 + $0x370] sm:$0xff] }
 0xe6e   :  { %5570 = vmatpush2.msra.mxu0 %v12448_v15  ;;  %15277 = vst [vmem:[#allocation93_spill] sm:$0xff] %v12476_v0  ;;  %5503 = vmatpush2.msra.mxu1 %v12464_v48  ;;  %v12482_v15 = vld [vmem:[#allocation17 + $0x338] sm:$0xff]  ;;  %15280 = vst [vmem:[#allocation67_spill] sm:$0xff] %v12484_v54  ;;  %v12490_v49 = vld [vmem:[#allocation17 + $0x348] sm:$0xff] }
 0xe6f   :  { %5571 = vmatprep.subr.mxu0 %v12454_v46  ;;  %15279 = vst [vmem:[#allocation172_spill] sm:$0xff] %v12482_v15  ;;  %5504 = vmatprep.subr.mxu1 %v12470_v9  ;;  %v12488_v46 = vld [vmem:[#allocation17 + $0x330] sm:$0xff]  ;;  %15282 = vst [vmem:[#allocation69_spill] sm:$0xff] %v12490_v49  ;;  %v12496_v48 = vld [vmem:[#allocation17 + $0x340] sm:$0xff] }
 0xe70   :  { %5572 = vmatpush2.msra.mxu0 %v12460_v6  ;;  %15281 = vst [vmem:[#allocation73_spill] sm:$0xff] %v12488_v46  ;;  %5505 = vmatpush2.msra.mxu1 %v12476_v0  ;;  %v12494_v6 = vld [vmem:[#allocation17 + $0x308] sm:$0xff]  ;;  %15284 = vst [vmem:[#allocation71_spill] sm:$0xff] %v12496_v48  ;;  %v12502_v9 = vld [vmem:[#allocation17 + $0x318] sm:$0xff] }
 0xe71   :  { %5573 = vmatprep.subr.mxu0 %v12466_v10  ;;  %15283 = vst [vmem:[#allocation75_spill] sm:$0xff] %v12494_v6  ;;  %5506 = vmatprep.subr.mxu1 %v12482_v15  ;;  %v12500_v10 = vld [vmem:[#allocation17 + $0x300] sm:$0xff]  ;;  %15286 = vst [vmem:[#allocation74_spill] sm:$0xff] %v12502_v9 }
 0xe72   :  { %5574 = vmatpush2.msra.mxu0 %v12472_v33  ;;  %15285 = vst [vmem:[#allocation77_spill] sm:$0xff] %v12500_v10  ;;  %5507 = vmatpush2.msra.mxu1 %v12488_v46  ;;  %v12512_v33 = vld [vmem:[#allocation17 + $0x2f8] sm:$0xff] }
 0xe73   :  { %5575 = vmatprep.subr.mxu0 %v12478_v35  ;;  %5508 = vmatprep.subr.mxu1 %v12494_v6  ;;  %v12510_v35 = vld [vmem:[#allocation17 + $0x310] sm:$0xff]  ;;  %15288 = vst [vmem:[#allocation146_spill] sm:$0xff] %v12512_v33 }
 0xe74   :  { %5576 = vmatpush2.msra.mxu0 %v12484_v54  ;;  %5509 = vmatpush2.msra.mxu1 %v12500_v10  ;;  %15287 = vst [vmem:[#allocation79_spill] sm:$0xff] %v12510_v35 }
 0xe75   :  { %5577 = vmatprep.subr.mxu0 %v12490_v49  ;;  %5588 = vmatprep.subr.mxu1 %v12512_v33 }
 0xe76   :  { %5578 = vmatpush2.msra.mxu0 %v12496_v48 }
 0xe77   :  { %5579 = vmatprep.subr.mxu0 %v12502_v9 }
 0xe78   :  { %5580 = vmatpush2.msra.mxu0 %v12510_v35 }
 0xe79   :  { %5897 = vmatprep.subr.mxu0 %v12135_v29 }
 0xeb9   :  { %v5033_v54 = vpop.f32.mrf.mxu0  ;;  %v5104_v9 = vpop.f32.mrf.mxu1 }
 0xeba   :  { %v5184_v46 = vrot.slane %v5033_v54, 2  ;;  %v5186_v40 = vrot.slane %v5104_v9, 2 }
 0xebb   :  { %v5035_v49 = vpop.f32.mrf.mxu0  ;;  %v5106_v26 = vpop.f32.mrf.mxu1 }
 0xebc   :  { %v5185_v6 = vrot.slane %v5035_v49, 2  ;;  %v5192_v48 = vadd.f32 %v5184_v46, %v15059_v63  ;;  %v5187_v35 = vrot.slane %v5106_v26, 2  ;;  %v5194_v33 = vadd.f32 %v5186_v40, %v15289_v37 }
 0xebe   :  { %v5193_v10 = vadd.f32 %v5185_v6, %v15175_v14  ;;  %v6378_v15 = vmul.f32 -1.442695, %v5192_v48  ;;  %v5195_v29 = vadd.f32 %v5187_v35, %v15290_v32  ;;  %v6380_v30 = vmul.f32 -1.442695, %v5194_v33  ;;  %v15291_v35 = vld [vmem:[#allocation65_spill] sm:$0xff] }
 0xec0   :  { %v6379_v0 = vmul.f32 -1.442695, %v5193_v10  ;;  %6671 = vpow2.f32 %v6378_v15  ;;  %v6381_v38 = vmul.f32 -1.442695, %v5195_v29 }
 0xec2   :  { %6673 = vpow2.f32 %v6379_v0 }
 0xec3   :  { %6675 = vpow2.f32 %v6380_v30 }
 0xec4   :  { %6677 = vpow2.f32 %v6381_v38 }
 0xecd   :  { %v6672_v54 = vpop.eup %6671 }
 0xece   :  { %v5208_v63 = vadd.f32 1.0, %v6672_v54 }
 0xecf   :  { %v6674_v49 = vpop.eup %6673 }
 0xed0   :  { %v5209_v14 = vadd.f32 1.0, %v6674_v49  ;;  %6679 = vrcp.f32 %v5208_v63  ;;  %v6676_v48 = vpop.eup %6675 }
 0xed1   :  { %v6678_v46 = vpop.eup %6677  ;;  %v5210_v9 = vadd.f32 1.0, %v6676_v48  ;;  %v5238_v48 = vrot.slane %v12059_v58, 6  ;;  %v12535_v58 = vld [vmem:[#allocation17 + $0x2c8] sm:$0xff] }
 0xed2   :  { %6681 = vrcp.f32 %v5209_v14  ;;  %v5211_v10 = vadd.f32 1.0, %v6678_v46 }
 0xed3   :  { %6683 = vrcp.f32 %v5210_v9 }
 0xed4   :  { %6685 = vrcp.f32 %v5211_v10 }
 0xedd   :  { %v6680_v40 = vpop.eup %6679 }
 0xedf   :  { %v6682_v30 = vpop.eup %6681 }
 0xee0   :  { %v6684_v49 = vpop.eup %6683 }
 0xee1   :  { %v6686_v63 = vpop.eup %6685  ;;  %v5234_v14 = vsub.f32 1.0, %v6684_v49 }
 0xee2   :  { %v5235_v9 = vsub.f32 1.0, %v6686_v63 }
 0xef9   :  { %v5175_v15 = vpop.f32.mrf.mxu0 }
 0xefa   :  { %v5220_v6 = vadd.f32 %v5175_v15, %v15063_v18  ;;  %v5239_v15 = vrot.slane %v12061_v21, 6  ;;  %v12539_v21 = vld [vmem:[#allocation17 + $0x2c0] sm:$0xff] }
 0xefb   :  { %v5177_v0 = vpop.f32.mrf.mxu0 }
 0xefc   :  { %v5224_v26 = vrot.slane %v5220_v6, 2  ;;  %v5221_v33 = vadd.f32 %v5177_v0, %v15291_v35  ;;  %v5242_v0 = vmul.f32 %v6684_v49, %v5238_v48  ;;  %v12558_v49 = vld [vmem:[#allocation17 + $0x238] sm:$0xff]  ;;  %v15298_v48 = vld [vmem:[#allocation142_spill] sm:$0xff] }
 0xefe   :  { %v5228_v37 = vmul.f32 %v6680_v40, %v5224_v26  ;;  %v5225_v32 = vrot.slane %v5221_v33, 2  ;;  %v5243_v33 = vmul.f32 %v6686_v63, %v5239_v15  ;;  %v15294_v63 = vld [vmem:[#allocation138_spill] sm:$0xff]  ;;  %v12718_v15 = vld [vmem:[#allocation17 + $0x478] sm:$0xff] }
 0xeff   :  { %15301 = vst [vmem:[#allocation152_spill] sm:$0xff] %v12718_v15 }
 0xf00   :  { %v5230_v38 = vadd.f32 %v5228_v37, %v14949_v13  ;;  %v5229_v29 = vmul.f32 %v6682_v30, %v5225_v32  ;;  %v12531_v32 = vld [vmem:[#allocation17 + $0x2f0] sm:$0xff]  ;;  %v12543_v30 = vld [vmem:[#allocation17 + $0x298] sm:$0xff] }
 0xf02   :  { %6687 = vtanh.f32 %v5230_v38  ;;  %v5231_v54 = vadd.f32 %v5229_v29, %v14950_v25  ;;  %v12546_v38 = vld [vmem:[#allocation17 + $0x290] sm:$0xff]  ;;  %v12550_v29 = vld [vmem:[#allocation17 + $0x268] sm:$0xff] }
 0xf04   :  { %6689 = vtanh.f32 %v5231_v54  ;;  %v12554_v54 = vld [vmem:[#allocation17 + $0x260] sm:$0xff] }
 0xf0f   :  { %v6688_v46 = vpop.eup %6687 }
 0xf10   :  { %v5236_v6 = vmul.f32 %v6688_v46, %v5234_v14  ;;  %v15296_v14 = vld [vmem:[#allocation140_spill] sm:$0xff] }
 0xf11   :  { %v6690_v26 = vpop.eup %6689  ;;  %v15300_v46 = vld [vmem:[#allocation144_spill] sm:$0xff] }
 0xf12   :  { %v5237_v10 = vmul.f32 %v6690_v26, %v5235_v9  ;;  %v5244_v13 = vadd.f32 %v5242_v0, %v5236_v6  ;;  %v15302_v9 = vld [vmem:[#allocation53_spill] sm:$0xff]  ;;  %v12722_v6 = vld [vmem:[#allocation17 + $0x470] sm:$0xff]  ;;  %v15304_v0 = vld [vmem:[#allocation55_spill] sm:$0xff] }
 0xf13   :  { %15303 = vst [vmem:[#allocation153_spill] sm:$0xff] %v12722_v6  ;;  %v12726_v26 = vld [vmem:[#allocation17 + $0x448] sm:$0xff] }
 0xf14   :  { %v5245_v40 = vadd.f32 %v5243_v33, %v5237_v10  ;;  %5246 = vst [vmem:[#allocation2 + $0x10] sm:$0xc0] %v5244_v13  ;;  %v12529_v37 = vrot.slane %v5244_v13, 6  ;;  %15305 = vst [vmem:[#allocation154_spill] sm:$0xff] %v12726_v26  ;;  %v15306_v10 = vld [vmem:[#allocation57_spill] sm:$0xff]  ;;  %v12730_v33 = vld [vmem:[#allocation17 + $0x440] sm:$0xff] }
 0xf15   :  { %15307 = vst [vmem:[#allocation155_spill] sm:$0xff] %v12730_v33  ;;  %v15308_v13 = vld [vmem:[#allocation59_spill] sm:$0xff] }
 0xf16   :  { %5247 = vst [vmem:[#allocation2] sm:$0xc0] %v5245_v40  ;;  %v12527_v25 = vrot.slane %v5245_v40, 6  ;;  %v12734_v40 = vld [vmem:[#allocation17 + $0x418] sm:$0xff] }
 0xf17   :  { %15309 = vst [vmem:[#allocation156_spill] sm:$0xff] %v12734_v40 }
 0xf18   :  { %5510 = vmatprep.mubr.f32.mxu1 %v12527_v25  ;;  %5581 = vmatprep.mubr.f32.mxu0 %v12527_v25 }
 0xf19   :  { %5511 = vmatmul.mubr.f32.vlgmr.msra.gmra.mxu1 %v12529_v37  ;;  %5582 = vmatmul.mubr.f32.vlgmr.msra.gmra.mxu0 %v12529_v37 }
 0xf1a   :  { %5589 = vmatpush1.msra.mxu1 %v12531_v32  ;;  %5652 = vmatprep.mubr.f32.mxu1 %v12527_v25 }
 0xf1b   :  { %5590 = vmatprep.subr.mxu1 %v12535_v58  ;;  %5898 = vmatpush1.msra.mxu0 %v12137_v47  ;;  %v12562_v47 = vld [vmem:[#allocation17 + $0x230] sm:$0xff] }
 0xf1c   :  { %5591 = vmatpush1.msra.mxu1 %v12539_v21  ;;  %5899 = vmatprep.subr.mxu0 %v12140_v3  ;;  %v12566_v3 = vld [vmem:[#allocation17 + $0x208] sm:$0xff] }
 0xf1d   :  { %5592 = vmatprep.subr.mxu1 %v12543_v30  ;;  %5900 = vmatpush1.msra.mxu0 %v12142_v43  ;;  %v12570_v43 = vld [vmem:[#allocation17 + $0x200] sm:$0xff] }
 0xf1e   :  { %5593 = vmatpush1.msra.mxu1 %v12546_v38  ;;  %5901 = vmatprep.subr.mxu0 %v12147_v44  ;;  %v12574_v44 = vld [vmem:[#allocation17 + $0x1d8] sm:$0xff] }
 0xf1f   :  { %5594 = vmatprep.subr.mxu1 %v12550_v29  ;;  %5902 = vmatpush1.msra.mxu0 %v12153_v22  ;;  %v12578_v22 = vld [vmem:[#allocation17 + $0x1d0] sm:$0xff] }
 0xf20   :  { %5595 = vmatpush1.msra.mxu1 %v12554_v54  ;;  %5903 = vmatprep.subr.mxu0 %v12159_v7  ;;  %v12582_v7 = vld [vmem:[#allocation17 + $0x1a8] sm:$0xff] }
 0xf21   :  { %5596 = vmatprep.subr.mxu1 %v12558_v49  ;;  %5904 = vmatpush1.msra.mxu0 %v12167_v62  ;;  %v12586_v62 = vld [vmem:[#allocation17 + $0x1a0] sm:$0xff] }
 0xf22   :  { %5597 = vmatpush1.msra.mxu1 %v12562_v47  ;;  %5905 = vmatprep.subr.mxu0 %v12173_v28  ;;  %v12590_v28 = vld [vmem:[#allocation17 + $0x178] sm:$0xff] }
 0xf23   :  { %5598 = vmatprep.subr.mxu1 %v12566_v3  ;;  %5906 = vmatpush1.msra.mxu0 %v12179_v42  ;;  %v12594_v42 = vld [vmem:[#allocation17 + $0x170] sm:$0xff] }
 0xf24   :  { %5599 = vmatpush1.msra.mxu1 %v12570_v43  ;;  %5907 = vmatprep.subr.mxu0 %v12185_v31  ;;  %v12598_v31 = vld [vmem:[#allocation17 + $0x148] sm:$0xff] }
 0xf25   :  { %5600 = vmatprep.subr.mxu1 %v12574_v44  ;;  %5908 = vmatpush1.msra.mxu0 %v12191_v53  ;;  %v12602_v53 = vld [vmem:[#allocation17 + $0x140] sm:$0xff] }
 0xf26   :  { %5601 = vmatpush1.msra.mxu1 %v12578_v22  ;;  %5909 = vmatprep.subr.mxu0 %v12197_v36  ;;  %v12606_v36 = vld [vmem:[#allocation17 + $0x118] sm:$0xff] }
 0xf27   :  { %5602 = vmatprep.subr.mxu1 %v12582_v7  ;;  %5910 = vmatpush1.msra.mxu0 %v12203_v12  ;;  %v12610_v12 = vld [vmem:[#allocation17 + $0x110] sm:$0xff] }
 0xf28   :  { %5603 = vmatpush1.msra.mxu1 %v12586_v62  ;;  %5911 = vmatprep.subr.mxu0 %v12209_v11  ;;  %v12614_v11 = vld [vmem:[#allocation17 + $0xe8] sm:$0xff] }
 0xf29   :  { %5604 = vmatprep.subr.mxu1 %v12590_v28  ;;  %5912 = vmatpush1.msra.mxu0 %v12215_v51  ;;  %v12618_v51 = vld [vmem:[#allocation17 + $0xe0] sm:$0xff] }
 0xf2a   :  { %5605 = vmatpush1.msra.mxu1 %v12594_v42  ;;  %5913 = vmatprep.subr.mxu0 %v12221_v19  ;;  %v12622_v19 = vld [vmem:[#allocation17 + $0xb8] sm:$0xff] }
 0xf2b   :  { %5606 = vmatprep.subr.mxu1 %v12598_v31  ;;  %5914 = vmatpush1.msra.mxu0 %v12227_v1  ;;  %v12626_v1 = vld [vmem:[#allocation17 + $0xb0] sm:$0xff] }
 0xf2c   :  { %5607 = vmatpush1.msra.mxu1 %v12602_v53  ;;  %5915 = vmatprep.subr.mxu0 %v12233_v52  ;;  %v12630_v52 = vld [vmem:[#allocation17 + $0x88] sm:$0xff] }
 0xf2d   :  { %5608 = vmatprep.subr.mxu1 %v12606_v36  ;;  %5916 = vmatpush1.msra.mxu0 %v12239_v50  ;;  %v12634_v50 = vld [vmem:[#allocation17 + $0x80] sm:$0xff] }
 0xf2e   :  { %5609 = vmatpush1.msra.mxu1 %v12610_v12  ;;  %5917 = vmatprep.subr.mxu0 %v12245_v17  ;;  %v12638_v17 = vld [vmem:[#allocation17 + $0x58] sm:$0xff] }
 0xf2f   :  { %5610 = vmatprep.subr.mxu1 %v12614_v11  ;;  %5918 = vmatpush1.msra.mxu0 %v12251_v57  ;;  %v12642_v57 = vld [vmem:[#allocation17 + $0x50] sm:$0xff] }
 0xf30   :  { %5611 = vmatpush1.msra.mxu1 %v12618_v51  ;;  %5919 = vmatprep.subr.mxu0 %v12257_v16  ;;  %v12646_v16 = vld [vmem:[#allocation17 + $0x28] sm:$0xff] }
 0xf31   :  { %5612 = vmatprep.subr.mxu1 %v12622_v19  ;;  %5920 = vmatpush1.msra.mxu0 %v12263_v41  ;;  %v12650_v41 = vld [vmem:[#allocation17 + $0x20] sm:$0xff] }
 0xf32   :  { %5613 = vmatpush1.msra.mxu1 %v12626_v1  ;;  %5921 = vmatprep.subr.mxu0 %v12269_v23  ;;  %v12654_v23 = vld [vmem:[#allocation17 + $0x5f8] sm:$0xff] }
 0xf33   :  { %5614 = vmatprep.subr.mxu1 %v12630_v52  ;;  %5922 = vmatpush1.msra.mxu0 %v12275_v24  ;;  %v12658_v24 = vld [vmem:[#allocation17 + $0x5f0] sm:$0xff] }
 0xf34   :  { %5615 = vmatpush1.msra.mxu1 %v12634_v50  ;;  %5923 = vmatprep.subr.mxu0 %v12281_v8  ;;  %v12662_v8 = vld [vmem:[#allocation17 + $0x5c8] sm:$0xff] }
 0xf35   :  { %5616 = vmatprep.subr.mxu1 %v12638_v17  ;;  %5924 = vmatpush1.msra.mxu0 %v12287_v2  ;;  %v12666_v2 = vld [vmem:[#allocation17 + $0x5c0] sm:$0xff] }
 0xf36   :  { %5617 = vmatpush1.msra.mxu1 %v12642_v57  ;;  %5925 = vmatprep.subr.mxu0 %v12293_v56  ;;  %v12670_v56 = vld [vmem:[#allocation17 + $0x598] sm:$0xff] }
 0xf37   :  { %5618 = vmatprep.subr.mxu1 %v12646_v16  ;;  %5926 = vmatpush1.msra.mxu0 %v12299_v61  ;;  %v12674_v61 = vld [vmem:[#allocation17 + $0x590] sm:$0xff] }
 0xf38   :  { %5619 = vmatpush1.msra.mxu1 %v12650_v41  ;;  %5927 = vmatprep.subr.mxu0 %v12305_v55  ;;  %v12678_v55 = vld [vmem:[#allocation17 + $0x568] sm:$0xff] }
 0xf39   :  { %5620 = vmatprep.subr.mxu1 %v12654_v23  ;;  %5928 = vmatpush1.msra.mxu0 %v12311_v27  ;;  %v12682_v27 = vld [vmem:[#allocation17 + $0x560] sm:$0xff] }
 0xf3a   :  { %5621 = vmatpush2.msra.mxu1 %v12658_v24  ;;  %5929 = vmatprep.subr.mxu0 %v12317_v4  ;;  %v12686_v4 = vld [vmem:[#allocation17 + $0x538] sm:$0xff] }
 0xf3b   :  { %5622 = vmatprep.subr.mxu1 %v12662_v8  ;;  %5930 = vmatpush2.msra.mxu0 %v12324_v59  ;;  %v12690_v59 = vld [vmem:[#allocation17 + $0x530] sm:$0xff] }
 0xf3c   :  { %5623 = vmatpush2.msra.mxu1 %v12666_v2  ;;  %5931 = vmatprep.subr.mxu0 %v12330_v39  ;;  %v12694_v39 = vld [vmem:[#allocation17 + $0x508] sm:$0xff] }
 0xf3d   :  { %5624 = vmatprep.subr.mxu1 %v12670_v56  ;;  %5932 = vmatpush2.msra.mxu0 %v12336_v45  ;;  %v12698_v45 = vld [vmem:[#allocation17 + $0x500] sm:$0xff] }
 0xf3e   :  { %5625 = vmatpush2.msra.mxu1 %v12674_v61  ;;  %5933 = vmatprep.subr.mxu0 %v12342_v60  ;;  %15292 = vst [vmem:[#allocation147_spill] sm:$0xff] %v12698_v45  ;;  %v12702_v60 = vld [vmem:[#allocation17 + $0x4d8] sm:$0xff] }
 0xf3f   :  { %5626 = vmatprep.subr.mxu1 %v12678_v55  ;;  %5934 = vmatpush2.msra.mxu0 %v12348_v5  ;;  %15293 = vst [vmem:[#allocation148_spill] sm:$0xff] %v12702_v60  ;;  %v12706_v5 = vld [vmem:[#allocation17 + $0x4d0] sm:$0xff] }
 0xf40   :  { %5627 = vmatpush2.msra.mxu1 %v12682_v27  ;;  %5935 = vmatprep.subr.mxu0 %v12354_v34  ;;  %15295 = vst [vmem:[#allocation149_spill] sm:$0xff] %v12706_v5  ;;  %v12710_v34 = vld [vmem:[#allocation17 + $0x4a8] sm:$0xff] }
 0xf41   :  { %5628 = vmatprep.subr.mxu1 %v12686_v4  ;;  %5936 = vmatpush2.msra.mxu0 %v12360_v20  ;;  %15297 = vst [vmem:[#allocation150_spill] sm:$0xff] %v12710_v34  ;;  %v12714_v20 = vld [vmem:[#allocation17 + $0x4a0] sm:$0xff] }
 0xf42   :  { %5629 = vmatpush2.msra.mxu1 %v12690_v59  ;;  %5937 = vmatprep.subr.mxu0 %v15294_v63  ;;  %15299 = vst [vmem:[#allocation151_spill] sm:$0xff] %v12714_v20  ;;  %v15310_v63 = vld [vmem:[#allocation191_spill] sm:$0xff] }
 0xf43   :  { %5630 = vmatprep.subr.mxu1 %v12694_v39  ;;  %5938 = vmatpush2.msra.mxu0 %v15296_v14  ;;  %v12738_v14 = vld [vmem:[#allocation17 + $0x410] sm:$0xff] }
 0xf44   :  { %5631 = vmatpush2.msra.mxu1 %v12698_v45  ;;  %5939 = vmatprep.subr.mxu0 %v15298_v48  ;;  %15311 = vst [vmem:[#allocation157_spill] sm:$0xff] %v12738_v14  ;;  %v15312_v48 = vld [vmem:[#allocation195_spill] sm:$0xff] }
 0xf45   :  { %5632 = vmatprep.subr.mxu1 %v12702_v60  ;;  %5940 = vmatpush2.msra.mxu0 %v15300_v46  ;;  %v12742_v46 = vld [vmem:[#allocation17 + $0x3e8] sm:$0xff] }
 0xf46   :  { %5633 = vmatpush2.msra.mxu1 %v12706_v5  ;;  %5941 = vmatprep.subr.mxu0 %v15302_v9  ;;  %15313 = vst [vmem:[#allocation158_spill] sm:$0xff] %v12742_v46  ;;  %v15314_v9 = vld [vmem:[#allocation199_spill] sm:$0xff]  ;;  %v15405_v5 = vld [vmem:[#allocation68_spill] sm:$0xff] }
 0xf47   :  { %5634 = vmatprep.subr.mxu1 %v12710_v34  ;;  %5942 = vmatpush2.msra.mxu0 %v15304_v0  ;;  %v12746_v0 = vld [vmem:[#allocation17 + $0x3e0] sm:$0xff] }
 0xf48   :  { %5635 = vmatpush2.msra.mxu1 %v12714_v20  ;;  %5943 = vmatprep.subr.mxu0 %v15306_v10  ;;  %15315 = vst [vmem:[#allocation159_spill] sm:$0xff] %v12746_v0  ;;  %v15316_v10 = vld [vmem:[#allocation30_spill] sm:$0xff] }
 0xf49   :  { %5636 = vmatprep.subr.mxu1 %v12718_v15  ;;  %5944 = vmatpush2.msra.mxu0 %v15308_v13  ;;  %v12750_v13 = vld [vmem:[#allocation17 + $0x3b8] sm:$0xff]  ;;  %v15401_v15 = vld [vmem:[#allocation39_spill] sm:$0xff]  ;;  %v15403_v34 = vld [vmem:[#allocation50_spill] sm:$0xff] }
 0xf4a   :  { %5637 = vmatpush2.msra.mxu1 %v12722_v6  ;;  %5945 = vmatprep.subr.mxu0 %v15310_v63  ;;  %15317 = vst [vmem:[#allocation203_spill] sm:$0xff] %v12750_v13  ;;  %v15318_v63 = vld [vmem:[#allocation29_spill] sm:$0xff]  ;;  %v15400_v6 = vld [vmem:[#allocation44_spill] sm:$0xff] }
 0xf4b   :  { %5638 = vmatprep.subr.mxu1 %v12726_v26  ;;  %5946 = vmatpush2.msra.mxu0 %v15312_v48  ;;  %v12754_v48 = vld [vmem:[#allocation17 + $0x3b0] sm:$0xff]  ;;  %v15344_v26 = vld [vmem:[#allocation94_spill] sm:$0xff] }
 0xf4c   :  { %5639 = vmatpush2.msra.mxu1 %v12730_v33  ;;  %5947 = vmatprep.subr.mxu0 %v15314_v9  ;;  %15319 = vst [vmem:[#allocation34_spill] sm:$0xff] %v12754_v48  ;;  %v15320_v33 = vld [vmem:[#allocation54_spill] sm:$0xff]  ;;  %v12758_v9 = vld [vmem:[#allocation17 + $0x388] sm:$0xff] }
 0xf4d   :  { %5640 = vmatprep.subr.mxu1 %v12734_v40  ;;  %5948 = vmatpush2.msra.mxu0 %v15316_v10  ;;  %15321 = vst [vmem:[#allocation31_spill] sm:$0xff] %v12758_v9  ;;  %v15322_v40 = vld [vmem:[#allocation110_spill] sm:$0xff] }
 0xf4e   :  { %5641 = vmatpush2.msra.mxu1 %v12738_v14  ;;  %5949 = vmatprep.subr.mxu0 %v15318_v63  ;;  %v12762_v10 = vld [vmem:[#allocation17 + $0x380] sm:$0xff]  ;;  %v15324_v14 = vld [vmem:[#allocation124_spill] sm:$0xff]  ;;  %v12766_v63 = vld [vmem:[#allocation17 + $0x358] sm:$0xff] }
 0xf4f   :  { %5642 = vmatprep.subr.mxu1 %v12742_v46  ;;  %5950 = vmatpush2.msra.mxu0 %v15320_v33  ;;  %15323 = vst [vmem:[#allocation56_spill] sm:$0xff] %v12762_v10  ;;  %15325 = vst [vmem:[#allocation179_spill] sm:$0xff] %v12766_v63  ;;  %v15326_v46 = vld [vmem:[#allocation164_spill] sm:$0xff] }
 0xf50   :  { %5643 = vmatpush2.msra.mxu1 %v12746_v0  ;;  %5951 = vmatprep.subr.mxu0 %v15322_v40  ;;  %v12770_v33 = vld [vmem:[#allocation17 + $0x350] sm:$0xff]  ;;  %v15328_v0 = vld [vmem:[#allocation85_spill] sm:$0xff]  ;;  %v12774_v40 = vld [vmem:[#allocation17 + $0x328] sm:$0xff] }
 0xf51   :  { %5644 = vmatprep.subr.mxu1 %v12750_v13  ;;  %5952 = vmatpush2.msra.mxu0 %v15324_v14  ;;  %15327 = vst [vmem:[#allocation180_spill] sm:$0xff] %v12770_v33  ;;  %15329 = vst [vmem:[#allocation181_spill] sm:$0xff] %v12774_v40  ;;  %v15330_v13 = vld [vmem:[#allocation89_spill] sm:$0xff]  ;;  %v12778_v14 = vld [vmem:[#allocation17 + $0x320] sm:$0xff] }
 0xf52   :  { %5645 = vmatpush2.msra.mxu1 %v12754_v48  ;;  %5953 = vmatprep.subr.mxu0 %v15326_v46  ;;  %15331 = vst [vmem:[#allocation182_spill] sm:$0xff] %v12778_v14  ;;  %v15332_v48 = vld [vmem:[#allocation93_spill] sm:$0xff]  ;;  %v15333_v46 = vld [vmem:[#allocation172_spill] sm:$0xff] }
 0xf53   :  { %5646 = vmatprep.subr.mxu1 %v12758_v9  ;;  %5954 = vmatpush2.msra.mxu0 %v15328_v0  ;;  %v15334_v9 = vld [vmem:[#allocation73_spill] sm:$0xff]  ;;  %v15335_v0 = vld [vmem:[#allocation75_spill] sm:$0xff] }
 0xf54   :  { %5647 = vmatpush2.msra.mxu1 %v12762_v10  ;;  %5955 = vmatprep.subr.mxu0 %v15330_v13  ;;  %v7311_v13 = vld [vmem:[#allocation17 + $0x2e8] sm:$0xff]  ;;  %v15336_v10 = vld [vmem:[#allocation77_spill] sm:$0xff] }
 0xf55   :  { %5648 = vmatprep.subr.mxu1 %v12766_v63  ;;  %5956 = vmatpush2.msra.mxu0 %v15332_v48  ;;  %v7312_v63 = vld [vmem:[#allocation17 + $0x2e0] sm:$0xff] }
 0xf56   :  { %5649 = vmatpush2.msra.mxu1 %v12770_v33  ;;  %5957 = vmatprep.subr.mxu0 %v15333_v46  ;;  %v15337_v48 = vld [vmem:[#allocation82_spill] sm:$0xff]  ;;  %v15339_v46 = vld [vmem:[#allocation84_spill] sm:$0xff] }
 0xf57   :  { %5650 = vmatprep.subr.mxu1 %v12774_v40  ;;  %5958 = vmatpush2.msra.mxu0 %v15334_v9  ;;  %v15338_v33 = vld [vmem:[#allocation146_spill] sm:$0xff]  ;;  %v15341_v9 = vld [vmem:[#allocation88_spill] sm:$0xff] }
 0xf58   :  { %5651 = vmatpush2.msra.mxu1 %v12778_v14  ;;  %5959 = vmatprep.subr.mxu0 %v15335_v0  ;;  %v15340_v40 = vld [vmem:[#allocation86_spill] sm:$0xff]  ;;  %v15343_v0 = vld [vmem:[#allocation92_spill] sm:$0xff] }
 0xf59   :  { %5653 = vmatmul.mubr.f32.vlgmr.msra.gmra.mxu1 %v12529_v37  ;;  %5968 = vmatprep.subr.mxu1 %v7311_v13  ;;  %v15342_v14 = vld [vmem:[#allocation90_spill] sm:$0xff]  ;;  %v15345_v13 = vld [vmem:[#allocation96_spill] sm:$0xff] }
 0xf5a   :  { %5969 = vmatpush1.msra.mxu1 %v7312_v63  ;;  %5960 = vmatpush2.msra.mxu0 %v15336_v10  ;;  %v15346_v63 = vld [vmem:[#allocation98_spill] sm:$0xff]  ;;  %v15347_v10 = vld [vmem:[#allocation100_spill] sm:$0xff] }
 0xf5b   :  { %5970 = vmatprep.subr.mxu1 %v15337_v48  ;;  %6039 = vmatprep.subr.mxu0 %v15338_v33  ;;  %v15348_v48 = vld [vmem:[#allocation102_spill] sm:$0xff]  ;;  %v15349_v33 = vld [vmem:[#allocation104_spill] sm:$0xff] }
 0xf5c   :  { %5971 = vmatpush1.msra.mxu1 %v15339_v46  ;;  %v15350_v46 = vld [vmem:[#allocation106_spill] sm:$0xff] }
 0xf5d   :  { %5972 = vmatprep.subr.mxu1 %v15340_v40  ;;  %v15351_v40 = vld [vmem:[#allocation108_spill] sm:$0xff] }
 0xf5e   :  { %5973 = vmatpush1.msra.mxu1 %v15341_v9  ;;  %v15352_v9 = vld [vmem:[#allocation112_spill] sm:$0xff] }
 0xf5f   :  { %5974 = vmatprep.subr.mxu1 %v15342_v14  ;;  %v15353_v14 = vld [vmem:[#allocation116_spill] sm:$0xff] }
 0xf60   :  { %5975 = vmatpush1.msra.mxu1 %v15343_v0  ;;  %v15354_v0 = vld [vmem:[#allocation119_spill] sm:$0xff] }
 0xf61   :  { %5976 = vmatprep.subr.mxu1 %v15344_v26  ;;  %v15355_v26 = vld [vmem:[#allocation122_spill] sm:$0xff] }
 0xf62   :  { %5977 = vmatpush1.msra.mxu1 %v15345_v13  ;;  %v15356_v13 = vld [vmem:[#allocation126_spill] sm:$0xff] }
 0xf63   :  { %5978 = vmatprep.subr.mxu1 %v15346_v63  ;;  %v15357_v63 = vld [vmem:[#allocation128_spill] sm:$0xff] }
 0xf64   :  { %5979 = vmatpush1.msra.mxu1 %v15347_v10  ;;  %v15358_v10 = vld [vmem:[#allocation129_spill] sm:$0xff] }
 0xf65   :  { %5980 = vmatprep.subr.mxu1 %v15348_v48  ;;  %v15359_v48 = vld [vmem:[#allocation42_spill] sm:$0xff] }
 0xf66   :  { %5981 = vmatpush1.msra.mxu1 %v15349_v33  ;;  %v15360_v33 = vld [vmem:[#allocation40_spill] sm:$0xff] }
 0xf67   :  { %5982 = vmatprep.subr.mxu1 %v15350_v46  ;;  %v15361_v46 = vld [vmem:[#allocation37_spill] sm:$0xff] }
 0xf68   :  { %5983 = vmatpush1.msra.mxu1 %v15351_v40  ;;  %v15362_v40 = vld [vmem:[#allocation35_spill] sm:$0xff] }
 0xf69   :  { %5984 = vmatprep.subr.mxu1 %v15352_v9  ;;  %v15363_v9 = vld [vmem:[#allocation28_spill] sm:$0xff] }
 0xf6a   :  { %5985 = vmatpush1.msra.mxu1 %v15353_v14  ;;  %v15364_v14 = vld [vmem:[#allocation48_spill] sm:$0xff] }
 0xf6b   :  { %5986 = vmatprep.subr.mxu1 %v15354_v0  ;;  %v15365_v0 = vld [vmem:[#allocation43_spill] sm:$0xff] }
 0xf6c   :  { %5987 = vmatpush1.msra.mxu1 %v15355_v26  ;;  %v15366_v26 = vld [vmem:[#allocation46_spill] sm:$0xff] }
 0xf6d   :  { %5988 = vmatprep.subr.mxu1 %v15356_v13  ;;  %v15367_v13 = vld [vmem:[#allocation41_spill] sm:$0xff] }
 0xf6e   :  { %5989 = vmatpush1.msra.mxu1 %v15357_v63  ;;  %v15368_v63 = vld [vmem:[#allocation131_spill] sm:$0xff] }
 0xf6f   :  { %5990 = vmatprep.subr.mxu1 %v15358_v10  ;;  %v15369_v10 = vld [vmem:[#allocation132_spill] sm:$0xff] }
 0xf70   :  { %5991 = vmatpush1.msra.mxu1 %v15359_v48  ;;  %v15370_v48 = vld [vmem:[#allocation133_spill] sm:$0xff] }
 0xf71   :  { %5992 = vmatprep.subr.mxu1 %v15360_v33  ;;  %v15371_v33 = vld [vmem:[#allocation134_spill] sm:$0xff] }
 0xf72   :  { %5993 = vmatpush1.msra.mxu1 %v15361_v46  ;;  %v15372_v46 = vld [vmem:[#allocation135_spill] sm:$0xff] }
 0xf73   :  { %5994 = vmatprep.subr.mxu1 %v15362_v40  ;;  %v15373_v40 = vld [vmem:[#allocation136_spill] sm:$0xff] }
 0xf74   :  { %5995 = vmatpush1.msra.mxu1 %v15363_v9  ;;  %v15374_v9 = vld [vmem:[#allocation137_spill] sm:$0xff] }
 0xf75   :  { %5996 = vmatprep.subr.mxu1 %v15364_v14  ;;  %v15375_v14 = vld [vmem:[#allocation139_spill] sm:$0xff] }
 0xf76   :  { %5997 = vmatpush1.msra.mxu1 %v15365_v0  ;;  %v15376_v0 = vld [vmem:[#allocation141_spill] sm:$0xff] }
 0xf77   :  { %5998 = vmatprep.subr.mxu1 %v15366_v26  ;;  %v15377_v26 = vld [vmem:[#allocation143_spill] sm:$0xff] }
 0xf78   :  { %5999 = vmatpush1.msra.mxu1 %v15367_v13  ;;  %v15378_v13 = vld [vmem:[#allocation58_spill] sm:$0xff] }
 0xf79   :  { %6000 = vmatprep.subr.mxu1 %v15368_v63  ;;  %v15379_v63 = vld [vmem:[#allocation60_spill] sm:$0xff] }
 0xf7a   :  { %6001 = vmatpush2.msra.mxu1 %v15369_v10  ;;  %v15380_v10 = vld [vmem:[#allocation62_spill] sm:$0xff] }
 0xf7b   :  { %6002 = vmatprep.subr.mxu1 %v15370_v48  ;;  %v15381_v48 = vld [vmem:[#allocation64_spill] sm:$0xff] }
 0xf7c   :  { %6003 = vmatpush2.msra.mxu1 %v15371_v33  ;;  %v15382_v33 = vld [vmem:[#allocation189_spill] sm:$0xff] }
 0xf7d   :  { %6004 = vmatprep.subr.mxu1 %v15372_v46  ;;  %v15383_v46 = vld [vmem:[#allocation193_spill] sm:$0xff] }
 0xf7e   :  { %6005 = vmatpush2.msra.mxu1 %v15373_v40  ;;  %v15384_v40 = vld [vmem:[#allocation197_spill] sm:$0xff] }
 0xf7f   :  { %6006 = vmatprep.subr.mxu1 %v15374_v9  ;;  %v15385_v9 = vld [vmem:[#allocation201_spill] sm:$0xff] }
 0xf80   :  { %6007 = vmatpush2.msra.mxu1 %v15375_v14  ;;  %v15386_v14 = vld [vmem:[#allocation51_spill] sm:$0xff] }
 0xf81   :  { %6008 = vmatprep.subr.mxu1 %v15376_v0  ;;  %v15387_v0 = vld [vmem:[#allocation33_spill] sm:$0xff] }
 0xf82   :  { %6009 = vmatpush2.msra.mxu1 %v15377_v26  ;;  %v15388_v26 = vld [vmem:[#allocation160_spill] sm:$0xff] }
 0xf83   :  { %6010 = vmatprep.subr.mxu1 %v15378_v13  ;;  %v15389_v13 = vld [vmem:[#allocation117_spill] sm:$0xff] }
 0xf84   :  { %6011 = vmatpush2.msra.mxu1 %v15379_v63  ;;  %v15390_v63 = vld [vmem:[#allocation127_spill] sm:$0xff] }
 0xf85   :  { %6012 = vmatprep.subr.mxu1 %v15380_v10  ;;  %v15391_v10 = vld [vmem:[#allocation83_spill] sm:$0xff] }
 0xf86   :  { %6013 = vmatpush2.msra.mxu1 %v15381_v48  ;;  %v15392_v48 = vld [vmem:[#allocation87_spill] sm:$0xff] }
 0xf87   :  { %6014 = vmatprep.subr.mxu1 %v15382_v33  ;;  %v15393_v33 = vld [vmem:[#allocation91_spill] sm:$0xff] }
 0xf88   :  { %6015 = vmatpush2.msra.mxu1 %v15383_v46  ;;  %v15394_v46 = vld [vmem:[#allocation72_spill] sm:$0xff] }
 0xf89   :  { %6016 = vmatprep.subr.mxu1 %v15384_v40  ;;  %v15395_v40 = vld [vmem:[#allocation67_spill] sm:$0xff] }
 0xf8a   :  { %6017 = vmatpush2.msra.mxu1 %v15385_v9  ;;  %v15396_v9 = vld [vmem:[#allocation69_spill] sm:$0xff] }
 0xf8b   :  { %6018 = vmatprep.subr.mxu1 %v15386_v14  ;;  %v15397_v14 = vld [vmem:[#allocation71_spill] sm:$0xff] }
 0xf8c   :  { %6019 = vmatpush2.msra.mxu1 %v15387_v0  ;;  %v15398_v0 = vld [vmem:[#allocation74_spill] sm:$0xff] }
 0xf8d   :  { %6020 = vmatprep.subr.mxu1 %v15388_v26  ;;  %v15399_v26 = vld [vmem:[#allocation79_spill] sm:$0xff] }
 0xf8e   :  { %6021 = vmatpush2.msra.mxu1 %v15389_v13  ;;  %v6215_v13 = vld [vmem:[#allocation18 + $0xf8] sm:$0xff] }
 0xf8f   :  { %6022 = vmatprep.subr.mxu1 %v15390_v63 }
 0xf90   :  { %6023 = vmatpush2.msra.mxu1 %v15391_v10 }
 0xf91   :  { %6024 = vmatprep.subr.mxu1 %v15392_v48 }
 0xf92   :  { %6025 = vmatpush2.msra.mxu1 %v15393_v33 }
 0xf93   :  { %6026 = vmatprep.subr.mxu1 %v15394_v46 }
 0xf94   :  { %6027 = vmatpush2.msra.mxu1 %v15395_v40 }
 0xf95   :  { %6028 = vmatprep.subr.mxu1 %v15396_v9  ;;  %v15402_v9 = vld [vmem:[#allocation61_spill] sm:$0xff] }
 0xf96   :  { %6029 = vmatpush2.msra.mxu1 %v15397_v14  ;;  %v12856_v14 = vadd.f32 %v15403_v34, %v15402_v9 }
 0xf97   :  { %6030 = vmatprep.subr.mxu1 %v15398_v0 }
 0xf98   :  { %6031 = vmatpush2.msra.mxu1 %v15399_v26  ;;  %15404 = vst [vmem:[#allocation183_spill] sm:$0xff] %v12856_v14  ;;  %v15406_v26 = vld [vmem:[#allocation45_spill] sm:$0xff] }
 0xf99   :  { %6391 = vmatprep.subr.mxu1 %v6215_v13  ;;  %v12860_v60 = vadd.f32 %v15406_v26, %v15405_v5 }
 0xf9b   :  { %15407 = vst [vmem:[#allocation184_spill] sm:$0xff] %v12860_v60 }
 0xfd9   :  { %v5512_v63 = vpop.f32.mrf.mxu1  ;;  %v5583_v40 = vpop.f32.mrf.mxu0 }
 0xfda   :  { %v5659_v48 = vadd.f32 %v5512_v63, %v15400_v6  ;;  %v5661_v13 = vadd.f32 %v5583_v40, %v12856_v14 }
 0xfdb   :  { %v5514_v10 = vpop.f32.mrf.mxu1  ;;  %v5585_v0 = vpop.f32.mrf.mxu0 }
 0xfdc   :  { %v5660_v33 = vadd.f32 %v5514_v10, %v15401_v15  ;;  %v6382_v20 = vmul.f32 -1.442695, %v5659_v48  ;;  %v5662_v63 = vadd.f32 %v5585_v0, %v12860_v60  ;;  %v6384_v6 = vmul.f32 -1.442695, %v5661_v13 }
 0xfde   :  { %v6383_v46 = vmul.f32 -1.442695, %v5660_v33  ;;  %6691 = vpow2.f32 %v6382_v20  ;;  %v6385_v10 = vmul.f32 -1.442695, %v5662_v63  ;;  %v15408_v63 = vld [vmem:[#allocation52_spill] sm:$0xff] }
 0xfe0   :  { %6693 = vpow2.f32 %v6383_v46 }
 0xfe1   :  { %6695 = vpow2.f32 %v6384_v6 }
 0xfe2   :  { %6697 = vpow2.f32 %v6385_v10 }
 0xfeb   :  { %v6692_v48 = vpop.eup %6691 }
 0xfec   :  { %v5675_v33 = vadd.f32 1.0, %v6692_v48 }
 0xfed   :  { %v6694_v20 = vpop.eup %6693 }
 0xfee   :  { %v5676_v46 = vadd.f32 1.0, %v6694_v20  ;;  %6699 = vrcp.f32 %v5675_v33  ;;  %v6696_v34 = vpop.eup %6695  ;;  %v15409_v20 = vld [vmem:[#allocation47_spill] sm:$0xff] }
 0xfef   :  { %v6698_v9 = vpop.eup %6697  ;;  %v5677_v15 = vadd.f32 1.0, %v6696_v34 }
 0xff0   :  { %6701 = vrcp.f32 %v5676_v46  ;;  %v5678_v5 = vadd.f32 1.0, %v6698_v9 }
 0xff1   :  { %6703 = vrcp.f32 %v5677_v15 }
 0xff2   :  { %6705 = vrcp.f32 %v5678_v5 }
 0xffb   :  { %v6700_v40 = vpop.eup %6699 }
 0xffd   :  { %v6702_v6 = vpop.eup %6701 }
 0xffe   :  { %v6704_v46 = vpop.eup %6703 }
 0xfff   :  { %v6706_v34 = vpop.eup %6705  ;;  %v5695_v9 = vsub.f32 1.0, %v6704_v46  ;;  %v5699_v15 = vmul.f32 %v6704_v46, %v12529_v37  ;;  %v6214_v37 = vld [vmem:[#allocation18 + $0xf0] sm:$0xff] }
0x1000   :  { %v15428_v46 = vld [vmem:[#allocation180_spill] sm:$0xff] }
0x1019   :  { %v5654_v45 = vpop.f32.mrf.mxu1 }
0x101a   :  { %v5687_v26 = vadd.f32 %v5654_v45, %v15063_v18  ;;  %v5696_v45 = vsub.f32 1.0, %v6706_v34 }
0x101b   :  { %v5656_v14 = vpop.f32.mrf.mxu1 }
0x101c   :  { %v5689_v0 = vmul.f32 %v6700_v40, %v5687_v26  ;;  %v5688_v13 = vadd.f32 %v5656_v14, %v15291_v35  ;;  %v5700_v14 = vmul.f32 %v6706_v34, %v12527_v25  ;;  %v6181_v25 = vld [vmem:[#allocation2] sm:$0xff] }
0x101d   :  { %v15429_v34 = vld [vmem:[#allocation181_spill] sm:$0xff] }
0x101e   :  { %v5691_v10 = vadd.f32 %v5689_v0, %v15408_v63  ;;  %v5690_v48 = vmul.f32 %v6702_v6, %v5688_v13  ;;  %v6199_v13 = vld [vmem:[#allocation18 + $0x78] sm:$0xff]  ;;  %v6197_v6 = vld [vmem:[#allocation18 + $0x68] sm:$0xff] }
0x1020   :  { %6707 = vtanh.f32 %v5691_v10  ;;  %v5692_v33 = vadd.f32 %v5690_v48, %v15409_v20  ;;  %v6212_v10 = vld [vmem:[#allocation18 + $0xe0] sm:$0xff] }
0x1021   :  { %v6196_v48 = vld [vmem:[#allocation18 + $0x60] sm:$0xff] }
0x1022   :  { %6709 = vtanh.f32 %v5692_v33  ;;  %v6210_v33 = vld [vmem:[#allocation18 + $0xd0] sm:$0xff] }
0x102d   :  { %v6708_v60 = vpop.eup %6707 }
0x102e   :  { %v5697_v18 = vmul.f32 %v6708_v60, %v5695_v9  ;;  %v6213_v60 = vld [vmem:[#allocation18 + $0xe8] sm:$0xff]  ;;  %v15430_v9 = vld [vmem:[#allocation182_spill] sm:$0xff] }
0x102f   :  { %v6710_v26 = vpop.eup %6709 }
0x1030   :  { %v5698_v40 = vmul.f32 %v6710_v26, %v5696_v45  ;;  %v12870_v5 = vadd.f32 %v5699_v15, %v5697_v18  ;;  %v6198_v18 = vld [vmem:[#allocation18 + $0x70] sm:$0xff] }
0x1032   :  { %v12872_v0 = vadd.f32 %v5700_v14, %v5698_v40  ;;  %5703 = vst [vmem:[#allocation2 + $0x18] sm:$0x3] %v12870_v5 }
0x1034   :  { %5704 = vst [vmem:[#allocation2 + $0x8] sm:$0x3] %v12872_v0  ;;  %5961 = vmatprep.mubr.f32.mxu0 %v12872_v0  ;;  %6032 = vmatprep.mubr.f32.mxu1 %v12872_v0 }
0x1035   :  { %5962 = vmatmul.mubr.f32.vlgmr.msra.gmra.mxu0 %v12870_v5  ;;  %6033 = vmatmul.mubr.f32.vlgmr.msra.gmra.mxu1 %v12870_v5 }
0x1036   :  { %6040 = vmatpush1.msra.mxu0 %v12531_v32  ;;  %6392 = vmatpush3.msra.mxu1 %v6199_v13  ;;  %v6211_v32 = vld [vmem:[#allocation18 + $0xd8] sm:$0xff]  ;;  %v15431_v13 = vld [vmem:[#allocation44_spill] sm:$0xff] }
0x1037   :  { %6041 = vmatprep.subr.mxu0 %v12535_v58  ;;  %6103 = vmatprep.mubr.f32.mxu0 %v12872_v0  ;;  %v6195_v58 = vld [vmem:[#allocation18 + $0x58] sm:$0xff] }
0x1038   :  { %6393 = vmatprep.subr.mxu1 %v6214_v37  ;;  %6287 = vmatprep.mubr.f32.mxu1 %v6181_v25 }
0x1039   :  { %6042 = vmatpush1.msra.mxu0 %v12539_v21  ;;  %6394 = vmatpush3.msra.mxu1 %v6198_v18  ;;  %v6194_v21 = vld [vmem:[#allocation18 + $0x50] sm:$0xff]  ;;  %v15432_v18 = vld [vmem:[#allocation39_spill] sm:$0xff] }
0x103a   :  { %6043 = vmatprep.subr.mxu0 %v12543_v30  ;;  %6395 = vmatprep.subr.mxu1 %v6213_v60  ;;  %v6209_v30 = vld [vmem:[#allocation18 + $0xc8] sm:$0xff] }
0x103b   :  { %6044 = vmatpush1.msra.mxu0 %v12546_v38  ;;  %6396 = vmatpush3.msra.mxu1 %v6197_v6  ;;  %v6193_v38 = vld [vmem:[#allocation18 + $0x48] sm:$0xff] }
0x103c   :  { %6045 = vmatprep.subr.mxu0 %v12550_v29  ;;  %6397 = vmatprep.subr.mxu1 %v6212_v10  ;;  %v6208_v29 = vld [vmem:[#allocation18 + $0xc0] sm:$0xff] }
0x103d   :  { %6046 = vmatpush1.msra.mxu0 %v12554_v54  ;;  %6398 = vmatpush3.msra.mxu1 %v6196_v48  ;;  %v6192_v54 = vld [vmem:[#allocation18 + $0x40] sm:$0xff] }
0x103e   :  { %6047 = vmatprep.subr.mxu0 %v12558_v49  ;;  %6399 = vmatprep.subr.mxu1 %v6211_v32  ;;  %v6207_v49 = vld [vmem:[#allocation18 + $0xb8] sm:$0xff] }
0x103f   :  { %6048 = vmatpush1.msra.mxu0 %v12562_v47  ;;  %6400 = vmatpush3.msra.mxu1 %v6195_v58  ;;  %v6191_v47 = vld [vmem:[#allocation18 + $0x38] sm:$0xff] }
0x1040   :  { %6049 = vmatprep.subr.mxu0 %v12566_v3  ;;  %6401 = vmatprep.subr.mxu1 %v6210_v33  ;;  %v6206_v3 = vld [vmem:[#allocation18 + $0xb0] sm:$0xff]  ;;  %v12950_v32 = vld [vmem:[%s12981_s13] ss:$0 sm:$0xff]  ;;  %s7564_s13 = smov [#allocation20]  }
0x1041   :  { %6050 = vmatpush1.msra.mxu0 %v12570_v43  ;;  %6402 = vmatpush3.msra.mxu1 %v6194_v21  ;;  %v6190_v43 = vld [vmem:[#allocation18 + $0x30] sm:$0xff]  ;;  %s6305_s20 = sshll.u32 %s7564_s13, 4  ;;  %s6306_s20 = int_to_ptr.vmem [resolvable:$true] %s6305_s20 }
0x1042   :  { %6051 = vmatprep.subr.mxu0 %v12574_v44  ;;  %6403 = vmatprep.subr.mxu1 %v6209_v30  ;;  %v6205_v44 = vld [vmem:[#allocation18 + $0xa8] sm:$0xff]  ;;  %s7513_s22 = scalar_lea.vmem %s6306_s20, 256  ;;  %p7518_p9 = scmp.lt.s32.totalorder %s6306_s20, %s6306_s20 }
0x1043   :  { %6052 = vmatpush1.msra.mxu0 %v12578_v22  ;;  %6404 = vmatpush3.msra.mxu1 %v6193_v38  ;;  %v6189_v22 = vld [vmem:[#allocation18 + $0x28] sm:$0xff]  ;;  %p7514_p8 = scmp.ne.s32.totalorder %s6306_s20, %s7513_s22  ;;  %p7519_p10 = scmp.lt.s32.totalorder %s7513_s22, %s7513_s22 }
0x1044   :  { %6053 = vmatprep.subr.mxu0 %v12582_v7  ;;  %6405 = vmatprep.subr.mxu1 %v6208_v29  ;;  %v6204_v7 = vld [vmem:[#allocation18 + $0xa0] sm:$0xff]  ;;  %v15433_v29 = vld [vmem:[#allocation183_spill] sm:$0xff] }
0x1045   :  { %6054 = vmatpush1.msra.mxu0 %v12586_v62  ;;  %6406 = vmatpush3.msra.mxu1 %v6192_v54  ;;  %v6188_v62 = vld [vmem:[#allocation18 + $0x20] sm:$0xff]  ;;  %p7520_p11 = por %p7519_p10, %p7518_p9 }
0x1046   :  { %6055 = vmatprep.subr.mxu0 %v12590_v28  ;;  %6407 = vmatprep.subr.mxu1 %v6207_v49  ;;  %v6203_v28 = vld [vmem:[#allocation18 + $0x98] sm:$0xff]  ;;  %v15434_v49 = vld [vmem:[#allocation184_spill] sm:$0xff] }
0x1047   :  { %6056 = vmatpush1.msra.mxu0 %v12594_v42  ;;  %6408 = vmatpush3.msra.mxu1 %v6191_v47  ;;  %v6187_v42 = vld [vmem:[#allocation18 + $0x18] sm:$0xff]  ;;  %p7521_p12 = pnand %p7520_p11, %p7514_p8 }
0x1048   :  { %6057 = vmatprep.subr.mxu0 %v12598_v31  ;;  %6409 = vmatprep.subr.mxu1 %v6206_v3  ;;  %v6202_v31 = vld [vmem:[#allocation18 + $0x90] sm:$0xff] }
0x1049   :  { %6058 = vmatpush1.msra.mxu0 %v12602_v53  ;;  %6410 = vmatpush3.msra.mxu1 %v6190_v43  ;;  %v6186_v53 = vld [vmem:[#allocation18 + $0x10] sm:$0xff] }
0x104a   :  { %6059 = vmatprep.subr.mxu0 %v12606_v36  ;;  %6411 = vmatprep.subr.mxu1 %v6205_v44  ;;  %v6201_v36 = vld [vmem:[#allocation18 + $0x88] sm:$0xff] }
0x104b   :  { %6060 = vmatpush1.msra.mxu0 %v12610_v12  ;;  %6412 = vmatpush3.msra.mxu1 %v6189_v22  ;;  %v6185_v12 = vld [vmem:[#allocation18 + $0x8] sm:$0xff] }
0x104c   :  { %6061 = vmatprep.subr.mxu0 %v12614_v11  ;;  %6413 = vmatprep.subr.mxu1 %v6204_v7  ;;  %v6200_v11 = vld [vmem:[#allocation18 + $0x80] sm:$0xff] }
0x104d   :  { %6062 = vmatpush1.msra.mxu0 %v12618_v51  ;;  %6414 = vmatpush3.msra.mxu1 %v6188_v62  ;;  %v6184_v51 = vld [vmem:[#allocation18] sm:$0xff] }
0x104e   :  { %6063 = vmatprep.subr.mxu0 %v12622_v19  ;;  %6415 = vmatprep.subr.mxu1 %v6203_v28  ;;  %v6180_v19 = vld [vmem:[#allocation2 + $0x10] sm:$0xff] }
0x104f   :  { %6064 = vmatpush1.msra.mxu0 %v12626_v1  ;;  %6416 = vmatpush3.msra.mxu1 %v6187_v42  ;;  %v15410_v1 = vld [vmem:[#allocation147_spill] sm:$0xff] }
0x1050   :  { %6065 = vmatprep.subr.mxu0 %v12630_v52  ;;  %6417 = vmatprep.subr.mxu1 %v6202_v31  ;;  %v15411_v52 = vld [vmem:[#allocation148_spill] sm:$0xff] }
0x1051   :  { %6066 = vmatpush1.msra.mxu0 %v12634_v50  ;;  %6418 = vmatpush3.msra.mxu1 %v6186_v53  ;;  %v15412_v50 = vld [vmem:[#allocation149_spill] sm:$0xff] }
0x1052   :  { %6067 = vmatprep.subr.mxu0 %v12638_v17  ;;  %6419 = vmatprep.subr.mxu1 %v6201_v36  ;;  %v15413_v17 = vld [vmem:[#allocation150_spill] sm:$0xff]  ;;  %v15435_v36 = vld [vmem:[#allocation145_spill] sm:$0xff] }
0x1053   :  { %6068 = vmatpush1.msra.mxu0 %v12642_v57  ;;  %6420 = vmatpush3.msra.mxu1 %v6185_v12  ;;  %v15414_v57 = vld [vmem:[#allocation151_spill] sm:$0xff] }
0x1054   :  { %6069 = vmatprep.subr.mxu0 %v12646_v16  ;;  %6421 = vmatprep.subr.mxu1 %v6200_v11  ;;  %v15415_v16 = vld [vmem:[#allocation152_spill] sm:$0xff] }
0x1055   :  { %6070 = vmatpush1.msra.mxu0 %v12650_v41  ;;  %6422 = vmatpush3.msra.mxu1 %v6184_v51  ;;  %v15416_v41 = vld [vmem:[#allocation153_spill] sm:$0xff] }
0x1056   :  { %6071 = vmatprep.subr.mxu0 %v12654_v23  ;;  %6288 = vmatmul.mubr.f32.vlgmr.msra.gmra.mxu1 %v6180_v19  ;;  %v15417_v23 = vld [vmem:[#allocation154_spill] sm:$0xff] }
0x1057   :  { %6072 = vmatpush2.msra.mxu0 %v12658_v24  ;;  %v15418_v24 = vld [vmem:[#allocation155_spill] sm:$0xff] }
0x1058   :  { %6073 = vmatprep.subr.mxu0 %v12662_v8  ;;  %v15419_v8 = vld [vmem:[#allocation156_spill] sm:$0xff] }
0x1059   :  { %6074 = vmatpush2.msra.mxu0 %v12666_v2  ;;  %v15420_v2 = vld [vmem:[#allocation157_spill] sm:$0xff] }
0x105a   :  { %6075 = vmatprep.subr.mxu0 %v12670_v56  ;;  %v15421_v56 = vld [vmem:[#allocation158_spill] sm:$0xff] }
0x105b   :  { %6076 = vmatpush2.msra.mxu0 %v12674_v61  ;;  %v15422_v61 = vld [vmem:[#allocation159_spill] sm:$0xff] }
0x105c   :  { %6077 = vmatprep.subr.mxu0 %v12678_v55  ;;  %v15423_v55 = vld [vmem:[#allocation203_spill] sm:$0xff] }
0x105d   :  { %6078 = vmatpush2.msra.mxu0 %v12682_v27  ;;  %v15424_v27 = vld [vmem:[#allocation34_spill] sm:$0xff] }
0x105e   :  { %6079 = vmatprep.subr.mxu0 %v12686_v4  ;;  %v15425_v4 = vld [vmem:[#allocation31_spill] sm:$0xff] }
0x105f   :  { %6080 = vmatpush2.msra.mxu0 %v12690_v59  ;;  %v15426_v59 = vld [vmem:[#allocation56_spill] sm:$0xff] }
0x1060   :  { %6081 = vmatprep.subr.mxu0 %v12694_v39  ;;  %v15427_v39 = vld [vmem:[#allocation179_spill] sm:$0xff] }
0x1061   :  { %6082 = vmatpush2.msra.mxu0 %v15410_v1 }
0x1062   :  { %6083 = vmatprep.subr.mxu0 %v15411_v52 }
0x1063   :  { %6084 = vmatpush2.msra.mxu0 %v15412_v50 }
0x1064   :  { %6085 = vmatprep.subr.mxu0 %v15413_v17 }
0x1065   :  { %6086 = vmatpush2.msra.mxu0 %v15414_v57 }
0x1066   :  { %6087 = vmatprep.subr.mxu0 %v15415_v16 }
0x1067   :  { %6088 = vmatpush2.msra.mxu0 %v15416_v41 }
0x1068   :  { %6089 = vmatprep.subr.mxu0 %v15417_v23 }
0x1069   :  { %6090 = vmatpush2.msra.mxu0 %v15418_v24 }
0x106a   :  { %6091 = vmatprep.subr.mxu0 %v15419_v8 }
0x106b   :  { %6092 = vmatpush2.msra.mxu0 %v15420_v2  ;;  %v6170_v2 = vrot.slane %v12870_v5, 6 }
0x106c   :  { %6093 = vmatprep.subr.mxu0 %v15421_v56 }
0x106d   :  { %6094 = vmatpush2.msra.mxu0 %v15422_v61 }
0x106e   :  { %6095 = vmatprep.subr.mxu0 %v15423_v55  ;;  %v6171_v55 = vrot.slane %v12872_v0, 6 }
0x106f   :  { %6096 = vmatpush2.msra.mxu0 %v15424_v27 }
0x1070   :  { %6097 = vmatprep.subr.mxu0 %v15425_v4 }
0x1071   :  { %6098 = vmatpush2.msra.mxu0 %v15426_v59 }
0x1072   :  { %6099 = vmatprep.subr.mxu0 %v15427_v39 }
0x1073   :  { %6100 = vmatpush2.msra.mxu0 %v15428_v46 }
0x1074   :  { %6101 = vmatprep.subr.mxu0 %v15429_v34 }
0x1075   :  { %6102 = vmatpush2.msra.mxu0 %v15430_v9 }
0x1076   :  { %6104 = vmatmul.mubr.f32.vlgmr.msra.gmra.mxu0 %v12870_v5 }
0x10f5   :  { %v5963_v45 = vpop.f32.mrf.mxu0  ;;  %v6034_v14 = vpop.f32.mrf.mxu1 }
0x10f6   :  { %v6114_v26 = vrot.slane %v5963_v45, 6  ;;  %v6116_v21 = vrot.slane %v6034_v14, 6 }
0x10f7   :  { %v5965_v15 = vpop.f32.mrf.mxu0  ;;  %v6036_v60 = vpop.f32.mrf.mxu1 }
0x10f8   :  { %v6115_v40 = vrot.slane %v5965_v15, 6  ;;  %v6122_v37 = vadd.f32 %v6114_v26, %v15431_v13  ;;  %v6117_v38 = vrot.slane %v6036_v60, 6  ;;  %v6124_v54 = vadd.f32 %v6116_v21, %v15433_v29 }
0x10fa   :  { %v6123_v25 = vadd.f32 %v6115_v40, %v15432_v18  ;;  %v6386_v6 = vmul.f32 -1.442695, %v6122_v37  ;;  %v6125_v47 = vadd.f32 %v6117_v38, %v15434_v49  ;;  %v6388_v3 = vmul.f32 -1.442695, %v6124_v54 }
0x10fc   :  { %v6387_v48 = vmul.f32 -1.442695, %v6123_v25  ;;  %6711 = vpow2.f32 %v6386_v6  ;;  %v6389_v43 = vmul.f32 -1.442695, %v6125_v47 }
0x10fe   :  { %6713 = vpow2.f32 %v6387_v48 }
0x10ff   :  { %6715 = vpow2.f32 %v6388_v3 }
0x1100   :  { %6717 = vpow2.f32 %v6389_v43 }
0x1109   :  { %v6712_v44 = vpop.eup %6711 }
0x110a   :  { %v6138_v7 = vadd.f32 1.0, %v6712_v44 }
0x110b   :  { %v6714_v22 = vpop.eup %6713 }
0x110c   :  { %v6139_v62 = vadd.f32 1.0, %v6714_v22  ;;  %6719 = vrcp.f32 %v6138_v7  ;;  %v6716_v28 = vpop.eup %6715 }
0x110d   :  { %v6718_v42 = vpop.eup %6717  ;;  %v6140_v53 = vadd.f32 1.0, %v6716_v28 }
0x110e   :  { %6721 = vrcp.f32 %v6139_v62  ;;  %v6141_v51 = vadd.f32 1.0, %v6718_v42 }
0x110f   :  { %6723 = vrcp.f32 %v6140_v53 }
0x1110   :  { %6725 = vrcp.f32 %v6141_v51 }
0x1116   :  { %v6423_v10 = vpop.f32.mrf.mxu1 }
0x1118   :  { %v6424_v58 = vpop.f32.mrf.mxu1 }
0x1119   :  { %v6425_v33 = vadd.f32 %v6424_v58, %v6423_v10  ;;  %v6720_v52 = vpop.eup %6719 }
0x111b   :  { %v6290_v30 = vadd.f32 %v6425_v33, %v12950_v32  ;;  %v6722_v57 = vpop.eup %6721 }
0x111c   :  { %v6724_v24 = vpop.eup %6723 }
0x111d   :  { %6298 = vst [vmem:[#allocation20] sm:$0xff] %v6290_v30  ;;  %v6726_v8 = vpop.eup %6725  ;;  %v6164_v56 = vsub.f32 1.0, %v6724_v24 }
0x111e   :  { %v6165_v4 = vsub.f32 1.0, %v6726_v8  ;;  %v6175_v39 = vmul.f32 %v6726_v8, %v6171_v55 }
0x1136   :  { %v6105_v31 = vpop.f32.mrf.mxu0 }
0x1137   :  { %v6150_v12 = vadd.f32 %v6105_v31, %v15435_v36 }
0x1138   :  { %v6107_v11 = vpop.f32.mrf.mxu0 }
0x1139   :  { %v6154_v19 = vrot.slane %v6150_v12, 6  ;;  %v6151_v1 = vadd.f32 %v6107_v11, %v15291_v35  ;;  %v6174_v35 = vmul.f32 %v6724_v24, %v6170_v2 }
0x113b   :  { %v6158_v50 = vmul.f32 %v6720_v52, %v6154_v19  ;;  %v6155_v17 = vrot.slane %v6151_v1, 6 }
0x113d   :  { %v6160_v16 = vadd.f32 %v6158_v50, %v15408_v63  ;;  %v6159_v41 = vmul.f32 %v6722_v57, %v6155_v17 }
0x113f   :  { %6727 = vtanh.f32 %v6160_v16  ;;  %v6161_v23 = vadd.f32 %v6159_v41, %v15409_v20 }
0x1141   :  { %6729 = vtanh.f32 %v6161_v23 }
0x114c   :  { %v6728_v61 = vpop.eup %6727 }
0x114d   :  { %v6166_v27 = vmul.f32 %v6728_v61, %v6164_v56 }
0x114e   :  { %v6730_v59 = vpop.eup %6729 }
0x114f   :  { %v6176_v46 = vadd.f32 %v6174_v35, %v6166_v27  ;;  %v6167_v63 = vmul.f32 %v6730_v59, %v6165_v4 }
0x1151   :  { %6178 = vst [vmem:[#allocation2 + $0x18] sm:$0xc] %v6176_v46  ;;  %v6177_v34 = vadd.f32 %v6175_v39, %v6167_v63 }
0x1153   :  { %6179 = vst [vmem:[#allocation2 + $0x8] sm:$0xc] %v6177_v34 }
0x1158   :  { %v6182_v9 = vld [vmem:[#allocation2 + $0x18] sm:$0xf] }
0x115a   :  { %v6183_v20 = vld [vmem:[#allocation2 + $0x8] sm:$0xf] }
0x115b   :  { %6292 = vmatprep.mubr.f32.mxu1 %v6183_v20 }
0x115c   :  { %6293 = vmatmul.mubr.f32.gmra.mxu1 %v6182_v9 }
0x121c   :  { %v6426_v45 = vpop.f32.mrf.mxu1 }
0x121e   :  { %v6427_v5 = vpop.f32.mrf.mxu1 }
0x121f   :  { %v6428_v15 = vadd.f32 %v6427_v5, %v6426_v45 }
0x1221   :  { %v6295_v0 = vadd.f32 %v6428_v15, %v12950_v32 }
0x1223   :  { %6299 = vst [vmem:[#allocation20 + $0x8] sm:$0xf] %v6295_v0 }
0x1224   :  { %7524 = shalt.err (!%p7521_p12)
}
0x1225   :  { %6311 = dma.vmem_to_hbm [thread:$0]  %s6306_s20, 256, %s12982_s14, [#allocation5], %s7548_s16, %s7548_s16, %s7549_s17  }
0x1226   :  { %7545 = dma.done.wait [#allocation5], 256  }
0x1227   :  { %7546 = vsyncadd [#allocation5], 4294967040 }
0x1228   :  { %6315 = vsyncpa [#allocation4], 1 }
0x1229   :  { %6316 = vsyncpa [#allocation7], 1 }
0x122a   :  { %6317 = vsyncpa [#allocation10], 1 }
0x122b   :  { %6318 = vsyncpa [#allocation13], 1 }
0x122c   :  { %6319 = vsyncpa [#allocation16], 1 }
0x122d   :  { %6320 = vsyncpa [#allocation19], 1 }
0x122e   :  { %6321 = vsyncpa [#allocation5], 1 }

</bundles_post_ra>
